<compile_context>
chip_gen: v7x
topology: tpu7x:2x2x1
jax: 0.10.0
libtpu: 0.0.40
codegen_flags: <defaults>
</compile_context>

<pallas_src>
import functools

import jax
import jax.numpy as jnp
import numpy as np
from jax.experimental import pallas as pl
from jax.experimental.pallas import tpu as pltpu

D_MODEL = 1024
D_HEAD = D_MODEL // 8   # 128
HIDDEN = 512


def stem_attn_mlp_kernel(bblk, xd_ref, xvbo_ref,
                         wqk_d_ref, bqk_d_ref, wv_d_ref, bv_d_ref,
                         wqk_v_ref, bqk_v_ref, wv_v_ref, bv_v_ref,
                         w1_ref, b1_ref, w2_ref, b2_ref,
                         out_ref):
    """Processes `bblk` batch elements per grid step (grid = (B/bblk,))."""
    t = xd_ref.shape[1] // bblk          # tokens per stem
    dh = wqk_d_ref.shape[1] // 2         # d_model // 8 = 128

    xd = xd_ref[0]      # (bblk*t,  D) bf16  drums
    xv = xvbo_ref[0]    # (bblk*3t, D) bf16  vocals|bass|other (share the V_* weights)

    def proj(x, w_ref, b_ref):
        return jnp.dot(x, w_ref[...], preferred_element_type=jnp.float32) + b_ref[...]

    # Fused Wq|Wk: one (D, 256) matmul per stem group fills the 256-wide MXU.
    qk_d = proj(xd, wqk_d_ref, bqk_d_ref)     # (bblk*t,  2*dh) f32
    v_d = proj(xd, wv_d_ref, bv_d_ref)        # (bblk*t,  D)    f32
    qk_v = proj(xv, wqk_v_ref, bqk_v_ref)     # (bblk*3t, 2*dh) f32
    v_v = proj(xv, wv_v_ref, bv_v_ref)        # (bblk*3t, D)    f32

    def split_batch(a, ntok):
        return a.reshape(bblk, ntok, a.shape[-1])

    # Token order per batch element is [drums, vocals, bass, other] (matches torch.cat order).
    q = jnp.concatenate([split_batch(qk_d[:, :dh], t),
                         split_batch(qk_v[:, :dh], 3 * t)], axis=1).astype(jnp.bfloat16)
    k = jnp.concatenate([split_batch(qk_d[:, dh:], t),
                         split_batch(qk_v[:, dh:], 3 * t)], axis=1).astype(jnp.bfloat16)
    v = jnp.concatenate([split_batch(v_d, t),
                         split_batch(v_v, 3 * t)], axis=1)             # (bblk, 4t, D) f32

    # scores = q @ k^T / sqrt(d_model): the 1/sqrt(d_model) scale was folded into Wq/bq in the
    # wrapper.  bf16 operands, f32 accumulation; contraction over the LAST dims (no k transpose).
    scores = jax.lax.dot_general(
        q, k, dimension_numbers=(((2,), (2,)), ((0,), (0,))),
        preferred_element_type=jnp.float32)                            # (bblk, 4t, 4t)

    # Softmax over the last axis (f32); dropout(p=0.1) on scores is identity in eval mode.
    m = jnp.max(scores, axis=-1, keepdims=True)
    e = jnp.exp(scores - m)
    attn = e * pl.reciprocal(jnp.sum(e, axis=-1, keepdims=True), approx=True)

    # Fused token-mean:  mean_i (attn @ v)[i] == colmean(attn) @ v  -> the full (bblk,4t,D)
    # context tensor is never materialized.  Tiny batched matvec, kept in f32 for accuracy.
    colmean = jnp.mean(attn, axis=1, keepdims=True)                    # (bblk, 1, 4t)
    pooled = jax.lax.dot_general(
        colmean, v, dimension_numbers=(((2,), (1,)), ((0,), (0,))),
        preferred_element_type=jnp.float32)[:, 0, :]                   # (bblk, D)

    # MLP head: Linear(1024,512) -> [Dropout] -> ReLU -> Linear(512,C) -> [Dropout] -> ReLU
    h = jnp.maximum(proj(pooled.astype(jnp.bfloat16), w1_ref, b1_ref), 0.0)
    y = jnp.maximum(proj(h.astype(jnp.bfloat16), w2_ref, b2_ref), 0.0)
    out_ref[0] = y                                                     # (bblk, Cpad)


def downstream_4stems_mlp(stems, params, *, bblk_target=16):
    """stems: dict of 'drums','vocals','bass','other', each (B, T, 1024) f32."""
    drums = stems['drums']
    B, T, D = drums.shape
    assert D == D_MODEL
    C = params['w2'].shape[1]
    c_pad = ((C + 127) // 128) * 128          # lane-dense output columns

    # Batch tile: large enough to fill the MXU rows, but keep >= 2 grid steps so both v7x
    # TensorCores get work (neutral on v5e/v6e).
    bblk = 1 if B < 2 else max(1, min(bblk_target, B // 2))
    nb = pl.cdiv(B, bblk)
    b_pad = nb * bblk

    f32, bf16 = jnp.float32, jnp.bfloat16
    scale = 1.0 / (D_MODEL ** 0.5)

    # Fold 1/sqrt(d_model) into Wq/bq; fuse Wq|Wk into one (1024,256) weight per stem group.
    # Matmul weights go to the MXU as bf16; biases stay f32.
    wqk_d = jnp.concatenate([params['wq_d'] * scale, params['wk_d']], axis=1).astype(bf16)
    bqk_d = jnp.concatenate([params['bq_d'] * scale, params['bk_d']], axis=1).astype(f32)
    wqk_v = jnp.concatenate([params['wq_v'] * scale, params['wk_v']], axis=1).astype(bf16)
    bqk_v = jnp.concatenate([params['bq_v'] * scale, params['bk_v']], axis=1).astype(f32)
    wv_d, bv_d = params['wv_d'].astype(bf16), params['bv_d'].astype(f32)
    wv_v, bv_v = params['wv_v'].astype(bf16), params['bv_v'].astype(f32)
    w1, b1 = params['w1'].astype(bf16), params['b1'].astype(f32)
    # Lane-dense output: pad classifier columns to a multiple of 128 (sliced off after the call).
    w2p = jnp.zeros((HIDDEN, c_pad), f32).at[:, :C].set(params['w2']).astype(bf16)
    b2p = jnp.zeros((1, c_pad), f32).at[:, :C].set(params['b2'])

    def prep(x, ntok):
        x = x.astype(bf16)
        if b_pad > B:
            x = jnp.pad(x, ((0, b_pad - B), (0, 0), (0, 0)))
        return x.reshape(nb, bblk * ntok, D)

    # Stems concatenated once in HBM: drums alone (D_* weights); vocals|bass|other share V_*.
    xd = prep(drums, T)
    xvbo = prep(jnp.concatenate([stems['vocals'], stems['bass'], stems['other']], axis=1), 3 * T)

    weights = (wqk_d, bqk_d, wv_d, bv_d, wqk_v, bqk_v, wv_v, bv_v, w1, b1, w2p, b2p)

    def wspec(a):
        nd = a.ndim
        return pl.BlockSpec(a.shape, lambda b, _nd=nd: (0,) * _nd)   # resident across grid steps

    in_specs = ([pl.BlockSpec((1, bblk * T, D), lambda b: (b, 0, 0)),
                 pl.BlockSpec((1, bblk * 3 * T, D), lambda b: (b, 0, 0))]
                + [wspec(a) for a in weights])
    out_spec = pl.BlockSpec((1, bblk, c_pad), lambda b: (b, 0, 0))

    out = pl.pallas_call(
        functools.partial(stem_attn_mlp_kernel, bblk),
        out_shape=jax.ShapeDtypeStruct((nb, bblk, c_pad), jnp.float32),
        grid=(nb,),
        in_specs=in_specs,
        out_specs=out_spec,
        compiler_params=pltpu.CompilerParams(
            dimension_semantics=("parallel",),
            vmem_limit_bytes=48 * 1024 * 1024),
    )(xd, xvbo, *weights)

    return out.reshape(b_pad, c_pad)[:B, :C]


# ------------------------- parameter init (deterministic) -------------------------

def xavier_normal_t(key, in_f, out_f):
    """Xavier-normal init, stored transposed as (in, out)."""
    std = (2.0 / (in_f + out_f)) ** 0.5
    return jax.random.normal(key, (in_f, out_f), jnp.float32) * std


def default_bias(key, in_f, out_f):
    """PyTorch nn.Linear default bias init: U(-1/sqrt(fan_in), 1/sqrt(fan_in)), shape (1, out)."""
    bound = 1.0 / (in_f ** 0.5)
    return jax.random.uniform(key, (1, out_f), jnp.float32, -bound, bound)


def make_params(key, n_class):
    ks = jax.random.split(key, 16)
    p = {}
    p['wq_d'] = xavier_normal_t(ks[0], D_MODEL, D_HEAD)
    p['bq_d'] = default_bias(ks[1], D_MODEL, D_HEAD)
    p['wk_d'] = xavier_normal_t(ks[2], D_MODEL, D_HEAD)
    p['bk_d'] = default_bias(ks[3], D_MODEL, D_HEAD)
    p['wv_d'] = xavier_normal_t(ks[4], D_MODEL, D_MODEL)
    p['bv_d'] = default_bias(ks[5], D_MODEL, D_MODEL)
    p['wq_v'] = xavier_normal_t(ks[6], D_MODEL, D_HEAD)
    p['bq_v'] = default_bias(ks[7], D_MODEL, D_HEAD)
    p['wk_v'] = xavier_normal_t(ks[8], D_MODEL, D_HEAD)
    p['bk_v'] = default_bias(ks[9], D_MODEL, D_HEAD)
    p['wv_v'] = xavier_normal_t(ks[10], D_MODEL, D_MODEL)
    p['bv_v'] = default_bias(ks[11], D_MODEL, D_MODEL)
    p['w1'] = xavier_normal_t(ks[12], D_MODEL, HIDDEN)
    p['b1'] = default_bias(ks[13], D_MODEL, HIDDEN)
    p['w2'] = xavier_normal_t(ks[14], HIDDEN, n_class)
    p['b2'] = default_bias(ks[15], HIDDEN, n_class)
    return p


# ------------------------------ pure-JAX reference ------------------------------

def reference(stems, params):
    def lin(x, w, b):
        return x @ w + b

    d, vo, ba, ot = stems['drums'], stems['vocals'], stems['bass'], stems['other']
    Dq = lin(d, params['wq_d'], params['bq_d'])
    Dk = lin(d, params['wk_d'], params['bk_d'])
    Dv = lin(d, params['wv_d'], params['bv_d'])
    Vq = lin(vo, params['wq_v'], params['bq_v'])
    Vk = lin(vo, params['wk_v'], params['bk_v'])
    Vv = lin(vo, params['wv_v'], params['bv_v'])
    Bq = lin(ba, params['wq_v'], params['bq_v'])   # bass uses V_* (as in source)
    Bk = lin(ba, params['wk_v'], params['bk_v'])
    Bv = lin(ba, params['wv_v'], params['bv_v'])
    Oq = lin(ot, params['wq_v'], params['bq_v'])   # other uses V_* (as in source)
    Ok = lin(ot, params['wk_v'], params['bk_v'])
    Ov = lin(ot, params['wv_v'], params['bv_v'])

    q = jnp.concatenate([Dq, Vq, Bq, Oq], axis=-2)
    k = jnp.concatenate([Dk, Vk, Bk, Ok], axis=-2)
    v = jnp.concatenate([Dv, Vv, Bv, Ov], axis=-2)

    scores = jnp.matmul(q, jnp.swapaxes(k, -1, -2)) / (D_MODEL ** 0.5)
    attn = jax.nn.softmax(scores, axis=-1)
    out = jnp.matmul(attn, v).mean(axis=-2)          # (B, 1024)

    h = jax.nn.relu(out @ params['w1'] + params['b1'])
    y = jax.nn.relu(h @ params['w2'] + params['b2'])
    return y


if __name__ == "__main__":
    B, T, n_class = 2, 8, 16
    key = jax.random.PRNGKey(0)
    kp, kd, kv, kb, ko = jax.random.split(key, 5)

    params = make_params(kp, n_class)
    stems = {
        'drums':  jax.random.normal(kd, (B, T, D_MODEL), jnp.float32),
        'vocals': jax.random.normal(kv, (B, T, D_MODEL), jnp.float32),
        'bass':   jax.random.normal(kb, (B, T, D_MODEL), jnp.float32),
        'other':  jax.random.normal(ko, (B, T, D_MODEL), jnp.float32),
    }

    out = jax.block_until_ready(downstream_4stems_mlp(stems, params))
    ref = jax.block_until_ready(reference(stems, params))
    assert out.shape == (B, n_class), out.shape
    np.testing.assert_allclose(np.asarray(out), np.asarray(ref), rtol=2e-2, atol=2e-2)

    print("KERNEL_OK")
</pallas_src>

<mosaic_0001>
module attributes {stable_mosaic.version = 11 : i64} {
  func.func @stem_attn_mlp_kernel(%arg0: i32, %arg1: memref<1x8x1024xbf16, #tpu.memory_space<vmem>>, %arg2: memref<1x24x1024xbf16, #tpu.memory_space<vmem>>, %arg3: memref<1024x256xbf16, #tpu.memory_space<vmem>>, %arg4: memref<1x256xf32, #tpu.memory_space<vmem>>, %arg5: memref<1024x1024xbf16, #tpu.memory_space<vmem>>, %arg6: memref<1x1024xf32, #tpu.memory_space<vmem>>, %arg7: memref<1024x256xbf16, #tpu.memory_space<vmem>>, %arg8: memref<1x256xf32, #tpu.memory_space<vmem>>, %arg9: memref<1024x1024xbf16, #tpu.memory_space<vmem>>, %arg10: memref<1x1024xf32, #tpu.memory_space<vmem>>, %arg11: memref<1024x512xbf16, #tpu.memory_space<vmem>>, %arg12: memref<1x512xf32, #tpu.memory_space<vmem>>, %arg13: memref<512x128xbf16, #tpu.memory_space<vmem>>, %arg14: memref<1x128xf32, #tpu.memory_space<vmem>>, %arg15: memref<1x1x128xf32, #tpu.memory_space<vmem>>) attributes {dimension_semantics = [#tpu.dimension_semantics<parallel>], iteration_bounds = array<i64: 2>, scalar_prefetch = 0 : i64, scratch_operands = 0 : i64, tpu.core_type = #tpu.core_type<tc>, window_params = [{transform_indices = @transform_0, window_bounds = array<i64: 1, 8, 1024>}, {transform_indices = @transform_1, window_bounds = array<i64: 1, 24, 1024>}, {pipeline_mode = #tpu.pipeline_mode<synchronous>, transform_indices = @transform_2, window_bounds = array<i64: 1024, 256>}, {pipeline_mode = #tpu.pipeline_mode<synchronous>, transform_indices = @transform_3, window_bounds = array<i64: 1, 256>}, {pipeline_mode = #tpu.pipeline_mode<synchronous>, transform_indices = @transform_4, window_bounds = array<i64: 1024, 1024>}, {pipeline_mode = #tpu.pipeline_mode<synchronous>, transform_indices = @transform_5, window_bounds = array<i64: 1, 1024>}, {pipeline_mode = #tpu.pipeline_mode<synchronous>, transform_indices = @transform_6, window_bounds = array<i64: 1024, 256>}, {pipeline_mode = #tpu.pipeline_mode<synchronous>, transform_indices = @transform_7, window_bounds = array<i64: 1, 256>}, {pipeline_mode = #tpu.pipeline_mode<synchronous>, transform_indices = @transform_8, window_bounds = array<i64: 1024, 1024>}, {pipeline_mode = #tpu.pipeline_mode<synchronous>, transform_indices = @transform_9, window_bounds = array<i64: 1, 1024>}, {pipeline_mode = #tpu.pipeline_mode<synchronous>, transform_indices = @transform_10, window_bounds = array<i64: 1024, 512>}, {pipeline_mode = #tpu.pipeline_mode<synchronous>, transform_indices = @transform_11, window_bounds = array<i64: 1, 512>}, {pipeline_mode = #tpu.pipeline_mode<synchronous>, transform_indices = @transform_12, window_bounds = array<i64: 512, 128>}, {pipeline_mode = #tpu.pipeline_mode<synchronous>, transform_indices = @transform_13, window_bounds = array<i64: 1, 128>}, {transform_indices = @transform_14, window_bounds = array<i64: 1, 1, 128>}]} {
    %c0 = arith.constant 0 : index
    %c0_0 = arith.constant 0 : index
    %c0_1 = arith.constant 0 : index
    %0 = vector.load %arg1[%c0, %c0_0, %c0_1] : memref<1x8x1024xbf16, #tpu.memory_space<vmem>>, vector<1x8x1024xbf16>
    %1 = vector.shape_cast %0 : vector<1x8x1024xbf16> to vector<8x1024xbf16>
    %c0_2 = arith.constant 0 : index
    %c0_3 = arith.constant 0 : index
    %c0_4 = arith.constant 0 : index
    %2 = vector.load %arg2[%c0_2, %c0_3, %c0_4] : memref<1x24x1024xbf16, #tpu.memory_space<vmem>>, vector<1x24x1024xbf16>
    %3 = vector.shape_cast %2 : vector<1x24x1024xbf16> to vector<24x1024xbf16>
    %c0_5 = arith.constant 0 : index
    %c0_6 = arith.constant 0 : index
    %4 = vector.load %arg3[%c0_5, %c0_6] : memref<1024x256xbf16, #tpu.memory_space<vmem>>, vector<1024x256xbf16>
    %cst = arith.constant dense<0.000000e+00> : vector<8x256xf32>
    %5 = tpu.matmul %1, %4, %cst {dimension_numbers = #tpu.dot_dimension_numbers<[1], [0], [0], [1], [0, 0, 1, 1], [], []>} : vector<8x1024xbf16>, vector<1024x256xbf16>, vector<8x256xf32> -> vector<8x256xf32>
    %c0_7 = arith.constant 0 : index
    %c0_8 = arith.constant 0 : index
    %6 = vector.load %arg4[%c0_7, %c0_8] : memref<1x256xf32, #tpu.memory_space<vmem>>, vector<1x256xf32>
    %7 = vector.broadcast %6 : vector<1x256xf32> to vector<8x256xf32>
    %8 = arith.addf %5, %7 : vector<8x256xf32>
    %c0_9 = arith.constant 0 : index
    %c0_10 = arith.constant 0 : index
    %9 = vector.load %arg5[%c0_9, %c0_10] : memref<1024x1024xbf16, #tpu.memory_space<vmem>>, vector<1024x1024xbf16>
    %cst_11 = arith.constant dense<0.000000e+00> : vector<8x1024xf32>
    %10 = tpu.matmul %1, %9, %cst_11 {dimension_numbers = #tpu.dot_dimension_numbers<[1], [0], [0], [1], [0, 0, 1, 1], [], []>} : vector<8x1024xbf16>, vector<1024x1024xbf16>, vector<8x1024xf32> -> vector<8x1024xf32>
    %c0_12 = arith.constant 0 : index
    %c0_13 = arith.constant 0 : index
    %11 = vector.load %arg6[%c0_12, %c0_13] : memref<1x1024xf32, #tpu.memory_space<vmem>>, vector<1x1024xf32>
    %12 = vector.broadcast %11 : vector<1x1024xf32> to vector<8x1024xf32>
    %13 = arith.addf %10, %12 : vector<8x1024xf32>
    %c0_14 = arith.constant 0 : index
    %c0_15 = arith.constant 0 : index
    %14 = vector.load %arg7[%c0_14, %c0_15] : memref<1024x256xbf16, #tpu.memory_space<vmem>>, vector<1024x256xbf16>
    %cst_16 = arith.constant dense<0.000000e+00> : vector<24x256xf32>
    %15 = tpu.matmul %3, %14, %cst_16 {dimension_numbers = #tpu.dot_dimension_numbers<[1], [0], [0], [1], [0, 0, 1, 1], [], []>} : vector<24x1024xbf16>, vector<1024x256xbf16>, vector<24x256xf32> -> vector<24x256xf32>
    %c0_17 = arith.constant 0 : index
    %c0_18 = arith.constant 0 : index
    %16 = vector.load %arg8[%c0_17, %c0_18] : memref<1x256xf32, #tpu.memory_space<vmem>>, vector<1x256xf32>
    %17 = vector.broadcast %16 : vector<1x256xf32> to vector<24x256xf32>
    %18 = arith.addf %15, %17 : vector<24x256xf32>
    %c0_19 = arith.constant 0 : index
    %c0_20 = arith.constant 0 : index
    %19 = vector.load %arg9[%c0_19, %c0_20] : memref<1024x1024xbf16, #tpu.memory_space<vmem>>, vector<1024x1024xbf16>
    %cst_21 = arith.constant dense<0.000000e+00> : vector<24x1024xf32>
    %20 = tpu.matmul %3, %19, %cst_21 {dimension_numbers = #tpu.dot_dimension_numbers<[1], [0], [0], [1], [0, 0, 1, 1], [], []>} : vector<24x1024xbf16>, vector<1024x1024xbf16>, vector<24x1024xf32> -> vector<24x1024xf32>
    %c0_22 = arith.constant 0 : index
    %c0_23 = arith.constant 0 : index
    %21 = vector.load %arg10[%c0_22, %c0_23] : memref<1x1024xf32, #tpu.memory_space<vmem>>, vector<1x1024xf32>
    %22 = vector.broadcast %21 : vector<1x1024xf32> to vector<24x1024xf32>
    %23 = arith.addf %20, %22 : vector<24x1024xf32>
    %24 = vector.extract_strided_slice %8 {offsets = [0, 0], sizes = [8, 128], strides = [1, 1]} : vector<8x256xf32> to vector<8x128xf32>
    %25 = vector.shape_cast %24 : vector<8x128xf32> to vector<1x8x128xf32>
    %26 = vector.extract_strided_slice %18 {offsets = [0, 0], sizes = [24, 128], strides = [1, 1]} : vector<24x256xf32> to vector<24x128xf32>
    %27 = vector.shape_cast %26 : vector<24x128xf32> to vector<1x24x128xf32>
    %28 = tpu.concatenate %25, %27 in 1 : vector<1x8x128xf32>, vector<1x24x128xf32> -> vector<1x32x128xf32>
    %29 = arith.truncf %28 : vector<1x32x128xf32> to vector<1x32x128xbf16>
    %30 = vector.extract_strided_slice %8 {offsets = [0, 128], sizes = [8, 128], strides = [1, 1]} : vector<8x256xf32> to vector<8x128xf32>
    %31 = vector.shape_cast %30 : vector<8x128xf32> to vector<1x8x128xf32>
    %32 = vector.extract_strided_slice %18 {offsets = [0, 128], sizes = [24, 128], strides = [1, 1]} : vector<24x256xf32> to vector<24x128xf32>
    %33 = vector.shape_cast %32 : vector<24x128xf32> to vector<1x24x128xf32>
    %34 = tpu.concatenate %31, %33 in 1 : vector<1x8x128xf32>, vector<1x24x128xf32> -> vector<1x32x128xf32>
    %35 = arith.truncf %34 : vector<1x32x128xf32> to vector<1x32x128xbf16>
    %36 = vector.shape_cast %13 : vector<8x1024xf32> to vector<1x8x1024xf32>
    %37 = vector.shape_cast %23 : vector<24x1024xf32> to vector<1x24x1024xf32>
    %38 = tpu.concatenate %36, %37 in 1 : vector<1x8x1024xf32>, vector<1x24x1024xf32> -> vector<1x32x1024xf32>
    %cst_24 = arith.constant dense<0.000000e+00> : vector<1x32x32xf32>
    %39 = tpu.matmul %29, %35, %cst_24 {dimension_numbers = #tpu.dot_dimension_numbers<[2], [2], [1], [1], [0, 0, 0, 1, 1, 1], [0], [0]>} : vector<1x32x128xbf16>, vector<1x32x128xbf16>, vector<1x32x32xf32> -> vector<1x32x32xf32>
    %cst_25 = arith.constant dense<0xFF800000> : vector<1x32xf32>
    %40 = vector.multi_reduction <maximumf>, %39, %cst_25 [2] : vector<1x32x32xf32> to vector<1x32xf32>
    %41 = vector.shape_cast %40 : vector<1x32xf32> to vector<1x32x1xf32>
    %42 = vector.broadcast %41 : vector<1x32x1xf32> to vector<1x32x32xf32>
    %43 = arith.subf %39, %42 : vector<1x32x32xf32>
    %44 = math.exp %43 : vector<1x32x32xf32>
    %cst_26 = arith.constant dense<0.000000e+00> : vector<1x32xf32>
    %45 = vector.multi_reduction <add>, %44, %cst_26 [2] : vector<1x32x32xf32> to vector<1x32xf32>
    %46 = vector.shape_cast %45 : vector<1x32xf32> to vector<1x32x1xf32>
    %47 = tpu.reciprocal %46 {approx = true} : vector<1x32x1xf32> -> vector<1x32x1xf32>
    %48 = vector.broadcast %47 : vector<1x32x1xf32> to vector<1x32x32xf32>
    %49 = arith.mulf %44, %48 : vector<1x32x32xf32>
    %cst_27 = arith.constant dense<0.000000e+00> : vector<1x32xf32>
    %50 = vector.multi_reduction <add>, %49, %cst_27 [1] : vector<1x32x32xf32> to vector<1x32xf32>
    %51 = vector.shape_cast %50 : vector<1x32xf32> to vector<1x1x32xf32>
    %cst_28 = arith.constant 3.200000e+01 : f32
    %52 = vector.broadcast %cst_28 : f32 to vector<1x1x32xf32>
    %53 = arith.divf %51, %52 : vector<1x1x32xf32>
    %cst_29 = arith.constant dense<0.000000e+00> : vector<1x1x1024xf32>
    %54 = tpu.matmul %53, %38, %cst_29 {dimension_numbers = #tpu.dot_dimension_numbers<[2], [1], [1], [2], [0, 0, 0, 1, 1, 2], [0], [0]>} : vector<1x1x32xf32>, vector<1x32x1024xf32>, vector<1x1x1024xf32> -> vector<1x1x1024xf32>
    %55 = vector.shape_cast %54 : vector<1x1x1024xf32> to vector<1x1024xf32>
    %56 = arith.truncf %55 : vector<1x1024xf32> to vector<1x1024xbf16>
    %c0_30 = arith.constant 0 : index
    %c0_31 = arith.constant 0 : index
    %57 = vector.load %arg11[%c0_30, %c0_31] : memref<1024x512xbf16, #tpu.memory_space<vmem>>, vector<1024x512xbf16>
    %cst_32 = arith.constant dense<0.000000e+00> : vector<1x512xf32>
    %58 = tpu.matmul %56, %57, %cst_32 {dimension_numbers = #tpu.dot_dimension_numbers<[1], [0], [0], [1], [0, 0, 1, 1], [], []>} : vector<1x1024xbf16>, vector<1024x512xbf16>, vector<1x512xf32> -> vector<1x512xf32>
    %c0_33 = arith.constant 0 : index
    %c0_34 = arith.constant 0 : index
    %59 = vector.load %arg12[%c0_33, %c0_34] : memref<1x512xf32, #tpu.memory_space<vmem>>, vector<1x512xf32>
    %60 = arith.addf %58, %59 : vector<1x512xf32>
    %cst_35 = arith.constant 0.000000e+00 : f32
    %61 = vector.broadcast %cst_35 : f32 to vector<1x512xf32>
    %62 = arith.maximumf %60, %61 : vector<1x512xf32>
    %63 = arith.truncf %62 : vector<1x512xf32> to vector<1x512xbf16>
    %c0_36 = arith.constant 0 : index
    %c0_37 = arith.constant 0 : index
    %64 = vector.load %arg13[%c0_36, %c0_37] : memref<512x128xbf16, #tpu.memory_space<vmem>>, vector<512x128xbf16>
    %cst_38 = arith.constant dense<0.000000e+00> : vector<1x128xf32>
    %65 = tpu.matmul %63, %64, %cst_38 {dimension_numbers = #tpu.dot_dimension_numbers<[1], [0], [0], [1], [0, 0, 1, 1], [], []>} : vector<1x512xbf16>, vector<512x128xbf16>, vector<1x128xf32> -> vector<1x128xf32>
    %c0_39 = arith.constant 0 : index
    %c0_40 = arith.constant 0 : index
    %66 = vector.load %arg14[%c0_39, %c0_40] : memref<1x128xf32, #tpu.memory_space<vmem>>, vector<1x128xf32>
    %67 = arith.addf %65, %66 : vector<1x128xf32>
    %cst_41 = arith.constant 0.000000e+00 : f32
    %68 = vector.broadcast %cst_41 : f32 to vector<1x128xf32>
    %69 = arith.maximumf %67, %68 : vector<1x128xf32>
    %c0_42 = arith.constant 0 : index
    %c0_43 = arith.constant 0 : index
    %c0_44 = arith.constant 0 : index
    %70 = vector.load %arg15[%c0_42, %c0_43, %c0_44] : memref<1x1x128xf32, #tpu.memory_space<vmem>>, vector<1x1x128xf32>
    %71 = vector.shape_cast %70 : vector<1x1x128xf32> to vector<1x128xf32>
    %72 = vector.shape_cast %69 : vector<1x128xf32> to vector<1x1x128xf32>
    tpu.vector_store %arg15[%c0_42, %c0_43, %c0_44], %72 {strides = array<i32>} : memref<1x1x128xf32, #tpu.memory_space<vmem>>, vector<1x1x128xf32>,
    return
  }
  func.func @transform_0(%arg0: i32) -> (i32, i32, i32) {
    %c0_i32 = arith.constant 0 : i32
    %c0_i32_0 = arith.constant 0 : i32
    %c0_i32_1 = arith.constant 0 : i32
    return %arg0, %c0_i32, %c0_i32_0 : i32, i32, i32
  }
  func.func @transform_1(%arg0: i32) -> (i32, i32, i32) {
    %c0_i32 = arith.constant 0 : i32
    %c0_i32_0 = arith.constant 0 : i32
    %c0_i32_1 = arith.constant 0 : i32
    return %arg0, %c0_i32, %c0_i32_0 : i32, i32, i32
  }
  func.func @transform_2(%arg0: i32) -> (i32, i32) {
    %c0_i32 = arith.constant 0 : i32
    %c0_i32_0 = arith.constant 0 : i32
    %c0_i32_1 = arith.constant 0 : i32
    return %c0_i32, %c0_i32_0 : i32, i32
  }
  func.func @transform_3(%arg0: i32) -> (i32, i32) {
    %c0_i32 = arith.constant 0 : i32
    %c0_i32_0 = arith.constant 0 : i32
    %c0_i32_1 = arith.constant 0 : i32
    return %c0_i32, %c0_i32_0 : i32, i32
  }
  func.func @transform_4(%arg0: i32) -> (i32, i32) {
    %c0_i32 = arith.constant 0 : i32
    %c0_i32_0 = arith.constant 0 : i32
    %c0_i32_1 = arith.constant 0 : i32
    return %c0_i32, %c0_i32_0 : i32, i32
  }
  func.func @transform_5(%arg0: i32) -> (i32, i32) {
    %c0_i32 = arith.constant 0 : i32
    %c0_i32_0 = arith.constant 0 : i32
    %c0_i32_1 = arith.constant 0 : i32
    return %c0_i32, %c0_i32_0 : i32, i32
  }
  func.func @transform_6(%arg0: i32) -> (i32, i32) {
    %c0_i32 = arith.constant 0 : i32
    %c0_i32_0 = arith.constant 0 : i32
    %c0_i32_1 = arith.constant 0 : i32
    return %c0_i32, %c0_i32_0 : i32, i32
  }
  func.func @transform_7(%arg0: i32) -> (i32, i32) {
    %c0_i32 = arith.constant 0 : i32
    %c0_i32_0 = arith.constant 0 : i32
    %c0_i32_1 = arith.constant 0 : i32
    return %c0_i32, %c0_i32_0 : i32, i32
  }
  func.func @transform_8(%arg0: i32) -> (i32, i32) {
    %c0_i32 = arith.constant 0 : i32
    %c0_i32_0 = arith.constant 0 : i32
    %c0_i32_1 = arith.constant 0 : i32
    return %c0_i32, %c0_i32_0 : i32, i32
  }
  func.func @transform_9(%arg0: i32) -> (i32, i32) {
    %c0_i32 = arith.constant 0 : i32
    %c0_i32_0 = arith.constant 0 : i32
    %c0_i32_1 = arith.constant 0 : i32
    return %c0_i32, %c0_i32_0 : i32, i32
  }
  func.func @transform_10(%arg0: i32) -> (i32, i32) {
    %c0_i32 = arith.constant 0 : i32
    %c0_i32_0 = arith.constant 0 : i32
    %c0_i32_1 = arith.constant 0 : i32
    return %c0_i32, %c0_i32_0 : i32, i32
  }
  func.func @transform_11(%arg0: i32) -> (i32, i32) {
    %c0_i32 = arith.constant 0 : i32
    %c0_i32_0 = arith.constant 0 : i32
    %c0_i32_1 = arith.constant 0 : i32
    return %c0_i32, %c0_i32_0 : i32, i32
  }
  func.func @transform_12(%arg0: i32) -> (i32, i32) {
    %c0_i32 = arith.constant 0 : i32
    %c0_i32_0 = arith.constant 0 : i32
    %c0_i32_1 = arith.constant 0 : i32
    return %c0_i32, %c0_i32_0 : i32, i32
  }
  func.func @transform_13(%arg0: i32) -> (i32, i32) {
    %c0_i32 = arith.constant 0 : i32
    %c0_i32_0 = arith.constant 0 : i32
    %c0_i32_1 = arith.constant 0 : i32
    return %c0_i32, %c0_i32_0 : i32, i32
  }
  func.func @transform_14(%arg0: i32) -> (i32, i32, i32) {
    %c0_i32 = arith.constant 0 : i32
    %c0_i32_0 = arith.constant 0 : i32
    %c0_i32_1 = arith.constant 0 : i32
    return %arg0, %c0_i32, %c0_i32_0 : i32, i32, i32
  }
}

</mosaic_0001>

<bundles_post_ra>
// kernel: tpu_custom_call.1
= control target key start
LH: loop header
LB: loop body
LE: loop exit
PB: predicated region body
PF: predicated region fallthrough
CT: control target
= control target key end

     0   :  { %s17909_s0 = inlined_call_operand.hbm [shape: bf16[2,8,1024], index: 0, kind: input, shape index: {}]   ;;  %s17910_s1 = inlined_call_operand.hbm [shape: bf16[2,24,1024], index: 1, kind: input, shape index: {}]   ;;  %s17911_s2 = inlined_call_operand.hbm [shape: bf16[1024,256], index: 2, kind: input, shape index: {}]   ;;  %s17912_s3 = inlined_call_operand.hbm [shape: f32[1,256], index: 3, kind: input, shape index: {}]   ;;  %s17913_s4 = inlined_call_operand.hbm [shape: bf16[1024,1024], index: 4, kind: input, shape index: {}]   ;;  %s17914_s5 = inlined_call_operand.hbm [shape: f32[1,1024], index: 5, kind: input, shape index: {}]   ;;  %s17915_s6 = inlined_call_operand.hbm [shape: bf16[1024,256], index: 6, kind: input, shape index: {}]   ;;  %s17916_s7 = inlined_call_operand.hbm [shape: f32[1,256], index: 7, kind: input, shape index: {}]   ;;  %s17917_s8 = inlined_call_operand.hbm [shape: bf16[1024,1024], index: 8, kind: input, shape index: {}]   ;;  %s17918_s9 = inlined_call_operand.hbm [shape: f32[1,1024], index: 9, kind: input, shape index: {}]   ;;  %s17919_s10 = inlined_call_operand.hbm [shape: bf16[1024,512], index: 10, kind: input, shape index: {}]   ;;  %s17920_s11 = inlined_call_operand.hbm [shape: f32[1,512], index: 11, kind: input, shape index: {}]   ;;  %s17921_s12 = inlined_call_operand.hbm [shape: bf16[512,128], index: 12, kind: input, shape index: {}]   ;;  %s17922_s13 = inlined_call_operand.hbm [shape: f32[1,128], index: 13, kind: input, shape index: {}]   ;;  %s17923_s14 = inlined_call_operand.hbm [shape: f32[2,1,128], index: 14, kind: output, shape index: {}]  }
   0x1   :  { %17938 = sst [smem:[#allocation39_spill]] %s17909_s0 }
   0x2   :  { %17939 = sst [smem:[#allocation40_spill]] %s17910_s1 }
   0x3   :  { %17940 = sst [smem:[#allocation41_spill]] %s17911_s2 }
   0x4   :  { %17941 = sst [smem:[#allocation42_spill]] %s17912_s3 }
   0x5   :  { %17942 = sst [smem:[#allocation43_spill]] %s17913_s4 }
   0x6   :  { %17943 = sst [smem:[#allocation44_spill]] %s17914_s5 }
   0x7   :  { %17944 = sst [smem:[#allocation45_spill]] %s17915_s6 }
   0x8   :  { %17945 = sst [smem:[#allocation46_spill]] %s17916_s7 }
   0x9   :  { %17946 = sst [smem:[#allocation47_spill]] %s17923_s14 }
   0xa   :  { %19 = vsyncpa [#allocation3], 0 }
   0xb   :  { %21 = vsyncpa [#allocation3 + $0x1], 0 }
   0xc   :  { %22 = vsyncpa [#allocation6], 0 }
   0xd   :  { %24 = vsyncpa [#allocation6 + $0x1], 0 }
   0xe   :  { %25 = vsyncpa [#allocation9], 0 }
   0xf   :  { %26 = vsyncpa [#allocation12], 0 }
  0x10   :  { %27 = vsyncpa [#allocation15], 0 }
  0x11   :  { %28 = vsyncpa [#allocation18], 0 }
  0x12   :  { %29 = vsyncpa [#allocation21], 0 }
  0x13   :  { %30 = vsyncpa [#allocation24], 0 }
  0x14   :  { %31 = vsyncpa [#allocation4], 0 }
  0x15   :  { %33 = vsyncpa [#allocation4 + $0x1], 0  ;;  %s16863_s29 = smov 0   ;;  %s16865_s30 = smov 0  }
  0x16   :  { %s16867_s15 = smov 0   ;;  %s16869_s16 = smov 0  }
  0x17 LB: > { %17947 = sst [smem:[#allocation36_spill]] %s16750_s29  ;;  %s16764_s17 = smov [#allocation7]   ;;  %s16762_s16 = sphi %s16869_s16, %s18004_s16   ;;  %s16758_s15 = sphi %s16867_s15, %s18003_s15   ;;  %s16754_s30 = sphi %s16865_s30, %s18002_s30   ;;  %s16750_s29 = sphi %s16863_s29, %s18001_s29  }
  0x18   : > { %s386_s18 = sshll.u32 %s16764_s17, 4  ;;  %s16884_s19 = sadd.s32 4294967295, %s16762_s16   ;;  %s16889_s18 = int_to_ptr.vmem [resolvable:$true] %s386_s18 }
  0x19   : > { %17948 = sst [smem:[#allocation37_spill]] %s16884_s19  ;;  %p13284_p0 = scmp.ge.s32.totalorder %s16762_s16, 1 }
  0x1a   : > { %p17932_p1 = scmp.eq.s32.totalorder %s16884_s19, 0  ;;  %p374_p2 = scmp.lt.s32.totalorder %s16762_s16, 3 }
  0x1b   : > { %s16765_s21 = smov [#allocation8]   ;;  %s16766_s24 = smov [#allocation11]  }
  0x1c   : > { %p16891_p3 = pnand %p13284_p0, %p374_p2  ;;  %s400_s22 = sshll.u32 %s16765_s21, 4  ;;  %s16904_s22 = int_to_ptr.vmem [resolvable:$true] %s400_s22 }
  0x1d   : > { %s424_s25 = sshll.u32 %s16766_s24, 4  ;;  %s17952_s2 = sld [smem:[#allocation41_spill]]  ;;  %s16906_s25 = int_to_ptr.vmem [resolvable:$true] %s424_s25 }
  0x1e   : > { %s17949_s20 = scalar_select %p16891_p3, 1, 0 }
  0x1f   : > { %p15309_p5 = pneg %p16891_p3 }
  0x20   : > { %17950 = sst [smem:[#allocation38_spill]] %s17949_s20 }
  0x21   : > { %p16900_p6 = pnand %p15309_p5, %p17932_p1 }
  0x23   : > { %s16268_s28 = scalar_lea.hbm %s17952_s2, 16384  ;;  %p16916_p8 = pneg %p16900_p6 }
  0x24   : > { %p16269_p7 = scmp.ne.s32.totalorder %s17952_s2, %s16268_s28  ;;  %p16275_p11 = scmp.lt.u32.totalorder %s16268_s28, %s17952_s2 }
  0x26   : > { %p16271_p9 = pnand %p16916_p8, %p16269_p7 }
  0x28   : > { %p16272_p10 = pneg %p16271_p9 }
  0x2a   : > { %p16277_p12 = pnand %p16275_p11, %p16272_p10 }
  0x2c   : > { %16280 = shalt.err (!%p16277_p12)
}
  0x2d   : > { %s16281_s14 = scalar_lea.vmem %s16889_s18, 16384  ;;  %p16289_p5 = scmp.lt.s32.totalorder %s16889_s18, %s16889_s18 }
  0x2e   : > { %p16282_p13 = scmp.ne.s32.totalorder %s16889_s18, %s16281_s14  ;;  %p16290_p4 = scmp.lt.s32.totalorder %s16281_s14, %s16281_s14 }
  0x30   : > { %p16284_p0 = pnand %p16282_p13, %p16916_p8  ;;  %p16291_p7 = por %p16290_p4, %p16289_p5 }
  0x32   : > { %p16285_p2 = pneg %p16284_p0 }
  0x34   : > { %p16292_p9 = pnand %p16291_p7, %p16285_p2 }
  0x36   : > { %16295 = shalt.err (!%p16292_p9)
}
  0x37   : > { %s17931_s26 = smov 128   ;;  %s17934_s20 = smov 8  }
  0x38   : > { %15312 = dma.hbm_to_vmem [thread:$0]  (!%p16900_p6), %s17952_s2, 16384, %s16889_s18, [#allocation6], %s17931_s26, %s17931_s26, %s17934_s20  }
  0x39   : > { %s17954_s3 = sld [smem:[#allocation42_spill]] }
  0x3f   : > { %s16296_s14 = scalar_lea.hbm %s17954_s3, 32 }
  0x40   : > { %p16297_p4 = scmp.ne.s32.totalorder %s17954_s3, %s16296_s14  ;;  %p16303_p12 = scmp.lt.u32.totalorder %s16296_s14, %s17954_s3 }
  0x42   : > { %p16299_p10 = pnand %p16297_p4, %p16916_p8 }
  0x44   : > { %p16300_p11 = pneg %p16299_p10 }
  0x46   : > { %p16305_p13 = pnand %p16303_p12, %p16300_p11 }
  0x48   : > { %16308 = shalt.err (!%p16305_p13)
}
  0x49   : > { %s16309_s18 = scalar_lea.vmem %s16904_s22, 32  ;;  %p16317_p7 = scmp.lt.s32.totalorder %s16904_s22, %s16904_s22 }
  0x4a   : > { %p16310_p0 = scmp.ne.s32.totalorder %s16904_s22, %s16309_s18  ;;  %p16318_p9 = scmp.lt.s32.totalorder %s16309_s18, %s16309_s18 }
  0x4c   : > { %p16312_p2 = pnand %p16310_p0, %p16916_p8  ;;  %p16319_p4 = por %p16318_p9, %p16317_p7 }
  0x4e   : > { %p16313_p5 = pneg %p16312_p2 }
  0x50   : > { %p16320_p10 = pnand %p16319_p4, %p16313_p5 }
  0x52   : > { %16323 = shalt.err (!%p16320_p10)
}
  0x53   : > { %15315 = dma.hbm_to_vmem [thread:$0]  (!%p16900_p6), %s17954_s3, 32, %s16904_s22, [#allocation9]  }
  0x54   : > { %s17955_s5 = sld [smem:[#allocation44_spill]] }
  0x5a   : > { %s16324_s27 = scalar_lea.hbm %s17955_s5, 128 }
  0x5b   : > { %p16325_p11 = scmp.ne.s32.totalorder %s17955_s5, %s16324_s27  ;;  %p16331_p0 = scmp.lt.u32.totalorder %s16324_s27, %s17955_s5 }
  0x5d   : > { %p16327_p12 = pnand %p16325_p11, %p16916_p8 }
  0x5f   : > { %p16328_p13 = pneg %p16327_p12 }
  0x61   : > { %p16333_p2 = pnand %p16331_p0, %p16328_p13 }
  0x63   : > { %16336 = shalt.err (!%p16333_p2)
}
  0x64   : > { %s16337_s22 = scalar_lea.vmem %s16906_s25, 128  ;;  %p16345_p4 = scmp.lt.s32.totalorder %s16906_s25, %s16906_s25 }
  0x65   : > { %p16338_p5 = scmp.ne.s32.totalorder %s16906_s25, %s16337_s22  ;;  %p16346_p10 = scmp.lt.s32.totalorder %s16337_s22, %s16337_s22 }
  0x67   : > { %p16340_p7 = pnand %p16338_p5, %p16916_p8  ;;  %p16347_p11 = por %p16346_p10, %p16345_p4 }
  0x69   : > { %p16341_p9 = pneg %p16340_p7 }
  0x6b   : > { %p16348_p12 = pnand %p16347_p11, %p16341_p9 }
  0x6d   : > { %16351 = shalt.err (!%p16348_p12)
}
  0x6e   : > { %15321 = dma.hbm_to_vmem [thread:$0]  (!%p16900_p6), %s17955_s5, 128, %s16906_s25, [#allocation12]  }
  0x6f   : > { %s16769_s1 = smov [#allocation14]   ;;  %s16770_s19 = smov [#allocation17]  }
  0x70   : > { %s448_s29 = sshll.u32 %s16769_s1, 4  ;;  %s472_s27 = sshll.u32 %s16770_s19, 4  ;;  %s449_s29 = int_to_ptr.vmem [resolvable:$true] %s448_s29  ;;  %s473_s27 = int_to_ptr.vmem [resolvable:$true] %s472_s27 }
  0x71   : > { %s17956_s7 = sld [smem:[#allocation46_spill]] }
  0x77   : > { %s16352_s24 = scalar_lea.hbm %s17956_s7, 32 }
  0x78   : > { %p16353_p13 = scmp.ne.s32.totalorder %s17956_s7, %s16352_s24  ;;  %p16359_p5 = scmp.lt.u32.totalorder %s16352_s24, %s17956_s7 }
  0x7a   : > { %p16355_p0 = pnand %p16353_p13, %p16916_p8 }
  0x7c   : > { %p16356_p2 = pneg %p16355_p0 }
  0x7e   : > { %p16361_p7 = pnand %p16359_p5, %p16356_p2 }
  0x80   : > { %16364 = shalt.err (!%p16361_p7)
}
  0x81   : > { %s16365_s25 = scalar_lea.vmem %s449_s29, 32  ;;  %p16373_p11 = scmp.lt.s32.totalorder %s449_s29, %s449_s29 }
  0x82   : > { %p16366_p9 = scmp.ne.s32.totalorder %s449_s29, %s16365_s25  ;;  %p16374_p12 = scmp.lt.s32.totalorder %s16365_s25, %s16365_s25 }
  0x84   : > { %p16368_p4 = pnand %p16366_p9, %p16916_p8  ;;  %p16375_p1 = por %p16374_p12, %p16373_p11 }
  0x86   : > { %p16369_p10 = pneg %p16368_p4 }
  0x88   : > { %p16376_p3 = pnand %p16375_p1, %p16369_p10 }
  0x8a   : > { %16379 = shalt.err (!%p16376_p3)
}
  0x8b   : > { %15327 = dma.hbm_to_vmem [thread:$0]  (!%p16900_p6), %s17956_s7, 32, %s449_s29, [#allocation15]  }
  0x8c   : > { %s16380_s28 = scalar_lea.hbm %s17918_s9, 128 }
  0x8d   : > { %p16381_p13 = scmp.ne.s32.totalorder %s17918_s9, %s16380_s28  ;;  %p16387_p3 = scmp.lt.u32.totalorder %s16380_s28, %s17918_s9 }
  0x8f   : > { %p16383_p0 = pnand %p16381_p13, %p16916_p8 }
  0x91   : > { %p16384_p1 = pneg %p16383_p0 }
  0x93   : > { %p16389_p2 = pnand %p16387_p3, %p16384_p1 }
  0x95   : > { %16392 = shalt.err (!%p16389_p2)
}
  0x96   : > { %s16393_s18 = scalar_lea.vmem %s473_s27, 128  ;;  %p16401_p4 = scmp.lt.s32.totalorder %s473_s27, %s473_s27 }
  0x97   : > { %p16394_p5 = scmp.ne.s32.totalorder %s473_s27, %s16393_s18  ;;  %p16402_p10 = scmp.lt.s32.totalorder %s16393_s18, %s16393_s18 }
  0x99   : > { %p16396_p7 = pnand %p16394_p5, %p16916_p8  ;;  %p16403_p11 = por %p16402_p10, %p16401_p4 }
  0x9b   : > { %p16397_p9 = pneg %p16396_p7 }
  0x9d   : > { %p16404_p12 = pnand %p16403_p11, %p16397_p9 }
  0x9f   : > { %16407 = shalt.err (!%p16404_p12)
}
  0xa0   : > { %15333 = dma.hbm_to_vmem [thread:$0]  (!%p16900_p6), %s17918_s9, 128, %s473_s27, [#allocation18]  }
  0xa1   : > { %s16771_s0 = smov [#allocation20]   ;;  %s16772_s26 = smov [#allocation10]  }
  0xa2   : > { %s496_s1 = sshll.u32 %s16771_s0, 4  ;;  %s410_s19 = sshll.u32 %s16772_s26, 4  ;;  %s497_s1 = int_to_ptr.vmem [resolvable:$true] %s496_s1  ;;  %s411_s19 = int_to_ptr.vmem [resolvable:$true] %s410_s19 }
  0xa3   : > { %s16408_s24 = scalar_lea.hbm %s17920_s11, 64 }
  0xa4   : > { %p16409_p13 = scmp.ne.s32.totalorder %s17920_s11, %s16408_s24  ;;  %p16415_p3 = scmp.lt.u32.totalorder %s16408_s24, %s17920_s11 }
  0xa6   : > { %p16411_p0 = pnand %p16409_p13, %p16916_p8 }
  0xa8   : > { %p16412_p1 = pneg %p16411_p0 }
  0xaa   : > { %p16417_p2 = pnand %p16415_p3, %p16412_p1 }
  0xac   : > { %16420 = shalt.err (!%p16417_p2)
}
  0xad   : > { %s16421_s27 = scalar_lea.vmem %s497_s1, 64  ;;  %p16429_p4 = scmp.lt.s32.totalorder %s497_s1, %s497_s1 }
  0xae   : > { %p16422_p5 = scmp.ne.s32.totalorder %s497_s1, %s16421_s27  ;;  %p16430_p10 = scmp.lt.s32.totalorder %s16421_s27, %s16421_s27 }
  0xb0   : > { %p16424_p7 = pnand %p16422_p5, %p16916_p8  ;;  %p16431_p11 = por %p16430_p10, %p16429_p4 }
  0xb2   : > { %p16425_p9 = pneg %p16424_p7 }
  0xb4   : > { %p16432_p12 = pnand %p16431_p11, %p16425_p9 }
  0xb6   : > { %16435 = shalt.err (!%p16432_p12)
}
  0xb7   : > { %15339 = dma.hbm_to_vmem [thread:$0]  (!%p16900_p6), %s17920_s11, 64, %s497_s1, [#allocation21]  }
  0xb8   : > { %s17957_s4 = sld [smem:[#allocation43_spill]] }
  0xbe   : > { %s16436_s17 = scalar_lea.hbm %s17957_s4, 65536 }
  0xbf   : > { %p16437_p13 = scmp.ne.s32.totalorder %s17957_s4, %s16436_s17  ;;  %p16443_p3 = scmp.lt.u32.totalorder %s16436_s17, %s17957_s4 }
  0xc1   : > { %p16439_p0 = pnand %p16437_p13, %p16916_p8 }
  0xc3   : > { %p16440_p1 = pneg %p16439_p0 }
  0xc5   : > { %p16445_p2 = pnand %p16443_p3, %p16440_p1 }
  0xc7   : > { %16448 = shalt.err (!%p16445_p2)
}
  0xc8   : > { %s16449_s29 = scalar_lea.vmem %s411_s19, 65536  ;;  %p16457_p4 = scmp.lt.s32.totalorder %s411_s19, %s411_s19 }
  0xc9   : > { %p16450_p5 = scmp.ne.s32.totalorder %s411_s19, %s16449_s29  ;;  %p16458_p10 = scmp.lt.s32.totalorder %s16449_s29, %s16449_s29 }
  0xcb   : > { %p16452_p7 = pnand %p16450_p5, %p16916_p8  ;;  %p16459_p11 = por %p16458_p10, %p16457_p4 }
  0xcd   : > { %p16453_p9 = pneg %p16452_p7 }
  0xcf   : > { %p16460_p12 = pnand %p16459_p11, %p16453_p9 }
  0xd1   : > { %16463 = shalt.err (!%p16460_p12)
}
  0xd2   : > { %s17935_s1 = smov 512   ;;  %s17936_s27 = smov 32  }
  0xd3   : > { %15318 = dma.hbm_to_vmem [thread:$0]  (!%p16900_p6), %s17957_s4, 65536, %s411_s19, [#allocation9], %s17935_s1, %s17935_s1, %s17936_s27  }
  0xd4   : > { %s16775_s26 = smov [#allocation13]   ;;  %s16776_s17 = smov [#allocation16]  }
  0xd5   : > { %s434_s28 = sshll.u32 %s16775_s26, 4  ;;  %s458_s24 = sshll.u32 %s16776_s17, 4  ;;  %s435_s28 = int_to_ptr.vmem [resolvable:$true] %s434_s28  ;;  %s459_s24 = int_to_ptr.vmem [resolvable:$true] %s458_s24 }
  0xd6   : > { %s17958_s6 = sld [smem:[#allocation45_spill]] }
  0xdc   : > { %s16464_s18 = scalar_lea.hbm %s17958_s6, 16384 }
  0xdd   : > { %p16465_p13 = scmp.ne.s32.totalorder %s17958_s6, %s16464_s18  ;;  %p16471_p3 = scmp.lt.u32.totalorder %s16464_s18, %s17958_s6 }
  0xdf   : > { %p16467_p0 = pnand %p16465_p13, %p16916_p8 }
  0xe1   : > { %p16468_p1 = pneg %p16467_p0 }
  0xe3   : > { %p16473_p2 = pnand %p16471_p3, %p16468_p1 }
  0xe5   : > { %16476 = shalt.err (!%p16473_p2)
}
  0xe6   : > { %s16477_s19 = scalar_lea.vmem %s435_s28, 16384  ;;  %p16485_p4 = scmp.lt.s32.totalorder %s435_s28, %s435_s28 }
  0xe7   : > { %p16478_p5 = scmp.ne.s32.totalorder %s435_s28, %s16477_s19  ;;  %p16486_p10 = scmp.lt.s32.totalorder %s16477_s19, %s16477_s19 }
  0xe9   : > { %p16480_p7 = pnand %p16478_p5, %p16916_p8  ;;  %p16487_p11 = por %p16486_p10, %p16485_p4 }
  0xeb   : > { %p16481_p9 = pneg %p16480_p7 }
  0xed   : > { %p16488_p12 = pnand %p16487_p11, %p16481_p9 }
  0xef   : > { %16491 = shalt.err (!%p16488_p12)
}
  0xf0   : > { %s17959_s20 = smov 8   ;;  %s17960_s25 = smov 128  }
  0xf1   : > { %15324 = dma.hbm_to_vmem [thread:$0]  (!%p16900_p6), %s17958_s6, 16384, %s435_s28, [#allocation12], %s17960_s25, %s17960_s25, %s17959_s20  }
  0xf2   : > { %s16492_s17 = scalar_lea.hbm %s17917_s8, 65536 }
  0xf3   : > { %p16493_p13 = scmp.ne.s32.totalorder %s17917_s8, %s16492_s17  ;;  %p16499_p3 = scmp.lt.u32.totalorder %s16492_s17, %s17917_s8 }
  0xf5   : > { %p16495_p0 = pnand %p16493_p13, %p16916_p8 }
  0xf7   : > { %p16496_p1 = pneg %p16495_p0 }
  0xf9   : > { %p16501_p2 = pnand %p16499_p3, %p16496_p1 }
  0xfb   : > { %16504 = shalt.err (!%p16501_p2)
}
  0xfc   : > { %s16505_s19 = scalar_lea.vmem %s459_s24, 65536  ;;  %p16513_p4 = scmp.lt.s32.totalorder %s459_s24, %s459_s24 }
  0xfd   : > { %p16506_p5 = scmp.ne.s32.totalorder %s459_s24, %s16505_s19  ;;  %p16514_p10 = scmp.lt.s32.totalorder %s16505_s19, %s16505_s19 }
  0xff   : > { %p16508_p7 = pnand %p16506_p5, %p16916_p8  ;;  %p16515_p11 = por %p16514_p10, %p16513_p4 }
 0x101   : > { %p16509_p9 = pneg %p16508_p7 }
 0x103   : > { %p16516_p12 = pnand %p16515_p11, %p16509_p9 }
 0x105   : > { %16519 = shalt.err (!%p16516_p12)
}
 0x106   : > { %15330 = dma.hbm_to_vmem [thread:$0]  (!%p16900_p6), %s17917_s8, 65536, %s459_s24, [#allocation15], %s17935_s1, %s17935_s1, %s17936_s27  }
 0x107   : > { %s16777_s25 = smov [#allocation19]   ;;  %s16520_s26 = scalar_lea.hbm %s17919_s10, 32768 }
 0x108   : > { %s482_s2 = sshll.u32 %s16777_s25, 4  ;;  %p16521_p13 = scmp.ne.s32.totalorder %s17919_s10, %s16520_s26  ;;  %s483_s2 = int_to_ptr.vmem [resolvable:$true] %s482_s2 }
 0x109   : > { %p16527_p3 = scmp.lt.u32.totalorder %s16520_s26, %s17919_s10 }
 0x10a   : > { %p16523_p0 = pnand %p16521_p13, %p16916_p8 }
 0x10c   : > { %p16524_p1 = pneg %p16523_p0 }
 0x10e   : > { %p16529_p2 = pnand %p16527_p3, %p16524_p1 }
 0x110   : > { %16532 = shalt.err (!%p16529_p2)
}
 0x111   : > { %s16533_s24 = scalar_lea.vmem %s483_s2, 32768  ;;  %p16541_p4 = scmp.lt.s32.totalorder %s483_s2, %s483_s2 }
 0x112   : > { %p16534_p5 = scmp.ne.s32.totalorder %s483_s2, %s16533_s24  ;;  %p16542_p10 = scmp.lt.s32.totalorder %s16533_s24, %s16533_s24 }
 0x114   : > { %p16536_p7 = pnand %p16534_p5, %p16916_p8  ;;  %p16543_p11 = por %p16542_p10, %p16541_p4 }
 0x116   : > { %p16537_p9 = pneg %p16536_p7 }
 0x118   : > { %p16544_p12 = pnand %p16543_p11, %p16537_p9 }
 0x11a   : > { %16547 = shalt.err (!%p16544_p12)
}
 0x11b   : > { %s16778_s29 = smov 256   ;;  %s16779_s19 = smov 16  }
 0x11c   : > { %15336 = dma.hbm_to_vmem [thread:$0]  (!%p16900_p6), %s17919_s10, 32768, %s483_s2, [#allocation18], %s16778_s29, %s16778_s29, %s16779_s19  }
 0x11d   : > { %s16780_s25 = smov [#allocation22]   ;;  %s16548_s17 = scalar_lea.hbm %s17921_s12, 4096 }
 0x11e   : > { %s506_s3 = sshll.u32 %s16780_s25, 4  ;;  %p16549_p13 = scmp.ne.s32.totalorder %s17921_s12, %s16548_s17  ;;  %s507_s3 = int_to_ptr.vmem [resolvable:$true] %s506_s3 }
 0x11f   : > { %p16555_p3 = scmp.lt.u32.totalorder %s16548_s17, %s17921_s12 }
 0x120   : > { %p16551_p0 = pnand %p16549_p13, %p16916_p8 }
 0x122   : > { %p16552_p1 = pneg %p16551_p0 }
 0x124   : > { %p16557_p2 = pnand %p16555_p3, %p16552_p1 }
 0x126   : > { %16560 = shalt.err (!%p16557_p2)
}
 0x127   : > { %s16561_s2 = scalar_lea.vmem %s507_s3, 4096  ;;  %p16569_p4 = scmp.lt.s32.totalorder %s507_s3, %s507_s3 }
 0x128   : > { %p16562_p5 = scmp.ne.s32.totalorder %s507_s3, %s16561_s2  ;;  %p16570_p10 = scmp.lt.s32.totalorder %s16561_s2, %s16561_s2 }
 0x12a   : > { %p16564_p7 = pnand %p16562_p5, %p16916_p8  ;;  %p16571_p11 = por %p16570_p10, %p16569_p4 }
 0x12c   : > { %p16565_p9 = pneg %p16564_p7 }
 0x12e   : > { %p16572_p12 = pnand %p16571_p11, %p16565_p9 }
 0x130   : > { %16575 = shalt.err (!%p16572_p12)
}
 0x131   : > { %s16781_s29 = smov 64   ;;  %s16782_s19 = smov 4  }
 0x132   : > { %15342 = dma.hbm_to_vmem [thread:$0]  (!%p16900_p6), %s17921_s12, 4096, %s507_s3, [#allocation21], %s16781_s29, %s16781_s29, %s16782_s19  }
 0x133   : > { %s16783_s25 = smov [#allocation23]   ;;  %s16576_s14 = scalar_lea.hbm %s17922_s13, 16 }
 0x134   : > { %s520_s0 = sshll.u32 %s16783_s25, 4  ;;  %p16577_p13 = scmp.ne.s32.totalorder %s17922_s13, %s16576_s14  ;;  %s521_s0 = int_to_ptr.vmem [resolvable:$true] %s520_s0 }
 0x135   : > { %p16583_p3 = scmp.lt.u32.totalorder %s16576_s14, %s17922_s13 }
 0x136   : > { %p16579_p0 = pnand %p16577_p13, %p16916_p8 }
 0x138   : > { %p16580_p1 = pneg %p16579_p0 }
 0x13a   : > { %p16585_p2 = pnand %p16583_p3, %p16580_p1 }
 0x13c   : > { %16588 = shalt.err (!%p16585_p2)
}
 0x13d   : > { %s16589_s3 = scalar_lea.vmem %s521_s0, 16  ;;  %s16596_s29 = scalar_lea.vmem %s521_s0, 32 }
 0x13e   : > { %p16590_p5 = scmp.ne.s32.totalorder %s521_s0, %s16589_s3  ;;  %p16597_p4 = scmp.lt.s32.totalorder %s521_s0, %s521_s0 }
 0x13f   : > { %p16598_p10 = scmp.lt.s32.totalorder %s16596_s29, %s16589_s3 }
 0x140   : > { %p16592_p7 = pnand %p16590_p5, %p16916_p8 }
 0x141   : > { %p16599_p11 = por %p16598_p10, %p16597_p4 }
 0x142   : > { %p16593_p9 = pneg %p16592_p7 }
 0x144   : > { %p16600_p12 = pnand %p16599_p11, %p16593_p9 }
 0x146   : > { %16603 = shalt.err (!%p16600_p12)
}
 0x147   : > { %s17961_s21 = sld [smem:[#allocation36_spill]]  ;;  %s17962_s20 = sld [smem:[#allocation37_spill]] }
 0x148   : > { %15345 = dma.hbm_to_vmem [thread:$0]  (!%p16900_p6), %s17922_s13, 16, %s521_s0, [#allocation24]  }
 0x149   : > { %s13283_s25 = sadd.s32 4294967294, %s16762_s16   ;;  %s17159_s23 = sadd.s32 1, %s16762_s16  }
 0x14a   : > { %s43_s26 = ssub.s32 %s16762_s16, %s17159_s23  ;;  %s46_s17 = sadd.s32 1, %s16758_s15 }
 0x14b   : > { %p44_p8 = scmp.eq.s32.totalorder %s43_s26, 0  ;;  %p53_p13 = scmp.ne.s32.totalorder %s16758_s15, %s16754_s30 }
 0x14c   : > { %p54_p0 = scmp.eq.s32.totalorder %s16762_s16, 0  ;;  %p367_p7 = scmp.eq.s32.totalorder %s13283_s25, 1 }
 0x14d   : > { %p59_p1 = scmp.ne.s32.totalorder %s16754_s30, %s17961_s21  ;;  %p17964_p2 = scmp.eq.s32.totalorder %s17962_s20, 0 }
 0x14e   : > { %s17170_s14 = scalar_select %p44_p8, %s16758_s15, %s46_s17  }
 0x14f   : > { %p17172_p3 = por %p54_p0, %p53_p13  ;;  %p17178_p6 = por %p17964_p2, %p59_p1 }
 0x150   : > { %p361_p5 = scmp.eq.s32.totalorder %s17962_s20, 1  ;;  %p15369_p9 = scmp.lt.s32.totalorder %s16762_s16, 2 }
 0x151   : > { %s17185_s18 = sand.u32 1, %s16758_s15   ;;  %p17191_p10 = por %p367_p7, %p59_p1 }
 0x152   : > { %p17187_p4 = por %p361_p5, %p53_p13  ;;  %s13298_s3 = sshll.u32 %s17185_s18, 5 }
 0x153   : > { %s17967_s2 = scalar_select %p17191_p10, 1, 0 }
 0x154   : > { %s17966_s24 = scalar_select %p17187_p4, 1, 0 }
 0x155   : > { %s14915_s29 = sshll.u32 %s16762_s16, 9  ;;  %s17968_s21 = sld [smem:[#allocation39_spill]] }
 0x156   : > { %s535_s25 = scalar_lea.vmem [#allocation2], %s13298_s3  ;;  %p17206_p11 = pnand %p15369_p9, %p17172_p3 }
 0x157   : > { %s543_s26 = sshll.u32 %s535_s25, 4  ;;  %s15252_s1 = smul.u32 96, %s17185_s18  ;;  %s17202_s26 = int_to_ptr.vmem [resolvable:$true] %s543_s26 }
 0x158   : > { %s532_s19 = scalar_lea.sflag [#allocation3], %s17185_s18  ;;  %p16606_p8 = pneg %p17206_p11 }
 0x15b   : > { %s17200_s20 = scalar_lea.hbm %s17968_s21, %s14915_s29  ;;  %s16609_s22 = scalar_lea.hbm %s17968_s21, 1024 }
 0x15c   : > { %s16604_s29 = scalar_lea.hbm %s17200_s20, 512  ;;  %p16610_p1 = scmp.lt.u32.totalorder %s17200_s20, %s17968_s21 }
 0x15d   : > { %p16605_p12 = scmp.ne.s32.totalorder %s17200_s20, %s16604_s29  ;;  %p16611_p3 = scmp.lt.u32.totalorder %s16609_s22, %s16604_s29 }
 0x15e   : > { %p16613_p5 = scmp.lt.u32.totalorder %s16604_s29, %s17200_s20 }
 0x15f   : > { %p16607_p13 = pnand %p16606_p8, %p16605_p12  ;;  %p16612_p2 = por %p16611_p3, %p16610_p1 }
 0x161   : > { %p16608_p0 = pneg %p16607_p13  ;;  %p16614_p7 = por %p16613_p5, %p16612_p2 }
 0x163   : > { %p16615_p9 = pnand %p16614_p7, %p16608_p0 }
 0x165   : > { %16618 = shalt.err (!%p16615_p9)
}
 0x166   : > { %s16619_s27 = scalar_lea.vmem %s17202_s26, 512  ;;  %s16784_s3 = smov [#allocation2]  }
 0x167   : > { %p16620_p12 = scmp.ne.s32.totalorder %s17202_s26, %s16619_s27  ;;  %s16624_s28 = sshll.u32 %s16784_s3, 4  ;;  %s16625_s28 = int_to_ptr.vmem [resolvable:$false] %s16624_s28 }
 0x168   : > { %s16626_s4 = scalar_lea.vmem %s16625_s28, 1024  ;;  %p16627_p4 = scmp.lt.s32.totalorder %s17202_s26, %s16625_s28 }
 0x169   : > { %p16622_p13 = pnand %p16620_p12, %p16606_p8  ;;  %p16628_p1 = scmp.lt.s32.totalorder %s16626_s4, %s16619_s27 }
 0x16b   : > { %p16623_p10 = pneg %p16622_p13  ;;  %p16629_p3 = por %p16628_p1, %p16627_p4 }
 0x16d   : > { %p16630_p2 = pnand %p16629_p3, %p16623_p10 }
 0x16f   : > { %16633 = shalt.err (!%p16630_p2)
}
 0x170   : > { %15349 = dma.hbm_to_vmem [thread:$0]  (!%p17206_p11), %s17200_s20, 512, %s17202_s26, %s532_s19  }
 0x171   : > { %s15253_s29 = smul.u32 1536, %s16762_s16  ;;  %s554_s22 = scalar_lea.vmem [#allocation5], %s15252_s1 }
 0x172   : > { %s561_s25 = sshll.u32 %s554_s22, 4  ;;  %s17970_s28 = sld [smem:[#allocation40_spill]]  ;;  %s17241_s25 = int_to_ptr.vmem [resolvable:$true] %s561_s25 }
 0x173   : > { %s17971_s5 = sand.u32 1, %s16762_s16  }
 0x174   : > { %s17250_s6 = scalar_lea.sflag [#allocation6], %s17971_s5 }
 0x178   : > { %s17246_s4 = scalar_lea.hbm %s17970_s28, %s15253_s29  ;;  %s16639_s20 = scalar_lea.hbm %s17970_s28, 3072 }
 0x179   : > { %s16634_s7 = scalar_lea.hbm %s17246_s4, 1536  ;;  %p16640_p5 = scmp.lt.u32.totalorder %s17246_s4, %s17970_s28 }
 0x17a   : > { %p16635_p4 = scmp.ne.s32.totalorder %s17246_s4, %s16634_s7  ;;  %p16641_p7 = scmp.lt.u32.totalorder %s16639_s20, %s16634_s7 }
 0x17b   : > { %p16643_p12 = scmp.lt.u32.totalorder %s16634_s7, %s17246_s4 }
 0x17c   : > { %p16637_p10 = pnand %p16635_p4, %p16606_p8  ;;  %p16642_p9 = por %p16641_p7, %p16640_p5 }
 0x17e   : > { %p16638_p0 = pneg %p16637_p10  ;;  %p16644_p13 = por %p16643_p12, %p16642_p9 }
 0x180   : > { %p16645_p1 = pnand %p16644_p13, %p16638_p0 }
 0x182   : > { %16648 = shalt.err (!%p16645_p1)
}
 0x183   : > { %s16649_s5 = scalar_lea.vmem %s17241_s25, 1536  ;;  %s16785_s29 = smov [#allocation5]  }
 0x184   : > { %p16650_p3 = scmp.ne.s32.totalorder %s17241_s25, %s16649_s5  ;;  %s16654_s22 = sshll.u32 %s16785_s29, 4  ;;  %s16655_s22 = int_to_ptr.vmem [resolvable:$false] %s16654_s22 }
 0x185   : > { %s16656_s3 = scalar_lea.vmem %s16655_s22, 3072  ;;  %p16657_p10 = scmp.lt.s32.totalorder %s17241_s25, %s16655_s22 }
 0x186   : > { %p16652_p2 = pnand %p16650_p3, %p16606_p8  ;;  %p16658_p5 = scmp.lt.s32.totalorder %s16656_s3, %s16649_s5 }
 0x188   : > { %p16653_p4 = pneg %p16652_p2  ;;  %p16659_p7 = por %p16658_p5, %p16657_p10 }
 0x18a   : > { %p16660_p9 = pnand %p16659_p7, %p16653_p4 }
 0x18c   : > { %16663 = shalt.err (!%p16660_p9)
}
 0x18d   : > { %s17972_s7 = smov 32   ;;  %s17973_s27 = smov 512  }
 0x18e   : > { %15352 = dma.hbm_to_vmem [thread:$0]  (!%p17206_p11), %s17246_s4, 1536, %s17241_s25, %s17250_s6, %s17973_s27, %s17973_s27, %s17972_s7  }
 0x18f   : > { %s17974_s1 = sld [smem:[#allocation38_spill]] }
 0x195   : > { %p17975_p8 = scmp.ne.s32.totalorder %s17974_s1, 0 }
 0x196   : > { %s17282_s18 = sand.u32 (!%p17975_p8), 1, %s16754_s30  }
 0x197   : > { %573 = sbr.rel (%p17975_p8) target bundleno = 3164 (0xc5c), region = 76  ;;  %s13303_s20 = sshll.u32 (!%p17975_p8), %s17282_s18, 5 }
 0x198   : > { %s576_s26 = scalar_lea.sflag (!%p17975_p8), [#allocation3], %s17282_s18  ;;  %s17286_s19 = scalar_lea.vmem (!%p17975_p8), [#allocation2], %s13303_s20 }
 0x19e   : > { %16709 = dma.done.wait (%p17178_p6), %s576_s26, 512  }
 0x19f   : > { %16711 = vsyncadd (%p17178_p6), %s576_s26, 4294966784  ;;  %s17976_s17 = sld [smem:[#allocation37_spill]]  ;;  %s15254_s25 = smul.u32 96, %s17282_s18 }
 0x1a1   : > { %s17294_s5 = scalar_lea.vmem [#allocation5], %s15254_s25 }
 0x1a5   : > { %s584_s6 = sand.u32 1, %s17976_s17  }
 0x1a6   : > { %s585_s4 = scalar_lea.sflag [#allocation6], %s584_s6 }
 0x1a7   : > { %16713 = dma.done.wait (%p17178_p6), %s585_s4, 1536  }
 0x1a8   : > { %16715 = vsyncadd (%p17178_p6), %s585_s4, 4294965760  ;;  %p17977_p11 = scmp.eq.s32.totalorder %s17976_s17, 0 }
 0x1aa   : > { %16717 = dma.done.wait (%p17977_p11), [#allocation6], 16384   ;;  %p17978_p0 = pmov %p17977_p11 }
 0x1ac   : > { %16719 = vsyncadd (%p17978_p0), [#allocation6], 4294950912  ;;  %p17979_p12 = pmov %p17978_p0 }
 0x1ad   : > { %p17980_p13 = pmov %p17978_p0 }
 0x1ae   : > { %16721 = dma.done.wait (%p17979_p12), [#allocation9], 65568  }
 0x1af   : > { %16723 = vsyncadd (%p17980_p13), [#allocation9], 4294901728  ;;  %p17981_p1 = pmov %p17978_p0 }
 0x1b0   : > { %p17982_p3 = pmov %p17978_p0 }
 0x1b1   : > { %16725 = dma.done.wait (%p17981_p1), [#allocation12], 16512  }
 0x1b2   : > { %16727 = vsyncadd (%p17982_p3), [#allocation12], 4294950784  ;;  %p17983_p6 = pmov %p17978_p0 }
 0x1b3   : > { %p17984_p2 = pmov %p17978_p0 }
 0x1b4   : > { %16729 = dma.done.wait (%p17983_p6), [#allocation15], 65568  }
 0x1b5   : > { %16731 = vsyncadd (%p17984_p2), [#allocation15], 4294901728  ;;  %p17985_p4 = pmov %p17978_p0 }
 0x1b6   : > { %p17986_p10 = pmov %p17978_p0 }
 0x1b7   : > { %16733 = dma.done.wait (%p17985_p4), [#allocation18], 32896  }
 0x1b8   : > { %16735 = vsyncadd (%p17986_p10), [#allocation18], 4294934400  ;;  %p17987_p5 = pmov %p17978_p0 }
 0x1b9   : > { %p17988_p7 = pmov %p17978_p0 }
 0x1ba   : > { %16737 = dma.done.wait (%p17987_p5), [#allocation21], 4160  }
 0x1bb   : > { %16739 = vsyncadd (%p17988_p7), [#allocation21], 4294963136  ;;  %p17989_p9 = pmov %p17978_p0 }
 0x1bc   : > { %p17990_p8 = pmov %p17978_p0 }
 0x1bd   : > { %16741 = dma.done.wait (%p17989_p9), [#allocation24], 16  }
 0x1be   : > { %16743 = vsyncadd (%p17990_p8), [#allocation24], 4294967280  ;;  %v15436_v0 = vld [vmem:[#allocation7 + $0x4] ss:$8 sps:$4 sm:$0xff]   ;;  %v15438_v3 = vld [vmem:[#allocation7] ss:$8 sps:$4 sm:$0xff]  }
 0x1bf   : > { %v1674_v1 = vld [vmem:[#allocation10] sm:$0xff]  ;;  %1510 = vmatprep.subr.bf16.mxu0 %v15436_v0  ;;  %v15439_v6 = vld [vmem:[#allocation7 + $0x14] ss:$8 sps:$4 sm:$0xff]   ;;  %v15441_v9 = vld [vmem:[#allocation7 + $0x10] ss:$8 sps:$4 sm:$0xff]   ;;  %vm10479_vm0 = vcmask 261120  }
 0x1c0   : > { %v1678_v2 = vld [vmem:[#allocation10 + $0x20] sm:$0xff]  ;;  %1511 = vmatpush1.bf16.msra.mxu0 %v15438_v3  ;;  %v15445_v19 = vld [vmem:[#allocation7 + $0x34] ss:$8 sps:$4 sm:$0xff]   ;;  %v15447_v22 = vld [vmem:[#allocation7 + $0x30] ss:$8 sps:$4 sm:$0xff]   ;;  %s14912_s0 = sshll.u32 %s17976_s17, 4 }
 0x1c1   : > { %v13453_v4 = vcombine.high %v1674_v1, %v1678_v2  ;;  %v13452_v5 = vcombine.low %v1674_v1, %v1678_v2  ;;  %v1682_v7 = vld [vmem:[#allocation10 + $0x40] sm:$0xff]  ;;  %1512 = vmatprep.subr.bf16.mxu0 %v15439_v6  ;;  %v15451_v31 = vld [vmem:[#allocation7 + $0x54] ss:$8 sps:$4 sm:$0xff]   ;;  %v15453_v34 = vld [vmem:[#allocation7 + $0x50] ss:$8 sps:$4 sm:$0xff]   ;;  %s684_s29 = scalar_lea.vmem [#allocation25], %s17282_s18 }
 0x1c2   : > { %v1686_v8 = vld [vmem:[#allocation10 + $0x60] sm:$0xff]  ;;  %v15457_v43 = vld [vmem:[#allocation7 + $0x74] ss:$8 sps:$4 sm:$0xff]   ;;  %v15459_v46 = vld [vmem:[#allocation7 + $0x70] ss:$8 sps:$4 sm:$0xff]   ;;  %s13080_s22 = sshll.u32 %s684_s29, 4  ;;  %s17867_s22 = int_to_ptr.vmem [resolvable:$true] %s13080_s22 }
 0x1c3   : > { %4788 = vmatprep.subr.bf16.mxu1 %v13453_v4  ;;  %v13461_v10 = vcombine.high %v1682_v7, %v1686_v8  ;;  %v15442_v11 = vld [vmem:[#allocation7 + $0x24] ss:$8 sps:$4 sm:$0xff]   ;;  %v13460_v12 = vcombine.low %v1682_v7, %v1686_v8  ;;  %v15444_v16 = vld [vmem:[#allocation7 + $0x20] ss:$8 sps:$4 sm:$0xff]   ;;  %v15463_v53 = vld [vmem:[#allocation7 + $0x94] ss:$8 sps:$4 sm:$0xff]  }
 0x1c4   : > { %4789 = vmatpush1.bf16.msra.mxu1 %v13452_v5  ;;  %v1690_v13 = vld [vmem:[#allocation10 + $0x80] sm:$0xff]  ;;  %1513 = vmatpush1.bf16.msra.mxu0 %v15441_v9  ;;  %v15465_v60 = vld [vmem:[#allocation7 + $0x90] ss:$8 sps:$4 sm:$0xff]   ;;  %v15469_v5 = vld [vmem:[#allocation7 + $0xb4] ss:$8 sps:$4 sm:$0xff]   ;;  %s17996_s27 = sld [smem:[#allocation47_spill]] }
 0x1c5   : > { %v1694_v14 = vld [vmem:[#allocation10 + $0xa0] sm:$0xff]  ;;  %4790 = vmatprep.subr.bf16.mxu1 %v13461_v10  ;;  %1514 = vmatprep.subr.bf16.mxu0 %v15442_v11  ;;  %v15471_v8 = vld [vmem:[#allocation7 + $0xb0] ss:$8 sps:$4 sm:$0xff]   ;;  %s13068_s20 = scalar_lea.sflag [#allocation4], %s17282_s18  ;;  %s16664_s26 = scalar_lea.vmem %s17867_s22, 16 }
 0x1c6   : > { %v13469_v15 = vcombine.high %v1690_v13, %v1694_v14  ;;  %v1698_v17 = vld [vmem:[#allocation10 + $0xc0] sm:$0xff]  ;;  %v13468_v20 = vcombine.low %v1690_v13, %v1694_v14  ;;  %p16665_p11 = scmp.ne.s32.totalorder %s17867_s22, %s16664_s26  ;;  %p17997_p0 = scmp.ne.s32.totalorder %s17966_s24, 0 }
 0x1c7   : > { %v1702_v18 = vld [vmem:[#allocation10 + $0xe0] sm:$0xff] }
 0x1c8   : > { %4791 = vmatpush1.bf16.msra.mxu1 %v13460_v12  ;;  %v13477_v21 = vcombine.high %v1698_v17, %v1702_v18  ;;  %1515 = vmatpush1.bf16.msra.mxu0 %v15444_v16  ;;  %v1706_v23 = vld [vmem:[#allocation10 + $0x100] sm:$0xff]  ;;  %v13476_v26 = vcombine.low %v1698_v17, %v1702_v18  ;;  %v15475_v17 = vld [vmem:[#allocation7 + $0xd4] ss:$8 sps:$4 sm:$0xff]   ;;  %p16666_p12 = pnand %p16665_p11, %p17997_p0 }
 0x1c9   : > { %4792 = vmatprep.subr.bf16.mxu1 %v13469_v15  ;;  %v1710_v24 = vld [vmem:[#allocation10 + $0x120] sm:$0xff]  ;;  %1516 = vmatprep.subr.bf16.mxu0 %v15445_v19 }
 0x1ca   : > { %v15448_v25 = vld [vmem:[#allocation7 + $0x44] ss:$8 sps:$4 sm:$0xff]   ;;  %v13485_v27 = vcombine.high %v1706_v23, %v1710_v24  ;;  %v15450_v28 = vld [vmem:[#allocation7 + $0x40] ss:$8 sps:$4 sm:$0xff]   ;;  %v13484_v32 = vcombine.low %v1706_v23, %v1710_v24  ;;  %s17865_s1 = scalar_lea.hbm %s17996_s27, %s14912_s0  ;;  %p16667_p13 = pneg %p16666_p12 }
 0x1cb   : > { %v1714_v29 = vld [vmem:[#allocation10 + $0x140] sm:$0xff] }
 0x1cc   : > { %4793 = vmatpush1.bf16.msra.mxu1 %v13468_v20  ;;  %1517 = vmatpush1.bf16.msra.mxu0 %v15447_v22  ;;  %v1718_v30 = vld [vmem:[#allocation10 + $0x160] sm:$0xff]  ;;  %v15477_v20 = vld [vmem:[#allocation7 + $0xd0] ss:$8 sps:$4 sm:$0xff]  }
 0x1cd   : > { %4794 = vmatprep.subr.bf16.mxu1 %v13477_v21  ;;  %1518 = vmatprep.subr.bf16.mxu0 %v15448_v25  ;;  %v13493_v33 = vcombine.high %v1714_v29, %v1718_v30  ;;  %v1722_v35 = vld [vmem:[#allocation10 + $0x180] sm:$0xff]  ;;  %v13492_v38 = vcombine.low %v1714_v29, %v1718_v30  ;;  %v15481_v29 = vld [vmem:[#allocation7 + $0xf4] ss:$8 sps:$4 sm:$0xff]  }
 0x1ce   : > { %v1726_v36 = vld [vmem:[#allocation10 + $0x1a0] sm:$0xff] }
 0x1cf   : > { %v15454_v37 = vld [vmem:[#allocation7 + $0x64] ss:$8 sps:$4 sm:$0xff]   ;;  %v13501_v39 = vcombine.high %v1722_v35, %v1726_v36  ;;  %v15456_v40 = vld [vmem:[#allocation7 + $0x60] ss:$8 sps:$4 sm:$0xff]   ;;  %v13500_v44 = vcombine.low %v1722_v35, %v1726_v36 }
 0x1d0   : > { %4795 = vmatpush1.bf16.msra.mxu1 %v13476_v26  ;;  %1519 = vmatpush1.bf16.msra.mxu0 %v15450_v28  ;;  %v1730_v41 = vld [vmem:[#allocation10 + $0x1c0] sm:$0xff] }
 0x1d1   : > { %4796 = vmatprep.subr.bf16.mxu1 %v13485_v27  ;;  %1520 = vmatprep.subr.bf16.mxu0 %v15451_v31  ;;  %v1734_v42 = vld [vmem:[#allocation10 + $0x1e0] sm:$0xff] }
 0x1d2   : > { %v13509_v45 = vcombine.high %v1730_v41, %v1734_v42  ;;  %v1738_v47 = vld [vmem:[#allocation10 + $0x200] sm:$0xff]  ;;  %v13508_v50 = vcombine.low %v1730_v41, %v1734_v42  ;;  %v15491_v42 = vld [vmem:[#allocation7 + $0x114] ss:$8 sps:$4 sm:$0xff]  }
 0x1d3   : > { %v1742_v48 = vld [vmem:[#allocation10 + $0x220] sm:$0xff] }
 0x1d4   : > { %4797 = vmatpush1.bf16.msra.mxu1 %v13484_v32  ;;  %1521 = vmatpush1.bf16.msra.mxu0 %v15453_v34  ;;  %v15460_v49 = vld [vmem:[#allocation7 + $0x84] ss:$8 sps:$4 sm:$0xff]   ;;  %v13517_v51 = vcombine.high %v1738_v47, %v1742_v48  ;;  %v15462_v52 = vld [vmem:[#allocation7 + $0x80] ss:$8 sps:$4 sm:$0xff]   ;;  %v13516_v57 = vcombine.low %v1738_v47, %v1742_v48  ;;  %v15483_v32 = vld [vmem:[#allocation7 + $0xf0] ss:$8 sps:$4 sm:$0xff]  }
 0x1d5   : > { %4798 = vmatprep.subr.bf16.mxu1 %v13493_v33  ;;  %1522 = vmatprep.subr.bf16.mxu0 %v15454_v37  ;;  %v1746_v54 = vld [vmem:[#allocation10 + $0x240] sm:$0xff] }
 0x1d6   : > { %v1750_v55 = vld [vmem:[#allocation10 + $0x260] sm:$0xff] }
 0x1d7   : > { %v17329_v56 = vld [vmem:[%s17286_s19] sm:$0xff]  ;;  %v13525_v59 = vcombine.high %v1746_v54, %v1750_v55  ;;  %v13524_v0 = vcombine.low %v1746_v54, %v1750_v55 }
 0x1d8   : > { %4799 = vmatpush1.bf16.msra.mxu1 %v13492_v38  ;;  %1523 = vmatpush1.bf16.msra.mxu0 %v15456_v40  ;;  %v17333_v58 = vcombine.high %v17329_v56, %v17329_v56  ;;  %v1754_v61 = vld [vmem:[#allocation10 + $0x280] sm:$0xff]  ;;  %v17339_v38 = vcombine.low %v17329_v56, %v17329_v56  ;;  %v15497_v56 = vld [vmem:[#allocation7 + $0x134] ss:$8 sps:$4 sm:$0xff]  }
 0x1d9   : > { %4800 = vmatprep.subr.bf16.mxu1 %v13501_v39  ;;  %1524 = vmatprep.subr.bf16.mxu0 %v15457_v43  ;;  %v1758_v62 = vld [vmem:[#allocation10 + $0x2a0] sm:$0xff] }
 0x1da   : > { %1542 = vmatprep.mubr.bf16.mxu0 %v17333_v58  ;;  %v15466_v63 = vld [vmem:[#allocation7 + $0xa4] ss:$8 sps:$4 sm:$0xff]   ;;  %4820 = vmatprep.mubr.bf16.mxu1 %v17333_v58  ;;  %v13533_v1 = vcombine.high %v1754_v61, %v1758_v62  ;;  %v15468_v2 = vld [vmem:[#allocation7 + $0xa0] ss:$8 sps:$4 sm:$0xff]   ;;  %v13532_v6 = vcombine.low %v1754_v61, %v1758_v62 }
 0x1db   : > { %v1762_v3 = vld [vmem:[#allocation10 + $0x2c0] sm:$0xff] }
 0x1dc   : > { %4801 = vmatpush1.bf16.msra.mxu1 %v13500_v44  ;;  %1525 = vmatpush1.bf16.msra.mxu0 %v15459_v46  ;;  %v1766_v4 = vld [vmem:[#allocation10 + $0x2e0] sm:$0xff]  ;;  %v15489_v46 = vld [vmem:[#allocation7 + $0x110] ss:$8 sps:$4 sm:$0xff]  }
 0x1dd   : > { %4802 = vmatprep.subr.bf16.mxu1 %v13509_v45  ;;  %1526 = vmatprep.subr.bf16.mxu0 %v15460_v49  ;;  %v13541_v7 = vcombine.high %v1762_v3, %v1766_v4  ;;  %v1770_v9 = vld [vmem:[#allocation10 + $0x300] sm:$0xff]  ;;  %v13540_v12 = vcombine.low %v1762_v3, %v1766_v4 }
 0x1de   : > { %v1774_v10 = vld [vmem:[#allocation10 + $0x320] sm:$0xff] }
 0x1df   : > { %v15472_v11 = vld [vmem:[#allocation7 + $0xc4] ss:$8 sps:$4 sm:$0xff]   ;;  %v13549_v13 = vcombine.high %v1770_v9, %v1774_v10  ;;  %v15474_v14 = vld [vmem:[#allocation7 + $0xc0] ss:$8 sps:$4 sm:$0xff]   ;;  %v13548_v18 = vcombine.low %v1770_v9, %v1774_v10 }
 0x1e0   : > { %4803 = vmatpush1.bf16.msra.mxu1 %v13508_v50  ;;  %1527 = vmatpush1.bf16.msra.mxu0 %v15462_v52  ;;  %v1778_v15 = vld [vmem:[#allocation10 + $0x340] sm:$0xff] }
 0x1e1   : > { %4804 = vmatprep.subr.bf16.mxu1 %v13517_v51  ;;  %1528 = vmatprep.subr.bf16.mxu0 %v15463_v53  ;;  %v1782_v16 = vld [vmem:[#allocation10 + $0x360] sm:$0xff] }
 0x1e2   : > { %v13557_v19 = vcombine.high %v1778_v15, %v1782_v16  ;;  %v1786_v21 = vld [vmem:[#allocation10 + $0x380] sm:$0xff]  ;;  %v13556_v24 = vcombine.low %v1778_v15, %v1782_v16 }
 0x1e3   : > { %v1790_v22 = vld [vmem:[#allocation10 + $0x3a0] sm:$0xff] }
 0x1e4   : > { %4805 = vmatpush1.bf16.msra.mxu1 %v13516_v57  ;;  %1529 = vmatpush1.bf16.msra.mxu0 %v15465_v60  ;;  %v15478_v23 = vld [vmem:[#allocation7 + $0xe4] ss:$8 sps:$4 sm:$0xff]   ;;  %v13565_v25 = vcombine.high %v1786_v21, %v1790_v22  ;;  %v15480_v26 = vld [vmem:[#allocation7 + $0xe0] ss:$8 sps:$4 sm:$0xff]   ;;  %v13564_v30 = vcombine.low %v1786_v21, %v1790_v22 }
 0x1e5   : > { %4806 = vmatprep.subr.bf16.mxu1 %v13525_v59  ;;  %1530 = vmatprep.subr.bf16.mxu0 %v15466_v63  ;;  %v1794_v27 = vld [vmem:[#allocation10 + $0x3c0] sm:$0xff]  ;;  %v15495_v59 = vld [vmem:[#allocation7 + $0x130] ss:$8 sps:$4 sm:$0xff]  }
 0x1e6   : > { %v1798_v28 = vld [vmem:[#allocation10 + $0x3e0] sm:$0xff] }
 0x1e7   : > { %v13573_v31 = vcombine.high %v1794_v27, %v1798_v28  ;;  %v1802_v33 = vld [vmem:[#allocation10 + $0x400] sm:$0xff]  ;;  %v13572_v36 = vcombine.low %v1794_v27, %v1798_v28 }
 0x1e8   : > { %4807 = vmatpush1.bf16.msra.mxu1 %v13524_v0  ;;  %1531 = vmatpush1.bf16.msra.mxu0 %v15468_v2  ;;  %v1806_v34 = vld [vmem:[#allocation10 + $0x420] sm:$0xff] }
 0x1e9   : > { %4808 = vmatprep.subr.bf16.mxu1 %v13533_v1  ;;  %1532 = vmatprep.subr.bf16.mxu0 %v15469_v5  ;;  %v15487_v35 = vld [vmem:[#allocation7 + $0x104] ss:$8 sps:$4 sm:$0xff]   ;;  %v13581_v37 = vcombine.high %v1802_v33, %v1806_v34  ;;  %v15485_v39 = vld [vmem:[#allocation7 + $0x100] ss:$8 sps:$4 sm:$0xff]   ;;  %v13580_v44 = vcombine.low %v1802_v33, %v1806_v34  ;;  %v15503_v5 = vld [vmem:[#allocation7 + $0x154] ss:$8 sps:$4 sm:$0xff]  }
 0x1ea   : > { %v1810_v40 = vld [vmem:[#allocation10 + $0x440] sm:$0xff] }
 0x1eb   : > { %v1814_v41 = vld [vmem:[#allocation10 + $0x460] sm:$0xff] }
 0x1ec   : > { %4809 = vmatpush1.bf16.msra.mxu1 %v13532_v6  ;;  %1533 = vmatpush1.bf16.msra.mxu0 %v15471_v8  ;;  %v17342_v43 = vld [vmem:[%s17286_s19 + $0x8] sm:$0xff]  ;;  %v13589_v47 = vcombine.high %v1810_v40, %v1814_v41  ;;  %v13588_v51 = vcombine.low %v1810_v40, %v1814_v41 }
 0x1ed   : > { %4810 = vmatprep.subr.bf16.mxu1 %v13541_v7  ;;  %1534 = vmatprep.subr.bf16.mxu0 %v15472_v11  ;;  %v17346_v45 = vcombine.high %v17342_v43, %v17342_v43  ;;  %v1818_v48 = vld [vmem:[#allocation10 + $0x480] sm:$0xff]  ;;  %v15501_v7 = vld [vmem:[#allocation7 + $0x150] ss:$8 sps:$4 sm:$0xff]  }
 0x1ee   : > { %v1822_v49 = vld [vmem:[#allocation10 + $0x4a0] sm:$0xff] }
 0x1ef   : > { %v15494_v50 = vld [vmem:[#allocation7 + $0x124] ss:$8 sps:$4 sm:$0xff]   ;;  %v15492_v52 = vld [vmem:[#allocation7 + $0x120] ss:$8 sps:$4 sm:$0xff]   ;;  %v13597_v53 = vcombine.high %v1818_v48, %v1822_v49  ;;  %v13596_v57 = vcombine.low %v1818_v48, %v1822_v49 }
 0x1f0   : > { %4811 = vmatpush1.bf16.msra.mxu1 %v13540_v12  ;;  %1535 = vmatpush1.bf16.msra.mxu0 %v15474_v14  ;;  %v1826_v54 = vld [vmem:[#allocation10 + $0x4c0] sm:$0xff] }
 0x1f1   : > { %4812 = vmatprep.subr.bf16.mxu1 %v13549_v13  ;;  %1536 = vmatprep.subr.bf16.mxu0 %v15475_v17  ;;  %v1830_v55 = vld [vmem:[#allocation10 + $0x4e0] sm:$0xff]  ;;  %v15509_v17 = vld [vmem:[#allocation7 + $0x174] ss:$8 sps:$4 sm:$0xff]  }
 0x1f2   : > { %v13605_v60 = vcombine.high %v1826_v54, %v1830_v55  ;;  %v1834_v61 = vld [vmem:[#allocation10 + $0x500] sm:$0xff]  ;;  %v13604_v0 = vcombine.low %v1826_v54, %v1830_v55 }
 0x1f3   : > { %v1838_v62 = vld [vmem:[#allocation10 + $0x520] sm:$0xff] }
 0x1f4   : > { %4813 = vmatpush1.bf16.msra.mxu1 %v13548_v18  ;;  %1537 = vmatpush1.bf16.msra.mxu0 %v15477_v20  ;;  %v15500_v63 = vld [vmem:[#allocation7 + $0x144] ss:$8 sps:$4 sm:$0xff]   ;;  %v15498_v1 = vld [vmem:[#allocation7 + $0x140] ss:$8 sps:$4 sm:$0xff]   ;;  %v13613_v2 = vcombine.high %v1834_v61, %v1838_v62  ;;  %v13612_v6 = vcombine.low %v1834_v61, %v1838_v62 }
 0x1f5   : > { %4814 = vmatprep.subr.bf16.mxu1 %v13557_v19  ;;  %1538 = vmatprep.subr.bf16.mxu0 %v15478_v23  ;;  %v1842_v3 = vld [vmem:[#allocation10 + $0x540] sm:$0xff]  ;;  %v15507_v19 = vld [vmem:[#allocation7 + $0x170] ss:$8 sps:$4 sm:$0xff]  }
 0x1f6   : > { %v1846_v4 = vld [vmem:[#allocation10 + $0x560] sm:$0xff] }
 0x1f7   : > { %v13621_v8 = vcombine.high %v1842_v3, %v1846_v4  ;;  %v1850_v9 = vld [vmem:[#allocation10 + $0x580] sm:$0xff]  ;;  %v13620_v12 = vcombine.low %v1842_v3, %v1846_v4 }
 0x1f8   : > { %4815 = vmatpush1.bf16.msra.mxu1 %v13556_v24  ;;  %1539 = vmatpush1.bf16.msra.mxu0 %v15480_v26  ;;  %v1854_v10 = vld [vmem:[#allocation10 + $0x5a0] sm:$0xff] }
 0x1f9   : > { %4816 = vmatprep.subr.bf16.mxu1 %v13565_v25  ;;  %1540 = vmatprep.subr.bf16.mxu0 %v15481_v29  ;;  %v15506_v11 = vld [vmem:[#allocation7 + $0x164] ss:$8 sps:$4 sm:$0xff]   ;;  %v15504_v13 = vld [vmem:[#allocation7 + $0x160] ss:$8 sps:$4 sm:$0xff]   ;;  %v13629_v14 = vcombine.high %v1850_v9, %v1854_v10  ;;  %v13628_v18 = vcombine.low %v1850_v9, %v1854_v10  ;;  %v15515_v29 = vld [vmem:[#allocation7 + $0x194] ss:$8 sps:$4 sm:$0xff]  }
 0x1fa   : > { %v1858_v15 = vld [vmem:[#allocation10 + $0x5c0] sm:$0xff] }
 0x1fb   : > { %v1862_v16 = vld [vmem:[#allocation10 + $0x5e0] sm:$0xff] }
 0x1fc   : > { %4817 = vmatpush1.bf16.msra.mxu1 %v13564_v30  ;;  %1541 = vmatpush1.bf16.msra.mxu0 %v15483_v32  ;;  %v13637_v20 = vcombine.high %v1858_v15, %v1862_v16  ;;  %v1866_v21 = vld [vmem:[#allocation10 + $0x600] sm:$0xff]  ;;  %v13636_v24 = vcombine.low %v1858_v15, %v1862_v16  ;;  %v17357_v16 = vcombine.low %v17342_v43, %v17342_v43 }
 0x1fd   : > { %4818 = vmatprep.subr.bf16.mxu1 %v13573_v31  ;;  %1551 = vmatprep.subr.bf16.mxu0 %v15487_v35  ;;  %v1870_v22 = vld [vmem:[#allocation10 + $0x620] sm:$0xff]  ;;  %v15513_v31 = vld [vmem:[#allocation7 + $0x190] ss:$8 sps:$4 sm:$0xff]  }
 0x1fe   : > { %v15512_v23 = vld [vmem:[#allocation7 + $0x184] ss:$8 sps:$4 sm:$0xff]   ;;  %v15510_v25 = vld [vmem:[#allocation7 + $0x180] ss:$8 sps:$4 sm:$0xff]   ;;  %v13645_v26 = vcombine.high %v1866_v21, %v1870_v22  ;;  %v13644_v30 = vcombine.low %v1866_v21, %v1870_v22  ;;  %v15539_v22 = vld [vmem:[#allocation7 + $0x210] ss:$8 sps:$4 sm:$0xff]  }
 0x1ff   : > { %1543 = vmatmul.mubr.bf16.vlgmr.msra.gmra.mrb[0].mxu0 %v17339_v38  ;;  %v1874_v27 = vld [vmem:[#allocation10 + $0x640] sm:$0xff] }
 0x200   : > { %4819 = vmatpush1.bf16.msra.mxu1 %v13572_v36  ;;  %1552 = vmatpush1.bf16.msra.mxu0 %v15485_v39  ;;  %v1878_v28 = vld [vmem:[#allocation10 + $0x660] sm:$0xff] }
 0x201   : > { %4829 = vmatprep.subr.bf16.mxu1 %v13581_v37  ;;  %1583 = vmatprep.mubr.bf16.mxu0 %v17346_v45  ;;  %v13653_v32 = vcombine.high %v1874_v27, %v1878_v28  ;;  %v1882_v33 = vld [vmem:[#allocation10 + $0x680] sm:$0xff]  ;;  %v13652_v36 = vcombine.low %v1874_v27, %v1878_v28 }
 0x202   : > { %1553 = vmatprep.subr.bf16.mxu0 %v15491_v42  ;;  %v1886_v34 = vld [vmem:[#allocation10 + $0x6a0] sm:$0xff]  ;;  %v15521_v42 = vld [vmem:[#allocation7 + $0x1b4] ss:$8 sps:$4 sm:$0xff]  }
 0x203   : > { %4821 = vmatmul.mubr.bf16.vlgmr.msra.gmra.mrb[0].mxu1 %v17339_v38  ;;  %v15518_v35 = vld [vmem:[#allocation7 + $0x1a4] ss:$8 sps:$4 sm:$0xff]   ;;  %v15516_v37 = vld [vmem:[#allocation7 + $0x1a0] ss:$8 sps:$4 sm:$0xff]   ;;  %v13661_v39 = vcombine.high %v1882_v33, %v1886_v34 }
 0x204   : > { %4830 = vmatpush1.bf16.msra.mxu1 %v13580_v44  ;;  %4861 = vmatprep.mubr.bf16.mxu1 %v17346_v45  ;;  %v1890_v40 = vld [vmem:[#allocation10 + $0x6c0] sm:$0xff]  ;;  %v13660_v44 = vcombine.low %v1882_v33, %v1886_v34  ;;  %v15545_v33 = vld [vmem:[#allocation7 + $0x230] ss:$8 sps:$4 sm:$0xff]  }
 0x205   : > { %4831 = vmatprep.subr.bf16.mxu1 %v13589_v47  ;;  %1554 = vmatpush1.bf16.msra.mxu0 %v15489_v46  ;;  %v1894_v41 = vld [vmem:[#allocation10 + $0x6e0] sm:$0xff]  ;;  %v15519_v46 = vld [vmem:[#allocation7 + $0x1b0] ss:$8 sps:$4 sm:$0xff]  }
 0x206   : > { %1555 = vmatprep.subr.bf16.mxu0 %v15494_v50  ;;  %v13669_v47 = vcombine.high %v1890_v40, %v1894_v41  ;;  %v1898_v48 = vld [vmem:[#allocation10 + $0x700] sm:$0xff] }
 0x207   : > { %v1902_v49 = vld [vmem:[#allocation10 + $0x720] sm:$0xff] }
 0x208   : > { %4832 = vmatpush1.bf16.msra.mxu1 %v13588_v51  ;;  %v15524_v50 = vld [vmem:[#allocation7 + $0x1c4] ss:$8 sps:$4 sm:$0xff]   ;;  %v13668_v51 = vcombine.low %v1890_v40, %v1894_v41  ;;  %v15542_v27 = vld [vmem:[#allocation7 + $0x220] ss:$8 sps:$4 sm:$0xff]  }
 0x209   : > { %4833 = vmatprep.subr.bf16.mxu1 %v13597_v53  ;;  %1556 = vmatpush1.bf16.msra.mxu0 %v15492_v52  ;;  %v15522_v52 = vld [vmem:[#allocation7 + $0x1c0] ss:$8 sps:$4 sm:$0xff]   ;;  %v13677_v53 = vcombine.high %v1898_v48, %v1902_v49  ;;  %v15544_v43 = vld [vmem:[#allocation7 + $0x224] ss:$8 sps:$4 sm:$0xff]  }
 0x20a   : > { %1557 = vmatprep.subr.bf16.mxu0 %v15497_v56  ;;  %v1906_v54 = vld [vmem:[#allocation10 + $0x740] sm:$0xff]  ;;  %v15527_v56 = vld [vmem:[#allocation7 + $0x1d4] ss:$8 sps:$4 sm:$0xff]  }
 0x20b   : > { %v1910_v55 = vld [vmem:[#allocation10 + $0x760] sm:$0xff] }
 0x20c   : > { %4834 = vmatpush1.bf16.msra.mxu1 %v13596_v57  ;;  %v13676_v57 = vcombine.low %v1898_v48, %v1902_v49  ;;  %v1914_v61 = vld [vmem:[#allocation10 + $0x780] sm:$0xff]  ;;  %v15551_v48 = vld [vmem:[#allocation7 + $0x250] ss:$8 sps:$4 sm:$0xff]  }
 0x20d   : > { %4835 = vmatprep.subr.bf16.mxu1 %v13605_v60  ;;  %1558 = vmatpush1.bf16.msra.mxu0 %v15495_v59  ;;  %v15525_v59 = vld [vmem:[#allocation7 + $0x1d0] ss:$8 sps:$4 sm:$0xff]   ;;  %v13685_v60 = vcombine.high %v1906_v54, %v1910_v55  ;;  %v1918_v62 = vld [vmem:[#allocation10 + $0x7a0] sm:$0xff] }
 0x20e   : > { %1559 = vmatprep.subr.bf16.mxu0 %v15500_v63  ;;  %v15530_v63 = vld [vmem:[#allocation7 + $0x1e4] ss:$8 sps:$4 sm:$0xff]   ;;  %v15548_v40 = vld [vmem:[#allocation7 + $0x240] ss:$8 sps:$4 sm:$0xff]  }
 0x20f   : > { %v1922_v3 = vld [vmem:[#allocation10 + $0x7c0] sm:$0xff] }
 0x210   : > { %4836 = vmatpush1.bf16.msra.mxu1 %v13604_v0  ;;  %v13684_v0 = vcombine.low %v1906_v54, %v1910_v55  ;;  %v1926_v4 = vld [vmem:[#allocation10 + $0x7e0] sm:$0xff] }
 0x211   : > { %4837 = vmatprep.subr.bf16.mxu1 %v13613_v2  ;;  %1560 = vmatpush1.bf16.msra.mxu0 %v15498_v1  ;;  %v15528_v1 = vld [vmem:[#allocation7 + $0x1e0] ss:$8 sps:$4 sm:$0xff]   ;;  %v13693_v2 = vcombine.high %v1914_v61, %v1918_v62 }
 0x212   : > { %1561 = vmatprep.subr.bf16.mxu0 %v15503_v5  ;;  %v15533_v5 = vld [vmem:[#allocation7 + $0x1f4] ss:$8 sps:$4 sm:$0xff]   ;;  %v1930_v9 = vld [vmem:[#allocation10 + $0x800] sm:$0xff] }
 0x213   : > { %v1934_v10 = vld [vmem:[#allocation10 + $0x820] sm:$0xff] }
 0x214   : > { %4838 = vmatpush1.bf16.msra.mxu1 %v13612_v6  ;;  %v13692_v6 = vcombine.low %v1914_v61, %v1918_v62  ;;  %v13709_v15 = vcombine.high %v1930_v9, %v1934_v10  ;;  %v13708_v21 = vcombine.low %v1930_v9, %v1934_v10  ;;  %v1954_v28 = vld [vmem:[#allocation10 + $0x8c0] sm:$0xff]  ;;  %v15557_v61 = vld [vmem:[#allocation7 + $0x270] ss:$8 sps:$4 sm:$0xff]  }
 0x215   : > { %4839 = vmatprep.subr.bf16.mxu1 %v13621_v8  ;;  %1562 = vmatpush1.bf16.msra.mxu0 %v15501_v7  ;;  %v15531_v7 = vld [vmem:[#allocation7 + $0x1f0] ss:$8 sps:$4 sm:$0xff]   ;;  %v13701_v8 = vcombine.high %v1922_v3, %v1926_v4  ;;  %v1962_v34 = vld [vmem:[#allocation10 + $0x900] sm:$0xff] }
 0x216   : > { %1563 = vmatprep.subr.bf16.mxu0 %v15506_v11  ;;  %v15537_v11 = vld [vmem:[#allocation7 + $0x204] ss:$8 sps:$4 sm:$0xff]   ;;  %v15554_v54 = vld [vmem:[#allocation7 + $0x260] ss:$8 sps:$4 sm:$0xff]   ;;  %v15563_v9 = vld [vmem:[#allocation7 + $0x290] ss:$8 sps:$4 sm:$0xff]  }
 0x217   : > { %v1970_v41 = vld [vmem:[#allocation10 + $0x940] sm:$0xff] }
 0x218   : > { %4840 = vmatpush1.bf16.msra.mxu1 %v13620_v12  ;;  %v17353_v12 = vld [vmem:[%s17286_s19 + $0x10] sm:$0xff]  ;;  %v1978_v49 = vld [vmem:[#allocation10 + $0x980] sm:$0xff] }
 0x219   : > { %4841 = vmatprep.subr.bf16.mxu1 %v13629_v14  ;;  %1564 = vmatpush1.bf16.msra.mxu0 %v15504_v13  ;;  %v13700_v13 = vcombine.low %v1922_v3, %v1926_v4  ;;  %v15535_v14 = vld [vmem:[#allocation7 + $0x200] ss:$8 sps:$4 sm:$0xff]  }
 0x21a   : > { %1565 = vmatprep.subr.bf16.mxu0 %v15509_v17  ;;  %v1938_v17 = vld [vmem:[#allocation10 + $0x840] sm:$0xff] }
 0x21b   : > { %v1986_v55 = vld [vmem:[#allocation10 + $0x9c0] sm:$0xff] }
 0x21c   : > { %4842 = vmatpush1.bf16.msra.mxu1 %v13628_v18  ;;  %v1942_v18 = vld [vmem:[#allocation10 + $0x860] sm:$0xff] }
 0x21d   : > { %4843 = vmatprep.subr.bf16.mxu1 %v13637_v20  ;;  %1566 = vmatpush1.bf16.msra.mxu0 %v15507_v19  ;;  %v17361_v19 = vcombine.high %v17353_v12, %v17353_v12  ;;  %v15541_v20 = vld [vmem:[#allocation7 + $0x214] ss:$8 sps:$4 sm:$0xff]   ;;  %v1994_v62 = vld [vmem:[#allocation10 + $0xa00] sm:$0xff] }
 0x21e   : > { %1567 = vmatprep.subr.bf16.mxu0 %v15512_v23  ;;  %v13717_v23 = vcombine.high %v1938_v17, %v1942_v18  ;;  %v15560_v3 = vld [vmem:[#allocation7 + $0x280] ss:$8 sps:$4 sm:$0xff]  }
 0x21f   : > { %v2002_v4 = vld [vmem:[#allocation10 + $0xa40] sm:$0xff] }
 0x220   : > { %4844 = vmatpush1.bf16.msra.mxu1 %v13636_v24  ;;  %v1946_v24 = vld [vmem:[#allocation10 + $0x880] sm:$0xff] }
 0x221   : > { %4845 = vmatprep.subr.bf16.mxu1 %v13645_v26  ;;  %1568 = vmatpush1.bf16.msra.mxu0 %v15510_v25  ;;  %v1950_v25 = vld [vmem:[#allocation10 + $0x8a0] sm:$0xff]  ;;  %v13716_v26 = vcombine.low %v1938_v17, %v1942_v18 }
 0x222   : > { %1569 = vmatprep.subr.bf16.mxu0 %v15515_v29  ;;  %v1958_v29 = vld [vmem:[#allocation10 + $0x8e0] sm:$0xff] }
 0x223   : > { %v2010_v10 = vld [vmem:[#allocation10 + $0xa80] sm:$0xff] }
 0x224   : > { %4846 = vmatpush1.bf16.msra.mxu1 %v13644_v30  ;;  %v13725_v30 = vcombine.high %v1946_v24, %v1950_v25  ;;  %v15566_v17 = vld [vmem:[#allocation7 + $0x2a0] ss:$8 sps:$4 sm:$0xff]  }
 0x225   : > { %4847 = vmatprep.subr.bf16.mxu1 %v13653_v32  ;;  %1570 = vmatpush1.bf16.msra.mxu0 %v15513_v31  ;;  %v15547_v31 = vld [vmem:[#allocation7 + $0x234] ss:$8 sps:$4 sm:$0xff]   ;;  %v13724_v32 = vcombine.low %v1946_v24, %v1950_v25  ;;  %v2018_v18 = vld [vmem:[#allocation10 + $0xac0] sm:$0xff]  ;;  %v15569_v24 = vld [vmem:[#allocation7 + $0x2b0] ss:$8 sps:$4 sm:$0xff]  }
 0x226   : > { %1571 = vmatprep.subr.bf16.mxu0 %v15518_v35  ;;  %v1966_v35 = vld [vmem:[#allocation10 + $0x920] sm:$0xff] }
 0x227   : > { %v2026_v25 = vld [vmem:[#allocation10 + $0xb00] sm:$0xff] }
 0x228   : > { %4848 = vmatpush1.bf16.msra.mxu1 %v13652_v36  ;;  %v13733_v36 = vcombine.high %v1954_v28, %v1958_v29 }
 0x229   : > { %4849 = vmatprep.subr.bf16.mxu1 %v13661_v39  ;;  %1572 = vmatpush1.bf16.msra.mxu0 %v15516_v37  ;;  %v15550_v37 = vld [vmem:[#allocation7 + $0x244] ss:$8 sps:$4 sm:$0xff]   ;;  %v13732_v39 = vcombine.low %v1954_v28, %v1958_v29  ;;  %v15572_v29 = vld [vmem:[#allocation7 + $0x2c0] ss:$8 sps:$4 sm:$0xff]  }
 0x22a   : > { %1573 = vmatprep.subr.bf16.mxu0 %v15521_v42  ;;  %v1974_v42 = vld [vmem:[#allocation10 + $0x960] sm:$0xff] }
 0x22c   : > { %4850 = vmatpush1.bf16.msra.mxu1 %v13660_v44  ;;  %v13741_v44 = vcombine.high %v1962_v34, %v1966_v35 }
 0x22d   : > { %4851 = vmatprep.subr.bf16.mxu1 %v13669_v47  ;;  %1574 = vmatpush1.bf16.msra.mxu0 %v15519_v46  ;;  %v15553_v46 = vld [vmem:[#allocation7 + $0x254] ss:$8 sps:$4 sm:$0xff]   ;;  %v13740_v47 = vcombine.low %v1962_v34, %v1966_v35  ;;  %v15575_v35 = vld [vmem:[#allocation7 + $0x2d0] ss:$8 sps:$4 sm:$0xff]  }
 0x22e   : > { %1575 = vmatprep.subr.bf16.mxu0 %v15524_v50  ;;  %v1982_v50 = vld [vmem:[#allocation10 + $0x9a0] sm:$0xff] }
 0x230   : > { %4852 = vmatpush1.bf16.msra.mxu1 %v13668_v51  ;;  %v13749_v51 = vcombine.high %v1970_v41, %v1974_v42 }
 0x231   : > { %4853 = vmatprep.subr.bf16.mxu1 %v13677_v53  ;;  %1576 = vmatpush1.bf16.msra.mxu0 %v15522_v52  ;;  %v15556_v52 = vld [vmem:[#allocation7 + $0x264] ss:$8 sps:$4 sm:$0xff]   ;;  %v13748_v53 = vcombine.low %v1970_v41, %v1974_v42  ;;  %v15578_v42 = vld [vmem:[#allocation7 + $0x2e0] ss:$8 sps:$4 sm:$0xff]  }
 0x232   : > { %1577 = vmatprep.subr.bf16.mxu0 %v15527_v56  ;;  %v1990_v56 = vld [vmem:[#allocation10 + $0x9e0] sm:$0xff] }
 0x234   : > { %4854 = vmatpush1.bf16.msra.mxu1 %v13676_v57  ;;  %v13757_v57 = vcombine.high %v1978_v49, %v1982_v50 }
 0x235   : > { %4855 = vmatprep.subr.bf16.mxu1 %v13685_v60  ;;  %1578 = vmatpush1.bf16.msra.mxu0 %v15525_v59  ;;  %v15559_v59 = vld [vmem:[#allocation7 + $0x274] ss:$8 sps:$4 sm:$0xff]   ;;  %v13756_v60 = vcombine.low %v1978_v49, %v1982_v50  ;;  %v15581_v50 = vld [vmem:[#allocation7 + $0x2f0] ss:$8 sps:$4 sm:$0xff]  }
 0x236   : > { %1579 = vmatprep.subr.bf16.mxu0 %v15530_v63  ;;  %v1998_v63 = vld [vmem:[#allocation10 + $0xa20] sm:$0xff] }
 0x238   : > { %4856 = vmatpush1.bf16.msra.mxu1 %v13684_v0  ;;  %v13765_v0 = vcombine.high %v1986_v55, %v1990_v56 }
 0x239   : > { %4857 = vmatprep.subr.bf16.mxu1 %v13693_v2  ;;  %1580 = vmatpush1.bf16.msra.mxu0 %v15528_v1  ;;  %v15562_v1 = vld [vmem:[#allocation7 + $0x284] ss:$8 sps:$4 sm:$0xff]   ;;  %v13764_v2 = vcombine.low %v1986_v55, %v1990_v56  ;;  %v17368_v55 = vld [vmem:[%s17286_s19 + $0x18] sm:$0xff]  ;;  %s16787_s19 = smov [#allocation25]  }
 0x23a   : > { %1581 = vmatprep.subr.bf16.mxu0 %v15533_v5  ;;  %v2006_v5 = vld [vmem:[#allocation10 + $0xa60] sm:$0xff]  ;;  %s16668_s17 = sshll.u32 %s16787_s19, 4  ;;  %s16669_s17 = int_to_ptr.vmem [resolvable:$false] %s16668_s17 }
 0x23b   : > { %s16670_s6 = scalar_lea.vmem %s16669_s17, 32  ;;  %p16671_p1 = scmp.lt.s32.totalorder %s17867_s22, %s16669_s17 }
 0x23c   : > { %4858 = vmatpush1.bf16.msra.mxu1 %v13692_v6  ;;  %v13773_v6 = vcombine.high %v1994_v62, %v1998_v63  ;;  %p16672_p3 = scmp.lt.s32.totalorder %s16670_s6, %s16664_s26 }
 0x23d   : > { %4859 = vmatprep.subr.bf16.mxu1 %v13701_v8  ;;  %1582 = vmatpush1.bf16.msra.mxu0 %v15531_v7  ;;  %v15565_v7 = vld [vmem:[#allocation7 + $0x294] ss:$8 sps:$4 sm:$0xff]   ;;  %v13772_v8 = vcombine.low %v1994_v62, %v1998_v63  ;;  %v17372_v62 = vcombine.low %v17353_v12, %v17353_v12  ;;  %v17376_v63 = vcombine.high %v17368_v55, %v17368_v55  ;;  %v15594_v12 = vld [vmem:[#allocation7 + $0x324] ss:$8 sps:$4 sm:$0xff]  }
 0x23e   : > { %1592 = vmatprep.subr.bf16.mxu0 %v15537_v11  ;;  %v2014_v11 = vld [vmem:[#allocation10 + $0xaa0] sm:$0xff]  ;;  %p16673_p6 = por %p16672_p3, %p16671_p1 }
 0x240   : > { %4860 = vmatpush1.bf16.msra.mxu1 %v13700_v13  ;;  %1584 = vmatmul.mubr.bf16.vlgmr.msra.gmra.mrb[0].mxu0 %v17357_v16  ;;  %v13781_v13 = vcombine.high %v2002_v4, %v2006_v5  ;;  %p16674_p2 = pnand %p16673_p6, %p16667_p13 }
 0x241   : > { %4870 = vmatprep.subr.bf16.mxu1 %v13709_v15  ;;  %1593 = vmatpush1.bf16.msra.mxu0 %v15535_v14  ;;  %v15568_v14 = vld [vmem:[#allocation7 + $0x2a4] ss:$8 sps:$4 sm:$0xff]   ;;  %v13780_v15 = vcombine.low %v2002_v4, %v2006_v5 }
 0x242   : > { %1624 = vmatprep.mubr.bf16.mxu0 %v17361_v19  ;;  %1594 = vmatprep.subr.bf16.mxu0 %v15541_v20  ;;  %v2022_v20 = vld [vmem:[#allocation10 + $0xae0] sm:$0xff] }
 0x243   : > { %4862 = vmatmul.mubr.bf16.vlgmr.msra.gmra.mrb[0].mxu1 %v17357_v16  ;;  %v13796_v28 = vcombine.low %v2018_v18, %v2022_v20  ;;  %v2078_v4 = vld [vmem:[#allocation10 + $0xca0] sm:$0xff] }
 0x244   : > { %4871 = vmatpush1.bf16.msra.mxu1 %v13708_v21  ;;  %4902 = vmatprep.mubr.bf16.mxu1 %v17361_v19  ;;  %v13789_v21 = vcombine.high %v2010_v10, %v2014_v11 }
 0x245   : > { %4872 = vmatprep.subr.bf16.mxu1 %v13717_v23  ;;  %1595 = vmatpush1.bf16.msra.mxu0 %v15539_v22  ;;  %v15571_v22 = vld [vmem:[#allocation7 + $0x2b4] ss:$8 sps:$4 sm:$0xff]   ;;  %v13788_v23 = vcombine.low %v2010_v10, %v2014_v11 }
 0x246   : > { %1596 = vmatprep.subr.bf16.mxu0 %v15544_v43  ;;  %v2030_v43 = vld [vmem:[#allocation10 + $0xb20] sm:$0xff]  ;;  %v15597_v11 = vld [vmem:[#allocation7 + $0x334] ss:$8 sps:$4 sm:$0xff]  }
 0x247   : > { %v13804_v34 = vcombine.low %v2026_v25, %v2030_v43 }
 0x248   : > { %4873 = vmatpush1.bf16.msra.mxu1 %v13716_v26  ;;  %v13797_v26 = vcombine.high %v2018_v18, %v2022_v20  ;;  %v15600_v20 = vld [vmem:[#allocation7 + $0x344] ss:$8 sps:$4 sm:$0xff]  }
 0x249   : > { %4874 = vmatprep.subr.bf16.mxu1 %v13725_v30  ;;  %1597 = vmatpush1.bf16.msra.mxu0 %v15542_v27  ;;  %v15574_v27 = vld [vmem:[#allocation7 + $0x2c4] ss:$8 sps:$4 sm:$0xff]  }
 0x24a   : > { %1598 = vmatprep.subr.bf16.mxu0 %v15547_v31  ;;  %v2034_v30 = vld [vmem:[#allocation10 + $0xb40] sm:$0xff] }
 0x24b   : > { %v2038_v31 = vld [vmem:[#allocation10 + $0xb60] sm:$0xff] }
 0x24c   : > { %4875 = vmatpush1.bf16.msra.mxu1 %v13724_v32  ;;  %v13805_v32 = vcombine.high %v2026_v25, %v2030_v43  ;;  %v13812_v41 = vcombine.low %v2034_v30, %v2038_v31  ;;  %v15603_v43 = vld [vmem:[#allocation7 + $0x354] ss:$8 sps:$4 sm:$0xff]  }
 0x24d   : > { %4876 = vmatprep.subr.bf16.mxu1 %v13733_v36  ;;  %1599 = vmatpush1.bf16.msra.mxu0 %v15545_v33  ;;  %v15577_v33 = vld [vmem:[#allocation7 + $0x2d4] ss:$8 sps:$4 sm:$0xff]   ;;  %v2042_v36 = vld [vmem:[#allocation10 + $0xb80] sm:$0xff] }
 0x24e   : > { %1600 = vmatprep.subr.bf16.mxu0 %v15550_v37  ;;  %v2046_v37 = vld [vmem:[#allocation10 + $0xba0] sm:$0xff] }
 0x24f   : > { %v13820_v49 = vcombine.low %v2042_v36, %v2046_v37 }
 0x250   : > { %4877 = vmatpush1.bf16.msra.mxu1 %v13732_v39  ;;  %v13813_v39 = vcombine.high %v2034_v30, %v2038_v31  ;;  %v15606_v31 = vld [vmem:[#allocation7 + $0x364] ss:$8 sps:$4 sm:$0xff]  }
 0x251   : > { %4878 = vmatprep.subr.bf16.mxu1 %v13741_v44  ;;  %1601 = vmatpush1.bf16.msra.mxu0 %v15548_v40  ;;  %v15580_v40 = vld [vmem:[#allocation7 + $0x2e4] ss:$8 sps:$4 sm:$0xff]  }
 0x252   : > { %1602 = vmatprep.subr.bf16.mxu0 %v15553_v46  ;;  %v2050_v44 = vld [vmem:[#allocation10 + $0xbc0] sm:$0xff] }
 0x253   : > { %v2054_v46 = vld [vmem:[#allocation10 + $0xbe0] sm:$0xff] }
 0x254   : > { %4879 = vmatpush1.bf16.msra.mxu1 %v13740_v47  ;;  %v13821_v47 = vcombine.high %v2042_v36, %v2046_v37  ;;  %v13828_v56 = vcombine.low %v2050_v44, %v2054_v46  ;;  %v15609_v37 = vld [vmem:[#allocation7 + $0x374] ss:$8 sps:$4 sm:$0xff]  }
 0x255   : > { %4880 = vmatprep.subr.bf16.mxu1 %v13749_v51  ;;  %1603 = vmatpush1.bf16.msra.mxu0 %v15551_v48  ;;  %v15583_v48 = vld [vmem:[#allocation7 + $0x2f4] ss:$8 sps:$4 sm:$0xff]   ;;  %v2058_v51 = vld [vmem:[#allocation10 + $0xc00] sm:$0xff] }
 0x256   : > { %1604 = vmatprep.subr.bf16.mxu0 %v15556_v52  ;;  %v2062_v52 = vld [vmem:[#allocation10 + $0xc20] sm:$0xff] }
 0x258   : > { %4881 = vmatpush1.bf16.msra.mxu1 %v13748_v53  ;;  %v13829_v53 = vcombine.high %v2050_v44, %v2054_v46  ;;  %v15612_v46 = vld [vmem:[#allocation7 + $0x384] ss:$8 sps:$4 sm:$0xff]  }
 0x259   : > { %4882 = vmatprep.subr.bf16.mxu1 %v13757_v57  ;;  %1605 = vmatpush1.bf16.msra.mxu0 %v15554_v54  ;;  %v15587_v54 = vld [vmem:[#allocation7 + $0x304] ss:$8 sps:$4 sm:$0xff]   ;;  %v15585_v57 = vld [vmem:[#allocation7 + $0x300] ss:$8 sps:$4 sm:$0xff]  }
 0x25a   : > { %1606 = vmatprep.subr.bf16.mxu0 %v15559_v59  ;;  %v2066_v59 = vld [vmem:[#allocation10 + $0xc40] sm:$0xff] }
 0x25c   : > { %4883 = vmatpush1.bf16.msra.mxu1 %v13756_v60  ;;  %v2070_v60 = vld [vmem:[#allocation10 + $0xc60] sm:$0xff] }
 0x25d   : > { %4884 = vmatprep.subr.bf16.mxu1 %v13765_v0  ;;  %1607 = vmatpush1.bf16.msra.mxu0 %v15557_v61  ;;  %v13837_v61 = vcombine.high %v2058_v51, %v2062_v52  ;;  %v15591_v0 = vld [vmem:[#allocation7 + $0x314] ss:$8 sps:$4 sm:$0xff]   ;;  %v13845_v5 = vcombine.high %v2066_v59, %v2070_v60 }
 0x25e   : > { %1608 = vmatprep.subr.bf16.mxu0 %v15562_v1  ;;  %v13836_v1 = vcombine.low %v2058_v51, %v2062_v52  ;;  %v15615_v52 = vld [vmem:[#allocation7 + $0x394] ss:$8 sps:$4 sm:$0xff]  }
 0x260   : > { %4885 = vmatpush1.bf16.msra.mxu1 %v13764_v2  ;;  %v15589_v2 = vld [vmem:[#allocation7 + $0x310] ss:$8 sps:$4 sm:$0xff]  }
 0x261   : > { %4886 = vmatprep.subr.bf16.mxu1 %v13773_v6  ;;  %1609 = vmatpush1.bf16.msra.mxu0 %v15560_v3  ;;  %v2074_v3 = vld [vmem:[#allocation10 + $0xc80] sm:$0xff]  ;;  %v13844_v6 = vcombine.low %v2066_v59, %v2070_v60 }
 0x262   : > { %1610 = vmatprep.subr.bf16.mxu0 %v15565_v7  ;;  %v15592_v7 = vld [vmem:[#allocation7 + $0x320] ss:$8 sps:$4 sm:$0xff]   ;;  %v13853_v10 = vcombine.high %v2074_v3, %v2078_v4  ;;  %v15618_v60 = vld [vmem:[#allocation7 + $0x3a4] ss:$8 sps:$4 sm:$0xff]  }
 0x264   : > { %4887 = vmatpush1.bf16.msra.mxu1 %v13772_v8  ;;  %v2082_v8 = vld [vmem:[#allocation10 + $0xcc0] sm:$0xff] }
 0x265   : > { %4888 = vmatprep.subr.bf16.mxu1 %v13781_v13  ;;  %1611 = vmatpush1.bf16.msra.mxu0 %v15563_v9  ;;  %v2086_v9 = vld [vmem:[#allocation10 + $0xce0] sm:$0xff]  ;;  %v13852_v13 = vcombine.low %v2074_v3, %v2078_v4  ;;  %v15621_v4 = vld [vmem:[#allocation7 + $0x3b4] ss:$8 sps:$4 sm:$0xff]  }
 0x266   : > { %1612 = vmatprep.subr.bf16.mxu0 %v15568_v14  ;;  %v15595_v14 = vld [vmem:[#allocation7 + $0x330] ss:$8 sps:$4 sm:$0xff]   ;;  %v13861_v18 = vcombine.high %v2082_v8, %v2086_v9 }
 0x268   : > { %4889 = vmatpush1.bf16.msra.mxu1 %v13780_v15  ;;  %v2090_v15 = vld [vmem:[#allocation10 + $0xd00] sm:$0xff] }
 0x269   : > { %4890 = vmatprep.subr.bf16.mxu1 %v13789_v21  ;;  %1613 = vmatpush1.bf16.msra.mxu0 %v15566_v17  ;;  %v2094_v17 = vld [vmem:[#allocation10 + $0xd20] sm:$0xff]  ;;  %v13860_v21 = vcombine.low %v2082_v8, %v2086_v9 }
 0x26a   : > { %1614 = vmatprep.subr.bf16.mxu0 %v15571_v22  ;;  %v15598_v22 = vld [vmem:[#allocation7 + $0x340] ss:$8 sps:$4 sm:$0xff]   ;;  %v13869_v25 = vcombine.high %v2090_v15, %v2094_v17  ;;  %v15624_v9 = vld [vmem:[#allocation7 + $0x3c4] ss:$8 sps:$4 sm:$0xff]  }
 0x26c   : > { %4891 = vmatpush1.bf16.msra.mxu1 %v13788_v23  ;;  %v2098_v23 = vld [vmem:[#allocation10 + $0xd40] sm:$0xff] }
 0x26d   : > { %4892 = vmatprep.subr.bf16.mxu1 %v13797_v26  ;;  %1615 = vmatpush1.bf16.msra.mxu0 %v15569_v24  ;;  %v2102_v24 = vld [vmem:[#allocation10 + $0xd60] sm:$0xff]  ;;  %v13868_v26 = vcombine.low %v2090_v15, %v2094_v17  ;;  %v15627_v17 = vld [vmem:[#allocation7 + $0x3d4] ss:$8 sps:$4 sm:$0xff]  }
 0x26e   : > { %1616 = vmatprep.subr.bf16.mxu0 %v15574_v27  ;;  %v15601_v27 = vld [vmem:[#allocation7 + $0x350] ss:$8 sps:$4 sm:$0xff]   ;;  %v13877_v30 = vcombine.high %v2098_v23, %v2102_v24 }
 0x270   : > { %4893 = vmatpush1.bf16.msra.mxu1 %v13796_v28  ;;  %v2106_v28 = vld [vmem:[#allocation10 + $0xd80] sm:$0xff] }
 0x271   : > { %4894 = vmatprep.subr.bf16.mxu1 %v13805_v32  ;;  %1617 = vmatpush1.bf16.msra.mxu0 %v15572_v29  ;;  %v2110_v29 = vld [vmem:[#allocation10 + $0xda0] sm:$0xff]  ;;  %v13876_v32 = vcombine.low %v2098_v23, %v2102_v24 }
 0x272   : > { %1618 = vmatprep.subr.bf16.mxu0 %v15577_v33  ;;  %v15604_v33 = vld [vmem:[#allocation7 + $0x360] ss:$8 sps:$4 sm:$0xff]   ;;  %v13885_v36 = vcombine.high %v2106_v28, %v2110_v29  ;;  %v15630_v24 = vld [vmem:[#allocation7 + $0x3e4] ss:$8 sps:$4 sm:$0xff]  }
 0x274   : > { %4895 = vmatpush1.bf16.msra.mxu1 %v13804_v34  ;;  %v2114_v34 = vld [vmem:[#allocation10 + $0xdc0] sm:$0xff] }
 0x275   : > { %4896 = vmatprep.subr.bf16.mxu1 %v13813_v39  ;;  %1619 = vmatpush1.bf16.msra.mxu0 %v15575_v35  ;;  %v2118_v35 = vld [vmem:[#allocation10 + $0xde0] sm:$0xff]  ;;  %v13884_v39 = vcombine.low %v2106_v28, %v2110_v29  ;;  %v15633_v29 = vld [vmem:[#allocation7 + $0x3f4] ss:$8 sps:$4 sm:$0xff]  }
 0x276   : > { %1620 = vmatprep.subr.bf16.mxu0 %v15580_v40  ;;  %v15607_v40 = vld [vmem:[#allocation7 + $0x370] ss:$8 sps:$4 sm:$0xff]   ;;  %v13893_v44 = vcombine.high %v2114_v34, %v2118_v35 }
 0x278   : > { %4897 = vmatpush1.bf16.msra.mxu1 %v13812_v41  ;;  %v2122_v41 = vld [vmem:[#allocation10 + $0xe00] sm:$0xff] }
 0x279   : > { %4898 = vmatprep.subr.bf16.mxu1 %v13821_v47  ;;  %1621 = vmatpush1.bf16.msra.mxu0 %v15578_v42  ;;  %v2126_v42 = vld [vmem:[#allocation10 + $0xe20] sm:$0xff]  ;;  %v13892_v47 = vcombine.low %v2114_v34, %v2118_v35  ;;  %v1676_v34 = vld [vmem:[#allocation10 + $0x10] sm:$0xff] }
 0x27a   : > { %1622 = vmatprep.subr.bf16.mxu0 %v15583_v48  ;;  %v15610_v48 = vld [vmem:[#allocation7 + $0x380] ss:$8 sps:$4 sm:$0xff]   ;;  %v13901_v51 = vcombine.high %v2122_v41, %v2126_v42  ;;  %v1680_v35 = vld [vmem:[#allocation10 + $0x30] sm:$0xff] }
 0x27c   : > { %4899 = vmatpush1.bf16.msra.mxu1 %v13820_v49  ;;  %v2130_v49 = vld [vmem:[#allocation10 + $0xe40] sm:$0xff] }
 0x27d   : > { %4900 = vmatprep.subr.bf16.mxu1 %v13829_v53  ;;  %1623 = vmatpush1.bf16.msra.mxu0 %v15581_v50  ;;  %v2134_v50 = vld [vmem:[#allocation10 + $0xe60] sm:$0xff]  ;;  %v13900_v53 = vcombine.low %v2122_v41, %v2126_v42  ;;  %v1684_v42 = vld [vmem:[#allocation10 + $0x50] sm:$0xff] }
 0x27e   : > { %1633 = vmatprep.subr.bf16.mxu0 %v15587_v54  ;;  %v15613_v54 = vld [vmem:[#allocation7 + $0x390] ss:$8 sps:$4 sm:$0xff]   ;;  %v13909_v59 = vcombine.high %v2130_v49, %v2134_v50 }
 0x280   : > { %4901 = vmatpush1.bf16.msra.mxu1 %v13828_v56  ;;  %1625 = vmatmul.mubr.bf16.vlgmr.msra.gmra.mrb[0].mxu0 %v17372_v62  ;;  %v2138_v56 = vld [vmem:[#allocation10 + $0xe80] sm:$0xff] }
 0x281   : > { %4911 = vmatprep.subr.bf16.mxu1 %v13837_v61  ;;  %1634 = vmatpush1.bf16.msra.mxu0 %v15585_v57  ;;  %v2142_v57 = vld [vmem:[#allocation10 + $0xea0] sm:$0xff]  ;;  %v13908_v61 = vcombine.low %v2130_v49, %v2134_v50  ;;  %v1691_v50 = vld [vmem:[#allocation10 + $0x88] sm:$0xff] }
 0x282   : > { %1665 = vmatprep.mubr.bf16.mxu0 %v17376_v63  ;;  %1635 = vmatprep.subr.bf16.mxu0 %v15591_v0  ;;  %v15616_v0 = vld [vmem:[#allocation7 + $0x3a0] ss:$8 sps:$4 sm:$0xff]   ;;  %v13917_v3 = vcombine.high %v2138_v56, %v2142_v57 }
 0x283   : > { %4903 = vmatmul.mubr.bf16.vlgmr.msra.gmra.mrb[0].mxu1 %v17372_v62 }
 0x284   : > { %4912 = vmatpush1.bf16.msra.mxu1 %v13836_v1  ;;  %4943 = vmatprep.mubr.bf16.mxu1 %v17376_v63  ;;  %v2146_v1 = vld [vmem:[#allocation10 + $0xec0] sm:$0xff] }
 0x285   : > { %4913 = vmatprep.subr.bf16.mxu1 %v13845_v5  ;;  %1636 = vmatpush1.bf16.msra.mxu0 %v15589_v2  ;;  %v2150_v2 = vld [vmem:[#allocation10 + $0xee0] sm:$0xff]  ;;  %v13916_v5 = vcombine.low %v2138_v56, %v2142_v57 }
 0x286   : > { %1637 = vmatprep.subr.bf16.mxu0 %v15594_v12  ;;  %v15619_v12 = vld [vmem:[#allocation7 + $0x3b0] ss:$8 sps:$4 sm:$0xff]   ;;  %v13925_v8 = vcombine.high %v2146_v1, %v2150_v2 }
 0x288   : > { %4914 = vmatpush1.bf16.msra.mxu1 %v13844_v6  ;;  %v2154_v6 = vld [vmem:[#allocation10 + $0xf00] sm:$0xff] }
 0x289   : > { %4915 = vmatprep.subr.bf16.mxu1 %v13853_v10  ;;  %1638 = vmatpush1.bf16.msra.mxu0 %v15592_v7  ;;  %v2158_v7 = vld [vmem:[#allocation10 + $0xf20] sm:$0xff]  ;;  %v13924_v10 = vcombine.low %v2146_v1, %v2150_v2  ;;  %v1704_v1 = vld [vmem:[#allocation10 + $0xf0] sm:$0xff] }
 0x28a   : > { %1639 = vmatprep.subr.bf16.mxu0 %v15597_v11  ;;  %v15622_v11 = vld [vmem:[#allocation7 + $0x3c0] ss:$8 sps:$4 sm:$0xff]   ;;  %v13933_v15 = vcombine.high %v2154_v6, %v2158_v7 }
 0x28c   : > { %4916 = vmatpush1.bf16.msra.mxu1 %v13852_v13  ;;  %v2162_v13 = vld [vmem:[#allocation10 + $0xf40] sm:$0xff] }
 0x28d   : > { %4917 = vmatprep.subr.bf16.mxu1 %v13861_v18  ;;  %1640 = vmatpush1.bf16.msra.mxu0 %v15595_v14  ;;  %v2166_v14 = vld [vmem:[#allocation10 + $0xf60] sm:$0xff]  ;;  %v13932_v18 = vcombine.low %v2154_v6, %v2158_v7  ;;  %v1708_v7 = vld [vmem:[#allocation10 + $0x110] sm:$0xff] }
 0x28e   : > { %1641 = vmatprep.subr.bf16.mxu0 %v15600_v20  ;;  %v15625_v20 = vld [vmem:[#allocation7 + $0x3d0] ss:$8 sps:$4 sm:$0xff]   ;;  %v13941_v23 = vcombine.high %v2162_v13, %v2166_v14 }
 0x290   : > { %4918 = vmatpush1.bf16.msra.mxu1 %v13860_v21  ;;  %v2170_v21 = vld [vmem:[#allocation10 + $0xf80] sm:$0xff] }
 0x291   : > { %4919 = vmatprep.subr.bf16.mxu1 %v13869_v25  ;;  %1642 = vmatpush1.bf16.msra.mxu0 %v15598_v22  ;;  %v2174_v22 = vld [vmem:[#allocation10 + $0xfa0] sm:$0xff]  ;;  %v13940_v25 = vcombine.low %v2162_v13, %v2166_v14  ;;  %v1715_v13 = vld [vmem:[#allocation10 + $0x148] sm:$0xff] }
 0x292   : > { %1643 = vmatprep.subr.bf16.mxu0 %v15603_v43  ;;  %v15628_v43 = vld [vmem:[#allocation7 + $0x3e0] ss:$8 sps:$4 sm:$0xff]   ;;  %v13949_v28 = vcombine.high %v2170_v21, %v2174_v22 }
 0x293   : > { %v1719_v14 = vld [vmem:[#allocation10 + $0x168] sm:$0xff] }
 0x294   : > { %4920 = vmatpush1.bf16.msra.mxu1 %v13868_v26  ;;  %v2178_v26 = vld [vmem:[#allocation10 + $0xfc0] sm:$0xff] }
 0x295   : > { %4921 = vmatprep.subr.bf16.mxu1 %v13877_v30  ;;  %1644 = vmatpush1.bf16.msra.mxu0 %v15601_v27  ;;  %v2182_v27 = vld [vmem:[#allocation10 + $0xfe0] sm:$0xff]  ;;  %v1675_v30 = vld [vmem:[#allocation10 + $0x8] sm:$0xff] }
 0x296   : > { %1645 = vmatprep.subr.bf16.mxu0 %v15606_v31  ;;  %v1679_v31 = vld [vmem:[#allocation10 + $0x28] sm:$0xff]  ;;  %v13956_v41 = vcombine.low %v2178_v26, %v2182_v27 }
 0x298   : > { %4922 = vmatpush1.bf16.msra.mxu1 %v13876_v32  ;;  %v13948_v32 = vcombine.low %v2170_v21, %v2174_v22  ;;  %v13495_v22 = vcombine.high %v1715_v13, %v1719_v14 }
 0x299   : > { %4923 = vmatprep.subr.bf16.mxu1 %v13885_v36  ;;  %1646 = vmatpush1.bf16.msra.mxu0 %v15604_v33  ;;  %v15631_v33 = vld [vmem:[#allocation7 + $0x3f0] ss:$8 sps:$4 sm:$0xff]   ;;  %v13957_v36 = vcombine.high %v2178_v26, %v2182_v27 }
 0x29a   : > { %1647 = vmatprep.subr.bf16.mxu0 %v15609_v37  ;;  %v13455_v37 = vcombine.high %v1675_v30, %v1679_v31  ;;  %v1728_v26 = vld [vmem:[#allocation10 + $0x1b0] sm:$0xff] }
 0x29c   : > { %4924 = vmatpush1.bf16.msra.mxu1 %v13884_v39  ;;  %v1683_v39 = vld [vmem:[#allocation10 + $0x48] sm:$0xff] }
 0x29d   : > { %4925 = vmatprep.subr.bf16.mxu1 %v13893_v44  ;;  %1648 = vmatpush1.bf16.msra.mxu0 %v15607_v40  ;;  %v1687_v40 = vld [vmem:[#allocation10 + $0x68] sm:$0xff]  ;;  %v1688_v44 = vld [vmem:[#allocation10 + $0x70] sm:$0xff] }
 0x29e   : > { %1649 = vmatprep.subr.bf16.mxu0 %v15612_v46  ;;  %v17384_v46 = vcombine.low %v17368_v55, %v17368_v55  ;;  %v13463_v49 = vcombine.high %v1683_v39, %v1687_v40  ;;  %v13465_v56 = vcombine.high %v1684_v42, %v1688_v44  ;;  %v13462_v57 = vcombine.low %v1683_v39, %v1687_v40  ;;  %v1739_v39 = vld [vmem:[#allocation10 + $0x208] sm:$0xff] }
 0x29f   : > { %v1743_v40 = vld [vmem:[#allocation10 + $0x228] sm:$0xff] }
 0x2a0   : > { %4926 = vmatpush1.bf16.msra.mxu1 %v13892_v47  ;;  %v13457_v47 = vcombine.high %v1676_v34, %v1680_v35 }
 0x2a1   : > { %4927 = vmatprep.subr.bf16.mxu1 %v13901_v51  ;;  %1650 = vmatpush1.bf16.msra.mxu0 %v15610_v48  ;;  %v13454_v48 = vcombine.low %v1675_v30, %v1679_v31  ;;  %v1695_v51 = vld [vmem:[#allocation10 + $0xa8] sm:$0xff] }
 0x2a2   : > { %1651 = vmatprep.subr.bf16.mxu0 %v15615_v52  ;;  %v13456_v52 = vcombine.low %v1676_v34, %v1680_v35  ;;  %v13471_v55 = vcombine.high %v1691_v50, %v1695_v51  ;;  %v1731_v30 = vld [vmem:[#allocation10 + $0x1c8] sm:$0xff]  ;;  %v1736_v34 = vld [vmem:[#allocation10 + $0x1f0] sm:$0xff] }
 0x2a3   : > { %v1735_v31 = vld [vmem:[#allocation10 + $0x1e8] sm:$0xff] }
 0x2a4   : > { %4928 = vmatpush1.bf16.msra.mxu1 %v13900_v53  ;;  %v1692_v53 = vld [vmem:[#allocation10 + $0x90] sm:$0xff] }
 0x2a5   : > { %4929 = vmatprep.subr.bf16.mxu1 %v13909_v59  ;;  %1652 = vmatpush1.bf16.msra.mxu0 %v15613_v54  ;;  %v1696_v54 = vld [vmem:[#allocation10 + $0xb0] sm:$0xff]  ;;  %v1699_v59 = vld [vmem:[#allocation10 + $0xc8] sm:$0xff] }
 0x2a6   : > { %1653 = vmatprep.subr.bf16.mxu0 %v15618_v60  ;;  %v1703_v60 = vld [vmem:[#allocation10 + $0xe8] sm:$0xff]  ;;  %v13473_v2 = vcombine.high %v1692_v53, %v1696_v54  ;;  %v13472_v6 = vcombine.low %v1692_v53, %v1696_v54  ;;  %v1748_v53 = vld [vmem:[#allocation10 + $0x250] sm:$0xff] }
 0x2a7   : > { %v1752_v54 = vld [vmem:[#allocation10 + $0x270] sm:$0xff] }
 0x2a8   : > { %4930 = vmatpush1.bf16.msra.mxu1 %v13908_v61  ;;  %v13464_v61 = vcombine.low %v1684_v42, %v1688_v44  ;;  %v1740_v42 = vld [vmem:[#allocation10 + $0x210] sm:$0xff] }
 0x2a9   : > { %4931 = vmatprep.subr.bf16.mxu1 %v13917_v3  ;;  %1654 = vmatpush1.bf16.msra.mxu0 %v15616_v0  ;;  %v1700_v0 = vld [vmem:[#allocation10 + $0xd0] sm:$0xff]  ;;  %v13470_v3 = vcombine.low %v1691_v50, %v1695_v51  ;;  %v1747_v50 = vld [vmem:[#allocation10 + $0x248] sm:$0xff] }
 0x2aa   : > { %1655 = vmatprep.subr.bf16.mxu0 %v15621_v4  ;;  %v13479_v4 = vcombine.high %v1699_v59, %v1703_v60  ;;  %v1744_v44 = vld [vmem:[#allocation10 + $0x230] sm:$0xff]  ;;  %v1751_v51 = vld [vmem:[#allocation10 + $0x268] sm:$0xff] }
 0x2ac   : > { %4932 = vmatpush1.bf16.msra.mxu1 %v13916_v5  ;;  %v1707_v5 = vld [vmem:[#allocation10 + $0x108] sm:$0xff] }
 0x2ad   : > { %4933 = vmatprep.subr.bf16.mxu1 %v13925_v8  ;;  %1656 = vmatpush1.bf16.msra.mxu0 %v15619_v12  ;;  %v1711_v12 = vld [vmem:[#allocation10 + $0x128] sm:$0xff]  ;;  %v1712_v8 = vld [vmem:[#allocation10 + $0x130] sm:$0xff] }
 0x2ae   : > { %1657 = vmatprep.subr.bf16.mxu0 %v15624_v9  ;;  %v13481_v9 = vcombine.high %v1700_v0, %v1704_v1  ;;  %v13486_v21 = vcombine.low %v1707_v5, %v1711_v12 }
 0x2b0   : > { %4934 = vmatpush1.bf16.msra.mxu1 %v13924_v10  ;;  %v13478_v10 = vcombine.low %v1699_v59, %v1703_v60  ;;  %v1755_v59 = vld [vmem:[#allocation10 + $0x288] sm:$0xff] }
 0x2b1   : > { %4935 = vmatprep.subr.bf16.mxu1 %v13933_v15  ;;  %1658 = vmatpush1.bf16.msra.mxu0 %v15622_v11  ;;  %v13487_v11 = vcombine.high %v1707_v5, %v1711_v12  ;;  %v13480_v15 = vcombine.low %v1700_v0, %v1704_v1  ;;  %v1759_v60 = vld [vmem:[#allocation10 + $0x2a8] sm:$0xff]  ;;  %v1756_v0 = vld [vmem:[#allocation10 + $0x290] sm:$0xff] }
 0x2b2   : > { %1659 = vmatprep.subr.bf16.mxu0 %v15627_v17  ;;  %v1716_v17 = vld [vmem:[#allocation10 + $0x150] sm:$0xff]  ;;  %v1763_v5 = vld [vmem:[#allocation10 + $0x2c8] sm:$0xff] }
 0x2b3   : > { %v1760_v1 = vld [vmem:[#allocation10 + $0x2b0] sm:$0xff]  ;;  %v1767_v12 = vld [vmem:[#allocation10 + $0x2e8] sm:$0xff] }
 0x2b4   : > { %4936 = vmatpush1.bf16.msra.mxu1 %v13932_v18  ;;  %v1720_v18 = vld [vmem:[#allocation10 + $0x170] sm:$0xff] }
 0x2b5   : > { %4937 = vmatprep.subr.bf16.mxu1 %v13941_v23  ;;  %1660 = vmatpush1.bf16.msra.mxu0 %v15625_v20  ;;  %v13489_v20 = vcombine.high %v1708_v7, %v1712_v8  ;;  %v1723_v23 = vld [vmem:[#allocation10 + $0x188] sm:$0xff]  ;;  %v13497_v27 = vcombine.high %v1716_v17, %v1720_v18 }
 0x2b6   : > { %1661 = vmatprep.subr.bf16.mxu0 %v15630_v24  ;;  %v1727_v24 = vld [vmem:[#allocation10 + $0x1a8] sm:$0xff] }
 0x2b8   : > { %4938 = vmatpush1.bf16.msra.mxu1 %v13940_v25  ;;  %v13488_v25 = vcombine.low %v1708_v7, %v1712_v8  ;;  %v1764_v7 = vld [vmem:[#allocation10 + $0x2d0] sm:$0xff] }
 0x2b9   : > { %4939 = vmatprep.subr.bf16.mxu1 %v13949_v28  ;;  %1662 = vmatpush1.bf16.msra.mxu0 %v15628_v43  ;;  %v1724_v43 = vld [vmem:[#allocation10 + $0x190] sm:$0xff]  ;;  %v13494_v28 = vcombine.low %v1715_v13, %v1719_v14  ;;  %v1771_v13 = vld [vmem:[#allocation10 + $0x308] sm:$0xff] }
 0x2ba   : > { %1663 = vmatprep.subr.bf16.mxu0 %v15633_v29  ;;  %v13503_v29 = vcombine.high %v1723_v23, %v1727_v24  ;;  %v13505_v35 = vcombine.high %v1724_v43, %v1728_v26  ;;  %v1768_v8 = vld [vmem:[#allocation10 + $0x2f0] sm:$0xff]  ;;  %v1775_v14 = vld [vmem:[#allocation10 + $0x328] sm:$0xff] }
 0x2bc   : > { %4940 = vmatpush1.bf16.msra.mxu1 %v13948_v32  ;;  %v13496_v32 = vcombine.low %v1716_v17, %v1720_v18  ;;  %v1772_v17 = vld [vmem:[#allocation10 + $0x310] sm:$0xff] }
 0x2bd   : > { %4941 = vmatprep.subr.bf16.mxu1 %v13957_v36  ;;  %1664 = vmatpush1.bf16.msra.mxu0 %v15631_v33  ;;  %v1732_v33 = vld [vmem:[#allocation10 + $0x1d0] sm:$0xff]  ;;  %v13502_v36 = vcombine.low %v1723_v23, %v1727_v24  ;;  %v1779_v23 = vld [vmem:[#allocation10 + $0x348] sm:$0xff] }
 0x2be   : > { %4952 = vmatprep.subr.bf16.mxu0 %v13455_v37  ;;  %v13511_v37 = vcombine.high %v1731_v30, %v1735_v31  ;;  %v1776_v18 = vld [vmem:[#allocation10 + $0x330] sm:$0xff]  ;;  %v1783_v24 = vld [vmem:[#allocation10 + $0x368] sm:$0xff] }
 0x2c0   : > { %4942 = vmatpush1.bf16.msra.mxu1 %v13956_v41  ;;  %1666 = vmatmul.mubr.bf16.vlgmr.msra.gmra.mrb[0].mxu0 %v17384_v46  ;;  %v13504_v41 = vcombine.low %v1724_v43, %v1728_v26  ;;  %v1780_v43 = vld [vmem:[#allocation10 + $0x350] sm:$0xff] }
 0x2c1   : > { %5116 = vmatprep.subr.bf16.mxu1 %v13457_v47  ;;  %4953 = vmatpush1.bf16.msra.mxu0 %v13454_v48  ;;  %v13513_v47 = vcombine.high %v1732_v33, %v1736_v34  ;;  %v13510_v48 = vcombine.low %v1731_v30, %v1735_v31  ;;  %v1784_v26 = vld [vmem:[#allocation10 + $0x370] sm:$0xff]  ;;  %v1787_v30 = vld [vmem:[#allocation10 + $0x388] sm:$0xff] }
 0x2c2   : > { %4984 = vmatprep.mubr.bf16.mxu0 %v17333_v58  ;;  %4954 = vmatprep.subr.bf16.mxu0 %v13463_v49  ;;  %v13519_v49 = vcombine.high %v1739_v39, %v1743_v40  ;;  %v1791_v31 = vld [vmem:[#allocation10 + $0x3a8] sm:$0xff] }
 0x2c3   : > { %4944 = vmatmul.mubr.bf16.vlgmr.msra.gmra.mrb[0].mxu1 %v17384_v46 }
 0x2c4   : > { %5117 = vmatpush1.bf16.msra.mxu1 %v13456_v52  ;;  %5148 = vmatprep.mubr.bf16.mxu1 %v17333_v58  ;;  %v13512_v52 = vcombine.low %v1732_v33, %v1736_v34  ;;  %v1788_v33 = vld [vmem:[#allocation10 + $0x390] sm:$0xff] }
 0x2c5   : > { %5118 = vmatprep.subr.bf16.mxu1 %v13465_v56  ;;  %4955 = vmatpush1.bf16.msra.mxu0 %v13462_v57  ;;  %v13521_v56 = vcombine.high %v1740_v42, %v1744_v44  ;;  %v13518_v57 = vcombine.low %v1739_v39, %v1743_v40  ;;  %v1792_v34 = vld [vmem:[#allocation10 + $0x3b0] sm:$0xff]  ;;  %v1795_v39 = vld [vmem:[#allocation10 + $0x3c8] sm:$0xff] }
 0x2c6   : > { %4956 = vmatprep.subr.bf16.mxu0 %v13471_v55  ;;  %v13527_v55 = vcombine.high %v1747_v50, %v1751_v51  ;;  %v1799_v40 = vld [vmem:[#allocation10 + $0x3e8] sm:$0xff] }
 0x2c8   : > { %5119 = vmatpush1.bf16.msra.mxu1 %v13464_v61  ;;  %v13520_v61 = vcombine.low %v1740_v42, %v1744_v44  ;;  %v1796_v42 = vld [vmem:[#allocation10 + $0x3d0] sm:$0xff] }
 0x2c9   : > { %5120 = vmatprep.subr.bf16.mxu1 %v13473_v2  ;;  %4957 = vmatpush1.bf16.msra.mxu0 %v13470_v3  ;;  %v13529_v2 = vcombine.high %v1748_v53, %v1752_v54  ;;  %v13526_v3 = vcombine.low %v1747_v50, %v1751_v51  ;;  %v1800_v44 = vld [vmem:[#allocation10 + $0x3f0] sm:$0xff]  ;;  %v1803_v50 = vld [vmem:[#allocation10 + $0x408] sm:$0xff] }
 0x2ca   : > { %4958 = vmatprep.subr.bf16.mxu0 %v13479_v4  ;;  %v13535_v4 = vcombine.high %v1755_v59, %v1759_v60  ;;  %v1807_v51 = vld [vmem:[#allocation10 + $0x428] sm:$0xff] }
 0x2cc   : > { %5121 = vmatpush1.bf16.msra.mxu1 %v13472_v6  ;;  %v13528_v6 = vcombine.low %v1748_v53, %v1752_v54  ;;  %v1804_v53 = vld [vmem:[#allocation10 + $0x410] sm:$0xff] }
 0x2cd   : > { %5122 = vmatprep.subr.bf16.mxu1 %v13481_v9  ;;  %4959 = vmatpush1.bf16.msra.mxu0 %v13478_v10  ;;  %v13537_v9 = vcombine.high %v1756_v0, %v1760_v1  ;;  %v13534_v10 = vcombine.low %v1755_v59, %v1759_v60  ;;  %v1808_v54 = vld [vmem:[#allocation10 + $0x430] sm:$0xff]  ;;  %v1811_v59 = vld [vmem:[#allocation10 + $0x448] sm:$0xff] }
 0x2ce   : > { %4960 = vmatprep.subr.bf16.mxu0 %v13487_v11  ;;  %v13543_v11 = vcombine.high %v1763_v5, %v1767_v12  ;;  %v1815_v60 = vld [vmem:[#allocation10 + $0x468] sm:$0xff] }
 0x2d0   : > { %5123 = vmatpush1.bf16.msra.mxu1 %v13480_v15  ;;  %v13536_v15 = vcombine.low %v1756_v0, %v1760_v1  ;;  %v1812_v0 = vld [vmem:[#allocation10 + $0x450] sm:$0xff] }
 0x2d1   : > { %5124 = vmatprep.subr.bf16.mxu1 %v13489_v20  ;;  %4961 = vmatpush1.bf16.msra.mxu0 %v13486_v21  ;;  %v13545_v20 = vcombine.high %v1764_v7, %v1768_v8  ;;  %v13542_v21 = vcombine.low %v1763_v5, %v1767_v12  ;;  %v1816_v1 = vld [vmem:[#allocation10 + $0x470] sm:$0xff]  ;;  %v1819_v5 = vld [vmem:[#allocation10 + $0x488] sm:$0xff] }
 0x2d2   : > { %4962 = vmatprep.subr.bf16.mxu0 %v13495_v22  ;;  %v13551_v22 = vcombine.high %v1771_v13, %v1775_v14  ;;  %v1823_v12 = vld [vmem:[#allocation10 + $0x4a8] sm:$0xff] }
 0x2d4   : > { %5125 = vmatpush1.bf16.msra.mxu1 %v13488_v25  ;;  %v13544_v25 = vcombine.low %v1764_v7, %v1768_v8  ;;  %v1820_v7 = vld [vmem:[#allocation10 + $0x490] sm:$0xff] }
 0x2d5   : > { %5126 = vmatprep.subr.bf16.mxu1 %v13497_v27  ;;  %4963 = vmatpush1.bf16.msra.mxu0 %v13494_v28  ;;  %v13553_v27 = vcombine.high %v1772_v17, %v1776_v18  ;;  %v13550_v28 = vcombine.low %v1771_v13, %v1775_v14  ;;  %v1824_v8 = vld [vmem:[#allocation10 + $0x4b0] sm:$0xff]  ;;  %v1827_v13 = vld [vmem:[#allocation10 + $0x4c8] sm:$0xff] }
 0x2d6   : > { %4964 = vmatprep.subr.bf16.mxu0 %v13503_v29  ;;  %v13559_v29 = vcombine.high %v1779_v23, %v1783_v24  ;;  %v1831_v14 = vld [vmem:[#allocation10 + $0x4e8] sm:$0xff] }
 0x2d8   : > { %5127 = vmatpush1.bf16.msra.mxu1 %v13496_v32  ;;  %v13552_v32 = vcombine.low %v1772_v17, %v1776_v18  ;;  %v1828_v17 = vld [vmem:[#allocation10 + $0x4d0] sm:$0xff] }
 0x2d9   : > { %5128 = vmatprep.subr.bf16.mxu1 %v13505_v35  ;;  %4965 = vmatpush1.bf16.msra.mxu0 %v13502_v36  ;;  %v13561_v35 = vcombine.high %v1780_v43, %v1784_v26  ;;  %v13558_v36 = vcombine.low %v1779_v23, %v1783_v24  ;;  %v1832_v18 = vld [vmem:[#allocation10 + $0x4f0] sm:$0xff]  ;;  %v1835_v23 = vld [vmem:[#allocation10 + $0x508] sm:$0xff] }
 0x2da   : > { %4966 = vmatprep.subr.bf16.mxu0 %v13511_v37  ;;  %v13567_v37 = vcombine.high %v1787_v30, %v1791_v31  ;;  %v1839_v24 = vld [vmem:[#allocation10 + $0x528] sm:$0xff] }
 0x2dc   : > { %5129 = vmatpush1.bf16.msra.mxu1 %v13504_v41  ;;  %v13560_v41 = vcombine.low %v1780_v43, %v1784_v26  ;;  %v1836_v43 = vld [vmem:[#allocation10 + $0x510] sm:$0xff] }
 0x2dd   : > { %5130 = vmatprep.subr.bf16.mxu1 %v13513_v47  ;;  %4967 = vmatpush1.bf16.msra.mxu0 %v13510_v48  ;;  %v13569_v47 = vcombine.high %v1788_v33, %v1792_v34  ;;  %v13566_v48 = vcombine.low %v1787_v30, %v1791_v31  ;;  %v1840_v26 = vld [vmem:[#allocation10 + $0x530] sm:$0xff]  ;;  %v1843_v30 = vld [vmem:[#allocation10 + $0x548] sm:$0xff] }
 0x2de   : > { %4968 = vmatprep.subr.bf16.mxu0 %v13519_v49  ;;  %v13575_v49 = vcombine.high %v1795_v39, %v1799_v40  ;;  %v1847_v31 = vld [vmem:[#allocation10 + $0x568] sm:$0xff] }
 0x2e0   : > { %5131 = vmatpush1.bf16.msra.mxu1 %v13512_v52  ;;  %v13568_v52 = vcombine.low %v1788_v33, %v1792_v34  ;;  %v1844_v33 = vld [vmem:[#allocation10 + $0x550] sm:$0xff] }
 0x2e1   : > { %5132 = vmatprep.subr.bf16.mxu1 %v13521_v56  ;;  %4969 = vmatpush1.bf16.msra.mxu0 %v13518_v57  ;;  %v13577_v56 = vcombine.high %v1796_v42, %v1800_v44  ;;  %v13574_v57 = vcombine.low %v1795_v39, %v1799_v40  ;;  %v1848_v34 = vld [vmem:[#allocation10 + $0x570] sm:$0xff]  ;;  %v1851_v39 = vld [vmem:[#allocation10 + $0x588] sm:$0xff]  ;;  %v13616_v40 = vcombine.low %v1836_v43, %v1840_v26 }
 0x2e2   : > { %4970 = vmatprep.subr.bf16.mxu0 %v13527_v55  ;;  %v13583_v55 = vcombine.high %v1803_v50, %v1807_v51 }
 0x2e4   : > { %5133 = vmatpush1.bf16.msra.mxu1 %v13520_v61  ;;  %v13576_v61 = vcombine.low %v1796_v42, %v1800_v44  ;;  %v1852_v42 = vld [vmem:[#allocation10 + $0x590] sm:$0xff]  ;;  %v13625_v44 = vcombine.high %v1844_v33, %v1848_v34 }
 0x2e5   : > { %5134 = vmatprep.subr.bf16.mxu1 %v13529_v2  ;;  %4971 = vmatpush1.bf16.msra.mxu0 %v13526_v3  ;;  %v13585_v2 = vcombine.high %v1804_v53, %v1808_v54  ;;  %v13582_v3 = vcombine.low %v1803_v50, %v1807_v51  ;;  %v1859_v50 = vld [vmem:[#allocation10 + $0x5c8] sm:$0xff] }
 0x2e6   : > { %4972 = vmatprep.subr.bf16.mxu0 %v13535_v4  ;;  %v13591_v4 = vcombine.high %v1811_v59, %v1815_v60  ;;  %v1863_v51 = vld [vmem:[#allocation10 + $0x5e8] sm:$0xff] }
 0x2e8   : > { %5135 = vmatpush1.bf16.msra.mxu1 %v13528_v6  ;;  %v13584_v6 = vcombine.low %v1804_v53, %v1808_v54  ;;  %v1860_v53 = vld [vmem:[#allocation10 + $0x5d0] sm:$0xff] }
 0x2e9   : > { %5136 = vmatprep.subr.bf16.mxu1 %v13537_v9  ;;  %4973 = vmatpush1.bf16.msra.mxu0 %v13534_v10  ;;  %v13593_v9 = vcombine.high %v1812_v0, %v1816_v1  ;;  %v13590_v10 = vcombine.low %v1811_v59, %v1815_v60  ;;  %v1864_v54 = vld [vmem:[#allocation10 + $0x5f0] sm:$0xff]  ;;  %v1867_v59 = vld [vmem:[#allocation10 + $0x608] sm:$0xff] }
 0x2ea   : > { %4974 = vmatprep.subr.bf16.mxu0 %v13543_v11  ;;  %v13599_v11 = vcombine.high %v1819_v5, %v1823_v12  ;;  %v1871_v60 = vld [vmem:[#allocation10 + $0x628] sm:$0xff] }
 0x2ec   : > { %5137 = vmatpush1.bf16.msra.mxu1 %v13536_v15  ;;  %v13592_v15 = vcombine.low %v1812_v0, %v1816_v1  ;;  %v1868_v0 = vld [vmem:[#allocation10 + $0x610] sm:$0xff] }
 0x2ed   : > { %5138 = vmatprep.subr.bf16.mxu1 %v13545_v20  ;;  %4975 = vmatpush1.bf16.msra.mxu0 %v13542_v21  ;;  %v13601_v20 = vcombine.high %v1820_v7, %v1824_v8  ;;  %v13598_v21 = vcombine.low %v1819_v5, %v1823_v12  ;;  %v1872_v1 = vld [vmem:[#allocation10 + $0x630] sm:$0xff]  ;;  %v1875_v5 = vld [vmem:[#allocation10 + $0x648] sm:$0xff] }
 0x2ee   : > { %4976 = vmatprep.subr.bf16.mxu0 %v13551_v22  ;;  %v13607_v22 = vcombine.high %v1827_v13, %v1831_v14  ;;  %v1879_v12 = vld [vmem:[#allocation10 + $0x668] sm:$0xff] }
 0x2f0   : > { %5139 = vmatpush1.bf16.msra.mxu1 %v13544_v25  ;;  %v13600_v25 = vcombine.low %v1820_v7, %v1824_v8  ;;  %v1876_v7 = vld [vmem:[#allocation10 + $0x650] sm:$0xff] }
 0x2f1   : > { %5140 = vmatprep.subr.bf16.mxu1 %v13553_v27  ;;  %4977 = vmatpush1.bf16.msra.mxu0 %v13550_v28  ;;  %v13609_v27 = vcombine.high %v1828_v17, %v1832_v18  ;;  %v13606_v28 = vcombine.low %v1827_v13, %v1831_v14  ;;  %v1880_v8 = vld [vmem:[#allocation10 + $0x670] sm:$0xff]  ;;  %v13648_v13 = vcombine.low %v1868_v0, %v1872_v1  ;;  %v1883_v14 = vld [vmem:[#allocation10 + $0x688] sm:$0xff] }
 0x2f2   : > { %4978 = vmatprep.subr.bf16.mxu0 %v13559_v29  ;;  %v13615_v29 = vcombine.high %v1835_v23, %v1839_v24 }
 0x2f4   : > { %5141 = vmatpush1.bf16.msra.mxu1 %v13552_v32  ;;  %v13608_v32 = vcombine.low %v1828_v17, %v1832_v18  ;;  %v13657_v17 = vcombine.high %v1876_v7, %v1880_v8  ;;  %v13654_v18 = vcombine.low %v1875_v5, %v1879_v12 }
 0x2f5   : > { %5142 = vmatprep.subr.bf16.mxu1 %v13561_v35  ;;  %4979 = vmatpush1.bf16.msra.mxu0 %v13558_v36  ;;  %v13617_v35 = vcombine.high %v1836_v43, %v1840_v26  ;;  %v13614_v36 = vcombine.low %v1835_v23, %v1839_v24  ;;  %v13656_v23 = vcombine.low %v1876_v7, %v1880_v8  ;;  %v1891_v24 = vld [vmem:[#allocation10 + $0x6c8] sm:$0xff] }
 0x2f6   : > { %4980 = vmatprep.subr.bf16.mxu0 %v13567_v37  ;;  %v13623_v37 = vcombine.high %v1843_v30, %v1847_v31 }
 0x2f8   : > { %5143 = vmatpush1.bf16.msra.mxu1 %v13560_v41  ;;  %v1855_v41 = vld [vmem:[#allocation10 + $0x5a8] sm:$0xff] }
 0x2f9   : > { %5144 = vmatprep.subr.bf16.mxu1 %v13569_v47  ;;  %4981 = vmatpush1.bf16.msra.mxu0 %v13566_v48  ;;  %v13622_v47 = vcombine.low %v1843_v30, %v1847_v31  ;;  %v1856_v48 = vld [vmem:[#allocation10 + $0x5b0] sm:$0xff]  ;;  %v1899_v31 = vld [vmem:[#allocation10 + $0x708] sm:$0xff] }
 0x2fa   : > { %4982 = vmatprep.subr.bf16.mxu0 %v13575_v49  ;;  %v13631_v49 = vcombine.high %v1851_v39, %v1855_v41 }
 0x2fc   : > { %5145 = vmatpush1.bf16.msra.mxu1 %v13568_v52  ;;  %v13624_v52 = vcombine.low %v1844_v33, %v1848_v34 }
 0x2fd   : > { %5146 = vmatprep.subr.bf16.mxu1 %v13577_v56  ;;  %4983 = vmatpush1.bf16.msra.mxu0 %v13574_v57  ;;  %v13633_v56 = vcombine.high %v1852_v42, %v1856_v48  ;;  %v13630_v57 = vcombine.low %v1851_v39, %v1855_v41  ;;  %v1911_v41 = vld [vmem:[#allocation10 + $0x768] sm:$0xff] }
 0x2fe   : > { %4993 = vmatprep.subr.bf16.mxu0 %v13583_v55  ;;  %v13639_v55 = vcombine.high %v1859_v50, %v1863_v51 }
 0x300   : > { %5147 = vmatpush1.bf16.msra.mxu1 %v13576_v61  ;;  %4985 = vmatmul.mubr.bf16.vlgmr.msra.gmra.mrb[4].mxu0 %v17339_v38  ;;  %v13632_v61 = vcombine.low %v1852_v42, %v1856_v48  ;;  %v1912_v48 = vld [vmem:[#allocation10 + $0x770] sm:$0xff] }
 0x301   : > { %5157 = vmatprep.subr.bf16.mxu1 %v13585_v2  ;;  %4994 = vmatpush1.bf16.msra.mxu0 %v13582_v3  ;;  %v13641_v2 = vcombine.high %v1860_v53, %v1864_v54  ;;  %v13638_v3 = vcombine.low %v1859_v50, %v1863_v51  ;;  %v1915_v51 = vld [vmem:[#allocation10 + $0x788] sm:$0xff] }
 0x302   : > { %5025 = vmatprep.mubr.bf16.mxu0 %v17346_v45  ;;  %4995 = vmatprep.subr.bf16.mxu0 %v13591_v4  ;;  %v13647_v4 = vcombine.high %v1867_v59, %v1871_v60 }
 0x303   : > { %5149 = vmatmul.mubr.bf16.vlgmr.msra.gmra.mrb[4].mxu1 %v17339_v38 }
 0x304   : > { %5158 = vmatpush1.bf16.msra.mxu1 %v13584_v6  ;;  %5189 = vmatprep.mubr.bf16.mxu1 %v17346_v45  ;;  %v13640_v6 = vcombine.low %v1860_v53, %v1864_v54 }
 0x305   : > { %5159 = vmatprep.subr.bf16.mxu1 %v13593_v9  ;;  %4996 = vmatpush1.bf16.msra.mxu0 %v13590_v10  ;;  %v13649_v9 = vcombine.high %v1868_v0, %v1872_v1  ;;  %v13646_v10 = vcombine.low %v1867_v59, %v1871_v60  ;;  %v1923_v60 = vld [vmem:[#allocation10 + $0x7c8] sm:$0xff] }
 0x306   : > { %4997 = vmatprep.subr.bf16.mxu0 %v13599_v11  ;;  %v13655_v11 = vcombine.high %v1875_v5, %v1879_v12  ;;  %v1931_v12 = vld [vmem:[#allocation10 + $0x808] sm:$0xff] }
 0x308   : > { %5160 = vmatpush1.bf16.msra.mxu1 %v13592_v15  ;;  %v1887_v15 = vld [vmem:[#allocation10 + $0x6a8] sm:$0xff] }
 0x309   : > { %5161 = vmatprep.subr.bf16.mxu1 %v13601_v20  ;;  %4998 = vmatpush1.bf16.msra.mxu0 %v13598_v21  ;;  %v1884_v20 = vld [vmem:[#allocation10 + $0x690] sm:$0xff]  ;;  %v13662_v26 = vcombine.low %v1883_v14, %v1887_v15 }
 0x30a   : > { %4999 = vmatprep.subr.bf16.mxu0 %v13607_v22  ;;  %v1888_v21 = vld [vmem:[#allocation10 + $0x6b0] sm:$0xff]  ;;  %v13663_v22 = vcombine.high %v1883_v14, %v1887_v15  ;;  %v1939_v14 = vld [vmem:[#allocation10 + $0x848] sm:$0xff] }
 0x30b   : > { %v13665_v43 = vcombine.high %v1884_v20, %v1888_v21  ;;  %v13664_v30 = vcombine.low %v1884_v20, %v1888_v21  ;;  %v1943_v15 = vld [vmem:[#allocation10 + $0x868] sm:$0xff]  ;;  %v1940_v20 = vld [vmem:[#allocation10 + $0x850] sm:$0xff] }
 0x30c   : > { %5162 = vmatpush1.bf16.msra.mxu1 %v13600_v25  ;;  %v1895_v25 = vld [vmem:[#allocation10 + $0x6e8] sm:$0xff]  ;;  %v1944_v21 = vld [vmem:[#allocation10 + $0x870] sm:$0xff] }
 0x30d   : > { %5163 = vmatprep.subr.bf16.mxu1 %v13609_v27  ;;  %5000 = vmatpush1.bf16.msra.mxu0 %v13606_v28  ;;  %v1892_v27 = vld [vmem:[#allocation10 + $0x6d0] sm:$0xff]  ;;  %v13670_v34 = vcombine.low %v1891_v24, %v1895_v25 }
 0x30e   : > { %5001 = vmatprep.subr.bf16.mxu0 %v13615_v29  ;;  %v1896_v28 = vld [vmem:[#allocation10 + $0x6f0] sm:$0xff]  ;;  %v13671_v29 = vcombine.high %v1891_v24, %v1895_v25  ;;  %v1947_v24 = vld [vmem:[#allocation10 + $0x888] sm:$0xff] }
 0x30f   : > { %v13673_v33 = vcombine.high %v1892_v27, %v1896_v28  ;;  %v13672_v39 = vcombine.low %v1892_v27, %v1896_v28  ;;  %v1951_v25 = vld [vmem:[#allocation10 + $0x8a8] sm:$0xff]  ;;  %v1948_v27 = vld [vmem:[#allocation10 + $0x890] sm:$0xff] }
 0x310   : > { %5164 = vmatpush1.bf16.msra.mxu1 %v13608_v32  ;;  %v1903_v32 = vld [vmem:[#allocation10 + $0x728] sm:$0xff]  ;;  %v1952_v28 = vld [vmem:[#allocation10 + $0x8b0] sm:$0xff] }
 0x311   : > { %5165 = vmatprep.subr.bf16.mxu1 %v13617_v35  ;;  %5002 = vmatpush1.bf16.msra.mxu0 %v13614_v36  ;;  %v1900_v35 = vld [vmem:[#allocation10 + $0x710] sm:$0xff] }
 0x312   : > { %5003 = vmatprep.subr.bf16.mxu0 %v13623_v37  ;;  %v1904_v36 = vld [vmem:[#allocation10 + $0x730] sm:$0xff]  ;;  %v13679_v37 = vcombine.high %v1899_v31, %v1903_v32 }
 0x313   : > { %v13681_v42 = vcombine.high %v1900_v35, %v1904_v36  ;;  %v13680_v50 = vcombine.low %v1900_v35, %v1904_v36  ;;  %v1956_v35 = vld [vmem:[#allocation10 + $0x8d0] sm:$0xff] }
 0x314   : > { %5166 = vmatpush1.bf16.msra.mxu1 %v13616_v40  ;;  %v1907_v40 = vld [vmem:[#allocation10 + $0x748] sm:$0xff]  ;;  %v1960_v36 = vld [vmem:[#allocation10 + $0x8f0] sm:$0xff] }
 0x315   : > { %5167 = vmatprep.subr.bf16.mxu1 %v13625_v44  ;;  %5004 = vmatpush1.bf16.msra.mxu0 %v13622_v47  ;;  %v13678_v44 = vcombine.low %v1899_v31, %v1903_v32  ;;  %v1908_v47 = vld [vmem:[#allocation10 + $0x750] sm:$0xff]  ;;  %v13686_v54 = vcombine.low %v1907_v40, %v1911_v41  ;;  %v1955_v31 = vld [vmem:[#allocation10 + $0x8c8] sm:$0xff] }
 0x316   : > { %5005 = vmatprep.subr.bf16.mxu0 %v13631_v49  ;;  %v13687_v49 = vcombine.high %v1907_v40, %v1911_v41  ;;  %v13689_v53 = vcombine.high %v1908_v47, %v1912_v48  ;;  %v13688_v59 = vcombine.low %v1908_v47, %v1912_v48  ;;  %v1959_v32 = vld [vmem:[#allocation10 + $0x8e8] sm:$0xff]  ;;  %v1964_v47 = vld [vmem:[#allocation10 + $0x910] sm:$0xff] }
 0x317   : > { %v1963_v40 = vld [vmem:[#allocation10 + $0x908] sm:$0xff]  ;;  %v1968_v48 = vld [vmem:[#allocation10 + $0x930] sm:$0xff] }
 0x318   : > { %5168 = vmatpush1.bf16.msra.mxu1 %v13624_v52  ;;  %v1919_v52 = vld [vmem:[#allocation10 + $0x7a8] sm:$0xff] }
 0x319   : > { %5169 = vmatprep.subr.bf16.mxu1 %v13633_v56  ;;  %5006 = vmatpush1.bf16.msra.mxu0 %v13630_v57  ;;  %v1916_v56 = vld [vmem:[#allocation10 + $0x790] sm:$0xff]  ;;  %v13694_v1 = vcombine.low %v1915_v51, %v1919_v52  ;;  %v1967_v41 = vld [vmem:[#allocation10 + $0x928] sm:$0xff] }
 0x31a   : > { %5007 = vmatprep.subr.bf16.mxu0 %v13639_v55  ;;  %v1920_v57 = vld [vmem:[#allocation10 + $0x7b0] sm:$0xff]  ;;  %v13695_v55 = vcombine.high %v1915_v51, %v1919_v52  ;;  %v1971_v51 = vld [vmem:[#allocation10 + $0x948] sm:$0xff] }
 0x31b   : > { %v13697_v0 = vcombine.high %v1916_v56, %v1920_v57  ;;  %v13696_v5 = vcombine.low %v1916_v56, %v1920_v57  ;;  %v1975_v52 = vld [vmem:[#allocation10 + $0x968] sm:$0xff]  ;;  %v1972_v56 = vld [vmem:[#allocation10 + $0x950] sm:$0xff] }
 0x31c   : > { %5170 = vmatpush1.bf16.msra.mxu1 %v13632_v61  ;;  %v1927_v61 = vld [vmem:[#allocation10 + $0x7e8] sm:$0xff]  ;;  %v1976_v57 = vld [vmem:[#allocation10 + $0x970] sm:$0xff] }
 0x31d   : > { %5171 = vmatprep.subr.bf16.mxu1 %v13641_v2  ;;  %5008 = vmatpush1.bf16.msra.mxu0 %v13638_v3  ;;  %v1924_v2 = vld [vmem:[#allocation10 + $0x7d0] sm:$0xff]  ;;  %v13702_v8 = vcombine.low %v1923_v60, %v1927_v61 }
 0x31e   : > { %5009 = vmatprep.subr.bf16.mxu0 %v13647_v4  ;;  %v1928_v3 = vld [vmem:[#allocation10 + $0x7f0] sm:$0xff]  ;;  %v13703_v4 = vcombine.high %v1923_v60, %v1927_v61  ;;  %v1979_v60 = vld [vmem:[#allocation10 + $0x988] sm:$0xff] }
 0x31f   : > { %v13705_v7 = vcombine.high %v1924_v2, %v1928_v3  ;;  %v1983_v61 = vld [vmem:[#allocation10 + $0x9a8] sm:$0xff] }
 0x320   : > { %5172 = vmatpush1.bf16.msra.mxu1 %v13640_v6  ;;  %v1935_v6 = vld [vmem:[#allocation10 + $0x828] sm:$0xff] }
 0x321   : > { %5173 = vmatprep.subr.bf16.mxu1 %v13649_v9  ;;  %5010 = vmatpush1.bf16.msra.mxu0 %v13646_v10  ;;  %v1932_v9 = vld [vmem:[#allocation10 + $0x810] sm:$0xff] }
 0x322   : > { %5011 = vmatprep.subr.bf16.mxu0 %v13655_v11  ;;  %v1936_v10 = vld [vmem:[#allocation10 + $0x830] sm:$0xff]  ;;  %v13711_v11 = vcombine.high %v1931_v12, %v1935_v6 }
 0x324   : > { %5174 = vmatpush1.bf16.msra.mxu1 %v13648_v13  ;;  %v13704_v13 = vcombine.low %v1924_v2, %v1928_v3  ;;  %v1980_v2 = vld [vmem:[#allocation10 + $0x990] sm:$0xff] }
 0x325   : > { %5175 = vmatprep.subr.bf16.mxu1 %v13657_v17  ;;  %5012 = vmatpush1.bf16.msra.mxu0 %v13654_v18  ;;  %v13713_v17 = vcombine.high %v1932_v9, %v1936_v10  ;;  %v13710_v18 = vcombine.low %v1931_v12, %v1935_v6  ;;  %v1984_v3 = vld [vmem:[#allocation10 + $0x9b0] sm:$0xff]  ;;  %v1987_v12 = vld [vmem:[#allocation10 + $0x9c8] sm:$0xff] }
 0x326   : > { %5013 = vmatprep.subr.bf16.mxu0 %v13663_v22  ;;  %v13719_v22 = vcombine.high %v1939_v14, %v1943_v15  ;;  %v1991_v6 = vld [vmem:[#allocation10 + $0x9e8] sm:$0xff] }
 0x328   : > { %5176 = vmatpush1.bf16.msra.mxu1 %v13656_v23  ;;  %v13712_v23 = vcombine.low %v1932_v9, %v1936_v10  ;;  %v1988_v9 = vld [vmem:[#allocation10 + $0x9d0] sm:$0xff] }
 0x329   : > { %5177 = vmatprep.subr.bf16.mxu1 %v13665_v43  ;;  %5014 = vmatpush1.bf16.msra.mxu0 %v13662_v26  ;;  %v13721_v43 = vcombine.high %v1940_v20, %v1944_v21  ;;  %v13718_v26 = vcombine.low %v1939_v14, %v1943_v15  ;;  %v1992_v10 = vld [vmem:[#allocation10 + $0x9f0] sm:$0xff]  ;;  %v1995_v14 = vld [vmem:[#allocation10 + $0xa08] sm:$0xff] }
 0x32a   : > { %5015 = vmatprep.subr.bf16.mxu0 %v13671_v29  ;;  %v13727_v29 = vcombine.high %v1947_v24, %v1951_v25  ;;  %v1999_v15 = vld [vmem:[#allocation10 + $0xa28] sm:$0xff] }
 0x32c   : > { %5178 = vmatpush1.bf16.msra.mxu1 %v13664_v30  ;;  %v13720_v30 = vcombine.low %v1940_v20, %v1944_v21  ;;  %v1996_v20 = vld [vmem:[#allocation10 + $0xa10] sm:$0xff] }
 0x32d   : > { %5179 = vmatprep.subr.bf16.mxu1 %v13673_v33  ;;  %5016 = vmatpush1.bf16.msra.mxu0 %v13670_v34  ;;  %v13729_v33 = vcombine.high %v1948_v27, %v1952_v28  ;;  %v13726_v34 = vcombine.low %v1947_v24, %v1951_v25  ;;  %v2000_v21 = vld [vmem:[#allocation10 + $0xa30] sm:$0xff]  ;;  %v2003_v24 = vld [vmem:[#allocation10 + $0xa48] sm:$0xff] }
 0x32e   : > { %5017 = vmatprep.subr.bf16.mxu0 %v13679_v37  ;;  %v13735_v37 = vcombine.high %v1955_v31, %v1959_v32  ;;  %v2007_v25 = vld [vmem:[#allocation10 + $0xa68] sm:$0xff] }
 0x330   : > { %5180 = vmatpush1.bf16.msra.mxu1 %v13672_v39  ;;  %v13728_v39 = vcombine.low %v1948_v27, %v1952_v28  ;;  %v2004_v27 = vld [vmem:[#allocation10 + $0xa50] sm:$0xff] }
 0x331   : > { %5181 = vmatprep.subr.bf16.mxu1 %v13681_v42  ;;  %5018 = vmatpush1.bf16.msra.mxu0 %v13678_v44  ;;  %v13737_v42 = vcombine.high %v1956_v35, %v1960_v36  ;;  %v13734_v44 = vcombine.low %v1955_v31, %v1959_v32  ;;  %v2008_v28 = vld [vmem:[#allocation10 + $0xa70] sm:$0xff]  ;;  %v2011_v31 = vld [vmem:[#allocation10 + $0xa88] sm:$0xff] }
 0x332   : > { %5019 = vmatprep.subr.bf16.mxu0 %v13687_v49  ;;  %v13743_v49 = vcombine.high %v1963_v40, %v1967_v41  ;;  %v2015_v32 = vld [vmem:[#allocation10 + $0xaa8] sm:$0xff] }
 0x334   : > { %5182 = vmatpush1.bf16.msra.mxu1 %v13680_v50  ;;  %v13736_v50 = vcombine.low %v1956_v35, %v1960_v36  ;;  %v2012_v35 = vld [vmem:[#allocation10 + $0xa90] sm:$0xff] }
 0x335   : > { %5183 = vmatprep.subr.bf16.mxu1 %v13689_v53  ;;  %5020 = vmatpush1.bf16.msra.mxu0 %v13686_v54  ;;  %v13745_v53 = vcombine.high %v1964_v47, %v1968_v48  ;;  %v13742_v54 = vcombine.low %v1963_v40, %v1967_v41  ;;  %v2016_v36 = vld [vmem:[#allocation10 + $0xab0] sm:$0xff]  ;;  %v2019_v40 = vld [vmem:[#allocation10 + $0xac8] sm:$0xff] }
 0x336   : > { %5021 = vmatprep.subr.bf16.mxu0 %v13695_v55  ;;  %v13751_v55 = vcombine.high %v1971_v51, %v1975_v52  ;;  %v2023_v41 = vld [vmem:[#allocation10 + $0xae8] sm:$0xff] }
 0x338   : > { %5184 = vmatpush1.bf16.msra.mxu1 %v13688_v59  ;;  %v13744_v59 = vcombine.low %v1964_v47, %v1968_v48  ;;  %v2020_v47 = vld [vmem:[#allocation10 + $0xad0] sm:$0xff] }
 0x339   : > { %5185 = vmatprep.subr.bf16.mxu1 %v13697_v0  ;;  %5022 = vmatpush1.bf16.msra.mxu0 %v13694_v1  ;;  %v13753_v0 = vcombine.high %v1972_v56, %v1976_v57  ;;  %v13750_v1 = vcombine.low %v1971_v51, %v1975_v52  ;;  %v2024_v48 = vld [vmem:[#allocation10 + $0xaf0] sm:$0xff]  ;;  %v2027_v51 = vld [vmem:[#allocation10 + $0xb08] sm:$0xff] }
 0x33a   : > { %5023 = vmatprep.subr.bf16.mxu0 %v13703_v4  ;;  %v13759_v4 = vcombine.high %v1979_v60, %v1983_v61  ;;  %v2031_v52 = vld [vmem:[#allocation10 + $0xb28] sm:$0xff] }
 0x33c   : > { %5186 = vmatpush1.bf16.msra.mxu1 %v13696_v5  ;;  %v13752_v5 = vcombine.low %v1972_v56, %v1976_v57  ;;  %v2028_v56 = vld [vmem:[#allocation10 + $0xb10] sm:$0xff] }
 0x33d   : > { %5187 = vmatprep.subr.bf16.mxu1 %v13705_v7  ;;  %5024 = vmatpush1.bf16.msra.mxu0 %v13702_v8  ;;  %v13761_v7 = vcombine.high %v1980_v2, %v1984_v3  ;;  %v13758_v8 = vcombine.low %v1979_v60, %v1983_v61  ;;  %v2032_v57 = vld [vmem:[#allocation10 + $0xb30] sm:$0xff]  ;;  %v2035_v60 = vld [vmem:[#allocation10 + $0xb48] sm:$0xff] }
 0x33e   : > { %5034 = vmatprep.subr.bf16.mxu0 %v13711_v11  ;;  %v13767_v11 = vcombine.high %v1987_v12, %v1991_v6  ;;  %v2039_v61 = vld [vmem:[#allocation10 + $0xb68] sm:$0xff] }
 0x340   : > { %5188 = vmatpush1.bf16.msra.mxu1 %v13704_v13  ;;  %5026 = vmatmul.mubr.bf16.vlgmr.msra.gmra.mrb[4].mxu0 %v17357_v16  ;;  %v13760_v13 = vcombine.low %v1980_v2, %v1984_v3  ;;  %v2036_v2 = vld [vmem:[#allocation10 + $0xb50] sm:$0xff] }
 0x341   : > { %5198 = vmatprep.subr.bf16.mxu1 %v13713_v17  ;;  %5035 = vmatpush1.bf16.msra.mxu0 %v13710_v18  ;;  %v13769_v17 = vcombine.high %v1988_v9, %v1992_v10  ;;  %v13766_v18 = vcombine.low %v1987_v12, %v1991_v6  ;;  %v2040_v3 = vld [vmem:[#allocation10 + $0xb70] sm:$0xff]  ;;  %v2043_v12 = vld [vmem:[#allocation10 + $0xb88] sm:$0xff] }
 0x342   : > { %5066 = vmatprep.mubr.bf16.mxu0 %v17361_v19  ;;  %5036 = vmatprep.subr.bf16.mxu0 %v13719_v22  ;;  %v13775_v22 = vcombine.high %v1995_v14, %v1999_v15  ;;  %v2047_v6 = vld [vmem:[#allocation10 + $0xba8] sm:$0xff] }
 0x343   : > { %5190 = vmatmul.mubr.bf16.vlgmr.msra.gmra.mrb[4].mxu1 %v17357_v16 }
 0x344   : > { %5199 = vmatpush1.bf16.msra.mxu1 %v13712_v23  ;;  %5230 = vmatprep.mubr.bf16.mxu1 %v17361_v19  ;;  %v13768_v23 = vcombine.low %v1988_v9, %v1992_v10  ;;  %v2044_v9 = vld [vmem:[#allocation10 + $0xb90] sm:$0xff] }
 0x345   : > { %5200 = vmatprep.subr.bf16.mxu1 %v13721_v43  ;;  %5037 = vmatpush1.bf16.msra.mxu0 %v13718_v26  ;;  %v13777_v43 = vcombine.high %v1996_v20, %v2000_v21  ;;  %v13774_v26 = vcombine.low %v1995_v14, %v1999_v15  ;;  %v2048_v10 = vld [vmem:[#allocation10 + $0xbb0] sm:$0xff]  ;;  %v2051_v14 = vld [vmem:[#allocation10 + $0xbc8] sm:$0xff] }
 0x346   : > { %5038 = vmatprep.subr.bf16.mxu0 %v13727_v29  ;;  %v13783_v29 = vcombine.high %v2003_v24, %v2007_v25  ;;  %v2055_v15 = vld [vmem:[#allocation10 + $0xbe8] sm:$0xff] }
 0x348   : > { %5201 = vmatpush1.bf16.msra.mxu1 %v13720_v30  ;;  %v13776_v30 = vcombine.low %v1996_v20, %v2000_v21  ;;  %v2052_v20 = vld [vmem:[#allocation10 + $0xbd0] sm:$0xff] }
 0x349   : > { %5202 = vmatprep.subr.bf16.mxu1 %v13729_v33  ;;  %5039 = vmatpush1.bf16.msra.mxu0 %v13726_v34  ;;  %v13785_v33 = vcombine.high %v2004_v27, %v2008_v28  ;;  %v13782_v34 = vcombine.low %v2003_v24, %v2007_v25  ;;  %v2056_v21 = vld [vmem:[#allocation10 + $0xbf0] sm:$0xff]  ;;  %v2059_v24 = vld [vmem:[#allocation10 + $0xc08] sm:$0xff] }
 0x34a   : > { %5040 = vmatprep.subr.bf16.mxu0 %v13735_v37  ;;  %v13791_v37 = vcombine.high %v2011_v31, %v2015_v32  ;;  %v2063_v25 = vld [vmem:[#allocation10 + $0xc28] sm:$0xff] }
 0x34c   : > { %5203 = vmatpush1.bf16.msra.mxu1 %v13728_v39  ;;  %v13784_v39 = vcombine.low %v2004_v27, %v2008_v28  ;;  %v2060_v27 = vld [vmem:[#allocation10 + $0xc10] sm:$0xff] }
 0x34d   : > { %5204 = vmatprep.subr.bf16.mxu1 %v13737_v42  ;;  %5041 = vmatpush1.bf16.msra.mxu0 %v13734_v44  ;;  %v13793_v42 = vcombine.high %v2012_v35, %v2016_v36  ;;  %v13790_v44 = vcombine.low %v2011_v31, %v2015_v32  ;;  %v2064_v28 = vld [vmem:[#allocation10 + $0xc30] sm:$0xff]  ;;  %v2067_v31 = vld [vmem:[#allocation10 + $0xc48] sm:$0xff] }
 0x34e   : > { %5042 = vmatprep.subr.bf16.mxu0 %v13743_v49  ;;  %v13799_v49 = vcombine.high %v2019_v40, %v2023_v41  ;;  %v2071_v32 = vld [vmem:[#allocation10 + $0xc68] sm:$0xff] }
 0x350   : > { %5205 = vmatpush1.bf16.msra.mxu1 %v13736_v50  ;;  %v13792_v50 = vcombine.low %v2012_v35, %v2016_v36  ;;  %v2068_v35 = vld [vmem:[#allocation10 + $0xc50] sm:$0xff] }
 0x351   : > { %5206 = vmatprep.subr.bf16.mxu1 %v13745_v53  ;;  %5043 = vmatpush1.bf16.msra.mxu0 %v13742_v54  ;;  %v13801_v53 = vcombine.high %v2020_v47, %v2024_v48  ;;  %v13798_v54 = vcombine.low %v2019_v40, %v2023_v41  ;;  %v2072_v36 = vld [vmem:[#allocation10 + $0xc70] sm:$0xff]  ;;  %v2075_v40 = vld [vmem:[#allocation10 + $0xc88] sm:$0xff] }
 0x352   : > { %5044 = vmatprep.subr.bf16.mxu0 %v13751_v55  ;;  %v13807_v55 = vcombine.high %v2027_v51, %v2031_v52  ;;  %v2079_v41 = vld [vmem:[#allocation10 + $0xca8] sm:$0xff] }
 0x354   : > { %5207 = vmatpush1.bf16.msra.mxu1 %v13744_v59  ;;  %v13800_v59 = vcombine.low %v2020_v47, %v2024_v48  ;;  %v2076_v47 = vld [vmem:[#allocation10 + $0xc90] sm:$0xff] }
 0x355   : > { %5208 = vmatprep.subr.bf16.mxu1 %v13753_v0  ;;  %5045 = vmatpush1.bf16.msra.mxu0 %v13750_v1  ;;  %v13809_v0 = vcombine.high %v2028_v56, %v2032_v57  ;;  %v13806_v1 = vcombine.low %v2027_v51, %v2031_v52  ;;  %v2080_v48 = vld [vmem:[#allocation10 + $0xcb0] sm:$0xff]  ;;  %v2083_v51 = vld [vmem:[#allocation10 + $0xcc8] sm:$0xff] }
 0x356   : > { %5046 = vmatprep.subr.bf16.mxu0 %v13759_v4  ;;  %v13815_v4 = vcombine.high %v2035_v60, %v2039_v61  ;;  %v2087_v52 = vld [vmem:[#allocation10 + $0xce8] sm:$0xff] }
 0x358   : > { %5209 = vmatpush1.bf16.msra.mxu1 %v13752_v5  ;;  %v13808_v5 = vcombine.low %v2028_v56, %v2032_v57  ;;  %v2084_v56 = vld [vmem:[#allocation10 + $0xcd0] sm:$0xff] }
 0x359   : > { %5210 = vmatprep.subr.bf16.mxu1 %v13761_v7  ;;  %5047 = vmatpush1.bf16.msra.mxu0 %v13758_v8  ;;  %v13817_v7 = vcombine.high %v2036_v2, %v2040_v3  ;;  %v13814_v8 = vcombine.low %v2035_v60, %v2039_v61  ;;  %v2088_v57 = vld [vmem:[#allocation10 + $0xcf0] sm:$0xff]  ;;  %v2091_v60 = vld [vmem:[#allocation10 + $0xd08] sm:$0xff] }
 0x35a   : > { %5048 = vmatprep.subr.bf16.mxu0 %v13767_v11  ;;  %v13823_v11 = vcombine.high %v2043_v12, %v2047_v6  ;;  %v2095_v61 = vld [vmem:[#allocation10 + $0xd28] sm:$0xff] }
 0x35c   : > { %5211 = vmatpush1.bf16.msra.mxu1 %v13760_v13  ;;  %v13816_v13 = vcombine.low %v2036_v2, %v2040_v3  ;;  %v2092_v2 = vld [vmem:[#allocation10 + $0xd10] sm:$0xff] }
 0x35d   : > { %5212 = vmatprep.subr.bf16.mxu1 %v13769_v17  ;;  %5049 = vmatpush1.bf16.msra.mxu0 %v13766_v18  ;;  %v13825_v17 = vcombine.high %v2044_v9, %v2048_v10  ;;  %v13822_v18 = vcombine.low %v2043_v12, %v2047_v6  ;;  %v2096_v3 = vld [vmem:[#allocation10 + $0xd30] sm:$0xff]  ;;  %v2099_v12 = vld [vmem:[#allocation10 + $0xd48] sm:$0xff] }
 0x35e   : > { %5050 = vmatprep.subr.bf16.mxu0 %v13775_v22  ;;  %v13831_v22 = vcombine.high %v2051_v14, %v2055_v15  ;;  %v2103_v6 = vld [vmem:[#allocation10 + $0xd68] sm:$0xff] }
 0x360   : > { %5213 = vmatpush1.bf16.msra.mxu1 %v13768_v23  ;;  %v13824_v23 = vcombine.low %v2044_v9, %v2048_v10  ;;  %v2100_v9 = vld [vmem:[#allocation10 + $0xd50] sm:$0xff] }
 0x361   : > { %5214 = vmatprep.subr.bf16.mxu1 %v13777_v43  ;;  %5051 = vmatpush1.bf16.msra.mxu0 %v13774_v26  ;;  %v13833_v43 = vcombine.high %v2052_v20, %v2056_v21  ;;  %v13830_v26 = vcombine.low %v2051_v14, %v2055_v15  ;;  %v2104_v10 = vld [vmem:[#allocation10 + $0xd70] sm:$0xff]  ;;  %v2107_v14 = vld [vmem:[#allocation10 + $0xd88] sm:$0xff] }
 0x362   : > { %5052 = vmatprep.subr.bf16.mxu0 %v13783_v29  ;;  %v13839_v29 = vcombine.high %v2059_v24, %v2063_v25  ;;  %v2111_v15 = vld [vmem:[#allocation10 + $0xda8] sm:$0xff] }
 0x364   : > { %5215 = vmatpush1.bf16.msra.mxu1 %v13776_v30  ;;  %v13832_v30 = vcombine.low %v2052_v20, %v2056_v21  ;;  %v2108_v20 = vld [vmem:[#allocation10 + $0xd90] sm:$0xff] }
 0x365   : > { %5216 = vmatprep.subr.bf16.mxu1 %v13785_v33  ;;  %5053 = vmatpush1.bf16.msra.mxu0 %v13782_v34  ;;  %v13841_v33 = vcombine.high %v2060_v27, %v2064_v28  ;;  %v13838_v34 = vcombine.low %v2059_v24, %v2063_v25  ;;  %v2112_v21 = vld [vmem:[#allocation10 + $0xdb0] sm:$0xff]  ;;  %v13880_v24 = vcombine.low %v2100_v9, %v2104_v10  ;;  %v2115_v25 = vld [vmem:[#allocation10 + $0xdc8] sm:$0xff] }
 0x366   : > { %5054 = vmatprep.subr.bf16.mxu0 %v13791_v37  ;;  %v13847_v37 = vcombine.high %v2067_v31, %v2071_v32 }
 0x368   : > { %5217 = vmatpush1.bf16.msra.mxu1 %v13784_v39  ;;  %v13840_v39 = vcombine.low %v2060_v27, %v2064_v28  ;;  %v13889_v27 = vcombine.high %v2108_v20, %v2112_v21 }
 0x369   : > { %5218 = vmatprep.subr.bf16.mxu1 %v13793_v42  ;;  %5055 = vmatpush1.bf16.msra.mxu0 %v13790_v44  ;;  %v13849_v42 = vcombine.high %v2068_v35, %v2072_v36  ;;  %v13846_v44 = vcombine.low %v2067_v31, %v2071_v32  ;;  %v2120_v31 = vld [vmem:[#allocation10 + $0xdf0] sm:$0xff] }
 0x36a   : > { %5056 = vmatprep.subr.bf16.mxu0 %v13799_v49  ;;  %v13855_v49 = vcombine.high %v2075_v40, %v2079_v41 }
 0x36c   : > { %5219 = vmatpush1.bf16.msra.mxu1 %v13792_v50  ;;  %v13848_v50 = vcombine.low %v2068_v35, %v2072_v36  ;;  %v13888_v36 = vcombine.low %v2108_v20, %v2112_v21  ;;  %v2156_v20 = vld [vmem:[#allocation10 + $0xf10] sm:$0xff] }
 0x36d   : > { %5220 = vmatprep.subr.bf16.mxu1 %v13801_v53  ;;  %5057 = vmatpush1.bf16.msra.mxu0 %v13798_v54  ;;  %v13857_v53 = vcombine.high %v2076_v47, %v2080_v48  ;;  %v13854_v54 = vcombine.low %v2075_v40, %v2079_v41  ;;  %v2160_v21 = vld [vmem:[#allocation10 + $0xf30] sm:$0xff] }
 0x36e   : > { %5058 = vmatprep.subr.bf16.mxu0 %v13807_v55  ;;  %v13863_v55 = vcombine.high %v2083_v51, %v2087_v52 }
 0x370   : > { %5221 = vmatpush1.bf16.msra.mxu1 %v13800_v59  ;;  %v13856_v59 = vcombine.low %v2076_v47, %v2080_v48  ;;  %v2124_v47 = vld [vmem:[#allocation10 + $0xe10] sm:$0xff] }
 0x371   : > { %5222 = vmatprep.subr.bf16.mxu1 %v13809_v0  ;;  %5059 = vmatpush1.bf16.msra.mxu0 %v13806_v1  ;;  %v13865_v0 = vcombine.high %v2084_v56, %v2088_v57  ;;  %v13862_v1 = vcombine.low %v2083_v51, %v2087_v52  ;;  %v2128_v48 = vld [vmem:[#allocation10 + $0xe30] sm:$0xff]  ;;  %v2131_v51 = vld [vmem:[#allocation10 + $0xe48] sm:$0xff] }
 0x372   : > { %5060 = vmatprep.subr.bf16.mxu0 %v13815_v4  ;;  %v13871_v4 = vcombine.high %v2091_v60, %v2095_v61  ;;  %v2135_v52 = vld [vmem:[#allocation10 + $0xe68] sm:$0xff] }
 0x374   : > { %5223 = vmatpush1.bf16.msra.mxu1 %v13808_v5  ;;  %v13864_v5 = vcombine.low %v2084_v56, %v2088_v57  ;;  %v2132_v56 = vld [vmem:[#allocation10 + $0xe50] sm:$0xff] }
 0x375   : > { %5224 = vmatprep.subr.bf16.mxu1 %v13817_v7  ;;  %5061 = vmatpush1.bf16.msra.mxu0 %v13814_v8  ;;  %v13873_v7 = vcombine.high %v2092_v2, %v2096_v3  ;;  %v13870_v8 = vcombine.low %v2091_v60, %v2095_v61  ;;  %v2136_v57 = vld [vmem:[#allocation10 + $0xe70] sm:$0xff]  ;;  %v2139_v60 = vld [vmem:[#allocation10 + $0xe88] sm:$0xff] }
 0x376   : > { %5062 = vmatprep.subr.bf16.mxu0 %v13823_v11  ;;  %v13879_v11 = vcombine.high %v2099_v12, %v2103_v6  ;;  %v2143_v61 = vld [vmem:[#allocation10 + $0xea8] sm:$0xff] }
 0x378   : > { %5225 = vmatpush1.bf16.msra.mxu1 %v13816_v13  ;;  %v13872_v13 = vcombine.low %v2092_v2, %v2096_v3  ;;  %v2140_v2 = vld [vmem:[#allocation10 + $0xe90] sm:$0xff] }
 0x379   : > { %5226 = vmatprep.subr.bf16.mxu1 %v13825_v17  ;;  %5063 = vmatpush1.bf16.msra.mxu0 %v13822_v18  ;;  %v13881_v17 = vcombine.high %v2100_v9, %v2104_v10  ;;  %v13878_v18 = vcombine.low %v2099_v12, %v2103_v6  ;;  %v2144_v3 = vld [vmem:[#allocation10 + $0xeb0] sm:$0xff]  ;;  %v2147_v12 = vld [vmem:[#allocation10 + $0xec8] sm:$0xff] }
 0x37a   : > { %5064 = vmatprep.subr.bf16.mxu0 %v13831_v22  ;;  %v13887_v22 = vcombine.high %v2107_v14, %v2111_v15  ;;  %v2151_v6 = vld [vmem:[#allocation10 + $0xee8] sm:$0xff]  ;;  %v2148_v9 = vld [vmem:[#allocation10 + $0xed0] sm:$0xff] }
 0x37b   : > { %v2152_v10 = vld [vmem:[#allocation10 + $0xef0] sm:$0xff] }
 0x37c   : > { %5227 = vmatpush1.bf16.msra.mxu1 %v13824_v23 }
 0x37d   : > { %5228 = vmatprep.subr.bf16.mxu1 %v13833_v43  ;;  %5065 = vmatpush1.bf16.msra.mxu0 %v13830_v26  ;;  %v2119_v43 = vld [vmem:[#allocation10 + $0xde8] sm:$0xff] }
 0x37e   : > { %5075 = vmatprep.subr.bf16.mxu0 %v13839_v29  ;;  %v13886_v29 = vcombine.low %v2107_v14, %v2111_v15  ;;  %v2155_v14 = vld [vmem:[#allocation10 + $0xf08] sm:$0xff] }
 0x37f   : > { %v2159_v15 = vld [vmem:[#allocation10 + $0xf28] sm:$0xff] }
 0x380   : > { %5229 = vmatpush1.bf16.msra.mxu1 %v13832_v30  ;;  %5067 = vmatmul.mubr.bf16.vlgmr.msra.gmra.mrb[4].mxu0 %v17372_v62  ;;  %v2116_v30 = vld [vmem:[#allocation10 + $0xdd0] sm:$0xff] }
 0x381   : > { %5239 = vmatprep.subr.bf16.mxu1 %v13841_v33  ;;  %5076 = vmatpush1.bf16.msra.mxu0 %v13838_v34  ;;  %v13895_v34 = vcombine.high %v2115_v25, %v2119_v43  ;;  %v13897_v41 = vcombine.high %v2116_v30, %v2120_v31 }
 0x382   : > { %5107 = vmatprep.mubr.bf16.mxu0 %v17376_v63  ;;  %5077 = vmatprep.subr.bf16.mxu0 %v13847_v37  ;;  %v2123_v37 = vld [vmem:[#allocation10 + $0xe08] sm:$0xff] }
 0x383   : > { %5231 = vmatmul.mubr.bf16.vlgmr.msra.gmra.mrb[4].mxu1 %v17372_v62 }
 0x384   : > { %5240 = vmatpush1.bf16.msra.mxu1 %v13840_v39  ;;  %5271 = vmatprep.mubr.bf16.mxu1 %v17376_v63  ;;  %v2127_v39 = vld [vmem:[#allocation10 + $0xe28] sm:$0xff] }
 0x385   : > { %5241 = vmatprep.subr.bf16.mxu1 %v13849_v42  ;;  %5078 = vmatpush1.bf16.msra.mxu0 %v13846_v44  ;;  %v13894_v44 = vcombine.low %v2115_v25, %v2119_v43  ;;  %v2163_v25 = vld [vmem:[#allocation10 + $0xf48] sm:$0xff] }
 0x386   : > { %5079 = vmatprep.subr.bf16.mxu0 %v13855_v49  ;;  %v13903_v49 = vcombine.high %v2123_v37, %v2127_v39  ;;  %v2167_v43 = vld [vmem:[#allocation10 + $0xf68] sm:$0xff] }
 0x388   : > { %5242 = vmatpush1.bf16.msra.mxu1 %v13848_v50  ;;  %v13896_v50 = vcombine.low %v2116_v30, %v2120_v31  ;;  %v2168_v30 = vld [vmem:[#allocation10 + $0xf70] sm:$0xff]  ;;  %v13943_v31 = vcombine.high %v2163_v25, %v2167_v43 }
 0x389   : > { %5243 = vmatprep.subr.bf16.mxu1 %v13857_v53  ;;  %5080 = vmatpush1.bf16.msra.mxu0 %v13854_v54  ;;  %v13905_v53 = vcombine.high %v2124_v47, %v2128_v48  ;;  %v13902_v54 = vcombine.low %v2123_v37, %v2127_v39  ;;  %v13942_v39 = vcombine.low %v2163_v25, %v2167_v43  ;;  %v15647_v25 = vld [vmem:[#allocation13 + $0x34] ss:$8 sps:$4 sm:$0xff]  }
 0x38a   : > { %5081 = vmatprep.subr.bf16.mxu0 %v13863_v55  ;;  %v13911_v55 = vcombine.high %v2131_v51, %v2135_v52 }
 0x38c   : > { %5244 = vmatpush1.bf16.msra.mxu1 %v13856_v59  ;;  %v13904_v59 = vcombine.low %v2124_v47, %v2128_v48  ;;  %v2179_v47 = vld [vmem:[#allocation10 + $0xfc8] sm:$0xff] }
 0x38d   : > { %5245 = vmatprep.subr.bf16.mxu1 %v13865_v0  ;;  %5082 = vmatpush1.bf16.msra.mxu0 %v13862_v1  ;;  %v13913_v0 = vcombine.high %v2132_v56, %v2136_v57  ;;  %v13910_v1 = vcombine.low %v2131_v51, %v2135_v52  ;;  %v2183_v48 = vld [vmem:[#allocation10 + $0xfe8] sm:$0xff]  ;;  %v2180_v51 = vld [vmem:[#allocation10 + $0xfd0] sm:$0xff] }
 0x38e   : > { %5083 = vmatprep.subr.bf16.mxu0 %v13871_v4  ;;  %v13919_v4 = vcombine.high %v2139_v60, %v2143_v61  ;;  %v2184_v52 = vld [vmem:[#allocation10 + $0xff0] sm:$0xff] }
 0x390   : > { %5246 = vmatpush1.bf16.msra.mxu1 %v13864_v5  ;;  %v13912_v5 = vcombine.low %v2132_v56, %v2136_v57  ;;  %v1677_v56 = vld [vmem:[#allocation10 + $0x18] sm:$0xff] }
 0x391   : > { %5247 = vmatprep.subr.bf16.mxu1 %v13873_v7  ;;  %5084 = vmatpush1.bf16.msra.mxu0 %v13870_v8  ;;  %v13921_v7 = vcombine.high %v2140_v2, %v2144_v3  ;;  %v13918_v8 = vcombine.low %v2139_v60, %v2143_v61  ;;  %v1681_v57 = vld [vmem:[#allocation10 + $0x38] sm:$0xff]  ;;  %v13960_v61 = vcombine.low %v2180_v51, %v2184_v52 }
 0x392   : > { %5085 = vmatprep.subr.bf16.mxu0 %v13879_v11  ;;  %v13927_v11 = vcombine.high %v2147_v12, %v2151_v6  ;;  %v13459_v60 = vcombine.high %v1677_v56, %v1681_v57 }
 0x393   : > { %v17402_v23 = vpop.f32.mrb[0].mxu0 }
 0x394   : > { %5248 = vmatpush1.bf16.msra.mxu1 %v13872_v13  ;;  %v17404_v26 = vpop.f32.mrb[1].mxu0  ;;  %v13920_v13 = vcombine.low %v2140_v2, %v2144_v3  ;;  %v15638_v2 = vld [vmem:[#allocation13 + $0x4] ss:$8 sps:$4 sm:$0xff]   ;;  %v17411_v3 = vld [vmem:[%s17294_s5] sm:$0xff] }
 0x395   : > { %5249 = vmatprep.subr.bf16.mxu1 %v13881_v17  ;;  %v1671_v28 = vpop.f32.mrb[2].mxu0  ;;  %5086 = vmatpush1.bf16.msra.mxu0 %v13878_v18  ;;  %v13929_v17 = vcombine.high %v2148_v9, %v2152_v10  ;;  %v13926_v18 = vcombine.low %v2147_v12, %v2151_v6  ;;  %v15636_v6 = vld [vmem:[#allocation13] ss:$8 sps:$4 sm:$0xff]  }
 0x396   : > { %v17406_v32 = vpop.f32.mrb[0].mxu1  ;;  %v1672_v33 = vpop.f32.mrb[3].mxu0  ;;  %5087 = vmatprep.subr.bf16.mxu0 %v13887_v22  ;;  %v13935_v22 = vcombine.high %v2155_v14, %v2159_v15  ;;  %v13934_v28 = vcombine.low %v2155_v14, %v2159_v15  ;;  %v15639_v14 = vld [vmem:[#allocation13 + $0x10] ss:$8 sps:$4 sm:$0xff]  }
 0x397   : > { %v17408_v35 = vpop.f32.mrb[1].mxu1  ;;  %v13936_v33 = vcombine.low %v2156_v20, %v2160_v21  ;;  %v1701_v15 = vld [vmem:[#allocation10 + $0xd8] sm:$0xff] }
 0x398   : > { %5250 = vmatpush1.bf16.msra.mxu1 %v13880_v24  ;;  %v4949_v40 = vpop.f32.mrb[2].mxu1  ;;  %v13928_v24 = vcombine.low %v2148_v9, %v2152_v10  ;;  %v15641_v10 = vld [vmem:[#allocation13 + $0x14] ss:$8 sps:$4 sm:$0xff]  }
 0x399   : > { %5251 = vmatprep.subr.bf16.mxu1 %v13889_v27  ;;  %v4950_v42 = vpop.f32.mrb[3].mxu1  ;;  %5088 = vmatpush1.bf16.msra.mxu0 %v13886_v29  ;;  %v13937_v27 = vcombine.high %v2156_v20, %v2160_v21  ;;  %v2164_v29 = vld [vmem:[#allocation10 + $0xf50] sm:$0xff] }
 0x39a   : > { %5089 = vmatprep.subr.bf16.mxu0 %v13895_v34  ;;  %v2171_v34 = vld [vmem:[#allocation10 + $0xf88] sm:$0xff]  ;;  %v13945_v37 = vcombine.high %v2164_v29, %v2168_v30  ;;  %v2172_v40 = vld [vmem:[#allocation10 + $0xf90] sm:$0xff] }
 0x39c   : > { %5252 = vmatpush1.bf16.msra.mxu1 %v13888_v36  ;;  %v2175_v36 = vld [vmem:[#allocation10 + $0xfa8] sm:$0xff] }
 0x39d   : > { %5253 = vmatprep.subr.bf16.mxu1 %v13897_v41  ;;  %5090 = vmatpush1.bf16.msra.mxu0 %v13894_v44  ;;  %v2176_v41 = vld [vmem:[#allocation10 + $0xfb0] sm:$0xff]  ;;  %v13951_v42 = vcombine.high %v2171_v34, %v2175_v36  ;;  %v13944_v44 = vcombine.low %v2164_v29, %v2168_v30  ;;  %v1717_v29 = vld [vmem:[#allocation10 + $0x158] sm:$0xff] }
 0x39e   : > { %5091 = vmatprep.subr.bf16.mxu0 %v13903_v49  ;;  %v13953_v49 = vcombine.high %v2172_v40, %v2176_v41  ;;  %v1721_v30 = vld [vmem:[#allocation10 + $0x178] sm:$0xff] }
 0x3a0   : > { %5254 = vmatpush1.bf16.msra.mxu1 %v13896_v50  ;;  %v13950_v50 = vcombine.low %v2171_v34, %v2175_v36  ;;  %v13499_v34 = vcombine.high %v1717_v29, %v1721_v30  ;;  %v15648_v36 = vld [vmem:[#allocation13 + $0x40] ss:$8 sps:$4 sm:$0xff]  }
 0x3a1   : > { %5255 = vmatprep.subr.bf16.mxu1 %v13905_v53  ;;  %5092 = vmatpush1.bf16.msra.mxu0 %v13902_v54  ;;  %v13959_v53 = vcombine.high %v2179_v47, %v2183_v48  ;;  %v13952_v54 = vcombine.low %v2172_v40, %v2176_v41  ;;  %v15653_v40 = vld [vmem:[#allocation13 + $0x54] ss:$8 sps:$4 sm:$0xff]   ;;  %v13498_v41 = vcombine.low %v1717_v29, %v1721_v30  ;;  %v15674_v29 = vld [vmem:[#allocation13 + $0xc4] ss:$8 sps:$4 sm:$0xff]  }
 0x3a2   : > { %5093 = vmatprep.subr.bf16.mxu0 %v13911_v55  ;;  %v13961_v55 = vcombine.high %v2180_v51, %v2184_v52  ;;  %v15654_v52 = vld [vmem:[#allocation13 + $0x60] ss:$8 sps:$4 sm:$0xff]  }
 0x3a4   : > { %5256 = vmatpush1.bf16.msra.mxu1 %v13904_v59  ;;  %v13958_v59 = vcombine.low %v2179_v47, %v2183_v48  ;;  %v1733_v47 = vld [vmem:[#allocation10 + $0x1d8] sm:$0xff] }
 0x3a5   : > { %5257 = vmatprep.subr.bf16.mxu1 %v13913_v0  ;;  %5094 = vmatpush1.bf16.msra.mxu0 %v13910_v1  ;;  %v1685_v0 = vld [vmem:[#allocation10 + $0x58] sm:$0xff] }
 0x3a6   : > { %5095 = vmatprep.subr.bf16.mxu0 %v13919_v4  ;;  %v1689_v1 = vld [vmem:[#allocation10 + $0x78] sm:$0xff] }
 0x3a7   : > { %v17414_v4 = vld [vmem:[%s17294_s5 + $0x20] sm:$0xff]  ;;  %v13467_v12 = vcombine.high %v1685_v0, %v1689_v1 }
 0x3a8   : > { %5258 = vmatpush1.bf16.msra.mxu1 %v13912_v5  ;;  %v13458_v5 = vcombine.low %v1677_v56, %v1681_v57  ;;  %v17418_v9 = vcombine.high %v17411_v3, %v17414_v4  ;;  %v1737_v48 = vld [vmem:[#allocation10 + $0x1f8] sm:$0xff] }
 0x3a9   : > { %5259 = vmatprep.subr.bf16.mxu1 %v13921_v7  ;;  %5096 = vmatpush1.bf16.msra.mxu0 %v13918_v8  ;;  %v1693_v7 = vld [vmem:[#allocation10 + $0x98] sm:$0xff]  ;;  %v13515_v51 = vcombine.high %v1733_v47, %v1737_v48  ;;  %v13514_v57 = vcombine.low %v1733_v47, %v1737_v48  ;;  %v15680_v47 = vld [vmem:[#allocation13 + $0xe4] ss:$8 sps:$4 sm:$0xff]  }
 0x3aa   : > { %5097 = vmatprep.subr.bf16.mxu0 %v13927_v11  ;;  %v1697_v8 = vld [vmem:[#allocation10 + $0xb8] sm:$0xff]  ;;  %v13466_v11 = vcombine.low %v1685_v0, %v1689_v1  ;;  %v15662_v0 = vld [vmem:[#allocation13 + $0x84] ss:$8 sps:$4 sm:$0xff]  }
 0x3ab   : > { %v13474_v20 = vcombine.low %v1693_v7, %v1697_v8  ;;  %v15659_v56 = vld [vmem:[#allocation13 + $0x74] ss:$8 sps:$4 sm:$0xff]  }
 0x3ac   : > { %5260 = vmatpush1.bf16.msra.mxu1 %v13920_v13  ;;  %v13475_v13 = vcombine.high %v1693_v7, %v1697_v8  ;;  %v15665_v7 = vld [vmem:[#allocation13 + $0x94] ss:$8 sps:$4 sm:$0xff]  }
 0x3ad   : > { %5261 = vmatprep.subr.bf16.mxu1 %v13929_v17  ;;  %5098 = vmatpush1.bf16.msra.mxu0 %v13926_v18  ;;  %v1705_v17 = vld [vmem:[#allocation10 + $0xf8] sm:$0xff]  ;;  %v15644_v18 = vld [vmem:[#allocation13 + $0x24] ss:$8 sps:$4 sm:$0xff]  }
 0x3ae   : > { %5099 = vmatprep.subr.bf16.mxu0 %v13935_v22  ;;  %v13483_v21 = vcombine.high %v1701_v15, %v1705_v17  ;;  %v15642_v22 = vld [vmem:[#allocation13 + $0x20] ss:$8 sps:$4 sm:$0xff]   ;;  %v13482_v43 = vcombine.low %v1701_v15, %v1705_v17  ;;  %v15668_v15 = vld [vmem:[#allocation13 + $0xa4] ss:$8 sps:$4 sm:$0xff]  }
 0x3b0   : > { %5262 = vmatpush1.bf16.msra.mxu1 %v13928_v24  ;;  %v1709_v24 = vld [vmem:[#allocation10 + $0x118] sm:$0xff] }
 0x3b1   : > { %5263 = vmatprep.subr.bf16.mxu1 %v13937_v27  ;;  %5100 = vmatpush1.bf16.msra.mxu0 %v13934_v28  ;;  %v15645_v28 = vld [vmem:[#allocation13 + $0x30] ss:$8 sps:$4 sm:$0xff]  }
 0x3b2   : > { %5101 = vmatprep.subr.bf16.mxu0 %v13943_v31  ;;  %v15650_v31 = vld [vmem:[#allocation13 + $0x44] ss:$8 sps:$4 sm:$0xff]  }
 0x3b4   : > { %5264 = vmatpush1.bf16.msra.mxu1 %v13936_v33 }
 0x3b5   : > { %5265 = vmatprep.subr.bf16.mxu1 %v13945_v37  ;;  %5102 = vmatpush1.bf16.msra.mxu0 %v13942_v39  ;;  %v1725_v37 = vld [vmem:[#allocation10 + $0x198] sm:$0xff] }
 0x3b6   : > { %5103 = vmatprep.subr.bf16.mxu0 %v13951_v42  ;;  %v1729_v39 = vld [vmem:[#allocation10 + $0x1b8] sm:$0xff] }
 0x3b7   : > { %v13507_v42 = vcombine.high %v1725_v37, %v1729_v39 }
 0x3b8   : > { %5266 = vmatpush1.bf16.msra.mxu1 %v13944_v44  ;;  %v15651_v44 = vld [vmem:[#allocation13 + $0x50] ss:$8 sps:$4 sm:$0xff]  }
 0x3b9   : > { %5267 = vmatprep.subr.bf16.mxu1 %v13953_v49  ;;  %5104 = vmatpush1.bf16.msra.mxu0 %v13950_v50  ;;  %v15656_v49 = vld [vmem:[#allocation13 + $0x64] ss:$8 sps:$4 sm:$0xff]   ;;  %v13506_v50 = vcombine.low %v1725_v37, %v1729_v39  ;;  %v15677_v37 = vld [vmem:[#allocation13 + $0xd4] ss:$8 sps:$4 sm:$0xff]  }
 0x3ba   : > { %5105 = vmatprep.subr.bf16.mxu0 %v13959_v53  ;;  %v1741_v53 = vld [vmem:[#allocation10 + $0x218] sm:$0xff] }
 0x3bc   : > { %5268 = vmatpush1.bf16.msra.mxu1 %v13952_v54  ;;  %v1745_v54 = vld [vmem:[#allocation10 + $0x238] sm:$0xff] }
 0x3bd   : > { %5269 = vmatprep.subr.bf16.mxu1 %v13961_v55  ;;  %5106 = vmatpush1.bf16.msra.mxu0 %v13958_v59  ;;  %v13523_v55 = vcombine.high %v1741_v53, %v1745_v54  ;;  %v15657_v59 = vld [vmem:[#allocation13 + $0x70] ss:$8 sps:$4 sm:$0xff]   ;;  %v13522_v1 = vcombine.low %v1741_v53, %v1745_v54  ;;  %v15683_v53 = vld [vmem:[#allocation13 + $0xf4] ss:$8 sps:$4 sm:$0xff]  }
 0x3be   : > { %5280 = vmatprep.subr.bf16.mxu0 %v13459_v60  ;;  %v1749_v60 = vld [vmem:[#allocation10 + $0x258] sm:$0xff] }
 0x3c0   : > { %5270 = vmatpush1.bf16.msra.mxu1 %v13960_v61  ;;  %5108 = vmatmul.mubr.bf16.vlgmr.msra.gmra.mrb[4].mxu0 %v17384_v46  ;;  %v1753_v61 = vld [vmem:[#allocation10 + $0x278] sm:$0xff] }
 0x3c1   : > { %6292 = vmatprep.subr.bf16.mxu1 %v15638_v2  ;;  %5281 = vmatpush1.bf16.msra.mxu0 %v13458_v5  ;;  %v13531_v2 = vcombine.high %v1749_v60, %v1753_v61  ;;  %v15660_v5 = vld [vmem:[#allocation13 + $0x80] ss:$8 sps:$4 sm:$0xff]   ;;  %v13530_v8 = vcombine.low %v1749_v60, %v1753_v61  ;;  %v15686_v60 = vld [vmem:[#allocation13 + $0x104] ss:$8 sps:$4 sm:$0xff]   ;;  %v698_v61 = vld [vmem:[%s17294_s5 + $0x40] sm:$0xff] }
 0x3c2   : > { %5312 = vmatprep.mubr.bf16.mxu0 %v17333_v58  ;;  %5282 = vmatprep.subr.bf16.mxu0 %v13467_v12  ;;  %v1713_v58 = vld [vmem:[#allocation10 + $0x138] sm:$0xff] }
 0x3c3   : > { %5272 = vmatmul.mubr.bf16.vlgmr.msra.gmra.mrb[4].mxu1 %v17384_v46  ;;  %v13491_v27 = vcombine.high %v1709_v24, %v1713_v58  ;;  %v13490_v33 = vcombine.low %v1709_v24, %v1713_v58  ;;  %v1757_v12 = vld [vmem:[#allocation10 + $0x298] sm:$0xff] }
 0x3c4   : > { %6293 = vmatpush1.bf16.msra.mxu1 %v15636_v6  ;;  %6324 = vmatprep.mubr.bf16.mxu1 %v17418_v9  ;;  %v1761_v6 = vld [vmem:[#allocation10 + $0x2b8] sm:$0xff] }
 0x3c5   : > { %6294 = vmatprep.subr.bf16.mxu1 %v15641_v10  ;;  %5283 = vmatpush1.bf16.msra.mxu0 %v13466_v11  ;;  %v13539_v10 = vcombine.high %v1757_v12, %v1761_v6  ;;  %v15663_v11 = vld [vmem:[#allocation13 + $0x90] ss:$8 sps:$4 sm:$0xff]   ;;  %v13538_v17 = vcombine.low %v1757_v12, %v1761_v6  ;;  %v15671_v24 = vld [vmem:[#allocation13 + $0xb4] ss:$8 sps:$4 sm:$0xff]  }
 0x3c6   : > { %5284 = vmatprep.subr.bf16.mxu0 %v13475_v13  ;;  %v1765_v13 = vld [vmem:[#allocation10 + $0x2d8] sm:$0xff] }
 0x3c7   : > { %v1821_v12 = vld [vmem:[#allocation10 + $0x498] sm:$0xff] }
 0x3c8   : > { %6295 = vmatpush1.bf16.msra.mxu1 %v15639_v14  ;;  %v1769_v14 = vld [vmem:[#allocation10 + $0x2f8] sm:$0xff] }
 0x3c9   : > { %6296 = vmatprep.subr.bf16.mxu1 %v15644_v18  ;;  %5285 = vmatpush1.bf16.msra.mxu0 %v13474_v20  ;;  %v13547_v18 = vcombine.high %v1765_v13, %v1769_v14  ;;  %v15666_v20 = vld [vmem:[#allocation13 + $0xa0] ss:$8 sps:$4 sm:$0xff]   ;;  %v13546_v58 = vcombine.low %v1765_v13, %v1769_v14  ;;  %v1825_v6 = vld [vmem:[#allocation10 + $0x4b8] sm:$0xff]  ;;  %v15692_v14 = vld [vmem:[#allocation13 + $0x124] ss:$8 sps:$4 sm:$0xff]  }
 0x3ca   : > { %5286 = vmatprep.subr.bf16.mxu0 %v13483_v21  ;;  %v1773_v21 = vld [vmem:[#allocation10 + $0x318] sm:$0xff] }
 0x3cb   : > { %v1833_v13 = vld [vmem:[#allocation10 + $0x4f8] sm:$0xff] }
 0x3cc   : > { %6297 = vmatpush1.bf16.msra.mxu1 %v15642_v22  ;;  %v1777_v22 = vld [vmem:[#allocation10 + $0x338] sm:$0xff] }
 0x3cd   : > { %6298 = vmatprep.subr.bf16.mxu1 %v15647_v25  ;;  %5287 = vmatpush1.bf16.msra.mxu0 %v13482_v43  ;;  %v13555_v25 = vcombine.high %v1773_v21, %v1777_v22  ;;  %v15669_v43 = vld [vmem:[#allocation13 + $0xb0] ss:$8 sps:$4 sm:$0xff]   ;;  %v13554_v30 = vcombine.low %v1773_v21, %v1777_v22 }
 0x3ce   : > { %5288 = vmatprep.subr.bf16.mxu0 %v13491_v27  ;;  %v1781_v27 = vld [vmem:[#allocation10 + $0x358] sm:$0xff] }
 0x3cf   : > { %v1837_v21 = vld [vmem:[#allocation10 + $0x518] sm:$0xff] }
 0x3d0   : > { %6299 = vmatpush1.bf16.msra.mxu1 %v15645_v28  ;;  %v1785_v28 = vld [vmem:[#allocation10 + $0x378] sm:$0xff] }
 0x3d1   : > { %6300 = vmatprep.subr.bf16.mxu1 %v15650_v31  ;;  %5289 = vmatpush1.bf16.msra.mxu0 %v13490_v33  ;;  %v13563_v31 = vcombine.high %v1781_v27, %v1785_v28  ;;  %v15672_v33 = vld [vmem:[#allocation13 + $0xc0] ss:$8 sps:$4 sm:$0xff]   ;;  %v13562_v39 = vcombine.low %v1781_v27, %v1785_v28  ;;  %v1841_v22 = vld [vmem:[#allocation10 + $0x538] sm:$0xff] }
 0x3d2   : > { %5290 = vmatprep.subr.bf16.mxu0 %v13499_v34  ;;  %v1789_v34 = vld [vmem:[#allocation10 + $0x398] sm:$0xff] }
 0x3d3   : > { %v15693_v27 = vld [vmem:[#allocation13 + $0x130] ss:$8 sps:$4 sm:$0xff]  }
 0x3d4   : > { %6301 = vmatpush1.bf16.msra.mxu1 %v15648_v36  ;;  %v1793_v36 = vld [vmem:[#allocation10 + $0x3b8] sm:$0xff] }
 0x3d5   : > { %6302 = vmatprep.subr.bf16.mxu1 %v15653_v40  ;;  %5291 = vmatpush1.bf16.msra.mxu0 %v13498_v41  ;;  %v13571_v40 = vcombine.high %v1789_v34, %v1793_v36  ;;  %v15675_v41 = vld [vmem:[#allocation13 + $0xd0] ss:$8 sps:$4 sm:$0xff]   ;;  %v13570_v48 = vcombine.low %v1789_v34, %v1793_v36  ;;  %v15696_v34 = vld [vmem:[#allocation13 + $0x140] ss:$8 sps:$4 sm:$0xff]  }
 0x3d6   : > { %5292 = vmatprep.subr.bf16.mxu0 %v13507_v42  ;;  %v1797_v42 = vld [vmem:[#allocation10 + $0x3d8] sm:$0xff] }
 0x3d7   : > { %v1845_v28 = vld [vmem:[#allocation10 + $0x558] sm:$0xff] }
 0x3d8   : > { %6303 = vmatpush1.bf16.msra.mxu1 %v15651_v44  ;;  %v1801_v44 = vld [vmem:[#allocation10 + $0x3f8] sm:$0xff] }
 0x3d9   : > { %6304 = vmatprep.subr.bf16.mxu1 %v15656_v49  ;;  %5293 = vmatpush1.bf16.msra.mxu0 %v13506_v50  ;;  %v13579_v49 = vcombine.high %v1797_v42, %v1801_v44  ;;  %v15678_v50 = vld [vmem:[#allocation13 + $0xe0] ss:$8 sps:$4 sm:$0xff]   ;;  %v13578_v54 = vcombine.low %v1797_v42, %v1801_v44  ;;  %v1853_v36 = vld [vmem:[#allocation10 + $0x598] sm:$0xff] }
 0x3da   : > { %5294 = vmatprep.subr.bf16.mxu0 %v13515_v51  ;;  %v1805_v51 = vld [vmem:[#allocation10 + $0x418] sm:$0xff] }
 0x3db   : > { %v15699_v42 = vld [vmem:[#allocation13 + $0x150] ss:$8 sps:$4 sm:$0xff]  }
 0x3dc   : > { %6305 = vmatpush1.bf16.msra.mxu1 %v15654_v52  ;;  %v1809_v52 = vld [vmem:[#allocation10 + $0x438] sm:$0xff] }
 0x3dd   : > { %6306 = vmatprep.subr.bf16.mxu1 %v15659_v56  ;;  %5295 = vmatpush1.bf16.msra.mxu0 %v13514_v57  ;;  %v13587_v56 = vcombine.high %v1805_v51, %v1809_v52  ;;  %v15681_v57 = vld [vmem:[#allocation13 + $0xf0] ss:$8 sps:$4 sm:$0xff]  }
 0x3de   : > { %5296 = vmatprep.subr.bf16.mxu0 %v13523_v55  ;;  %v1813_v55 = vld [vmem:[#allocation10 + $0x458] sm:$0xff] }
 0x3df   : > { %v1861_v44 = vld [vmem:[#allocation10 + $0x5d8] sm:$0xff] }
 0x3e0   : > { %6307 = vmatpush1.bf16.msra.mxu1 %v15657_v59  ;;  %v1817_v59 = vld [vmem:[#allocation10 + $0x478] sm:$0xff] }
 0x3e1   : > { %6308 = vmatprep.subr.bf16.mxu1 %v15662_v0  ;;  %5297 = vmatpush1.bf16.msra.mxu0 %v13522_v1  ;;  %v13586_v0 = vcombine.low %v1805_v51, %v1809_v52  ;;  %v17427_v1 = vcombine.low %v17411_v3, %v17414_v4  ;;  %v13603_v3 = vcombine.high %v1821_v12, %v1825_v6  ;;  %v15687_v4 = vld [vmem:[#allocation13 + $0x110] ss:$8 sps:$4 sm:$0xff]   ;;  %v15702_v51 = vld [vmem:[#allocation13 + $0x160] ss:$8 sps:$4 sm:$0xff]  }
 0x3e2   : > { %5298 = vmatprep.subr.bf16.mxu0 %v13531_v2  ;;  %v13595_v2 = vcombine.high %v1813_v55, %v1817_v59  ;;  %v1869_v52 = vld [vmem:[#allocation10 + $0x618] sm:$0xff] }
 0x3e4   : > { %6309 = vmatpush1.bf16.msra.mxu1 %v15660_v5  ;;  %v15684_v5 = vld [vmem:[#allocation13 + $0x100] ss:$8 sps:$4 sm:$0xff]  }
 0x3e5   : > { %6310 = vmatprep.subr.bf16.mxu1 %v15665_v7  ;;  %5299 = vmatpush1.bf16.msra.mxu0 %v13530_v8  ;;  %v17429_v7 = vcombine.high %v698_v61, %v698_v61  ;;  %v15689_v8 = vld [vmem:[#allocation13 + $0x114] ss:$8 sps:$4 sm:$0xff]  }
 0x3e6   : > { %5300 = vmatprep.subr.bf16.mxu0 %v13539_v10  ;;  %v13594_v10 = vcombine.low %v1813_v55, %v1817_v59  ;;  %v15705_v55 = vld [vmem:[#allocation13 + $0x170] ss:$8 sps:$4 sm:$0xff]  }
 0x3e7   : > { %v1877_v59 = vld [vmem:[#allocation10 + $0x658] sm:$0xff] }
 0x3e8   : > { %6311 = vmatpush1.bf16.msra.mxu1 %v15663_v11  ;;  %v1829_v11 = vld [vmem:[#allocation10 + $0x4d8] sm:$0xff] }
 0x3e9   : > { %6312 = vmatprep.subr.bf16.mxu1 %v15668_v15  ;;  %5301 = vmatpush1.bf16.msra.mxu0 %v13538_v17  ;;  %v17436_v15 = vld [vmem:[%s17294_s5 + $0x8] sm:$0xff]  ;;  %v13602_v17 = vcombine.low %v1821_v12, %v1825_v6  ;;  %v1885_v12 = vld [vmem:[#allocation10 + $0x698] sm:$0xff] }
 0x3ea   : > { %5302 = vmatprep.subr.bf16.mxu0 %v13547_v18  ;;  %v17441_v18 = vcombine.low %v698_v61, %v698_v61  ;;  %v15710_v61 = vld [vmem:[#allocation13 + $0x184] ss:$8 sps:$4 sm:$0xff]   ;;  %v1889_v6 = vld [vmem:[#allocation10 + $0x6b8] sm:$0xff] }
 0x3ec   : > { %6313 = vmatpush1.bf16.msra.mxu1 %v15666_v20  ;;  %v15690_v20 = vld [vmem:[#allocation13 + $0x120] ss:$8 sps:$4 sm:$0xff]  }
 0x3ed   : > { %6314 = vmatprep.subr.bf16.mxu1 %v15671_v24  ;;  %5303 = vmatpush1.bf16.msra.mxu0 %v13546_v58  ;;  %v15695_v58 = vld [vmem:[#allocation13 + $0x134] ss:$8 sps:$4 sm:$0xff]  }
 0x3ee   : > { %5304 = vmatprep.subr.bf16.mxu0 %v13555_v25  ;;  %v13610_v25 = vcombine.low %v1829_v11, %v1833_v13 }
 0x3f0   : > { %6315 = vmatpush1.bf16.msra.mxu1 %v15669_v43  ;;  %v13619_v43 = vcombine.high %v1837_v21, %v1841_v22 }
 0x3f1   : > { %6316 = vmatprep.subr.bf16.mxu1 %v15674_v29  ;;  %5305 = vmatpush1.bf16.msra.mxu0 %v13554_v30  ;;  %v1849_v29 = vld [vmem:[#allocation10 + $0x578] sm:$0xff]  ;;  %v15698_v30 = vld [vmem:[#allocation13 + $0x144] ss:$8 sps:$4 sm:$0xff]  }
 0x3f2   : > { %5306 = vmatprep.subr.bf16.mxu0 %v13563_v31  ;;  %v13618_v31 = vcombine.low %v1837_v21, %v1841_v22  ;;  %v1901_v21 = vld [vmem:[#allocation10 + $0x718] sm:$0xff] }
 0x3f3   : > { %v1905_v22 = vld [vmem:[#allocation10 + $0x738] sm:$0xff] }
 0x3f4   : > { %6317 = vmatpush1.bf16.msra.mxu1 %v15672_v33  ;;  %v13627_v33 = vcombine.high %v1845_v28, %v1849_v29 }
 0x3f5   : > { %6318 = vmatprep.subr.bf16.mxu1 %v15677_v37  ;;  %5307 = vmatpush1.bf16.msra.mxu0 %v13562_v39  ;;  %v1857_v37 = vld [vmem:[#allocation10 + $0x5b8] sm:$0xff] }
 0x3f6   : > { %5308 = vmatprep.subr.bf16.mxu0 %v13571_v40  ;;  %v15701_v39 = vld [vmem:[#allocation13 + $0x154] ss:$8 sps:$4 sm:$0xff]   ;;  %v13626_v40 = vcombine.low %v1845_v28, %v1849_v29 }
 0x3f7   : > { %v1909_v28 = vld [vmem:[#allocation10 + $0x758] sm:$0xff] }
 0x3f8   : > { %6319 = vmatpush1.bf16.msra.mxu1 %v15675_v41  ;;  %v13635_v41 = vcombine.high %v1853_v36, %v1857_v37  ;;  %v1913_v29 = vld [vmem:[#allocation10 + $0x778] sm:$0xff] }
 0x3f9   : > { %6320 = vmatprep.subr.bf16.mxu1 %v15680_v47  ;;  %5309 = vmatpush1.bf16.msra.mxu0 %v13570_v48  ;;  %v1865_v47 = vld [vmem:[#allocation10 + $0x5f8] sm:$0xff]  ;;  %v15704_v48 = vld [vmem:[#allocation13 + $0x164] ss:$8 sps:$4 sm:$0xff]  }
 0x3fa   : > { %5310 = vmatprep.subr.bf16.mxu0 %v13579_v49  ;;  %v13634_v49 = vcombine.low %v1853_v36, %v1857_v37  ;;  %v1917_v36 = vld [vmem:[#allocation10 + $0x798] sm:$0xff] }
 0x3fb   : > { %v1921_v37 = vld [vmem:[#allocation10 + $0x7b8] sm:$0xff] }
 0x3fc   : > { %6321 = vmatpush1.bf16.msra.mxu1 %v15678_v50  ;;  %v13643_v50 = vcombine.high %v1861_v44, %v1865_v47 }
 0x3fd   : > { %6322 = vmatprep.subr.bf16.mxu1 %v15683_v53  ;;  %5311 = vmatpush1.bf16.msra.mxu0 %v13578_v54  ;;  %v1873_v53 = vld [vmem:[#allocation10 + $0x638] sm:$0xff] }
 0x3fe   : > { %5321 = vmatprep.subr.bf16.mxu0 %v13587_v56  ;;  %v15707_v54 = vld [vmem:[#allocation13 + $0x174] ss:$8 sps:$4 sm:$0xff]   ;;  %v13642_v56 = vcombine.low %v1861_v44, %v1865_v47 }
 0x3ff   : > { %v1925_v44 = vld [vmem:[#allocation10 + $0x7d8] sm:$0xff] }
 0x400   : > { %6323 = vmatpush1.bf16.msra.mxu1 %v15681_v57  ;;  %5313 = vmatmul.mubr.bf16.vlgmr.msra.gmra.mrb[8].mxu0 %v17339_v38  ;;  %v17439_v38 = vld [vmem:[%s17294_s5 + $0x28] sm:$0xff]  ;;  %v13651_v57 = vcombine.high %v1869_v52, %v1873_v53  ;;  %v1929_v47 = vld [vmem:[#allocation10 + $0x7f8] sm:$0xff] }
 0x401   : > { %6343 = vmatprep.subr.bf16.mxu1 %v15686_v60  ;;  %5322 = vmatpush1.bf16.msra.mxu0 %v13586_v0  ;;  %v17445_v24 = vcombine.high %v17436_v15, %v17439_v38  ;;  %v1881_v60 = vld [vmem:[#allocation10 + $0x678] sm:$0xff]  ;;  %v13650_v0 = vcombine.low %v1869_v52, %v1873_v53 }
 0x402   : > { %5353 = vmatprep.mubr.bf16.mxu0 %v17346_v45  ;;  %5323 = vmatprep.subr.bf16.mxu0 %v13595_v2  ;;  %v13611_v45 = vcombine.high %v1829_v11, %v1833_v13  ;;  %v13659_v2 = vcombine.high %v1877_v59, %v1881_v60  ;;  %v1893_v11 = vld [vmem:[#allocation10 + $0x6d8] sm:$0xff] }
 0x403   : > { %6325 = vmatmul.mubr.bf16.vlgmr.msra.gmra.mrb[8].mxu1 %v17427_v1  ;;  %v1897_v13 = vld [vmem:[#allocation10 + $0x6f8] sm:$0xff] }
 0x404   : > { %6344 = vmatpush1.bf16.msra.mxu1 %v15684_v5  ;;  %6334 = vmatprep.mubr.bf16.mxu1 %v17429_v7  ;;  %v15708_v5 = vld [vmem:[#allocation13 + $0x180] ss:$8 sps:$4 sm:$0xff]   ;;  %v1933_v52 = vld [vmem:[#allocation10 + $0x818] sm:$0xff] }
 0x405   : > { %6345 = vmatprep.subr.bf16.mxu1 %v15689_v8  ;;  %5324 = vmatpush1.bf16.msra.mxu0 %v13594_v10  ;;  %v15713_v8 = vld [vmem:[#allocation13 + $0x194] ss:$8 sps:$4 sm:$0xff]   ;;  %v13658_v10 = vcombine.low %v1877_v59, %v1881_v60 }
 0x406   : > { %5325 = vmatprep.subr.bf16.mxu0 %v13603_v3  ;;  %v13667_v3 = vcombine.high %v1885_v12, %v1889_v6  ;;  %v1937_v53 = vld [vmem:[#allocation10 + $0x838] sm:$0xff] }
 0x407   : > { %v1941_v59 = vld [vmem:[#allocation10 + $0x858] sm:$0xff] }
 0x408   : > { %6346 = vmatpush1.bf16.msra.mxu1 %v15687_v4  ;;  %v15711_v4 = vld [vmem:[#allocation13 + $0x190] ss:$8 sps:$4 sm:$0xff]  }
 0x409   : > { %6347 = vmatprep.subr.bf16.mxu1 %v15692_v14  ;;  %5326 = vmatpush1.bf16.msra.mxu0 %v13602_v17  ;;  %v15716_v14 = vld [vmem:[#allocation13 + $0x1a4] ss:$8 sps:$4 sm:$0xff]   ;;  %v13666_v17 = vcombine.low %v1885_v12, %v1889_v6  ;;  %v1945_v60 = vld [vmem:[#allocation10 + $0x878] sm:$0xff]  ;;  %v15734_v6 = vld [vmem:[#allocation13 + $0x200] ss:$8 sps:$4 sm:$0xff]  }
 0x40a   : > { %5327 = vmatprep.subr.bf16.mxu0 %v13611_v45  ;;  %v13675_v45 = vcombine.high %v1893_v11, %v1897_v13  ;;  %v13723_v12 = vcombine.high %v1941_v59, %v1945_v60 }
 0x40b   : > { %6335 = vmatmul.mubr.bf16.gmra.mrb[12].mxu1 %v17441_v18 }
 0x40c   : > { %6348 = vmatpush1.bf16.msra.mxu1 %v15690_v20  ;;  %6375 = vmatprep.mubr.bf16.mxu1 %v17445_v24  ;;  %v15714_v20 = vld [vmem:[#allocation13 + $0x1a0] ss:$8 sps:$4 sm:$0xff]  }
 0x40d   : > { %6349 = vmatprep.subr.bf16.mxu1 %v15695_v58  ;;  %5328 = vmatpush1.bf16.msra.mxu0 %v13610_v25  ;;  %v15719_v58 = vld [vmem:[#allocation13 + $0x1b4] ss:$8 sps:$4 sm:$0xff]   ;;  %v13674_v25 = vcombine.low %v1893_v11, %v1897_v13  ;;  %v13722_v11 = vcombine.low %v1941_v59, %v1945_v60 }
 0x40e   : > { %5329 = vmatprep.subr.bf16.mxu0 %v13619_v43  ;;  %v13683_v43 = vcombine.high %v1901_v21, %v1905_v22  ;;  %v1957_v13 = vld [vmem:[#allocation10 + $0x8d8] sm:$0xff] }
 0x410   : > { %6350 = vmatpush1.bf16.msra.mxu1 %v15693_v27  ;;  %v15717_v27 = vld [vmem:[#allocation13 + $0x1b0] ss:$8 sps:$4 sm:$0xff]  }
 0x411   : > { %6351 = vmatprep.subr.bf16.mxu1 %v15698_v30  ;;  %5330 = vmatpush1.bf16.msra.mxu0 %v13618_v31  ;;  %v15722_v30 = vld [vmem:[#allocation13 + $0x1c4] ss:$8 sps:$4 sm:$0xff]   ;;  %v13682_v31 = vcombine.low %v1901_v21, %v1905_v22  ;;  %v15740_v22 = vld [vmem:[#allocation13 + $0x220] ss:$8 sps:$4 sm:$0xff]  }
 0x412   : > { %5331 = vmatprep.subr.bf16.mxu0 %v13627_v33  ;;  %v13691_v33 = vcombine.high %v1909_v28, %v1913_v29 }
 0x414   : > { %6352 = vmatpush1.bf16.msra.mxu1 %v15696_v34  ;;  %v15720_v34 = vld [vmem:[#allocation13 + $0x1c0] ss:$8 sps:$4 sm:$0xff]  }
 0x415   : > { %6353 = vmatprep.subr.bf16.mxu1 %v15701_v39  ;;  %5332 = vmatpush1.bf16.msra.mxu0 %v13626_v40  ;;  %v15725_v39 = vld [vmem:[#allocation13 + $0x1d4] ss:$8 sps:$4 sm:$0xff]   ;;  %v13690_v40 = vcombine.low %v1909_v28, %v1913_v29 }
 0x416   : > { %5333 = vmatprep.subr.bf16.mxu0 %v13635_v41  ;;  %v13699_v41 = vcombine.high %v1917_v36, %v1921_v37 }
 0x418   : > { %6354 = vmatpush1.bf16.msra.mxu1 %v15699_v42  ;;  %v15723_v42 = vld [vmem:[#allocation13 + $0x1d0] ss:$8 sps:$4 sm:$0xff]  }
 0x419   : > { %6355 = vmatprep.subr.bf16.mxu1 %v15704_v48  ;;  %5334 = vmatpush1.bf16.msra.mxu0 %v13634_v49  ;;  %v15729_v48 = vld [vmem:[#allocation13 + $0x1e4] ss:$8 sps:$4 sm:$0xff]   ;;  %v13698_v49 = vcombine.low %v1917_v36, %v1921_v37 }
 0x41a   : > { %5335 = vmatprep.subr.bf16.mxu0 %v13643_v50  ;;  %v13707_v50 = vcombine.high %v1925_v44, %v1929_v47 }
 0x41c   : > { %6356 = vmatpush1.bf16.msra.mxu1 %v15702_v51  ;;  %v15727_v51 = vld [vmem:[#allocation13 + $0x1e0] ss:$8 sps:$4 sm:$0xff]  }
 0x41d   : > { %6357 = vmatprep.subr.bf16.mxu1 %v15707_v54  ;;  %5336 = vmatpush1.bf16.msra.mxu0 %v13642_v56  ;;  %v15733_v54 = vld [vmem:[#allocation13 + $0x1f4] ss:$8 sps:$4 sm:$0xff]   ;;  %v13706_v56 = vcombine.low %v1925_v44, %v1929_v47 }
 0x41e   : > { %5337 = vmatprep.subr.bf16.mxu0 %v13651_v57  ;;  %v13715_v57 = vcombine.high %v1933_v52, %v1937_v53 }
 0x420   : > { %6358 = vmatpush1.bf16.msra.mxu1 %v15705_v55  ;;  %v15731_v55 = vld [vmem:[#allocation13 + $0x1f0] ss:$8 sps:$4 sm:$0xff]  }
 0x421   : > { %6359 = vmatprep.subr.bf16.mxu1 %v15710_v61  ;;  %5338 = vmatpush1.bf16.msra.mxu0 %v13650_v0  ;;  %v15736_v61 = vld [vmem:[#allocation13 + $0x204] ss:$8 sps:$4 sm:$0xff]  }
 0x422   : > { %5339 = vmatprep.subr.bf16.mxu0 %v13659_v2  ;;  %v699_v0 = vld [vmem:[%s17294_s5 + $0x48] sm:$0xff]  ;;  %v13714_v2 = vcombine.low %v1933_v52, %v1937_v53 }
 0x423   : > { %v17466_v21 = vcombine.low %v699_v0, %v699_v0 }
 0x424   : > { %6360 = vmatpush1.bf16.msra.mxu1 %v15708_v5  ;;  %v17452_v5 = vcombine.low %v17436_v15, %v17439_v38  ;;  %v15737_v38 = vld [vmem:[#allocation13 + $0x210] ss:$8 sps:$4 sm:$0xff]  }
 0x425   : > { %6361 = vmatprep.subr.bf16.mxu1 %v15713_v8  ;;  %5340 = vmatpush1.bf16.msra.mxu0 %v13658_v10  ;;  %v1949_v8 = vld [vmem:[#allocation10 + $0x898] sm:$0xff] }
 0x426   : > { %5341 = vmatprep.subr.bf16.mxu0 %v13667_v3  ;;  %v1953_v10 = vld [vmem:[#allocation10 + $0x8b8] sm:$0xff]  ;;  %v17454_v3 = vcombine.high %v699_v0, %v699_v0 }
 0x427   : > { %v13731_v15 = vcombine.high %v1949_v8, %v1953_v10  ;;  %v2005_v0 = vld [vmem:[#allocation10 + $0xa58] sm:$0xff] }
 0x428   : > { %6362 = vmatpush1.bf16.msra.mxu1 %v15711_v4  ;;  %v15739_v4 = vld [vmem:[#allocation13 + $0x214] ss:$8 sps:$4 sm:$0xff]  }
 0x429   : > { %6363 = vmatprep.subr.bf16.mxu1 %v15716_v14  ;;  %5342 = vmatpush1.bf16.msra.mxu0 %v13666_v17  ;;  %v1961_v14 = vld [vmem:[#allocation10 + $0x8f8] sm:$0xff]  ;;  %v15742_v17 = vld [vmem:[#allocation13 + $0x224] ss:$8 sps:$4 sm:$0xff]  }
 0x42a   : > { %5343 = vmatprep.subr.bf16.mxu0 %v13675_v45  ;;  %v17461_v45 = vld [vmem:[%s17294_s5 + $0x10] sm:$0xff]  ;;  %v13738_v28 = vcombine.low %v1957_v13, %v1961_v14 }
 0x42c   : > { %6364 = vmatpush1.bf16.msra.mxu1 %v15714_v20  ;;  %v13730_v20 = vcombine.low %v1949_v8, %v1953_v10  ;;  %v15758_v10 = vld [vmem:[#allocation13 + $0x280] ss:$8 sps:$4 sm:$0xff]  }
 0x42d   : > { %6365 = vmatprep.subr.bf16.mxu1 %v15719_v58  ;;  %5344 = vmatpush1.bf16.msra.mxu0 %v13674_v25  ;;  %v1965_v58 = vld [vmem:[#allocation10 + $0x918] sm:$0xff] }
 0x42e   : > { %5345 = vmatprep.subr.bf16.mxu0 %v13683_v43  ;;  %v1969_v25 = vld [vmem:[#allocation10 + $0x938] sm:$0xff] }
 0x42f   : > { %v13747_v29 = vcombine.high %v1965_v58, %v1969_v25  ;;  %v13746_v36 = vcombine.low %v1965_v58, %v1969_v25  ;;  %v15764_v25 = vld [vmem:[#allocation13 + $0x2a0] ss:$8 sps:$4 sm:$0xff]  }
 0x430   : > { %6366 = vmatpush1.bf16.msra.mxu1 %v15717_v27  ;;  %v15745_v27 = vld [vmem:[#allocation13 + $0x234] ss:$8 sps:$4 sm:$0xff]  }
 0x431   : > { %6367 = vmatprep.subr.bf16.mxu1 %v15722_v30  ;;  %5346 = vmatpush1.bf16.msra.mxu0 %v13682_v31  ;;  %v15743_v30 = vld [vmem:[#allocation13 + $0x230] ss:$8 sps:$4 sm:$0xff]  }
 0x432   : > { %5347 = vmatprep.subr.bf16.mxu0 %v13691_v33  ;;  %v1973_v31 = vld [vmem:[#allocation10 + $0x958] sm:$0xff] }
 0x433   : > { %v1977_v33 = vld [vmem:[#allocation10 + $0x978] sm:$0xff] }
 0x434   : > { %6368 = vmatpush1.bf16.msra.mxu1 %v15720_v34  ;;  %v15748_v34 = vld [vmem:[#allocation13 + $0x244] ss:$8 sps:$4 sm:$0xff]   ;;  %v13755_v37 = vcombine.high %v1973_v31, %v1977_v33  ;;  %v13754_v44 = vcombine.low %v1973_v31, %v1977_v33  ;;  %v15767_v33 = vld [vmem:[#allocation13 + $0x2b0] ss:$8 sps:$4 sm:$0xff]  }
 0x435   : > { %6369 = vmatprep.subr.bf16.mxu1 %v15725_v39  ;;  %5348 = vmatpush1.bf16.msra.mxu0 %v13690_v40  ;;  %v15746_v39 = vld [vmem:[#allocation13 + $0x240] ss:$8 sps:$4 sm:$0xff]   ;;  %v1981_v40 = vld [vmem:[#allocation10 + $0x998] sm:$0xff] }
 0x436   : > { %5349 = vmatprep.subr.bf16.mxu0 %v13699_v41  ;;  %v1985_v41 = vld [vmem:[#allocation10 + $0x9b8] sm:$0xff] }
 0x437   : > { %v13763_v47 = vcombine.high %v1981_v40, %v1985_v41  ;;  %v13762_v52 = vcombine.low %v1981_v40, %v1985_v41  ;;  %v15770_v41 = vld [vmem:[#allocation13 + $0x2c0] ss:$8 sps:$4 sm:$0xff]  }
 0x438   : > { %6370 = vmatpush1.bf16.msra.mxu1 %v15723_v42  ;;  %v15751_v42 = vld [vmem:[#allocation13 + $0x254] ss:$8 sps:$4 sm:$0xff]  }
 0x439   : > { %6371 = vmatprep.subr.bf16.mxu1 %v15729_v48  ;;  %5350 = vmatpush1.bf16.msra.mxu0 %v13698_v49  ;;  %v15749_v48 = vld [vmem:[#allocation13 + $0x250] ss:$8 sps:$4 sm:$0xff]  }
 0x43a   : > { %5351 = vmatprep.subr.bf16.mxu0 %v13707_v50  ;;  %v1989_v49 = vld [vmem:[#allocation10 + $0x9d8] sm:$0xff] }
 0x43b   : > { %v1993_v50 = vld [vmem:[#allocation10 + $0x9f8] sm:$0xff] }
 0x43c   : > { %6372 = vmatpush1.bf16.msra.mxu1 %v15727_v51  ;;  %v15754_v51 = vld [vmem:[#allocation13 + $0x264] ss:$8 sps:$4 sm:$0xff]   ;;  %v13771_v53 = vcombine.high %v1989_v49, %v1993_v50  ;;  %v13770_v59 = vcombine.low %v1989_v49, %v1993_v50  ;;  %v15773_v50 = vld [vmem:[#allocation13 + $0x2d0] ss:$8 sps:$4 sm:$0xff]  }
 0x43d   : > { %6373 = vmatprep.subr.bf16.mxu1 %v15733_v54  ;;  %5352 = vmatpush1.bf16.msra.mxu0 %v13706_v56  ;;  %v15752_v54 = vld [vmem:[#allocation13 + $0x260] ss:$8 sps:$4 sm:$0xff]   ;;  %v1997_v56 = vld [vmem:[#allocation10 + $0xa18] sm:$0xff] }
 0x43e   : > { %5362 = vmatprep.subr.bf16.mxu0 %v13715_v57  ;;  %v2001_v57 = vld [vmem:[#allocation10 + $0xa38] sm:$0xff] }
 0x43f   : > { %v13779_v60 = vcombine.high %v1997_v56, %v2001_v57 }
 0x440   : > { %6374 = vmatpush1.bf16.msra.mxu1 %v15731_v55  ;;  %5354 = vmatmul.mubr.bf16.vlgmr.msra.gmra.mrb[8].mxu0 %v17357_v16  ;;  %v17464_v16 = vld [vmem:[%s17294_s5 + $0x30] sm:$0xff]  ;;  %v15757_v55 = vld [vmem:[#allocation13 + $0x274] ss:$8 sps:$4 sm:$0xff]  }
 0x441   : > { %6394 = vmatprep.subr.bf16.mxu1 %v15736_v61  ;;  %5363 = vmatpush1.bf16.msra.mxu0 %v13714_v2  ;;  %v17470_v43 = vcombine.high %v17461_v45, %v17464_v16  ;;  %v15755_v61 = vld [vmem:[#allocation13 + $0x270] ss:$8 sps:$4 sm:$0xff]  }
 0x442   : > { %5394 = vmatprep.mubr.bf16.mxu0 %v17361_v19  ;;  %5364 = vmatprep.subr.bf16.mxu0 %v13723_v12  ;;  %v13739_v19 = vcombine.high %v1957_v13, %v1961_v14  ;;  %v2009_v2 = vld [vmem:[#allocation10 + $0xa78] sm:$0xff]  ;;  %v15760_v12 = vld [vmem:[#allocation13 + $0x284] ss:$8 sps:$4 sm:$0xff]  }
 0x443   : > { %6376 = vmatmul.mubr.bf16.vlgmr.msra.gmra.mrb[8].mxu1 %v17452_v5  ;;  %v13787_v8 = vcombine.high %v2005_v0, %v2009_v2  ;;  %v15761_v14 = vld [vmem:[#allocation13 + $0x290] ss:$8 sps:$4 sm:$0xff]  }
 0x444   : > { %6395 = vmatpush1.bf16.msra.mxu1 %v15734_v6  ;;  %6385 = vmatprep.mubr.bf16.mxu1 %v17454_v3  ;;  %v13778_v6 = vcombine.low %v1997_v56, %v2001_v57  ;;  %v15777_v57 = vld [vmem:[#allocation13 + $0x2e0] ss:$8 sps:$4 sm:$0xff]  }
 0x445   : > { %6396 = vmatprep.subr.bf16.mxu1 %v15739_v4  ;;  %5365 = vmatpush1.bf16.msra.mxu0 %v13722_v11  ;;  %v2013_v4 = vld [vmem:[#allocation10 + $0xa98] sm:$0xff] }
 0x446   : > { %5366 = vmatprep.subr.bf16.mxu0 %v13731_v15  ;;  %v2017_v11 = vld [vmem:[#allocation10 + $0xab8] sm:$0xff] }
 0x447   : > { %v15763_v15 = vld [vmem:[#allocation13 + $0x294] ss:$8 sps:$4 sm:$0xff]   ;;  %v13795_v13 = vcombine.high %v2013_v4, %v2017_v11 }
 0x448   : > { %6397 = vmatpush1.bf16.msra.mxu1 %v15737_v38  ;;  %v13786_v38 = vcombine.low %v2005_v0, %v2009_v2  ;;  %v15781_v2 = vld [vmem:[#allocation13 + $0x2f0] ss:$8 sps:$4 sm:$0xff]  }
 0x449   : > { %6398 = vmatprep.subr.bf16.mxu1 %v15742_v17  ;;  %5367 = vmatpush1.bf16.msra.mxu0 %v13730_v20  ;;  %v2021_v17 = vld [vmem:[#allocation10 + $0xad8] sm:$0xff] }
 0x44a   : > { %5368 = vmatprep.subr.bf16.mxu0 %v13739_v19  ;;  %v2025_v20 = vld [vmem:[#allocation10 + $0xaf8] sm:$0xff]  ;;  %v15766_v19 = vld [vmem:[#allocation13 + $0x2a4] ss:$8 sps:$4 sm:$0xff]  }
 0x44b   : > { %6386 = vmatmul.mubr.bf16.gmra.mrb[12].mxu1 %v17466_v21  ;;  %v13803_v58 = vcombine.high %v2021_v17, %v2025_v20 }
 0x44c   : > { %6399 = vmatpush1.bf16.msra.mxu1 %v15740_v22  ;;  %6426 = vmatprep.mubr.bf16.mxu1 %v17470_v43  ;;  %v13794_v22 = vcombine.low %v2013_v4, %v2017_v11  ;;  %v17477_v11 = vcombine.low %v17461_v45, %v17464_v16  ;;  %v15787_v16 = vld [vmem:[#allocation13 + $0x310] ss:$8 sps:$4 sm:$0xff]  }
 0x44d   : > { %6400 = vmatprep.subr.bf16.mxu1 %v15745_v27  ;;  %5369 = vmatpush1.bf16.msra.mxu0 %v13738_v28  ;;  %v2029_v27 = vld [vmem:[#allocation10 + $0xb18] sm:$0xff] }
 0x44e   : > { %5370 = vmatprep.subr.bf16.mxu0 %v13747_v29  ;;  %v2033_v28 = vld [vmem:[#allocation10 + $0xb38] sm:$0xff] }
 0x44f   : > { %v15769_v29 = vld [vmem:[#allocation13 + $0x2b4] ss:$8 sps:$4 sm:$0xff]   ;;  %v13811_v31 = vcombine.high %v2029_v27, %v2033_v28 }
 0x450   : > { %6401 = vmatpush1.bf16.msra.mxu1 %v15743_v30  ;;  %v13802_v30 = vcombine.low %v2021_v17, %v2025_v20  ;;  %v15789_v20 = vld [vmem:[#allocation13 + $0x314] ss:$8 sps:$4 sm:$0xff]  }
 0x451   : > { %6402 = vmatprep.subr.bf16.mxu1 %v15748_v34  ;;  %5371 = vmatpush1.bf16.msra.mxu0 %v13746_v36  ;;  %v2037_v34 = vld [vmem:[#allocation10 + $0xb58] sm:$0xff] }
 0x452   : > { %5372 = vmatprep.subr.bf16.mxu0 %v13755_v37  ;;  %v2041_v36 = vld [vmem:[#allocation10 + $0xb78] sm:$0xff]  ;;  %v15772_v37 = vld [vmem:[#allocation13 + $0x2c4] ss:$8 sps:$4 sm:$0xff]  }
 0x453   : > { %v13819_v40 = vcombine.high %v2037_v34, %v2041_v36 }
 0x454   : > { %6403 = vmatpush1.bf16.msra.mxu1 %v15746_v39  ;;  %v13810_v39 = vcombine.low %v2029_v27, %v2033_v28  ;;  %v17486_v27 = vld [vmem:[%s17294_s5 + $0x18] sm:$0xff] }
 0x455   : > { %6404 = vmatprep.subr.bf16.mxu1 %v15751_v42  ;;  %5373 = vmatpush1.bf16.msra.mxu0 %v13754_v44  ;;  %v2045_v42 = vld [vmem:[#allocation10 + $0xb98] sm:$0xff] }
 0x456   : > { %5374 = vmatprep.subr.bf16.mxu0 %v13763_v47  ;;  %v2049_v44 = vld [vmem:[#allocation10 + $0xbb8] sm:$0xff] }
 0x457   : > { %v15775_v47 = vld [vmem:[#allocation13 + $0x2d4] ss:$8 sps:$4 sm:$0xff]   ;;  %v13827_v49 = vcombine.high %v2045_v42, %v2049_v44 }
 0x458   : > { %6405 = vmatpush1.bf16.msra.mxu1 %v15749_v48  ;;  %v13818_v48 = vcombine.low %v2037_v34, %v2041_v36  ;;  %v15795_v36 = vld [vmem:[#allocation13 + $0x334] ss:$8 sps:$4 sm:$0xff]  }
 0x459   : > { %6406 = vmatprep.subr.bf16.mxu1 %v15754_v51  ;;  %5375 = vmatpush1.bf16.msra.mxu0 %v13762_v52  ;;  %v2053_v51 = vld [vmem:[#allocation10 + $0xbd8] sm:$0xff] }
 0x45a   : > { %5376 = vmatprep.subr.bf16.mxu0 %v13771_v53  ;;  %v2057_v52 = vld [vmem:[#allocation10 + $0xbf8] sm:$0xff]  ;;  %v15779_v53 = vld [vmem:[#allocation13 + $0x2e4] ss:$8 sps:$4 sm:$0xff]  }
 0x45b   : > { %v13835_v56 = vcombine.high %v2053_v51, %v2057_v52 }
 0x45c   : > { %6407 = vmatpush1.bf16.msra.mxu1 %v15752_v54  ;;  %v13826_v54 = vcombine.low %v2045_v42, %v2049_v44  ;;  %v2105_v42 = vld [vmem:[#allocation10 + $0xd78] sm:$0xff]  ;;  %v15798_v44 = vld [vmem:[#allocation13 + $0x344] ss:$8 sps:$4 sm:$0xff]  }
 0x45d   : > { %6408 = vmatprep.subr.bf16.mxu1 %v15757_v55  ;;  %5377 = vmatpush1.bf16.msra.mxu0 %v13770_v59  ;;  %v2061_v55 = vld [vmem:[#allocation10 + $0xc18] sm:$0xff] }
 0x45e   : > { %5378 = vmatprep.subr.bf16.mxu0 %v13779_v60  ;;  %v2065_v59 = vld [vmem:[#allocation10 + $0xc38] sm:$0xff] }
 0x45f   : > { %v15783_v60 = vld [vmem:[#allocation13 + $0x2f4] ss:$8 sps:$4 sm:$0xff]   ;;  %v13843_v0 = vcombine.high %v2061_v55, %v2065_v59  ;;  %v13842_v4 = vcombine.low %v2061_v55, %v2065_v59 }
 0x460   : > { %6409 = vmatpush1.bf16.msra.mxu1 %v15755_v61  ;;  %v13834_v61 = vcombine.low %v2053_v51, %v2057_v52  ;;  %v2113_v51 = vld [vmem:[#allocation10 + $0xdb8] sm:$0xff] }
 0x461   : > { %6410 = vmatprep.subr.bf16.mxu1 %v15760_v12  ;;  %5379 = vmatpush1.bf16.msra.mxu0 %v13778_v6  ;;  %v2069_v12 = vld [vmem:[#allocation10 + $0xc58] sm:$0xff] }
 0x462   : > { %5380 = vmatprep.subr.bf16.mxu0 %v13787_v8  ;;  %v2073_v6 = vld [vmem:[#allocation10 + $0xc78] sm:$0xff]  ;;  %v15786_v8 = vld [vmem:[#allocation13 + $0x304] ss:$8 sps:$4 sm:$0xff]  }
 0x463   : > { %v15801_v52 = vld [vmem:[#allocation13 + $0x354] ss:$8 sps:$4 sm:$0xff]  }
 0x464   : > { %6411 = vmatpush1.bf16.msra.mxu1 %v15758_v10  ;;  %v700_v10 = vld [vmem:[%s17294_s5 + $0x50] sm:$0xff]  ;;  %v2117_v55 = vld [vmem:[#allocation10 + $0xdd8] sm:$0xff] }
 0x465   : > { %6412 = vmatprep.subr.bf16.mxu1 %v15763_v15  ;;  %5381 = vmatpush1.bf16.msra.mxu0 %v13786_v38  ;;  %v13851_v15 = vcombine.high %v2069_v12, %v2073_v6  ;;  %v15784_v38 = vld [vmem:[#allocation13 + $0x300] ss:$8 sps:$4 sm:$0xff]   ;;  %v17479_v17 = vcombine.high %v700_v10, %v700_v10  ;;  %v2121_v59 = vld [vmem:[#allocation10 + $0xdf8] sm:$0xff] }
 0x466   : > { %5382 = vmatprep.subr.bf16.mxu0 %v13795_v13  ;;  %v2077_v13 = vld [vmem:[#allocation10 + $0xc98] sm:$0xff] }
 0x468   : > { %6413 = vmatpush1.bf16.msra.mxu1 %v15761_v14  ;;  %v2081_v14 = vld [vmem:[#allocation10 + $0xcb8] sm:$0xff] }
 0x469   : > { %6414 = vmatprep.subr.bf16.mxu1 %v15766_v19  ;;  %5383 = vmatpush1.bf16.msra.mxu0 %v13794_v22  ;;  %v13850_v19 = vcombine.low %v2069_v12, %v2073_v6  ;;  %v13859_v45 = vcombine.high %v2077_v13, %v2081_v14  ;;  %v2085_v22 = vld [vmem:[#allocation10 + $0xcd8] sm:$0xff]  ;;  %v13858_v28 = vcombine.low %v2077_v13, %v2081_v14 }
 0x46a   : > { %5384 = vmatprep.subr.bf16.mxu0 %v13803_v58  ;;  %v2089_v58 = vld [vmem:[#allocation10 + $0xcf8] sm:$0xff] }
 0x46b   : > { %v15807_v14 = vld [vmem:[#allocation13 + $0x374] ss:$8 sps:$4 sm:$0xff]  }
 0x46c   : > { %6415 = vmatpush1.bf16.msra.mxu1 %v15764_v25  ;;  %v15792_v25 = vld [vmem:[#allocation13 + $0x324] ss:$8 sps:$4 sm:$0xff]  }
 0x46d   : > { %6416 = vmatprep.subr.bf16.mxu1 %v15769_v29  ;;  %5385 = vmatpush1.bf16.msra.mxu0 %v13802_v30  ;;  %v17491_v29 = vcombine.low %v700_v10, %v700_v10  ;;  %v15790_v30 = vld [vmem:[#allocation13 + $0x320] ss:$8 sps:$4 sm:$0xff]  }
 0x46e   : > { %5386 = vmatprep.subr.bf16.mxu0 %v13811_v31  ;;  %v2093_v31 = vld [vmem:[#allocation10 + $0xd18] sm:$0xff] }
 0x470   : > { %6417 = vmatpush1.bf16.msra.mxu1 %v15767_v33  ;;  %v2097_v33 = vld [vmem:[#allocation10 + $0xd38] sm:$0xff] }
 0x471   : > { %6418 = vmatprep.subr.bf16.mxu1 %v15772_v37  ;;  %5387 = vmatpush1.bf16.msra.mxu0 %v13810_v39  ;;  %v13866_v37 = vcombine.low %v2085_v22, %v2089_v58  ;;  %v13875_v39 = vcombine.high %v2093_v31, %v2097_v33 }
 0x472   : > { %5388 = vmatprep.subr.bf16.mxu0 %v13819_v40  ;;  %v15793_v40 = vld [vmem:[#allocation13 + $0x330] ss:$8 sps:$4 sm:$0xff]  }
 0x474   : > { %6419 = vmatpush1.bf16.msra.mxu1 %v15770_v41  ;;  %v2101_v41 = vld [vmem:[#allocation10 + $0xd58] sm:$0xff] }
 0x475   : > { %6420 = vmatprep.subr.bf16.mxu1 %v15775_v47  ;;  %5389 = vmatpush1.bf16.msra.mxu0 %v13818_v48  ;;  %v13874_v47 = vcombine.low %v2093_v31, %v2097_v33  ;;  %v13883_v48 = vcombine.high %v2101_v41, %v2105_v42  ;;  %v2141_v31 = vld [vmem:[#allocation10 + $0xe98] sm:$0xff] }
 0x476   : > { %5390 = vmatprep.subr.bf16.mxu0 %v13827_v49  ;;  %v15796_v49 = vld [vmem:[#allocation13 + $0x340] ss:$8 sps:$4 sm:$0xff]   ;;  %v2145_v33 = vld [vmem:[#allocation10 + $0xeb8] sm:$0xff] }
 0x478   : > { %6421 = vmatpush1.bf16.msra.mxu1 %v15773_v50  ;;  %v2109_v50 = vld [vmem:[#allocation10 + $0xd98] sm:$0xff] }
 0x479   : > { %6422 = vmatprep.subr.bf16.mxu1 %v15779_v53  ;;  %5391 = vmatpush1.bf16.msra.mxu0 %v13826_v54  ;;  %v13882_v53 = vcombine.low %v2101_v41, %v2105_v42  ;;  %v13891_v54 = vcombine.high %v2109_v50, %v2113_v51  ;;  %v2149_v41 = vld [vmem:[#allocation10 + $0xed8] sm:$0xff] }
 0x47a   : > { %5392 = vmatprep.subr.bf16.mxu0 %v13835_v56  ;;  %v2153_v42 = vld [vmem:[#allocation10 + $0xef8] sm:$0xff] }
 0x47c   : > { %6423 = vmatpush1.bf16.msra.mxu1 %v15777_v57  ;;  %v15799_v57 = vld [vmem:[#allocation13 + $0x350] ss:$8 sps:$4 sm:$0xff]  }
 0x47d   : > { %6424 = vmatprep.subr.bf16.mxu1 %v15783_v60  ;;  %5393 = vmatpush1.bf16.msra.mxu0 %v13834_v61  ;;  %v15804_v61 = vld [vmem:[#allocation13 + $0x364] ss:$8 sps:$4 sm:$0xff]  }
 0x47e   : > { %5403 = vmatprep.subr.bf16.mxu0 %v13843_v0 }
 0x480   : > { %6425 = vmatpush1.bf16.msra.mxu1 %v15781_v2  ;;  %5395 = vmatmul.mubr.bf16.vlgmr.msra.gmra.mrb[8].mxu0 %v17372_v62  ;;  %v17489_v62 = vld [vmem:[%s17294_s5 + $0x38] sm:$0xff]  ;;  %v13890_v2 = vcombine.low %v2109_v50, %v2113_v51 }
 0x481   : > { %6445 = vmatprep.subr.bf16.mxu1 %v15786_v8  ;;  %5404 = vmatpush1.bf16.msra.mxu0 %v13842_v4  ;;  %v17495_v34 = vcombine.high %v17486_v27, %v17489_v62  ;;  %v13899_v8 = vcombine.high %v2117_v55, %v2121_v59  ;;  %v15802_v4 = vld [vmem:[#allocation13 + $0x360] ss:$8 sps:$4 sm:$0xff]   ;;  %v2157_v50 = vld [vmem:[#allocation10 + $0xf18] sm:$0xff] }
 0x482   : > { %5435 = vmatprep.mubr.bf16.mxu0 %v17376_v63  ;;  %5405 = vmatprep.subr.bf16.mxu0 %v13851_v15  ;;  %v13867_v63 = vcombine.high %v2085_v22, %v2089_v58  ;;  %v2125_v15 = vld [vmem:[#allocation10 + $0xe18] sm:$0xff] }
 0x483   : > { %6427 = vmatmul.mubr.bf16.vlgmr.msra.gmra.mrb[8].mxu1 %v17477_v11  ;;  %v2133_v22 = vld [vmem:[#allocation10 + $0xe58] sm:$0xff] }
 0x484   : > { %6446 = vmatpush1.bf16.msra.mxu1 %v15784_v38  ;;  %6436 = vmatprep.mubr.bf16.mxu1 %v17479_v17  ;;  %v2129_v38 = vld [vmem:[#allocation10 + $0xe38] sm:$0xff] }
 0x485   : > { %6447 = vmatprep.subr.bf16.mxu1 %v15789_v20  ;;  %5406 = vmatpush1.bf16.msra.mxu0 %v13850_v19  ;;  %v13898_v19 = vcombine.low %v2117_v55, %v2121_v59  ;;  %v2137_v58 = vld [vmem:[#allocation10 + $0xe78] sm:$0xff] }
 0x486   : > { %5407 = vmatprep.subr.bf16.mxu0 %v13859_v45  ;;  %v13907_v45 = vcombine.high %v2125_v15, %v2129_v38  ;;  %v2161_v51 = vld [vmem:[#allocation10 + $0xf38] sm:$0xff] }
 0x487   : > { %v2165_v55 = vld [vmem:[#allocation10 + $0xf58] sm:$0xff] }
 0x488   : > { %6448 = vmatpush1.bf16.msra.mxu1 %v15787_v16  ;;  %v15805_v16 = vld [vmem:[#allocation13 + $0x370] ss:$8 sps:$4 sm:$0xff]  }
 0x489   : > { %6449 = vmatprep.subr.bf16.mxu1 %v15792_v25  ;;  %5408 = vmatpush1.bf16.msra.mxu0 %v13858_v28  ;;  %v15810_v25 = vld [vmem:[#allocation13 + $0x384] ss:$8 sps:$4 sm:$0xff]   ;;  %v13906_v28 = vcombine.low %v2125_v15, %v2129_v38  ;;  %v2169_v59 = vld [vmem:[#allocation10 + $0xf78] sm:$0xff] }
 0x48a   : > { %5409 = vmatprep.subr.bf16.mxu0 %v13867_v63  ;;  %v13915_v63 = vcombine.high %v2133_v22, %v2137_v58  ;;  %v15825_v15 = vld [vmem:[#allocation13 + $0x3d4] ss:$8 sps:$4 sm:$0xff]   ;;  %v13946_v38 = vcombine.low %v2165_v55, %v2169_v59 }
 0x48b   : > { %6437 = vmatmul.mubr.bf16.gmra.mrb[12].mxu1 %v17491_v29 }
 0x48c   : > { %6450 = vmatpush1.bf16.msra.mxu1 %v15790_v30  ;;  %6477 = vmatprep.mubr.bf16.mxu1 %v17495_v34  ;;  %v15808_v30 = vld [vmem:[#allocation13 + $0x380] ss:$8 sps:$4 sm:$0xff]  }
 0x48d   : > { %6451 = vmatprep.subr.bf16.mxu1 %v15795_v36  ;;  %5410 = vmatpush1.bf16.msra.mxu0 %v13866_v37  ;;  %v15813_v36 = vld [vmem:[#allocation13 + $0x394] ss:$8 sps:$4 sm:$0xff]   ;;  %v13914_v37 = vcombine.low %v2133_v22, %v2137_v58  ;;  %v15828_v58 = vld [vmem:[#allocation13 + $0x3e0] ss:$8 sps:$4 sm:$0xff]  }
 0x48e   : > { %5411 = vmatprep.subr.bf16.mxu0 %v13875_v39  ;;  %v13923_v39 = vcombine.high %v2141_v31, %v2145_v33 }
 0x490   : > { %6452 = vmatpush1.bf16.msra.mxu1 %v15793_v40  ;;  %v15811_v40 = vld [vmem:[#allocation13 + $0x390] ss:$8 sps:$4 sm:$0xff]  }
 0x491   : > { %6453 = vmatprep.subr.bf16.mxu1 %v15798_v44  ;;  %5412 = vmatpush1.bf16.msra.mxu0 %v13874_v47  ;;  %v15816_v44 = vld [vmem:[#allocation13 + $0x3a4] ss:$8 sps:$4 sm:$0xff]   ;;  %v13922_v47 = vcombine.low %v2141_v31, %v2145_v33 }
 0x492   : > { %5413 = vmatprep.subr.bf16.mxu0 %v13883_v48  ;;  %v13931_v48 = vcombine.high %v2149_v41, %v2153_v42  ;;  %v6497_v31 = vld [vmem:[#allocation16 + $0x8] sm:$0xff] }
 0x493   : > { %v17499_v56 = vpop.f32.mrb[4].mxu0  ;;  %v6501_v33 = vld [vmem:[#allocation16 + $0x28] sm:$0xff] }
 0x494   : > { %6454 = vmatpush1.bf16.msra.mxu1 %v15796_v49  ;;  %v17501_v60 = vpop.f32.mrb[5].mxu0  ;;  %v15814_v49 = vld [vmem:[#allocation13 + $0x3a0] ss:$8 sps:$4 sm:$0xff]  }
 0x495   : > { %6455 = vmatprep.subr.bf16.mxu1 %v15801_v52  ;;  %v5113_v0 = vpop.f32.mrb[6].mxu0  ;;  %5414 = vmatpush1.bf16.msra.mxu0 %v13882_v53  ;;  %v15819_v52 = vld [vmem:[#allocation13 + $0x3b4] ss:$8 sps:$4 sm:$0xff]   ;;  %v13930_v53 = vcombine.low %v2149_v41, %v2153_v42  ;;  %v14111_v41 = vcombine.high %v6497_v31, %v6501_v33 }
 0x496   : > { %v17503_v12 = vpop.f32.mrb[4].mxu1  ;;  %v5114_v6 = vpop.f32.mrb[7].mxu0  ;;  %5415 = vmatprep.subr.bf16.mxu0 %v13891_v54  ;;  %v13939_v54 = vcombine.high %v2157_v50, %v2161_v51  ;;  %v13938_v0 = vcombine.low %v2157_v50, %v2161_v51  ;;  %v701_v42 = vld [vmem:[%s17294_s5 + $0x58] sm:$0xff]  ;;  %v14110_v51 = vcombine.low %v6497_v31, %v6501_v33 }
 0x497   : > { %v17505_v10 = vpop.f32.mrb[5].mxu1  ;;  %v15820_v6 = vld [vmem:[#allocation13 + $0x3c0] ss:$8 sps:$4 sm:$0xff]  }
 0x498   : > { %6456 = vmatpush1.bf16.msra.mxu1 %v15799_v57  ;;  %v5277_v13 = vpop.f32.mrb[6].mxu1  ;;  %v15817_v57 = vld [vmem:[#allocation13 + $0x3b0] ss:$8 sps:$4 sm:$0xff]  }
 0x499   : > { %6457 = vmatprep.subr.bf16.mxu1 %v15804_v61  ;;  %v5278_v20 = vpop.f32.mrb[7].mxu1  ;;  %5416 = vmatpush1.bf16.msra.mxu0 %v13890_v2  ;;  %v15822_v61 = vld [vmem:[#allocation13 + $0x3c4] ss:$8 sps:$4 sm:$0xff]   ;;  %v13947_v2 = vcombine.high %v2165_v55, %v2169_v59 }
 0x49a   : > { %5417 = vmatprep.subr.bf16.mxu0 %v13899_v8  ;;  %v2173_v8 = vld [vmem:[#allocation10 + $0xf98] sm:$0xff] }
 0x49b   : > { %v2181_v20 = vld [vmem:[#allocation10 + $0xfd8] sm:$0xff] }
 0x49c   : > { %6458 = vmatpush1.bf16.msra.mxu1 %v15802_v4  ;;  %v2177_v4 = vld [vmem:[#allocation10 + $0xfb8] sm:$0xff] }
 0x49d   : > { %6459 = vmatprep.subr.bf16.mxu1 %v15807_v14  ;;  %5418 = vmatpush1.bf16.msra.mxu0 %v13898_v19  ;;  %v13955_v13 = vcombine.high %v2173_v8, %v2177_v4  ;;  %v15823_v14 = vld [vmem:[#allocation13 + $0x3d0] ss:$8 sps:$4 sm:$0xff]  }
 0x49e   : > { %5419 = vmatprep.subr.bf16.mxu0 %v13907_v45  ;;  %v2185_v19 = vld [vmem:[#allocation10 + $0xff8] sm:$0xff]  ;;  %v15830_v45 = vld [vmem:[#allocation13 + $0x3e4] ss:$8 sps:$4 sm:$0xff]  }
 0x49f   : > { %v13963_v22 = vcombine.high %v2181_v20, %v2185_v19  ;;  %v6513_v59 = vld [vmem:[#allocation16 + $0x88] sm:$0xff] }
 0x4a0   : > { %6460 = vmatpush1.bf16.msra.mxu1 %v15805_v16  ;;  %v13954_v16 = vcombine.low %v2173_v8, %v2177_v4  ;;  %v6521_v8 = vld [vmem:[#allocation16 + $0xc8] sm:$0xff] }
 0x4a1   : > { %6461 = vmatprep.subr.bf16.mxu1 %v15810_v25  ;;  %5420 = vmatpush1.bf16.msra.mxu0 %v13906_v28  ;;  %v6496_v25 = vld [vmem:[#allocation16] sm:$0xff]  ;;  %v6525_v4 = vld [vmem:[#allocation16 + $0xe8] sm:$0xff] }
 0x4a2   : > { %5421 = vmatprep.subr.bf16.mxu0 %v13915_v63  ;;  %v6500_v28 = vld [vmem:[#allocation16 + $0x20] sm:$0xff]  ;;  %v15833_v63 = vld [vmem:[#allocation13 + $0x3f4] ss:$8 sps:$4 sm:$0xff]   ;;  %v6537_v33 = vld [vmem:[#allocation16 + $0x148] sm:$0xff] }
 0x4a4   : > { %6462 = vmatpush1.bf16.msra.mxu1 %v15808_v30  ;;  %v13962_v30 = vcombine.low %v2181_v20, %v2185_v19  ;;  %v6532_v20 = vld [vmem:[#allocation16 + $0x120] sm:$0xff]  ;;  %v14135_v19 = vcombine.high %v6521_v8, %v6525_v4 }
 0x4a5   : > { %6463 = vmatprep.subr.bf16.mxu1 %v15813_v36  ;;  %5422 = vmatpush1.bf16.msra.mxu0 %v13914_v37  ;;  %v14109_v36 = vcombine.high %v6496_v25, %v6500_v28  ;;  %v15831_v37 = vld [vmem:[#allocation13 + $0x3f0] ss:$8 sps:$4 sm:$0xff]  }
 0x4a6   : > { %5423 = vmatprep.subr.bf16.mxu0 %v13923_v39  ;;  %v6504_v39 = vld [vmem:[#allocation16 + $0x40] sm:$0xff] }
 0x4a8   : > { %6464 = vmatpush1.bf16.msra.mxu1 %v15811_v40  ;;  %v6508_v40 = vld [vmem:[#allocation16 + $0x60] sm:$0xff] }
 0x4a9   : > { %6465 = vmatprep.subr.bf16.mxu1 %v15816_v44  ;;  %5424 = vmatpush1.bf16.msra.mxu0 %v13922_v47  ;;  %v14108_v44 = vcombine.low %v6496_v25, %v6500_v28  ;;  %v6505_v47 = vld [vmem:[#allocation16 + $0x48] sm:$0xff]  ;;  %v14117_v50 = vcombine.high %v6504_v39, %v6508_v40  ;;  %v14116_v55 = vcombine.low %v6504_v39, %v6508_v40  ;;  %v6536_v28 = vld [vmem:[#allocation16 + $0x140] sm:$0xff] }
 0x4aa   : > { %5425 = vmatprep.subr.bf16.mxu0 %v13931_v48  ;;  %v6509_v48 = vld [vmem:[#allocation16 + $0x68] sm:$0xff]  ;;  %v14134_v25 = vcombine.low %v6521_v8, %v6525_v4  ;;  %v6544_v40 = vld [vmem:[#allocation16 + $0x180] sm:$0xff] }
 0x4ab   : > { %v6561_v8 = vld [vmem:[#allocation16 + $0x208] sm:$0xff] }
 0x4ac   : > { %6466 = vmatpush1.bf16.msra.mxu1 %v15814_v49  ;;  %v17510_v49 = vcombine.low %v17486_v27, %v17489_v62  ;;  %v14118_v62 = vcombine.low %v6505_v47, %v6509_v48  ;;  %v6565_v4 = vld [vmem:[#allocation16 + $0x228] sm:$0xff] }
 0x4ad   : > { %6467 = vmatprep.subr.bf16.mxu1 %v15819_v52  ;;  %5426 = vmatpush1.bf16.msra.mxu0 %v13930_v53  ;;  %v6512_v52 = vld [vmem:[#allocation16 + $0x80] sm:$0xff] }
 0x4ae   : > { %5427 = vmatprep.subr.bf16.mxu0 %v13939_v54  ;;  %v6516_v53 = vld [vmem:[#allocation16 + $0xa0] sm:$0xff]  ;;  %v17512_v54 = vcombine.high %v701_v42, %v701_v42 }
 0x4af   : > { %v14125_v27 = vcombine.high %v6512_v52, %v6516_v53 }
 0x4b0   : > { %6468 = vmatpush1.bf16.msra.mxu1 %v15817_v57  ;;  %v14119_v57 = vcombine.high %v6505_v47, %v6509_v48  ;;  %v6545_v47 = vld [vmem:[#allocation16 + $0x188] sm:$0xff] }
 0x4b1   : > { %6469 = vmatprep.subr.bf16.mxu1 %v15822_v61  ;;  %5428 = vmatpush1.bf16.msra.mxu0 %v13938_v0  ;;  %v6517_v61 = vld [vmem:[#allocation16 + $0xa8] sm:$0xff]  ;;  %v6520_v0 = vld [vmem:[#allocation16 + $0xc0] sm:$0xff] }
 0x4b2   : > { %5429 = vmatprep.subr.bf16.mxu0 %v13947_v2  ;;  %v6524_v2 = vld [vmem:[#allocation16 + $0xe0] sm:$0xff]  ;;  %v6549_v48 = vld [vmem:[#allocation16 + $0x1a8] sm:$0xff] }
 0x4b4   : > { %6470 = vmatpush1.bf16.msra.mxu1 %v15820_v6  ;;  %v14124_v6 = vcombine.low %v6512_v52, %v6516_v53  ;;  %v6552_v52 = vld [vmem:[#allocation16 + $0x1c0] sm:$0xff] }
 0x4b5   : > { %6471 = vmatprep.subr.bf16.mxu1 %v15825_v15  ;;  %5430 = vmatpush1.bf16.msra.mxu0 %v13946_v38  ;;  %v14133_v15 = vcombine.high %v6520_v0, %v6524_v2  ;;  %v17518_v38 = vcombine.low %v701_v42, %v701_v42  ;;  %v6556_v53 = vld [vmem:[#allocation16 + $0x1e0] sm:$0xff] }
 0x4b6   : > { %5431 = vmatprep.subr.bf16.mxu0 %v13955_v13  ;;  %v14126_v13 = vcombine.low %v6513_v59, %v6517_v61 }
 0x4b8   : > { %6472 = vmatpush1.bf16.msra.mxu1 %v15823_v14  ;;  %v6528_v14 = vld [vmem:[#allocation16 + $0x100] sm:$0xff] }
 0x4b9   : > { %6473 = vmatprep.subr.bf16.mxu1 %v15830_v45  ;;  %5432 = vmatpush1.bf16.msra.mxu0 %v13954_v16  ;;  %v14132_v45 = vcombine.low %v6520_v0, %v6524_v2  ;;  %v6529_v16 = vld [vmem:[#allocation16 + $0x108] sm:$0xff]  ;;  %v14140_v31 = vcombine.low %v6528_v14, %v6532_v20  ;;  %v6560_v0 = vld [vmem:[#allocation16 + $0x200] sm:$0xff] }
 0x4ba   : > { %5433 = vmatprep.subr.bf16.mxu0 %v13963_v22  ;;  %v6533_v22 = vld [vmem:[#allocation16 + $0x128] sm:$0xff]  ;;  %v6564_v2 = vld [vmem:[#allocation16 + $0x220] sm:$0xff] }
 0x4bb   : > { %v14142_v39 = vcombine.low %v6529_v16, %v6533_v22 }
 0x4bc   : > { %6474 = vmatpush1.bf16.msra.mxu1 %v15828_v58  ;;  %v14141_v58 = vcombine.high %v6528_v14, %v6532_v20  ;;  %v6568_v14 = vld [vmem:[#allocation16 + $0x240] sm:$0xff] }
 0x4bd   : > { %6475 = vmatprep.subr.bf16.mxu1 %v15833_v63  ;;  %5434 = vmatpush1.bf16.msra.mxu0 %v13962_v30  ;;  %v6540_v63 = vld [vmem:[#allocation16 + $0x160] sm:$0xff]  ;;  %v14143_v30 = vcombine.high %v6529_v16, %v6533_v22  ;;  %v6569_v16 = vld [vmem:[#allocation16 + $0x248] sm:$0xff] }
 0x4be   : > { %9610 = vmatprep.subr.bf16.mxu0 %v14109_v36  ;;  %v6541_v36 = vld [vmem:[#allocation16 + $0x168] sm:$0xff]  ;;  %v6572_v20 = vld [vmem:[#allocation16 + $0x260] sm:$0xff] }
 0x4bf   : > { %v14151_v42 = vcombine.high %v6537_v33, %v6541_v36  ;;  %v6573_v22 = vld [vmem:[#allocation16 + $0x268] sm:$0xff] }
 0x4c0   : > { %6476 = vmatpush1.bf16.msra.mxu1 %v15831_v37  ;;  %5436 = vmatmul.mubr.bf16.vlgmr.msra.gmra.mrb[8].mxu0 %v17384_v46  ;;  %v14127_v46 = vcombine.high %v6513_v59, %v6517_v61  ;;  %v14149_v37 = vcombine.high %v6536_v28, %v6540_v63  ;;  %v6553_v59 = vld [vmem:[#allocation16 + $0x1c8] sm:$0xff] }
 0x4c1   : > { %9814 = vmatprep.subr.bf16.mxu1 %v14111_v41  ;;  %9611 = vmatpush1.bf16.msra.mxu0 %v14108_v44  ;;  %v6548_v41 = vld [vmem:[#allocation16 + $0x1a0] sm:$0xff]  ;;  %v14148_v44 = vcombine.low %v6536_v28, %v6540_v63  ;;  %v6557_v61 = vld [vmem:[#allocation16 + $0x1e8] sm:$0xff] }
 0x4c2   : > { %9642 = vmatprep.mubr.bf16.mxu0 %v17418_v9  ;;  %9612 = vmatprep.subr.bf16.mxu0 %v14117_v50  ;;  %v14157_v50 = vcombine.high %v6544_v40, %v6548_v41  ;;  %v6576_v28 = vld [vmem:[#allocation16 + $0x280] sm:$0xff] }
 0x4c3   : > { %6478 = vmatmul.mubr.bf16.vlgmr.msra.gmra.mrb[8].mxu1 %v17510_v49  ;;  %v6580_v63 = vld [vmem:[#allocation16 + $0x2a0] sm:$0xff] }
 0x4c4   : > { %9815 = vmatpush1.bf16.msra.mxu1 %v14110_v51  ;;  %6487 = vmatprep.mubr.bf16.mxu1 %v17512_v54  ;;  %v14150_v51 = vcombine.low %v6537_v33, %v6541_v36  ;;  %v6577_v33 = vld [vmem:[#allocation16 + $0x288] sm:$0xff] }
 0x4c5   : > { %9816 = vmatprep.subr.bf16.mxu1 %v14119_v57  ;;  %9613 = vmatpush1.bf16.msra.mxu0 %v14116_v55  ;;  %v14159_v57 = vcombine.high %v6545_v47, %v6549_v48  ;;  %v14156_v55 = vcombine.low %v6544_v40, %v6548_v41  ;;  %v6581_v36 = vld [vmem:[#allocation16 + $0x2a8] sm:$0xff]  ;;  %v6584_v40 = vld [vmem:[#allocation16 + $0x2c0] sm:$0xff] }
 0x4c6   : > { %9614 = vmatprep.subr.bf16.mxu0 %v14125_v27  ;;  %v14165_v27 = vcombine.high %v6552_v52, %v6556_v53  ;;  %v6588_v41 = vld [vmem:[#allocation16 + $0x2e0] sm:$0xff] }
 0x4c8   : > { %9817 = vmatpush1.bf16.msra.mxu1 %v14118_v62  ;;  %v14158_v62 = vcombine.low %v6545_v47, %v6549_v48  ;;  %v6585_v47 = vld [vmem:[#allocation16 + $0x2c8] sm:$0xff] }
 0x4c9   : > { %9818 = vmatprep.subr.bf16.mxu1 %v14127_v46  ;;  %9615 = vmatpush1.bf16.msra.mxu0 %v14124_v6  ;;  %v14167_v46 = vcombine.high %v6553_v59, %v6557_v61  ;;  %v14164_v6 = vcombine.low %v6552_v52, %v6556_v53  ;;  %v6589_v48 = vld [vmem:[#allocation16 + $0x2e8] sm:$0xff]  ;;  %v6592_v52 = vld [vmem:[#allocation16 + $0x300] sm:$0xff] }
 0x4ca   : > { %9616 = vmatprep.subr.bf16.mxu0 %v14133_v15  ;;  %v14173_v15 = vcombine.high %v6560_v0, %v6564_v2  ;;  %v6596_v53 = vld [vmem:[#allocation16 + $0x320] sm:$0xff] }
 0x4cb   : > { %6488 = vmatmul.mubr.bf16.gmra.mrb[12].mxu1 %v17518_v38 }
 0x4cc   : > { %9819 = vmatpush1.bf16.msra.mxu1 %v14126_v13  ;;  %9846 = vmatprep.mubr.bf16.mxu1 %v17418_v9  ;;  %v14166_v13 = vcombine.low %v6553_v59, %v6557_v61  ;;  %v6593_v59 = vld [vmem:[#allocation16 + $0x308] sm:$0xff] }
 0x4cd   : > { %9820 = vmatprep.subr.bf16.mxu1 %v14135_v19  ;;  %9617 = vmatpush1.bf16.msra.mxu0 %v14132_v45  ;;  %v14175_v19 = vcombine.high %v6561_v8, %v6565_v4  ;;  %v14172_v45 = vcombine.low %v6560_v0, %v6564_v2  ;;  %v6597_v61 = vld [vmem:[#allocation16 + $0x328] sm:$0xff]  ;;  %v6600_v0 = vld [vmem:[#allocation16 + $0x340] sm:$0xff] }
 0x4ce   : > { %9618 = vmatprep.subr.bf16.mxu0 %v14141_v58  ;;  %v14181_v58 = vcombine.high %v6568_v14, %v6572_v20  ;;  %v6604_v2 = vld [vmem:[#allocation16 + $0x360] sm:$0xff] }
 0x4d0   : > { %9821 = vmatpush1.bf16.msra.mxu1 %v14134_v25  ;;  %v14174_v25 = vcombine.low %v6561_v8, %v6565_v4  ;;  %v6601_v8 = vld [vmem:[#allocation16 + $0x348] sm:$0xff] }
 0x4d1   : > { %9822 = vmatprep.subr.bf16.mxu1 %v14143_v30  ;;  %9619 = vmatpush1.bf16.msra.mxu0 %v14140_v31  ;;  %v14183_v30 = vcombine.high %v6569_v16, %v6573_v22  ;;  %v14180_v31 = vcombine.low %v6568_v14, %v6572_v20  ;;  %v6605_v4 = vld [vmem:[#allocation16 + $0x368] sm:$0xff]  ;;  %v6608_v14 = vld [vmem:[#allocation16 + $0x380] sm:$0xff] }
 0x4d2   : > { %9620 = vmatprep.subr.bf16.mxu0 %v14149_v37  ;;  %v14189_v37 = vcombine.high %v6576_v28, %v6580_v63  ;;  %v6612_v20 = vld [vmem:[#allocation16 + $0x3a0] sm:$0xff] }
 0x4d4   : > { %9823 = vmatpush1.bf16.msra.mxu1 %v14142_v39  ;;  %v14182_v39 = vcombine.low %v6569_v16, %v6573_v22  ;;  %v6609_v16 = vld [vmem:[#allocation16 + $0x388] sm:$0xff] }
 0x4d5   : > { %9824 = vmatprep.subr.bf16.mxu1 %v14151_v42  ;;  %9621 = vmatpush1.bf16.msra.mxu0 %v14148_v44  ;;  %v14191_v42 = vcombine.high %v6577_v33, %v6581_v36  ;;  %v14188_v44 = vcombine.low %v6576_v28, %v6580_v63  ;;  %v6613_v22 = vld [vmem:[#allocation16 + $0x3a8] sm:$0xff]  ;;  %v6616_v28 = vld [vmem:[#allocation16 + $0x3c0] sm:$0xff] }
 0x4d6   : > { %9622 = vmatprep.subr.bf16.mxu0 %v14157_v50  ;;  %v14197_v50 = vcombine.high %v6584_v40, %v6588_v41  ;;  %v6620_v63 = vld [vmem:[#allocation16 + $0x3e0] sm:$0xff] }
 0x4d8   : > { %9825 = vmatpush1.bf16.msra.mxu1 %v14150_v51  ;;  %v14190_v51 = vcombine.low %v6577_v33, %v6581_v36  ;;  %v6617_v33 = vld [vmem:[#allocation16 + $0x3c8] sm:$0xff] }
 0x4d9   : > { %9826 = vmatprep.subr.bf16.mxu1 %v14159_v57  ;;  %9623 = vmatpush1.bf16.msra.mxu0 %v14156_v55  ;;  %v14199_v57 = vcombine.high %v6585_v47, %v6589_v48  ;;  %v14196_v55 = vcombine.low %v6584_v40, %v6588_v41  ;;  %v6621_v36 = vld [vmem:[#allocation16 + $0x3e8] sm:$0xff]  ;;  %v6624_v40 = vld [vmem:[#allocation16 + $0x400] sm:$0xff] }
 0x4da   : > { %9624 = vmatprep.subr.bf16.mxu0 %v14165_v27  ;;  %v14205_v27 = vcombine.high %v6592_v52, %v6596_v53  ;;  %v6628_v41 = vld [vmem:[#allocation16 + $0x420] sm:$0xff] }
 0x4dc   : > { %9827 = vmatpush1.bf16.msra.mxu1 %v14158_v62  ;;  %v14198_v62 = vcombine.low %v6585_v47, %v6589_v48  ;;  %v6625_v47 = vld [vmem:[#allocation16 + $0x408] sm:$0xff] }
 0x4dd   : > { %9828 = vmatprep.subr.bf16.mxu1 %v14167_v46  ;;  %9625 = vmatpush1.bf16.msra.mxu0 %v14164_v6  ;;  %v14207_v46 = vcombine.high %v6593_v59, %v6597_v61  ;;  %v14204_v6 = vcombine.low %v6592_v52, %v6596_v53  ;;  %v6629_v48 = vld [vmem:[#allocation16 + $0x428] sm:$0xff]  ;;  %v6632_v52 = vld [vmem:[#allocation16 + $0x440] sm:$0xff] }
 0x4de   : > { %9626 = vmatprep.subr.bf16.mxu0 %v14173_v15  ;;  %v14213_v15 = vcombine.high %v6600_v0, %v6604_v2  ;;  %v6636_v53 = vld [vmem:[#allocation16 + $0x460] sm:$0xff] }
 0x4e0   : > { %9829 = vmatpush1.bf16.msra.mxu1 %v14166_v13  ;;  %v14206_v13 = vcombine.low %v6593_v59, %v6597_v61  ;;  %v6633_v59 = vld [vmem:[#allocation16 + $0x448] sm:$0xff] }
 0x4e1   : > { %9830 = vmatprep.subr.bf16.mxu1 %v14175_v19  ;;  %9627 = vmatpush1.bf16.msra.mxu0 %v14172_v45  ;;  %v14215_v19 = vcombine.high %v6601_v8, %v6605_v4  ;;  %v14212_v45 = vcombine.low %v6600_v0, %v6604_v2  ;;  %v6637_v61 = vld [vmem:[#allocation16 + $0x468] sm:$0xff]  ;;  %v6640_v0 = vld [vmem:[#allocation16 + $0x480] sm:$0xff] }
 0x4e2   : > { %9628 = vmatprep.subr.bf16.mxu0 %v14181_v58  ;;  %v14221_v58 = vcombine.high %v6608_v14, %v6612_v20  ;;  %v6644_v2 = vld [vmem:[#allocation16 + $0x4a0] sm:$0xff] }
 0x4e4   : > { %9831 = vmatpush1.bf16.msra.mxu1 %v14174_v25  ;;  %v14214_v25 = vcombine.low %v6601_v8, %v6605_v4  ;;  %v6641_v8 = vld [vmem:[#allocation16 + $0x488] sm:$0xff] }
 0x4e5   : > { %9832 = vmatprep.subr.bf16.mxu1 %v14183_v30  ;;  %9629 = vmatpush1.bf16.msra.mxu0 %v14180_v31  ;;  %v14223_v30 = vcombine.high %v6609_v16, %v6613_v22  ;;  %v14220_v31 = vcombine.low %v6608_v14, %v6612_v20  ;;  %v6645_v4 = vld [vmem:[#allocation16 + $0x4a8] sm:$0xff]  ;;  %v6648_v14 = vld [vmem:[#allocation16 + $0x4c0] sm:$0xff] }
 0x4e6   : > { %9630 = vmatprep.subr.bf16.mxu0 %v14189_v37  ;;  %v14229_v37 = vcombine.high %v6616_v28, %v6620_v63  ;;  %v6652_v20 = vld [vmem:[#allocation16 + $0x4e0] sm:$0xff] }
 0x4e8   : > { %9833 = vmatpush1.bf16.msra.mxu1 %v14182_v39  ;;  %v14222_v39 = vcombine.low %v6609_v16, %v6613_v22  ;;  %v6649_v16 = vld [vmem:[#allocation16 + $0x4c8] sm:$0xff] }
 0x4e9   : > { %9834 = vmatprep.subr.bf16.mxu1 %v14191_v42  ;;  %9631 = vmatpush1.bf16.msra.mxu0 %v14188_v44  ;;  %v14231_v42 = vcombine.high %v6617_v33, %v6621_v36  ;;  %v14228_v44 = vcombine.low %v6616_v28, %v6620_v63  ;;  %v6653_v22 = vld [vmem:[#allocation16 + $0x4e8] sm:$0xff]  ;;  %v6656_v28 = vld [vmem:[#allocation16 + $0x500] sm:$0xff] }
 0x4ea   : > { %9632 = vmatprep.subr.bf16.mxu0 %v14197_v50  ;;  %v14237_v50 = vcombine.high %v6624_v40, %v6628_v41  ;;  %v6660_v63 = vld [vmem:[#allocation16 + $0x520] sm:$0xff] }
 0x4ec   : > { %9835 = vmatpush1.bf16.msra.mxu1 %v14190_v51  ;;  %v14230_v51 = vcombine.low %v6617_v33, %v6621_v36  ;;  %v6657_v33 = vld [vmem:[#allocation16 + $0x508] sm:$0xff] }
 0x4ed   : > { %9836 = vmatprep.subr.bf16.mxu1 %v14199_v57  ;;  %9633 = vmatpush1.bf16.msra.mxu0 %v14196_v55  ;;  %v14239_v57 = vcombine.high %v6625_v47, %v6629_v48  ;;  %v14236_v55 = vcombine.low %v6624_v40, %v6628_v41  ;;  %v6661_v36 = vld [vmem:[#allocation16 + $0x528] sm:$0xff]  ;;  %v6664_v40 = vld [vmem:[#allocation16 + $0x540] sm:$0xff] }
 0x4ee   : > { %9634 = vmatprep.subr.bf16.mxu0 %v14205_v27  ;;  %v14245_v27 = vcombine.high %v6632_v52, %v6636_v53  ;;  %v6668_v41 = vld [vmem:[#allocation16 + $0x560] sm:$0xff] }
 0x4f0   : > { %9837 = vmatpush1.bf16.msra.mxu1 %v14198_v62  ;;  %v14238_v62 = vcombine.low %v6625_v47, %v6629_v48  ;;  %v6665_v47 = vld [vmem:[#allocation16 + $0x548] sm:$0xff] }
 0x4f1   : > { %9838 = vmatprep.subr.bf16.mxu1 %v14207_v46  ;;  %9635 = vmatpush1.bf16.msra.mxu0 %v14204_v6  ;;  %v14247_v46 = vcombine.high %v6633_v59, %v6637_v61  ;;  %v14244_v6 = vcombine.low %v6632_v52, %v6636_v53  ;;  %v6669_v48 = vld [vmem:[#allocation16 + $0x568] sm:$0xff]  ;;  %v6672_v52 = vld [vmem:[#allocation16 + $0x580] sm:$0xff] }
 0x4f2   : > { %9636 = vmatprep.subr.bf16.mxu0 %v14213_v15  ;;  %v14253_v15 = vcombine.high %v6640_v0, %v6644_v2  ;;  %v6676_v53 = vld [vmem:[#allocation16 + $0x5a0] sm:$0xff] }
 0x4f4   : > { %9839 = vmatpush1.bf16.msra.mxu1 %v14206_v13  ;;  %v14246_v13 = vcombine.low %v6633_v59, %v6637_v61  ;;  %v6673_v59 = vld [vmem:[#allocation16 + $0x588] sm:$0xff] }
 0x4f5   : > { %9840 = vmatprep.subr.bf16.mxu1 %v14215_v19  ;;  %9637 = vmatpush1.bf16.msra.mxu0 %v14212_v45  ;;  %v14255_v19 = vcombine.high %v6641_v8, %v6645_v4  ;;  %v14252_v45 = vcombine.low %v6640_v0, %v6644_v2  ;;  %v6677_v61 = vld [vmem:[#allocation16 + $0x5a8] sm:$0xff]  ;;  %v6680_v0 = vld [vmem:[#allocation16 + $0x5c0] sm:$0xff] }
 0x4f6   : > { %9638 = vmatprep.subr.bf16.mxu0 %v14221_v58  ;;  %v14261_v58 = vcombine.high %v6648_v14, %v6652_v20  ;;  %v6684_v2 = vld [vmem:[#allocation16 + $0x5e0] sm:$0xff] }
 0x4f8   : > { %9841 = vmatpush1.bf16.msra.mxu1 %v14214_v25  ;;  %v14254_v25 = vcombine.low %v6641_v8, %v6645_v4  ;;  %v6681_v8 = vld [vmem:[#allocation16 + $0x5c8] sm:$0xff] }
 0x4f9   : > { %9842 = vmatprep.subr.bf16.mxu1 %v14223_v30  ;;  %9639 = vmatpush1.bf16.msra.mxu0 %v14220_v31  ;;  %v14263_v30 = vcombine.high %v6649_v16, %v6653_v22  ;;  %v14260_v31 = vcombine.low %v6648_v14, %v6652_v20  ;;  %v6685_v4 = vld [vmem:[#allocation16 + $0x5e8] sm:$0xff]  ;;  %v6688_v14 = vld [vmem:[#allocation16 + $0x600] sm:$0xff] }
 0x4fa   : > { %9640 = vmatprep.subr.bf16.mxu0 %v14229_v37  ;;  %v14269_v37 = vcombine.high %v6656_v28, %v6660_v63  ;;  %v6692_v20 = vld [vmem:[#allocation16 + $0x620] sm:$0xff] }
 0x4fc   : > { %9843 = vmatpush1.bf16.msra.mxu1 %v14222_v39  ;;  %v14262_v39 = vcombine.low %v6649_v16, %v6653_v22  ;;  %v6689_v16 = vld [vmem:[#allocation16 + $0x608] sm:$0xff] }
 0x4fd   : > { %9844 = vmatprep.subr.bf16.mxu1 %v14231_v42  ;;  %9641 = vmatpush1.bf16.msra.mxu0 %v14228_v44  ;;  %v14271_v42 = vcombine.high %v6657_v33, %v6661_v36  ;;  %v14268_v44 = vcombine.low %v6656_v28, %v6660_v63  ;;  %v6693_v22 = vld [vmem:[#allocation16 + $0x628] sm:$0xff]  ;;  %v6696_v28 = vld [vmem:[#allocation16 + $0x640] sm:$0xff] }
 0x4fe   : > { %9661 = vmatprep.subr.bf16.mxu0 %v14237_v50  ;;  %v14277_v50 = vcombine.high %v6664_v40, %v6668_v41  ;;  %v6700_v63 = vld [vmem:[#allocation16 + $0x660] sm:$0xff] }
 0x500   : > { %9845 = vmatpush1.bf16.msra.mxu1 %v14230_v51  ;;  %9643 = vmatmul.mubr.bf16.vlgmr.msra.gmra.mrb[12].mxu0 %v17427_v1  ;;  %v14270_v51 = vcombine.low %v6657_v33, %v6661_v36  ;;  %v6697_v33 = vld [vmem:[#allocation16 + $0x648] sm:$0xff] }
 0x501   : > { %9865 = vmatprep.subr.bf16.mxu1 %v14239_v57  ;;  %9662 = vmatpush1.bf16.msra.mxu0 %v14236_v55  ;;  %v14279_v57 = vcombine.high %v6665_v47, %v6669_v48  ;;  %v14276_v55 = vcombine.low %v6664_v40, %v6668_v41  ;;  %v6701_v36 = vld [vmem:[#allocation16 + $0x668] sm:$0xff]  ;;  %v6704_v40 = vld [vmem:[#allocation16 + $0x680] sm:$0xff] }
 0x502   : > { %9652 = vmatprep.mubr.bf16.mxu0 %v17429_v7  ;;  %9663 = vmatprep.subr.bf16.mxu0 %v14245_v27  ;;  %v14285_v27 = vcombine.high %v6672_v52, %v6676_v53  ;;  %v6708_v41 = vld [vmem:[#allocation16 + $0x6a0] sm:$0xff] }
 0x503   : > { %9847 = vmatmul.mubr.bf16.vlgmr.msra.gmra.mrb[16].mxu1 %v17427_v1 }
 0x504   : > { %9866 = vmatpush1.bf16.msra.mxu1 %v14238_v62  ;;  %9856 = vmatprep.mubr.bf16.mxu1 %v17429_v7  ;;  %v14278_v62 = vcombine.low %v6665_v47, %v6669_v48  ;;  %v6705_v47 = vld [vmem:[#allocation16 + $0x688] sm:$0xff] }
 0x505   : > { %9867 = vmatprep.subr.bf16.mxu1 %v14247_v46  ;;  %9664 = vmatpush1.bf16.msra.mxu0 %v14244_v6  ;;  %v14287_v46 = vcombine.high %v6673_v59, %v6677_v61  ;;  %v14284_v6 = vcombine.low %v6672_v52, %v6676_v53  ;;  %v6709_v48 = vld [vmem:[#allocation16 + $0x6a8] sm:$0xff]  ;;  %v6712_v52 = vld [vmem:[#allocation16 + $0x6c0] sm:$0xff] }
 0x506   : > { %9665 = vmatprep.subr.bf16.mxu0 %v14253_v15  ;;  %v14293_v15 = vcombine.high %v6680_v0, %v6684_v2  ;;  %v6716_v53 = vld [vmem:[#allocation16 + $0x6e0] sm:$0xff] }
 0x508   : > { %9868 = vmatpush1.bf16.msra.mxu1 %v14246_v13  ;;  %9653 = vmatmul.mubr.bf16.gmra.mrb[16].mxu0 %v17441_v18  ;;  %v14286_v13 = vcombine.low %v6673_v59, %v6677_v61  ;;  %v6713_v59 = vld [vmem:[#allocation16 + $0x6c8] sm:$0xff] }
 0x509   : > { %9869 = vmatprep.subr.bf16.mxu1 %v14255_v19  ;;  %9666 = vmatpush1.bf16.msra.mxu0 %v14252_v45  ;;  %v14295_v19 = vcombine.high %v6681_v8, %v6685_v4  ;;  %v14292_v45 = vcombine.low %v6680_v0, %v6684_v2  ;;  %v6717_v61 = vld [vmem:[#allocation16 + $0x6e8] sm:$0xff]  ;;  %v6720_v0 = vld [vmem:[#allocation16 + $0x700] sm:$0xff] }
 0x50a   : > { %9693 = vmatprep.mubr.bf16.mxu0 %v17445_v24  ;;  %9667 = vmatprep.subr.bf16.mxu0 %v14261_v58  ;;  %v14301_v58 = vcombine.high %v6688_v14, %v6692_v20  ;;  %v6724_v2 = vld [vmem:[#allocation16 + $0x720] sm:$0xff] }
 0x50b   : > { %9857 = vmatmul.mubr.bf16.gmra.mrb[20].mxu1 %v17441_v18 }
 0x50c   : > { %9870 = vmatpush1.bf16.msra.mxu1 %v14254_v25  ;;  %9897 = vmatprep.mubr.bf16.mxu1 %v17445_v24  ;;  %v14294_v25 = vcombine.low %v6681_v8, %v6685_v4  ;;  %v6721_v8 = vld [vmem:[#allocation16 + $0x708] sm:$0xff] }
 0x50d   : > { %9871 = vmatprep.subr.bf16.mxu1 %v14263_v30  ;;  %9668 = vmatpush1.bf16.msra.mxu0 %v14260_v31  ;;  %v14303_v30 = vcombine.high %v6689_v16, %v6693_v22  ;;  %v14300_v31 = vcombine.low %v6688_v14, %v6692_v20  ;;  %v6725_v4 = vld [vmem:[#allocation16 + $0x728] sm:$0xff]  ;;  %v6728_v14 = vld [vmem:[#allocation16 + $0x740] sm:$0xff] }
 0x50e   : > { %9669 = vmatprep.subr.bf16.mxu0 %v14269_v37  ;;  %v14309_v37 = vcombine.high %v6696_v28, %v6700_v63  ;;  %v6732_v20 = vld [vmem:[#allocation16 + $0x760] sm:$0xff] }
 0x510   : > { %9872 = vmatpush1.bf16.msra.mxu1 %v14262_v39  ;;  %v14302_v39 = vcombine.low %v6689_v16, %v6693_v22  ;;  %v6729_v16 = vld [vmem:[#allocation16 + $0x748] sm:$0xff] }
 0x511   : > { %9873 = vmatprep.subr.bf16.mxu1 %v14271_v42  ;;  %9670 = vmatpush1.bf16.msra.mxu0 %v14268_v44  ;;  %v14311_v42 = vcombine.high %v6697_v33, %v6701_v36  ;;  %v14308_v44 = vcombine.low %v6696_v28, %v6700_v63  ;;  %v6733_v22 = vld [vmem:[#allocation16 + $0x768] sm:$0xff]  ;;  %v6736_v28 = vld [vmem:[#allocation16 + $0x780] sm:$0xff] }
 0x512   : > { %9671 = vmatprep.subr.bf16.mxu0 %v14277_v50  ;;  %v14317_v50 = vcombine.high %v6704_v40, %v6708_v41  ;;  %v6740_v63 = vld [vmem:[#allocation16 + $0x7a0] sm:$0xff] }
 0x514   : > { %9874 = vmatpush1.bf16.msra.mxu1 %v14270_v51  ;;  %v14310_v51 = vcombine.low %v6697_v33, %v6701_v36  ;;  %v6737_v33 = vld [vmem:[#allocation16 + $0x788] sm:$0xff] }
 0x515   : > { %9875 = vmatprep.subr.bf16.mxu1 %v14279_v57  ;;  %9672 = vmatpush1.bf16.msra.mxu0 %v14276_v55  ;;  %v14319_v57 = vcombine.high %v6705_v47, %v6709_v48  ;;  %v14316_v55 = vcombine.low %v6704_v40, %v6708_v41  ;;  %v6741_v36 = vld [vmem:[#allocation16 + $0x7a8] sm:$0xff]  ;;  %v6744_v40 = vld [vmem:[#allocation16 + $0x7c0] sm:$0xff] }
 0x516   : > { %9673 = vmatprep.subr.bf16.mxu0 %v14285_v27  ;;  %v14325_v27 = vcombine.high %v6712_v52, %v6716_v53  ;;  %v6748_v41 = vld [vmem:[#allocation16 + $0x7e0] sm:$0xff] }
 0x518   : > { %9876 = vmatpush1.bf16.msra.mxu1 %v14278_v62  ;;  %v14318_v62 = vcombine.low %v6705_v47, %v6709_v48  ;;  %v6745_v47 = vld [vmem:[#allocation16 + $0x7c8] sm:$0xff] }
 0x519   : > { %9877 = vmatprep.subr.bf16.mxu1 %v14287_v46  ;;  %9674 = vmatpush1.bf16.msra.mxu0 %v14284_v6  ;;  %v14327_v46 = vcombine.high %v6713_v59, %v6717_v61  ;;  %v14324_v6 = vcombine.low %v6712_v52, %v6716_v53  ;;  %v6749_v48 = vld [vmem:[#allocation16 + $0x7e8] sm:$0xff]  ;;  %v6752_v52 = vld [vmem:[#allocation16 + $0x800] sm:$0xff] }
 0x51a   : > { %9675 = vmatprep.subr.bf16.mxu0 %v14293_v15  ;;  %v14333_v15 = vcombine.high %v6720_v0, %v6724_v2  ;;  %v6756_v53 = vld [vmem:[#allocation16 + $0x820] sm:$0xff] }
 0x51c   : > { %9878 = vmatpush1.bf16.msra.mxu1 %v14286_v13  ;;  %v14326_v13 = vcombine.low %v6713_v59, %v6717_v61  ;;  %v6753_v59 = vld [vmem:[#allocation16 + $0x808] sm:$0xff] }
 0x51d   : > { %9879 = vmatprep.subr.bf16.mxu1 %v14295_v19  ;;  %9676 = vmatpush1.bf16.msra.mxu0 %v14292_v45  ;;  %v14335_v19 = vcombine.high %v6721_v8, %v6725_v4  ;;  %v14332_v45 = vcombine.low %v6720_v0, %v6724_v2  ;;  %v6757_v61 = vld [vmem:[#allocation16 + $0x828] sm:$0xff]  ;;  %v6760_v0 = vld [vmem:[#allocation16 + $0x840] sm:$0xff] }
 0x51e   : > { %9677 = vmatprep.subr.bf16.mxu0 %v14301_v58  ;;  %v14341_v58 = vcombine.high %v6728_v14, %v6732_v20  ;;  %v6764_v2 = vld [vmem:[#allocation16 + $0x860] sm:$0xff] }
 0x520   : > { %9880 = vmatpush1.bf16.msra.mxu1 %v14294_v25  ;;  %v14334_v25 = vcombine.low %v6721_v8, %v6725_v4  ;;  %v6761_v8 = vld [vmem:[#allocation16 + $0x848] sm:$0xff] }
 0x521   : > { %9881 = vmatprep.subr.bf16.mxu1 %v14303_v30  ;;  %9678 = vmatpush1.bf16.msra.mxu0 %v14300_v31  ;;  %v14343_v30 = vcombine.high %v6729_v16, %v6733_v22  ;;  %v14340_v31 = vcombine.low %v6728_v14, %v6732_v20  ;;  %v6765_v4 = vld [vmem:[#allocation16 + $0x868] sm:$0xff]  ;;  %v6768_v14 = vld [vmem:[#allocation16 + $0x880] sm:$0xff] }
 0x522   : > { %9679 = vmatprep.subr.bf16.mxu0 %v14309_v37  ;;  %v14349_v37 = vcombine.high %v6736_v28, %v6740_v63  ;;  %v6772_v20 = vld [vmem:[#allocation16 + $0x8a0] sm:$0xff] }
 0x524   : > { %9882 = vmatpush1.bf16.msra.mxu1 %v14302_v39  ;;  %v14342_v39 = vcombine.low %v6729_v16, %v6733_v22  ;;  %v6769_v16 = vld [vmem:[#allocation16 + $0x888] sm:$0xff] }
 0x525   : > { %9883 = vmatprep.subr.bf16.mxu1 %v14311_v42  ;;  %9680 = vmatpush1.bf16.msra.mxu0 %v14308_v44  ;;  %v14351_v42 = vcombine.high %v6737_v33, %v6741_v36  ;;  %v14348_v44 = vcombine.low %v6736_v28, %v6740_v63  ;;  %v6773_v22 = vld [vmem:[#allocation16 + $0x8a8] sm:$0xff]  ;;  %v6776_v28 = vld [vmem:[#allocation16 + $0x8c0] sm:$0xff] }
 0x526   : > { %9681 = vmatprep.subr.bf16.mxu0 %v14317_v50  ;;  %v14357_v50 = vcombine.high %v6744_v40, %v6748_v41  ;;  %v6780_v63 = vld [vmem:[#allocation16 + $0x8e0] sm:$0xff] }
 0x528   : > { %9884 = vmatpush1.bf16.msra.mxu1 %v14310_v51  ;;  %v14350_v51 = vcombine.low %v6737_v33, %v6741_v36  ;;  %v6777_v33 = vld [vmem:[#allocation16 + $0x8c8] sm:$0xff] }
 0x529   : > { %9885 = vmatprep.subr.bf16.mxu1 %v14319_v57  ;;  %9682 = vmatpush1.bf16.msra.mxu0 %v14316_v55  ;;  %v14359_v57 = vcombine.high %v6745_v47, %v6749_v48  ;;  %v14356_v55 = vcombine.low %v6744_v40, %v6748_v41  ;;  %v6781_v36 = vld [vmem:[#allocation16 + $0x8e8] sm:$0xff]  ;;  %v6784_v40 = vld [vmem:[#allocation16 + $0x900] sm:$0xff] }
 0x52a   : > { %9683 = vmatprep.subr.bf16.mxu0 %v14325_v27  ;;  %v14365_v27 = vcombine.high %v6752_v52, %v6756_v53  ;;  %v6788_v41 = vld [vmem:[#allocation16 + $0x920] sm:$0xff] }
 0x52c   : > { %9886 = vmatpush1.bf16.msra.mxu1 %v14318_v62  ;;  %v14358_v62 = vcombine.low %v6745_v47, %v6749_v48  ;;  %v6785_v47 = vld [vmem:[#allocation16 + $0x908] sm:$0xff] }
 0x52d   : > { %9887 = vmatprep.subr.bf16.mxu1 %v14327_v46  ;;  %9684 = vmatpush1.bf16.msra.mxu0 %v14324_v6  ;;  %v14367_v46 = vcombine.high %v6753_v59, %v6757_v61  ;;  %v14364_v6 = vcombine.low %v6752_v52, %v6756_v53  ;;  %v6789_v48 = vld [vmem:[#allocation16 + $0x928] sm:$0xff]  ;;  %v6792_v52 = vld [vmem:[#allocation16 + $0x940] sm:$0xff] }
 0x52e   : > { %9685 = vmatprep.subr.bf16.mxu0 %v14333_v15  ;;  %v14373_v15 = vcombine.high %v6760_v0, %v6764_v2  ;;  %v6796_v53 = vld [vmem:[#allocation16 + $0x960] sm:$0xff] }
 0x530   : > { %9888 = vmatpush1.bf16.msra.mxu1 %v14326_v13  ;;  %v14366_v13 = vcombine.low %v6753_v59, %v6757_v61  ;;  %v6793_v59 = vld [vmem:[#allocation16 + $0x948] sm:$0xff] }
 0x531   : > { %9889 = vmatprep.subr.bf16.mxu1 %v14335_v19  ;;  %9686 = vmatpush1.bf16.msra.mxu0 %v14332_v45  ;;  %v14375_v19 = vcombine.high %v6761_v8, %v6765_v4  ;;  %v14372_v45 = vcombine.low %v6760_v0, %v6764_v2  ;;  %v6797_v61 = vld [vmem:[#allocation16 + $0x968] sm:$0xff]  ;;  %v6800_v0 = vld [vmem:[#allocation16 + $0x980] sm:$0xff] }
 0x532   : > { %9687 = vmatprep.subr.bf16.mxu0 %v14341_v58  ;;  %v14381_v58 = vcombine.high %v6768_v14, %v6772_v20  ;;  %v6804_v2 = vld [vmem:[#allocation16 + $0x9a0] sm:$0xff] }
 0x534   : > { %9890 = vmatpush1.bf16.msra.mxu1 %v14334_v25  ;;  %v14374_v25 = vcombine.low %v6761_v8, %v6765_v4  ;;  %v6801_v8 = vld [vmem:[#allocation16 + $0x988] sm:$0xff] }
 0x535   : > { %9891 = vmatprep.subr.bf16.mxu1 %v14343_v30  ;;  %9688 = vmatpush1.bf16.msra.mxu0 %v14340_v31  ;;  %v14383_v30 = vcombine.high %v6769_v16, %v6773_v22  ;;  %v14380_v31 = vcombine.low %v6768_v14, %v6772_v20  ;;  %v6805_v4 = vld [vmem:[#allocation16 + $0x9a8] sm:$0xff]  ;;  %v6808_v14 = vld [vmem:[#allocation16 + $0x9c0] sm:$0xff] }
 0x536   : > { %9689 = vmatprep.subr.bf16.mxu0 %v14349_v37  ;;  %v14389_v37 = vcombine.high %v6776_v28, %v6780_v63  ;;  %v6812_v20 = vld [vmem:[#allocation16 + $0x9e0] sm:$0xff] }
 0x538   : > { %9892 = vmatpush1.bf16.msra.mxu1 %v14342_v39  ;;  %v14382_v39 = vcombine.low %v6769_v16, %v6773_v22  ;;  %v6809_v16 = vld [vmem:[#allocation16 + $0x9c8] sm:$0xff] }
 0x539   : > { %9893 = vmatprep.subr.bf16.mxu1 %v14351_v42  ;;  %9690 = vmatpush1.bf16.msra.mxu0 %v14348_v44  ;;  %v14391_v42 = vcombine.high %v6777_v33, %v6781_v36  ;;  %v14388_v44 = vcombine.low %v6776_v28, %v6780_v63  ;;  %v6813_v22 = vld [vmem:[#allocation16 + $0x9e8] sm:$0xff]  ;;  %v6816_v28 = vld [vmem:[#allocation16 + $0xa00] sm:$0xff] }
 0x53a   : > { %9691 = vmatprep.subr.bf16.mxu0 %v14357_v50  ;;  %v14397_v50 = vcombine.high %v6784_v40, %v6788_v41  ;;  %v6820_v63 = vld [vmem:[#allocation16 + $0xa20] sm:$0xff] }
 0x53c   : > { %9894 = vmatpush1.bf16.msra.mxu1 %v14350_v51  ;;  %v14390_v51 = vcombine.low %v6777_v33, %v6781_v36  ;;  %v6817_v33 = vld [vmem:[#allocation16 + $0xa08] sm:$0xff] }
 0x53d   : > { %9895 = vmatprep.subr.bf16.mxu1 %v14359_v57  ;;  %9692 = vmatpush1.bf16.msra.mxu0 %v14356_v55  ;;  %v14399_v57 = vcombine.high %v6785_v47, %v6789_v48  ;;  %v14396_v55 = vcombine.low %v6784_v40, %v6788_v41  ;;  %v6821_v36 = vld [vmem:[#allocation16 + $0xa28] sm:$0xff]  ;;  %v6824_v40 = vld [vmem:[#allocation16 + $0xa40] sm:$0xff] }
 0x53e   : > { %9712 = vmatprep.subr.bf16.mxu0 %v14365_v27  ;;  %v14405_v27 = vcombine.high %v6792_v52, %v6796_v53  ;;  %v6828_v41 = vld [vmem:[#allocation16 + $0xa60] sm:$0xff] }
 0x540   : > { %9896 = vmatpush1.bf16.msra.mxu1 %v14358_v62  ;;  %9694 = vmatmul.mubr.bf16.vlgmr.msra.gmra.mrb[12].mxu0 %v17452_v5  ;;  %v14398_v62 = vcombine.low %v6785_v47, %v6789_v48  ;;  %v6825_v47 = vld [vmem:[#allocation16 + $0xa48] sm:$0xff] }
 0x541   : > { %9916 = vmatprep.subr.bf16.mxu1 %v14367_v46  ;;  %9713 = vmatpush1.bf16.msra.mxu0 %v14364_v6  ;;  %v14407_v46 = vcombine.high %v6793_v59, %v6797_v61  ;;  %v14404_v6 = vcombine.low %v6792_v52, %v6796_v53  ;;  %v6829_v48 = vld [vmem:[#allocation16 + $0xa68] sm:$0xff]  ;;  %v6832_v52 = vld [vmem:[#allocation16 + $0xa80] sm:$0xff] }
 0x542   : > { %9703 = vmatprep.mubr.bf16.mxu0 %v17454_v3  ;;  %9714 = vmatprep.subr.bf16.mxu0 %v14373_v15  ;;  %v14413_v15 = vcombine.high %v6800_v0, %v6804_v2  ;;  %v6836_v53 = vld [vmem:[#allocation16 + $0xaa0] sm:$0xff] }
 0x543   : > { %9898 = vmatmul.mubr.bf16.vlgmr.msra.gmra.mrb[16].mxu1 %v17452_v5 }
 0x544   : > { %9917 = vmatpush1.bf16.msra.mxu1 %v14366_v13  ;;  %9907 = vmatprep.mubr.bf16.mxu1 %v17454_v3  ;;  %v14406_v13 = vcombine.low %v6793_v59, %v6797_v61  ;;  %v6833_v59 = vld [vmem:[#allocation16 + $0xa88] sm:$0xff] }
 0x545   : > { %9918 = vmatprep.subr.bf16.mxu1 %v14375_v19  ;;  %9715 = vmatpush1.bf16.msra.mxu0 %v14372_v45  ;;  %v14415_v19 = vcombine.high %v6801_v8, %v6805_v4  ;;  %v14412_v45 = vcombine.low %v6800_v0, %v6804_v2  ;;  %v6837_v61 = vld [vmem:[#allocation16 + $0xaa8] sm:$0xff]  ;;  %v6840_v0 = vld [vmem:[#allocation16 + $0xac0] sm:$0xff] }
 0x546   : > { %9716 = vmatprep.subr.bf16.mxu0 %v14381_v58  ;;  %v14421_v58 = vcombine.high %v6808_v14, %v6812_v20  ;;  %v6844_v2 = vld [vmem:[#allocation16 + $0xae0] sm:$0xff] }
 0x548   : > { %9919 = vmatpush1.bf16.msra.mxu1 %v14374_v25  ;;  %9704 = vmatmul.mubr.bf16.gmra.mrb[16].mxu0 %v17466_v21  ;;  %v14414_v25 = vcombine.low %v6801_v8, %v6805_v4  ;;  %v6841_v8 = vld [vmem:[#allocation16 + $0xac8] sm:$0xff] }
 0x549   : > { %9920 = vmatprep.subr.bf16.mxu1 %v14383_v30  ;;  %9717 = vmatpush1.bf16.msra.mxu0 %v14380_v31  ;;  %v14423_v30 = vcombine.high %v6809_v16, %v6813_v22  ;;  %v14420_v31 = vcombine.low %v6808_v14, %v6812_v20  ;;  %v6845_v4 = vld [vmem:[#allocation16 + $0xae8] sm:$0xff]  ;;  %v6848_v14 = vld [vmem:[#allocation16 + $0xb00] sm:$0xff] }
 0x54a   : > { %9744 = vmatprep.mubr.bf16.mxu0 %v17470_v43  ;;  %9718 = vmatprep.subr.bf16.mxu0 %v14389_v37  ;;  %v14429_v37 = vcombine.high %v6816_v28, %v6820_v63  ;;  %v6852_v20 = vld [vmem:[#allocation16 + $0xb20] sm:$0xff] }
 0x54b   : > { %9908 = vmatmul.mubr.bf16.gmra.mrb[20].mxu1 %v17466_v21 }
 0x54c   : > { %9921 = vmatpush1.bf16.msra.mxu1 %v14382_v39  ;;  %9948 = vmatprep.mubr.bf16.mxu1 %v17470_v43  ;;  %v14422_v39 = vcombine.low %v6809_v16, %v6813_v22  ;;  %v6849_v16 = vld [vmem:[#allocation16 + $0xb08] sm:$0xff] }
 0x54d   : > { %9922 = vmatprep.subr.bf16.mxu1 %v14391_v42  ;;  %9719 = vmatpush1.bf16.msra.mxu0 %v14388_v44  ;;  %v14431_v42 = vcombine.high %v6817_v33, %v6821_v36  ;;  %v14428_v44 = vcombine.low %v6816_v28, %v6820_v63  ;;  %v6853_v22 = vld [vmem:[#allocation16 + $0xb28] sm:$0xff]  ;;  %v6856_v28 = vld [vmem:[#allocation16 + $0xb40] sm:$0xff] }
 0x54e   : > { %9720 = vmatprep.subr.bf16.mxu0 %v14397_v50  ;;  %v14437_v50 = vcombine.high %v6824_v40, %v6828_v41  ;;  %v6860_v63 = vld [vmem:[#allocation16 + $0xb60] sm:$0xff] }
 0x550   : > { %9923 = vmatpush1.bf16.msra.mxu1 %v14390_v51  ;;  %v14430_v51 = vcombine.low %v6817_v33, %v6821_v36  ;;  %v6857_v33 = vld [vmem:[#allocation16 + $0xb48] sm:$0xff] }
 0x551   : > { %9924 = vmatprep.subr.bf16.mxu1 %v14399_v57  ;;  %9721 = vmatpush1.bf16.msra.mxu0 %v14396_v55  ;;  %v14439_v57 = vcombine.high %v6825_v47, %v6829_v48  ;;  %v14436_v55 = vcombine.low %v6824_v40, %v6828_v41  ;;  %v6861_v36 = vld [vmem:[#allocation16 + $0xb68] sm:$0xff]  ;;  %v6864_v40 = vld [vmem:[#allocation16 + $0xb80] sm:$0xff] }
 0x552   : > { %9722 = vmatprep.subr.bf16.mxu0 %v14405_v27  ;;  %v14445_v27 = vcombine.high %v6832_v52, %v6836_v53  ;;  %v6868_v41 = vld [vmem:[#allocation16 + $0xba0] sm:$0xff] }
 0x554   : > { %9925 = vmatpush1.bf16.msra.mxu1 %v14398_v62  ;;  %v14438_v62 = vcombine.low %v6825_v47, %v6829_v48  ;;  %v6865_v47 = vld [vmem:[#allocation16 + $0xb88] sm:$0xff] }
 0x555   : > { %9926 = vmatprep.subr.bf16.mxu1 %v14407_v46  ;;  %9723 = vmatpush1.bf16.msra.mxu0 %v14404_v6  ;;  %v14447_v46 = vcombine.high %v6833_v59, %v6837_v61  ;;  %v14444_v6 = vcombine.low %v6832_v52, %v6836_v53  ;;  %v6869_v48 = vld [vmem:[#allocation16 + $0xba8] sm:$0xff]  ;;  %v6872_v52 = vld [vmem:[#allocation16 + $0xbc0] sm:$0xff] }
 0x556   : > { %9724 = vmatprep.subr.bf16.mxu0 %v14413_v15  ;;  %v14453_v15 = vcombine.high %v6840_v0, %v6844_v2  ;;  %v6876_v53 = vld [vmem:[#allocation16 + $0xbe0] sm:$0xff] }
 0x558   : > { %9927 = vmatpush1.bf16.msra.mxu1 %v14406_v13  ;;  %v14446_v13 = vcombine.low %v6833_v59, %v6837_v61  ;;  %v6873_v59 = vld [vmem:[#allocation16 + $0xbc8] sm:$0xff] }
 0x559   : > { %9928 = vmatprep.subr.bf16.mxu1 %v14415_v19  ;;  %9725 = vmatpush1.bf16.msra.mxu0 %v14412_v45  ;;  %v14455_v19 = vcombine.high %v6841_v8, %v6845_v4  ;;  %v14452_v45 = vcombine.low %v6840_v0, %v6844_v2  ;;  %v6877_v61 = vld [vmem:[#allocation16 + $0xbe8] sm:$0xff]  ;;  %v6880_v0 = vld [vmem:[#allocation16 + $0xc00] sm:$0xff] }
 0x55a   : > { %9726 = vmatprep.subr.bf16.mxu0 %v14421_v58  ;;  %v14461_v58 = vcombine.high %v6848_v14, %v6852_v20  ;;  %v6884_v2 = vld [vmem:[#allocation16 + $0xc20] sm:$0xff] }
 0x55c   : > { %9929 = vmatpush1.bf16.msra.mxu1 %v14414_v25  ;;  %v14454_v25 = vcombine.low %v6841_v8, %v6845_v4  ;;  %v6881_v8 = vld [vmem:[#allocation16 + $0xc08] sm:$0xff] }
 0x55d   : > { %9930 = vmatprep.subr.bf16.mxu1 %v14423_v30  ;;  %9727 = vmatpush1.bf16.msra.mxu0 %v14420_v31  ;;  %v14463_v30 = vcombine.high %v6849_v16, %v6853_v22  ;;  %v14460_v31 = vcombine.low %v6848_v14, %v6852_v20  ;;  %v6885_v4 = vld [vmem:[#allocation16 + $0xc28] sm:$0xff]  ;;  %v6888_v14 = vld [vmem:[#allocation16 + $0xc40] sm:$0xff] }
 0x55e   : > { %9728 = vmatprep.subr.bf16.mxu0 %v14429_v37  ;;  %v14469_v37 = vcombine.high %v6856_v28, %v6860_v63  ;;  %v6892_v20 = vld [vmem:[#allocation16 + $0xc60] sm:$0xff] }
 0x560   : > { %9931 = vmatpush1.bf16.msra.mxu1 %v14422_v39  ;;  %v14462_v39 = vcombine.low %v6849_v16, %v6853_v22  ;;  %v6889_v16 = vld [vmem:[#allocation16 + $0xc48] sm:$0xff] }
 0x561   : > { %9932 = vmatprep.subr.bf16.mxu1 %v14431_v42  ;;  %9729 = vmatpush1.bf16.msra.mxu0 %v14428_v44  ;;  %v14471_v42 = vcombine.high %v6857_v33, %v6861_v36  ;;  %v14468_v44 = vcombine.low %v6856_v28, %v6860_v63  ;;  %v6893_v22 = vld [vmem:[#allocation16 + $0xc68] sm:$0xff]  ;;  %v6896_v28 = vld [vmem:[#allocation16 + $0xc80] sm:$0xff] }
 0x562   : > { %9730 = vmatprep.subr.bf16.mxu0 %v14437_v50  ;;  %v14477_v50 = vcombine.high %v6864_v40, %v6868_v41  ;;  %v6900_v63 = vld [vmem:[#allocation16 + $0xca0] sm:$0xff] }
 0x564   : > { %9933 = vmatpush1.bf16.msra.mxu1 %v14430_v51  ;;  %v14470_v51 = vcombine.low %v6857_v33, %v6861_v36  ;;  %v6897_v33 = vld [vmem:[#allocation16 + $0xc88] sm:$0xff] }
 0x565   : > { %9934 = vmatprep.subr.bf16.mxu1 %v14439_v57  ;;  %9731 = vmatpush1.bf16.msra.mxu0 %v14436_v55  ;;  %v14479_v57 = vcombine.high %v6865_v47, %v6869_v48  ;;  %v14476_v55 = vcombine.low %v6864_v40, %v6868_v41  ;;  %v6901_v36 = vld [vmem:[#allocation16 + $0xca8] sm:$0xff]  ;;  %v6904_v40 = vld [vmem:[#allocation16 + $0xcc0] sm:$0xff] }
 0x566   : > { %9732 = vmatprep.subr.bf16.mxu0 %v14445_v27  ;;  %v14485_v27 = vcombine.high %v6872_v52, %v6876_v53  ;;  %v6908_v41 = vld [vmem:[#allocation16 + $0xce0] sm:$0xff] }
 0x568   : > { %9935 = vmatpush1.bf16.msra.mxu1 %v14438_v62  ;;  %v14478_v62 = vcombine.low %v6865_v47, %v6869_v48  ;;  %v6905_v47 = vld [vmem:[#allocation16 + $0xcc8] sm:$0xff] }
 0x569   : > { %9936 = vmatprep.subr.bf16.mxu1 %v14447_v46  ;;  %9733 = vmatpush1.bf16.msra.mxu0 %v14444_v6  ;;  %v14487_v46 = vcombine.high %v6873_v59, %v6877_v61  ;;  %v14484_v6 = vcombine.low %v6872_v52, %v6876_v53  ;;  %v6909_v48 = vld [vmem:[#allocation16 + $0xce8] sm:$0xff]  ;;  %v14510_v52 = vcombine.low %v6897_v33, %v6901_v36  ;;  %v6912_v53 = vld [vmem:[#allocation16 + $0xd00] sm:$0xff] }
 0x56a   : > { %9734 = vmatprep.subr.bf16.mxu0 %v14453_v15  ;;  %v14493_v15 = vcombine.high %v6880_v0, %v6884_v2 }
 0x56c   : > { %9937 = vmatpush1.bf16.msra.mxu1 %v14446_v13  ;;  %v14486_v13 = vcombine.low %v6873_v59, %v6877_v61  ;;  %v14516_v59 = vcombine.low %v6904_v40, %v6908_v41  ;;  %v6913_v61 = vld [vmem:[#allocation16 + $0xd08] sm:$0xff] }
 0x56d   : > { %9938 = vmatprep.subr.bf16.mxu1 %v14455_v19  ;;  %9735 = vmatpush1.bf16.msra.mxu0 %v14452_v45  ;;  %v14495_v19 = vcombine.high %v6881_v8, %v6885_v4  ;;  %v14492_v45 = vcombine.low %v6880_v0, %v6884_v2  ;;  %v14518_v2 = vcombine.low %v6905_v47, %v6909_v48 }
 0x56e   : > { %9736 = vmatprep.subr.bf16.mxu0 %v14461_v58  ;;  %v14501_v58 = vcombine.high %v6888_v14, %v6892_v20 }
 0x570   : > { %9939 = vmatpush1.bf16.msra.mxu1 %v14454_v25  ;;  %v14494_v25 = vcombine.low %v6881_v8, %v6885_v4 }
 0x571   : > { %9940 = vmatprep.subr.bf16.mxu1 %v14463_v30  ;;  %9737 = vmatpush1.bf16.msra.mxu0 %v14460_v31  ;;  %v14503_v30 = vcombine.high %v6889_v16, %v6893_v22  ;;  %v14500_v31 = vcombine.low %v6888_v14, %v6892_v20  ;;  %v830_v14 = vld [vmem:[#allocation8] sm:$0x3] }
 0x572   : > { %9738 = vmatprep.subr.bf16.mxu0 %v14469_v37  ;;  %v14509_v37 = vcombine.high %v6896_v28, %v6900_v63 }
 0x574   : > { %9941 = vmatpush1.bf16.msra.mxu1 %v14462_v39  ;;  %v14502_v39 = vcombine.low %v6889_v16, %v6893_v22  ;;  %v5572_v22 = vld [vmem:[#allocation14] sm:$0x3] }
 0x575   : > { %9942 = vmatprep.subr.bf16.mxu1 %v14471_v42  ;;  %9739 = vmatpush1.bf16.msra.mxu0 %v14468_v44  ;;  %v14511_v42 = vcombine.high %v6897_v33, %v6901_v36  ;;  %v14508_v44 = vcombine.low %v6896_v28, %v6900_v63 }
 0x576   : > { %9740 = vmatprep.subr.bf16.mxu0 %v14477_v50  ;;  %v832_v50 = vlaneseq }
 0x578   : > { %9943 = vmatpush1.bf16.msra.mxu1 %v14470_v51  ;;  %v14517_v51 = vcombine.high %v6904_v40, %v6908_v41 }
 0x579   : > { %9944 = vmatprep.subr.bf16.mxu1 %v14479_v57  ;;  %9741 = vmatpush1.bf16.msra.mxu0 %v14476_v55  ;;  %v6916_v57 = vld [vmem:[#allocation16 + $0xd20] sm:$0xff]  ;;  %v14519_v55 = vcombine.high %v6905_v47, %v6909_v48 }
 0x57a   : > { %9742 = vmatprep.subr.bf16.mxu0 %v14485_v27  ;;  %v6917_v27 = vld [vmem:[#allocation16 + $0xd28] sm:$0xff]  ;;  %v14525_v0 = vcombine.high %v6912_v53, %v6916_v57  ;;  %v14524_v4 = vcombine.low %v6912_v53, %v6916_v57  ;;  %v6940_v47 = vld [vmem:[#allocation16 + $0xde0] sm:$0xff] }
 0x57b   : > { %v14527_v8 = vcombine.high %v6913_v61, %v6917_v27  ;;  %v14526_v16 = vcombine.low %v6913_v61, %v6917_v27  ;;  %v6937_v57 = vld [vmem:[#allocation16 + $0xdc8] sm:$0xff] }
 0x57c   : > { %9945 = vmatpush1.bf16.msra.mxu1 %v14478_v62  ;;  %v17544_v62 = vshrl.u32 %v832_v50, 7 }
 0x57d   : > { %9946 = vmatprep.subr.bf16.mxu1 %v14487_v46  ;;  %9743 = vmatpush1.bf16.msra.mxu0 %v14484_v6  ;;  %v6920_v46 = vld [vmem:[#allocation16 + $0xd40] sm:$0xff] }
 0x57e   : > { %9763 = vmatprep.subr.bf16.mxu0 %v14493_v15  ;;  %v6924_v6 = vld [vmem:[#allocation16 + $0xd60] sm:$0xff]  ;;  %v6921_v15 = vld [vmem:[#allocation16 + $0xd48] sm:$0xff]  ;;  %v17549_v20 = vsub.s32 0, %v17544_v62 }
 0x57f   : > { %v14532_v63 = vcombine.low %v6920_v46, %v6924_v6 }
 0x580   : > { %9947 = vmatpush1.bf16.msra.mxu1 %v14486_v13  ;;  %9745 = vmatmul.mubr.bf16.vlgmr.msra.gmra.mrb[12].mxu0 %v17477_v11  ;;  %v6925_v13 = vld [vmem:[#allocation16 + $0xd68] sm:$0xff]  ;;  %v835_v33 = vrot.slane %v830_v14, %v17549_v20  ;;  %v5577_v36 = vrot.slane %v5572_v22, %v17549_v20 }
 0x581   : > { %9967 = vmatprep.subr.bf16.mxu1 %v14495_v19  ;;  %9764 = vmatpush1.bf16.msra.mxu0 %v14492_v45  ;;  %v14533_v19 = vcombine.high %v6920_v46, %v6924_v6  ;;  %v17552_v45 = vsub.s32 1, %v17544_v62  ;;  %v14535_v28 = vcombine.high %v6921_v15, %v6925_v13 }
 0x582   : > { %9754 = vmatprep.mubr.bf16.mxu0 %v17479_v17  ;;  %9765 = vmatprep.subr.bf16.mxu0 %v14501_v58  ;;  %v6928_v58 = vld [vmem:[#allocation16 + $0xd80] sm:$0xff] }
 0x583   : > { %9949 = vmatmul.mubr.bf16.vlgmr.msra.gmra.mrb[16].mxu1 %v17477_v11  ;;  %v5581_v41 = vrot.slane %v5572_v22, %v17552_v45 }
 0x584   : > { %9968 = vmatpush1.bf16.msra.mxu1 %v14494_v25  ;;  %9958 = vmatprep.mubr.bf16.mxu1 %v17479_v17  ;;  %v6932_v25 = vld [vmem:[#allocation16 + $0xda0] sm:$0xff] }
 0x585   : > { %9969 = vmatprep.subr.bf16.mxu1 %v14503_v30  ;;  %9766 = vmatpush1.bf16.msra.mxu0 %v14500_v31  ;;  %v6929_v30 = vld [vmem:[#allocation16 + $0xd88] sm:$0xff]  ;;  %v14540_v53 = vcombine.low %v6928_v58, %v6932_v25 }
 0x586   : > { %9767 = vmatprep.subr.bf16.mxu0 %v14509_v37  ;;  %v6933_v31 = vld [vmem:[#allocation16 + $0xda8] sm:$0xff]  ;;  %v14541_v37 = vcombine.high %v6928_v58, %v6932_v25 }
 0x587   : > { %v14543_v50 = vcombine.high %v6929_v30, %v6933_v31  ;;  %v6945_v58 = vld [vmem:[#allocation16 + $0xe08] sm:$0xff] }
 0x588   : > { %9970 = vmatpush1.bf16.msra.mxu1 %v14502_v39  ;;  %9755 = vmatmul.mubr.bf16.gmra.mrb[16].mxu0 %v17491_v29  ;;  %v839_v39 = vrot.slane %v830_v14, %v17552_v45  ;;  %v6949_v25 = vld [vmem:[#allocation16 + $0xe28] sm:$0xff] }
 0x589   : > { %9971 = vmatprep.subr.bf16.mxu1 %v14511_v42  ;;  %9768 = vmatpush1.bf16.msra.mxu0 %v14508_v44  ;;  %v14534_v42 = vcombine.low %v6921_v15, %v6925_v13  ;;  %v6936_v44 = vld [vmem:[#allocation16 + $0xdc0] sm:$0xff] }
 0x58a   : > { %9795 = vmatprep.mubr.bf16.mxu0 %v17495_v34  ;;  %9769 = vmatprep.subr.bf16.mxu0 %v14517_v51  ;;  %v15005_v46 = vadd.f32 %v17404_v26, %v839_v39  ;;  %v6948_v15 = vld [vmem:[#allocation16 + $0xe20] sm:$0xff]  ;;  %v14548_v22 = vcombine.low %v6936_v44, %v6940_v47  ;;  %v6953_v39 = vld [vmem:[#allocation16 + $0xe48] sm:$0xff] }
 0x58b   : > { %9959 = vmatmul.mubr.bf16.gmra.mrb[20].mxu1 %v17491_v29 }
 0x58c   : > { %9972 = vmatpush1.bf16.msra.mxu1 %v14510_v52  ;;  %9999 = vmatprep.mubr.bf16.mxu1 %v17495_v34 }
 0x58d   : > { %9973 = vmatprep.subr.bf16.mxu1 %v14519_v55  ;;  %9770 = vmatpush1.bf16.msra.mxu0 %v14516_v59  ;;  %v6941_v55 = vld [vmem:[#allocation16 + $0xde8] sm:$0xff]  ;;  %v17563_v59 = vadd.f32 %v17402_v23, %v835_v33 }
 0x58e   : > { %9771 = vmatprep.subr.bf16.mxu0 %v14525_v0  ;;  %v14551_v23 = vcombine.high %v6937_v57, %v6941_v55 }
 0x590   : > { %9974 = vmatpush1.bf16.msra.mxu1 %v14518_v2  ;;  %v14549_v2 = vcombine.high %v6936_v44, %v6940_v47 }
 0x591   : > { %9975 = vmatprep.subr.bf16.mxu1 %v14527_v8  ;;  %9772 = vmatpush1.bf16.msra.mxu0 %v14524_v4  ;;  %v14542_v8 = vcombine.low %v6929_v30, %v6933_v31  ;;  %v6944_v4 = vld [vmem:[#allocation16 + $0xe00] sm:$0xff]  ;;  %v14559_v31 = vcombine.high %v6945_v58, %v6949_v25 }
 0x592   : > { %9773 = vmatprep.subr.bf16.mxu0 %v14533_v19  ;;  %v14557_v26 = vcombine.high %v6944_v4, %v6948_v15  ;;  %v6956_v30 = vld [vmem:[#allocation16 + $0xe60] sm:$0xff] }
 0x593   : > { %v17557_v40 = vpop.f32.mrb[8].mxu0 }
 0x594   : > { %9976 = vmatpush1.bf16.msra.mxu1 %v14526_v16  ;;  %v17560_v48 = vpop.f32.mrb[9].mxu0 }
 0x595   : > { %9977 = vmatprep.subr.bf16.mxu1 %v14535_v28  ;;  %v5441_v52 = vpop.f32.mrb[10].mxu0  ;;  %9774 = vmatpush1.bf16.msra.mxu0 %v14532_v63  ;;  %v14550_v28 = vcombine.low %v6937_v57, %v6941_v55  ;;  %v6952_v63 = vld [vmem:[#allocation16 + $0xe40] sm:$0xff] }
 0x596   : > { %v6479_v51 = vpop.f32.mrb[8].mxu1  ;;  %v5442_v0 = vpop.f32.mrb[11].mxu0  ;;  %9775 = vmatprep.subr.bf16.mxu0 %v14541_v37  ;;  %v14556_v37 = vcombine.low %v6944_v4, %v6948_v15  ;;  %v14565_v44 = vcombine.high %v6952_v63, %v6956_v30  ;;  %v6960_v57 = vld [vmem:[#allocation16 + $0xe80] sm:$0xff]  ;;  %v6961_v4 = vld [vmem:[#allocation16 + $0xe88] sm:$0xff] }
 0x597   : > { %v17565_v61 = vadd.f32 %v6479_v51, %v5577_v36  ;;  %v6481_v27 = vpop.f32.mrb[9].mxu1  ;;  %v6964_v55 = vld [vmem:[#allocation16 + $0xea0] sm:$0xff]  ;;  %v6965_v15 = vld [vmem:[#allocation16 + $0xea8] sm:$0xff] }
 0x598   : > { %v15015_v6 = vadd.f32 %v6481_v27, %v5581_v41  ;;  %9978 = vmatpush1.bf16.msra.mxu1 %v14534_v42  ;;  %v6483_v13 = vpop.f32.mrb[10].mxu1  ;;  %v6957_v42 = vld [vmem:[#allocation16 + $0xe68] sm:$0xff] }
 0x599   : > { %v10426_v14 = vpack.c.bf16 %v17565_v61, %v17563_v59  ;;  %9979 = vmatprep.subr.bf16.mxu1 %v14543_v50  ;;  %v6485_v19 = vpop.f32.mrb[11].mxu1  ;;  %9776 = vmatpush1.bf16.msra.mxu0 %v14540_v53  ;;  %v17572_v33 = vadd.f32 %v6483_v13, %v5577_v36  ;;  %v14558_v53 = vcombine.low %v6945_v58, %v6949_v25  ;;  %v6969_v25 = vld [vmem:[#allocation16 + $0xec8] sm:$0xff]  ;;  %v2206_v61 = vsub.s32 4, %v17544_v62 }
 0x59a   : > { %v17570_v16 = vpack.c.bf16 %v15015_v6, %v15005_v46  ;;  %9777 = vmatprep.subr.bf16.mxu0 %v14549_v2  ;;  %v15017_v50 = vadd.f32 %v6485_v19, %v5581_v41  ;;  %v14567_v2 = vcombine.high %v6953_v39, %v6957_v42  ;;  %v6968_v19 = vld [vmem:[#allocation16 + $0xec0] sm:$0xff]  ;;  %v14572_v58 = vcombine.low %v6960_v57, %v6964_v55  ;;  %v6967_v46 = vld [vmem:[#allocation16 + $0xeb8] sm:$0xff] }
 0x59c   : > { %9980 = vmatpush1.bf16.msra.mxu1 %v14542_v8  ;;  %v14564_v8 = vcombine.low %v6952_v63, %v6956_v30  ;;  %v14574_v63 = vcombine.low %v6961_v4, %v6965_v15  ;;  %v6976_v30 = vld [vmem:[#allocation16 + $0xf00] sm:$0xff] }
 0x59d   : > { %9981 = vmatprep.subr.bf16.mxu1 %v14551_v23  ;;  %9778 = vmatpush1.bf16.msra.mxu0 %v14548_v22  ;;  %v14566_v23 = vcombine.low %v6953_v39, %v6957_v42  ;;  %v6972_v22 = vld [vmem:[#allocation16 + $0xee0] sm:$0xff]  ;;  %v6981_v39 = vld [vmem:[#allocation16 + $0xf28] sm:$0xff] }
 0x59e   : > { %v6489_v51 = vpop.f32.mrb[12].mxu1  ;;  %9779 = vmatprep.subr.bf16.mxu0 %v14557_v26  ;;  %v6973_v26 = vld [vmem:[#allocation16 + $0xee8] sm:$0xff] }
 0x59f   : > { %v17574_v47 = vadd.f32 %v6489_v51, %v5577_v36  ;;  %v6491_v52 = vpop.f32.mrb[13].mxu1  ;;  %v14573_v36 = vcombine.high %v6960_v57, %v6964_v55  ;;  %v6977_v51 = vld [vmem:[#allocation16 + $0xf08] sm:$0xff] }
 0x5a0   : > { %9982 = vmatpush1.bf16.msra.mxu1 %v14550_v28  ;;  %v15019_v27 = vadd.f32 %v6491_v52, %v5581_v41  ;;  %v6493_v0 = vpop.f32.mrb[14].mxu1  ;;  %v14575_v41 = vcombine.high %v6961_v4, %v6965_v15  ;;  %v14581_v28 = vcombine.high %v6968_v19, %v6972_v22  ;;  %v6984_v52 = vld [vmem:[#allocation16 + $0xf40] sm:$0xff]  ;;  %v14591_v57 = vcombine.high %v6977_v51, %v6981_v39 }
 0x5a1   : > { %9983 = vmatprep.subr.bf16.mxu1 %v14559_v31  ;;  %v6494_v6 = vpop.f32.mrb[15].mxu1  ;;  %9780 = vmatpush1.bf16.msra.mxu0 %v14556_v37  ;;  %v6980_v31 = vld [vmem:[#allocation16 + $0xf20] sm:$0xff]  ;;  %v14583_v37 = vcombine.high %v6969_v25, %v6973_v26  ;;  %v6989_v0 = vld [vmem:[#allocation16 + $0xf68] sm:$0xff] }
 0x5a2   : > { %v17578_v13 = vpack.c.bf16 %v15019_v27, %v15017_v50  ;;  %9781 = vmatprep.subr.bf16.mxu0 %v14565_v44  ;;  %v14580_v50 = vcombine.low %v6968_v19, %v6972_v22  ;;  %v14589_v42 = vcombine.high %v6976_v30, %v6980_v31  ;;  %v14582_v44 = vcombine.low %v6969_v25, %v6973_v26  ;;  %v6985_v27 = vld [vmem:[#allocation16 + $0xf48] sm:$0xff]  ;;  %v6996_v4 = vld [vmem:[#allocation16 + $0xfa0] sm:$0xff] }
 0x5a3   : > { %v14588_v55 = vcombine.low %v6976_v30, %v6980_v31  ;;  %v14590_v6 = vcombine.low %v6977_v51, %v6981_v39  ;;  %v14599_v15 = vcombine.high %v6985_v27, %v6989_v0  ;;  %v6997_v19 = vld [vmem:[#allocation16 + $0xfa8] sm:$0xff]  ;;  %v7004_v25 = vld [vmem:[#allocation16 + $0xfe0] sm:$0xff]  ;;  %v6502_v51 = vld [vmem:[#allocation16 + $0x30] sm:$0xff] }
 0x5a4   : > { %9984 = vmatpush1.bf16.msra.mxu1 %v14558_v53  ;;  %v6988_v53 = vld [vmem:[#allocation16 + $0xf60] sm:$0xff]  ;;  %v7005_v30 = vld [vmem:[#allocation16 + $0xfe8] sm:$0xff] }
 0x5a5   : > { %9985 = vmatprep.subr.bf16.mxu1 %v14567_v2  ;;  %9782 = vmatpush1.bf16.msra.mxu0 %v14564_v8  ;;  %v14597_v2 = vcombine.high %v6984_v52, %v6988_v53  ;;  %v6992_v8 = vld [vmem:[#allocation16 + $0xf80] sm:$0xff] }
 0x5a6   : > { %9783 = vmatprep.subr.bf16.mxu0 %v14573_v36  ;;  %v14596_v36 = vcombine.low %v6984_v52, %v6988_v53  ;;  %v14605_v22 = vcombine.high %v6992_v8, %v6996_v4  ;;  %v6503_v52 = vld [vmem:[#allocation16 + $0x38] sm:$0xff] }
 0x5a8   : > { %9986 = vmatpush1.bf16.msra.mxu1 %v14566_v23  ;;  %v6993_v23 = vld [vmem:[#allocation16 + $0xf88] sm:$0xff] }
 0x5a9   : > { %9987 = vmatprep.subr.bf16.mxu1 %v14575_v41  ;;  %9784 = vmatpush1.bf16.msra.mxu0 %v14572_v58  ;;  %v14598_v41 = vcombine.low %v6985_v27, %v6989_v0  ;;  %v7000_v58 = vld [vmem:[#allocation16 + $0xfc0] sm:$0xff]  ;;  %v14607_v26 = vcombine.high %v6993_v23, %v6997_v19  ;;  %v6510_v27 = vld [vmem:[#allocation16 + $0x70] sm:$0xff] }
 0x5aa   : > { %9785 = vmatprep.subr.bf16.mxu0 %v14581_v28  ;;  %v14604_v28 = vcombine.low %v6992_v8, %v6996_v4  ;;  %v14613_v31 = vcombine.high %v7000_v58, %v7004_v25  ;;  %v6511_v8 = vld [vmem:[#allocation16 + $0x78] sm:$0xff] }
 0x5ac   : > { %9988 = vmatpush1.bf16.msra.mxu1 %v14574_v63  ;;  %v7001_v63 = vld [vmem:[#allocation16 + $0xfc8] sm:$0xff] }
 0x5ad   : > { %9989 = vmatprep.subr.bf16.mxu1 %v14583_v37  ;;  %9786 = vmatpush1.bf16.msra.mxu0 %v14580_v50  ;;  %v14606_v37 = vcombine.low %v6993_v23, %v6997_v19  ;;  %v6498_v50 = vld [vmem:[#allocation16 + $0x10] sm:$0xff]  ;;  %v14615_v39 = vcombine.high %v7001_v63, %v7005_v30 }
 0x5ae   : > { %9787 = vmatprep.subr.bf16.mxu0 %v14589_v42  ;;  %v14612_v42 = vcombine.low %v7000_v58, %v7004_v25  ;;  %v14113_v53 = vcombine.high %v6498_v50, %v6502_v51  ;;  %v6518_v23 = vld [vmem:[#allocation16 + $0xb0] sm:$0xff]  ;;  %v6519_v58 = vld [vmem:[#allocation16 + $0xb8] sm:$0xff] }
 0x5b0   : > { %9990 = vmatpush1.bf16.msra.mxu1 %v14582_v44  ;;  %v6499_v44 = vld [vmem:[#allocation16 + $0x18] sm:$0xff] }
 0x5b1   : > { %9991 = vmatprep.subr.bf16.mxu1 %v14591_v57  ;;  %9788 = vmatpush1.bf16.msra.mxu0 %v14588_v55  ;;  %v14614_v57 = vcombine.low %v7001_v63, %v7005_v30  ;;  %v6506_v55 = vld [vmem:[#allocation16 + $0x50] sm:$0xff]  ;;  %v14115_v0 = vcombine.high %v6499_v44, %v6503_v52 }
 0x5b2   : > { %9789 = vmatprep.subr.bf16.mxu0 %v14597_v2  ;;  %v14112_v2 = vcombine.low %v6498_v50, %v6502_v51  ;;  %v14121_v4 = vcombine.high %v6506_v55, %v6510_v27  ;;  %v6526_v63 = vld [vmem:[#allocation16 + $0xf0] sm:$0xff]  ;;  %v6527_v50 = vld [vmem:[#allocation16 + $0xf8] sm:$0xff] }
 0x5b4   : > { %9992 = vmatpush1.bf16.msra.mxu1 %v14590_v6  ;;  %v6507_v6 = vld [vmem:[#allocation16 + $0x58] sm:$0xff] }
 0x5b5   : > { %9993 = vmatprep.subr.bf16.mxu1 %v14599_v15  ;;  %9790 = vmatpush1.bf16.msra.mxu0 %v14596_v36  ;;  %v14114_v15 = vcombine.low %v6499_v44, %v6503_v52  ;;  %v6514_v36 = vld [vmem:[#allocation16 + $0x90] sm:$0xff]  ;;  %v14123_v19 = vcombine.high %v6507_v6, %v6511_v8 }
 0x5b6   : > { %9791 = vmatprep.subr.bf16.mxu0 %v14605_v22  ;;  %v14120_v22 = vcombine.low %v6506_v55, %v6510_v27  ;;  %v14129_v25 = vcombine.high %v6514_v36, %v6518_v23  ;;  %v6534_v44 = vld [vmem:[#allocation16 + $0x130] sm:$0xff]  ;;  %v6535_v55 = vld [vmem:[#allocation16 + $0x138] sm:$0xff] }
 0x5b8   : > { %9994 = vmatpush1.bf16.msra.mxu1 %v14598_v41  ;;  %v6515_v41 = vld [vmem:[#allocation16 + $0x98] sm:$0xff] }
 0x5b9   : > { %9995 = vmatprep.subr.bf16.mxu1 %v14607_v26  ;;  %9792 = vmatpush1.bf16.msra.mxu0 %v14604_v28  ;;  %v14122_v26 = vcombine.low %v6507_v6, %v6511_v8  ;;  %v6522_v28 = vld [vmem:[#allocation16 + $0xd0] sm:$0xff]  ;;  %v14131_v30 = vcombine.high %v6515_v41, %v6519_v58 }
 0x5ba   : > { %9793 = vmatprep.subr.bf16.mxu0 %v14613_v31  ;;  %v14128_v31 = vcombine.low %v6514_v36, %v6518_v23  ;;  %v14137_v51 = vcombine.high %v6522_v28, %v6526_v63  ;;  %v6542_v6 = vld [vmem:[#allocation16 + $0x170] sm:$0xff]  ;;  %v6543_v36 = vld [vmem:[#allocation16 + $0x178] sm:$0xff] }
 0x5bc   : > { %9996 = vmatpush1.bf16.msra.mxu1 %v14606_v37  ;;  %v6523_v37 = vld [vmem:[#allocation16 + $0xd8] sm:$0xff] }
 0x5bd   : > { %9997 = vmatprep.subr.bf16.mxu1 %v14615_v39  ;;  %9794 = vmatpush1.bf16.msra.mxu0 %v14612_v42  ;;  %v14130_v39 = vcombine.low %v6515_v41, %v6519_v58  ;;  %v6530_v42 = vld [vmem:[#allocation16 + $0x110] sm:$0xff]  ;;  %v14139_v52 = vcombine.high %v6523_v37, %v6527_v50 }
 0x5be   : > { %10018 = vmatprep.subr.bf16.mxu0 %v14113_v53  ;;  %v14136_v53 = vcombine.low %v6522_v28, %v6526_v63  ;;  %v14145_v27 = vcombine.high %v6530_v42, %v6534_v44  ;;  %v6550_v41 = vld [vmem:[#allocation16 + $0x1b0] sm:$0xff]  ;;  %v6551_v28 = vld [vmem:[#allocation16 + $0x1b8] sm:$0xff] }
 0x5c0   : > { %9998 = vmatpush1.bf16.msra.mxu1 %v14614_v57  ;;  %9796 = vmatmul.mubr.bf16.vlgmr.msra.gmra.mrb[12].mxu0 %v17510_v49  ;;  %v6531_v57 = vld [vmem:[#allocation16 + $0x118] sm:$0xff] }
 0x5c1   : > { %10222 = vmatprep.subr.bf16.mxu1 %v14115_v0  ;;  %10019 = vmatpush1.bf16.msra.mxu0 %v14112_v2  ;;  %v14138_v0 = vcombine.low %v6523_v37, %v6527_v50  ;;  %v6538_v2 = vld [vmem:[#allocation16 + $0x150] sm:$0xff]  ;;  %v14147_v8 = vcombine.high %v6531_v57, %v6535_v55 }
 0x5c2   : > { %9805 = vmatprep.mubr.bf16.mxu0 %v17512_v54  ;;  %10020 = vmatprep.subr.bf16.mxu0 %v14121_v4  ;;  %v14144_v4 = vcombine.low %v6530_v42, %v6534_v44  ;;  %v14153_v23 = vcombine.high %v6538_v2, %v6542_v6 }
 0x5c3   : > { %10000 = vmatmul.mubr.bf16.vlgmr.msra.gmra.mrb[16].mxu1 %v17510_v49 }
 0x5c4   : > { %10223 = vmatpush1.bf16.msra.mxu1 %v14114_v15  ;;  %10009 = vmatprep.mubr.bf16.mxu1 %v17512_v54  ;;  %v6539_v15 = vld [vmem:[#allocation16 + $0x158] sm:$0xff] }
 0x5c5   : > { %10224 = vmatprep.subr.bf16.mxu1 %v14123_v19  ;;  %10021 = vmatpush1.bf16.msra.mxu0 %v14120_v22  ;;  %v14146_v19 = vcombine.low %v6531_v57, %v6535_v55  ;;  %v6546_v22 = vld [vmem:[#allocation16 + $0x190] sm:$0xff]  ;;  %v14155_v58 = vcombine.high %v6539_v15, %v6543_v36  ;;  %v14154_v63 = vcombine.low %v6539_v15, %v6543_v36 }
 0x5c6   : > { %10022 = vmatprep.subr.bf16.mxu0 %v14129_v25  ;;  %v14152_v25 = vcombine.low %v6538_v2, %v6542_v6  ;;  %v14160_v50 = vcombine.low %v6546_v22, %v6550_v41 }
 0x5c8   : > { %10225 = vmatpush1.bf16.msra.mxu1 %v14122_v26  ;;  %9806 = vmatmul.mubr.bf16.gmra.mrb[16].mxu0 %v17518_v38  ;;  %v6547_v26 = vld [vmem:[#allocation16 + $0x198] sm:$0xff] }
 0x5c9   : > { %10226 = vmatprep.subr.bf16.mxu1 %v14131_v30  ;;  %10023 = vmatpush1.bf16.msra.mxu0 %v14128_v31  ;;  %v6554_v30 = vld [vmem:[#allocation16 + $0x1d0] sm:$0xff]  ;;  %v14163_v37 = vcombine.high %v6547_v26, %v6551_v28  ;;  %v14162_v44 = vcombine.low %v6547_v26, %v6551_v28 }
 0x5ca   : > { %10050 = vmatprep.mubr.bf16.mxu0 %v17418_v9  ;;  %10024 = vmatprep.subr.bf16.mxu0 %v14137_v51  ;;  %v6558_v31 = vld [vmem:[#allocation16 + $0x1f0] sm:$0xff]  ;;  %v6555_v51 = vld [vmem:[#allocation16 + $0x1d8] sm:$0xff] }
 0x5cb   : > { %10010 = vmatmul.mubr.bf16.gmra.mrb[20].mxu1 %v17518_v38  ;;  %v14169_v42 = vcombine.high %v6554_v30, %v6558_v31  ;;  %v14168_v55 = vcombine.low %v6554_v30, %v6558_v31 }
 0x5cc   : > { %10227 = vmatpush1.bf16.msra.mxu1 %v14130_v39  ;;  %10254 = vmatprep.mubr.bf16.mxu1 %v17418_v9  ;;  %v14161_v9 = vcombine.high %v6546_v22, %v6550_v41  ;;  %v6559_v39 = vld [vmem:[#allocation16 + $0x1f8] sm:$0xff] }
 0x5cd   : > { %10228 = vmatprep.subr.bf16.mxu1 %v14139_v52  ;;  %10025 = vmatpush1.bf16.msra.mxu0 %v14136_v53  ;;  %v6562_v52 = vld [vmem:[#allocation16 + $0x210] sm:$0xff]  ;;  %v14171_v57 = vcombine.high %v6555_v51, %v6559_v39  ;;  %v14170_v6 = vcombine.low %v6555_v51, %v6559_v39 }
 0x5ce   : > { %10026 = vmatprep.subr.bf16.mxu0 %v14145_v27  ;;  %v6566_v53 = vld [vmem:[#allocation16 + $0x230] sm:$0xff]  ;;  %v6563_v27 = vld [vmem:[#allocation16 + $0x218] sm:$0xff] }
 0x5cf   : > { %v14177_v2 = vcombine.high %v6562_v52, %v6566_v53  ;;  %v14176_v36 = vcombine.low %v6562_v52, %v6566_v53 }
 0x5d0   : > { %10229 = vmatpush1.bf16.msra.mxu1 %v14138_v0  ;;  %v6567_v0 = vld [vmem:[#allocation16 + $0x238] sm:$0xff] }
 0x5d1   : > { %10230 = vmatprep.subr.bf16.mxu1 %v14147_v8  ;;  %10027 = vmatpush1.bf16.msra.mxu0 %v14144_v4  ;;  %v6570_v8 = vld [vmem:[#allocation16 + $0x250] sm:$0xff]  ;;  %v14179_v15 = vcombine.high %v6563_v27, %v6567_v0  ;;  %v14178_v41 = vcombine.low %v6563_v27, %v6567_v0 }
 0x5d2   : > { %10028 = vmatprep.subr.bf16.mxu0 %v14153_v23  ;;  %v6574_v4 = vld [vmem:[#allocation16 + $0x270] sm:$0xff]  ;;  %v6571_v23 = vld [vmem:[#allocation16 + $0x258] sm:$0xff] }
 0x5d3   : > { %v14185_v22 = vcombine.high %v6570_v8, %v6574_v4  ;;  %v14184_v28 = vcombine.low %v6570_v8, %v6574_v4 }
 0x5d4   : > { %10231 = vmatpush1.bf16.msra.mxu1 %v14146_v19  ;;  %v6575_v19 = vld [vmem:[#allocation16 + $0x278] sm:$0xff] }
 0x5d5   : > { %10232 = vmatprep.subr.bf16.mxu1 %v14155_v58  ;;  %10029 = vmatpush1.bf16.msra.mxu0 %v14152_v25  ;;  %v6578_v58 = vld [vmem:[#allocation16 + $0x290] sm:$0xff]  ;;  %v14187_v26 = vcombine.high %v6571_v23, %v6575_v19  ;;  %v14186_v31 = vcombine.low %v6571_v23, %v6575_v19 }
 0x5d6   : > { %10030 = vmatprep.subr.bf16.mxu0 %v14161_v9  ;;  %v6582_v25 = vld [vmem:[#allocation16 + $0x2b0] sm:$0xff]  ;;  %v6579_v9 = vld [vmem:[#allocation16 + $0x298] sm:$0xff] }
 0x5d7   : > { %v14193_v30 = vcombine.high %v6578_v58, %v6582_v25  ;;  %v14192_v39 = vcombine.low %v6578_v58, %v6582_v25 }
 0x5d8   : > { %10233 = vmatpush1.bf16.msra.mxu1 %v14154_v63  ;;  %v6583_v63 = vld [vmem:[#allocation16 + $0x2b8] sm:$0xff] }
 0x5d9   : > { %10234 = vmatprep.subr.bf16.mxu1 %v14163_v37  ;;  %10031 = vmatpush1.bf16.msra.mxu0 %v14160_v50  ;;  %v6586_v37 = vld [vmem:[#allocation16 + $0x2d0] sm:$0xff]  ;;  %v14195_v51 = vcombine.high %v6579_v9, %v6583_v63  ;;  %v14194_v53 = vcombine.low %v6579_v9, %v6583_v63 }
 0x5da   : > { %10032 = vmatprep.subr.bf16.mxu0 %v14169_v42  ;;  %v6590_v50 = vld [vmem:[#allocation16 + $0x2f0] sm:$0xff]  ;;  %v6587_v42 = vld [vmem:[#allocation16 + $0x2d8] sm:$0xff] }
 0x5db   : > { %v14201_v52 = vcombine.high %v6586_v37, %v6590_v50  ;;  %v14200_v0 = vcombine.low %v6586_v37, %v6590_v50 }
 0x5dc   : > { %10235 = vmatpush1.bf16.msra.mxu1 %v14162_v44  ;;  %v6591_v44 = vld [vmem:[#allocation16 + $0x2f8] sm:$0xff] }
 0x5dd   : > { %10236 = vmatprep.subr.bf16.mxu1 %v14171_v57  ;;  %10033 = vmatpush1.bf16.msra.mxu0 %v14168_v55  ;;  %v6594_v57 = vld [vmem:[#allocation16 + $0x310] sm:$0xff]  ;;  %v14203_v27 = vcombine.high %v6587_v42, %v6591_v44  ;;  %v14202_v4 = vcombine.low %v6587_v42, %v6591_v44 }
 0x5de   : > { %10034 = vmatprep.subr.bf16.mxu0 %v14177_v2  ;;  %v6598_v55 = vld [vmem:[#allocation16 + $0x330] sm:$0xff]  ;;  %v6595_v2 = vld [vmem:[#allocation16 + $0x318] sm:$0xff] }
 0x5df   : > { %v14209_v8 = vcombine.high %v6594_v57, %v6598_v55  ;;  %v14208_v19 = vcombine.low %v6594_v57, %v6598_v55 }
 0x5e0   : > { %10237 = vmatpush1.bf16.msra.mxu1 %v14170_v6  ;;  %v6599_v6 = vld [vmem:[#allocation16 + $0x338] sm:$0xff] }
 0x5e1   : > { %10238 = vmatprep.subr.bf16.mxu1 %v14179_v15  ;;  %10035 = vmatpush1.bf16.msra.mxu0 %v14176_v36  ;;  %v6602_v15 = vld [vmem:[#allocation16 + $0x350] sm:$0xff]  ;;  %v14211_v23 = vcombine.high %v6595_v2, %v6599_v6  ;;  %v14210_v25 = vcombine.low %v6595_v2, %v6599_v6 }
 0x5e2   : > { %10036 = vmatprep.subr.bf16.mxu0 %v14185_v22  ;;  %v6606_v36 = vld [vmem:[#allocation16 + $0x370] sm:$0xff]  ;;  %v6603_v22 = vld [vmem:[#allocation16 + $0x358] sm:$0xff] }
 0x5e3   : > { %v14217_v58 = vcombine.high %v6602_v15, %v6606_v36  ;;  %v14216_v63 = vcombine.low %v6602_v15, %v6606_v36 }
 0x5e4   : > { %10239 = vmatpush1.bf16.msra.mxu1 %v14178_v41  ;;  %v6607_v41 = vld [vmem:[#allocation16 + $0x378] sm:$0xff] }
 0x5e5   : > { %10240 = vmatprep.subr.bf16.mxu1 %v14187_v26  ;;  %10037 = vmatpush1.bf16.msra.mxu0 %v14184_v28  ;;  %v6610_v26 = vld [vmem:[#allocation16 + $0x390] sm:$0xff]  ;;  %v14219_v9 = vcombine.high %v6603_v22, %v6607_v41  ;;  %v14218_v50 = vcombine.low %v6603_v22, %v6607_v41 }
 0x5e6   : > { %10038 = vmatprep.subr.bf16.mxu0 %v14193_v30  ;;  %v6614_v28 = vld [vmem:[#allocation16 + $0x3b0] sm:$0xff]  ;;  %v6611_v30 = vld [vmem:[#allocation16 + $0x398] sm:$0xff] }
 0x5e7   : > { %v14225_v37 = vcombine.high %v6610_v26, %v6614_v28  ;;  %v14224_v44 = vcombine.low %v6610_v26, %v6614_v28 }
 0x5e8   : > { %10241 = vmatpush1.bf16.msra.mxu1 %v14186_v31  ;;  %v6615_v31 = vld [vmem:[#allocation16 + $0x3b8] sm:$0xff] }
 0x5e9   : > { %10242 = vmatprep.subr.bf16.mxu1 %v14195_v51  ;;  %10039 = vmatpush1.bf16.msra.mxu0 %v14192_v39  ;;  %v6618_v51 = vld [vmem:[#allocation16 + $0x3d0] sm:$0xff]  ;;  %v14227_v42 = vcombine.high %v6611_v30, %v6615_v31  ;;  %v14226_v55 = vcombine.low %v6611_v30, %v6615_v31 }
 0x5ea   : > { %10040 = vmatprep.subr.bf16.mxu0 %v14201_v52  ;;  %v6622_v39 = vld [vmem:[#allocation16 + $0x3f0] sm:$0xff]  ;;  %v6619_v52 = vld [vmem:[#allocation16 + $0x3d8] sm:$0xff] }
 0x5eb   : > { %v14233_v57 = vcombine.high %v6618_v51, %v6622_v39  ;;  %v14232_v6 = vcombine.low %v6618_v51, %v6622_v39 }
 0x5ec   : > { %10243 = vmatpush1.bf16.msra.mxu1 %v14194_v53  ;;  %v6623_v53 = vld [vmem:[#allocation16 + $0x3f8] sm:$0xff] }
 0x5ed   : > { %10244 = vmatprep.subr.bf16.mxu1 %v14203_v27  ;;  %10041 = vmatpush1.bf16.msra.mxu0 %v14200_v0  ;;  %v6626_v27 = vld [vmem:[#allocation16 + $0x410] sm:$0xff]  ;;  %v14235_v2 = vcombine.high %v6619_v52, %v6623_v53  ;;  %v14234_v36 = vcombine.low %v6619_v52, %v6623_v53 }
 0x5ee   : > { %10042 = vmatprep.subr.bf16.mxu0 %v14209_v8  ;;  %v6630_v0 = vld [vmem:[#allocation16 + $0x430] sm:$0xff]  ;;  %v6627_v8 = vld [vmem:[#allocation16 + $0x418] sm:$0xff] }
 0x5ef   : > { %v14241_v15 = vcombine.high %v6626_v27, %v6630_v0  ;;  %v14240_v41 = vcombine.low %v6626_v27, %v6630_v0 }
 0x5f0   : > { %10245 = vmatpush1.bf16.msra.mxu1 %v14202_v4  ;;  %v6631_v4 = vld [vmem:[#allocation16 + $0x438] sm:$0xff] }
 0x5f1   : > { %10246 = vmatprep.subr.bf16.mxu1 %v14211_v23  ;;  %10043 = vmatpush1.bf16.msra.mxu0 %v14208_v19  ;;  %v6634_v23 = vld [vmem:[#allocation16 + $0x450] sm:$0xff]  ;;  %v14243_v22 = vcombine.high %v6627_v8, %v6631_v4  ;;  %v14242_v28 = vcombine.low %v6627_v8, %v6631_v4  ;;  %v6659_v4 = vld [vmem:[#allocation16 + $0x518] sm:$0xff] }
 0x5f2   : > { %10044 = vmatprep.subr.bf16.mxu0 %v14217_v58  ;;  %v6638_v19 = vld [vmem:[#allocation16 + $0x470] sm:$0xff]  ;;  %v6635_v58 = vld [vmem:[#allocation16 + $0x458] sm:$0xff] }
 0x5f3   : > { %v14249_v26 = vcombine.high %v6634_v23, %v6638_v19  ;;  %v14248_v31 = vcombine.low %v6634_v23, %v6638_v19  ;;  %v6666_v23 = vld [vmem:[#allocation16 + $0x550] sm:$0xff] }
 0x5f4   : > { %10247 = vmatpush1.bf16.msra.mxu1 %v14210_v25  ;;  %v6639_v25 = vld [vmem:[#allocation16 + $0x478] sm:$0xff]  ;;  %v6670_v19 = vld [vmem:[#allocation16 + $0x570] sm:$0xff] }
 0x5f5   : > { %10248 = vmatprep.subr.bf16.mxu1 %v14219_v9  ;;  %10045 = vmatpush1.bf16.msra.mxu0 %v14216_v63  ;;  %v6642_v9 = vld [vmem:[#allocation16 + $0x490] sm:$0xff]  ;;  %v14251_v30 = vcombine.high %v6635_v58, %v6639_v25  ;;  %v14250_v39 = vcombine.low %v6635_v58, %v6639_v25  ;;  %v6667_v58 = vld [vmem:[#allocation16 + $0x558] sm:$0xff] }
 0x5f6   : > { %10046 = vmatprep.subr.bf16.mxu0 %v14225_v37  ;;  %v6646_v63 = vld [vmem:[#allocation16 + $0x4b0] sm:$0xff]  ;;  %v6643_v37 = vld [vmem:[#allocation16 + $0x498] sm:$0xff] }
 0x5f7   : > { %v14257_v51 = vcombine.high %v6642_v9, %v6646_v63  ;;  %v14256_v53 = vcombine.low %v6642_v9, %v6646_v63  ;;  %v6671_v25 = vld [vmem:[#allocation16 + $0x578] sm:$0xff]  ;;  %v6674_v9 = vld [vmem:[#allocation16 + $0x590] sm:$0xff] }
 0x5f8   : > { %10249 = vmatpush1.bf16.msra.mxu1 %v14218_v50  ;;  %v6647_v50 = vld [vmem:[#allocation16 + $0x4b8] sm:$0xff]  ;;  %v6678_v63 = vld [vmem:[#allocation16 + $0x5b0] sm:$0xff] }
 0x5f9   : > { %10250 = vmatprep.subr.bf16.mxu1 %v14227_v42  ;;  %10047 = vmatpush1.bf16.msra.mxu0 %v14224_v44  ;;  %v6650_v42 = vld [vmem:[#allocation16 + $0x4d0] sm:$0xff]  ;;  %v14259_v52 = vcombine.high %v6643_v37, %v6647_v50  ;;  %v14258_v0 = vcombine.low %v6643_v37, %v6647_v50  ;;  %v6679_v37 = vld [vmem:[#allocation16 + $0x5b8] sm:$0xff]  ;;  %v14282_v50 = vcombine.low %v6667_v58, %v6671_v25 }
 0x5fa   : > { %10048 = vmatprep.subr.bf16.mxu0 %v14233_v57  ;;  %v6654_v44 = vld [vmem:[#allocation16 + $0x4f0] sm:$0xff]  ;;  %v6651_v57 = vld [vmem:[#allocation16 + $0x4d8] sm:$0xff] }
 0x5fb   : > { %v14265_v27 = vcombine.high %v6650_v42, %v6654_v44  ;;  %v14264_v8 = vcombine.low %v6650_v42, %v6654_v44  ;;  %v14288_v44 = vcombine.low %v6674_v9, %v6678_v63 }
 0x5fc   : > { %10251 = vmatpush1.bf16.msra.mxu1 %v14226_v55  ;;  %v6655_v55 = vld [vmem:[#allocation16 + $0x4f8] sm:$0xff] }
 0x5fd   : > { %10252 = vmatprep.subr.bf16.mxu1 %v14235_v2  ;;  %10049 = vmatpush1.bf16.msra.mxu0 %v14232_v6  ;;  %v6658_v2 = vld [vmem:[#allocation16 + $0x510] sm:$0xff]  ;;  %v14267_v6 = vcombine.high %v6651_v57, %v6655_v55 }
 0x5fe   : > { %10069 = vmatprep.subr.bf16.mxu0 %v14241_v15 }
 0x600   : > { %10253 = vmatpush1.bf16.msra.mxu1 %v14234_v36  ;;  %10051 = vmatmul.mubr.bf16.vlgmr.msra.gmra.mrb[20].mxu0 %v17427_v1  ;;  %v14266_v36 = vcombine.low %v6651_v57, %v6655_v55 }
 0x601   : > { %10273 = vmatprep.subr.bf16.mxu1 %v14243_v22  ;;  %10070 = vmatpush1.bf16.msra.mxu0 %v14240_v41 }
 0x602   : > { %10060 = vmatprep.mubr.bf16.mxu0 %v17429_v7  ;;  %10071 = vmatprep.subr.bf16.mxu0 %v14249_v26  ;;  %v14281_v26 = vcombine.high %v6666_v23, %v6670_v19 }
 0x603   : > { %10255 = vmatmul.mubr.bf16.vlgmr.msra.gmra.mrb[24].mxu1 %v17427_v1  ;;  %v6662_v1 = vld [vmem:[#allocation16 + $0x530] sm:$0xff] }
 0x604   : > { %10274 = vmatpush1.bf16.msra.mxu1 %v14242_v28  ;;  %10264 = vmatprep.mubr.bf16.mxu1 %v17429_v7  ;;  %v6663_v7 = vld [vmem:[#allocation16 + $0x538] sm:$0xff]  ;;  %v14273_v15 = vcombine.high %v6658_v2, %v6662_v1  ;;  %v14272_v41 = vcombine.low %v6658_v2, %v6662_v1 }
 0x605   : > { %10275 = vmatprep.subr.bf16.mxu1 %v14251_v30  ;;  %10072 = vmatpush1.bf16.msra.mxu0 %v14248_v31  ;;  %v14275_v22 = vcombine.high %v6659_v4, %v6663_v7  ;;  %v14274_v28 = vcombine.low %v6659_v4, %v6663_v7  ;;  %v14280_v30 = vcombine.low %v6666_v23, %v6670_v19  ;;  %v6675_v31 = vld [vmem:[#allocation16 + $0x598] sm:$0xff] }
 0x606   : > { %10073 = vmatprep.subr.bf16.mxu0 %v14257_v51  ;;  %v6682_v51 = vld [vmem:[#allocation16 + $0x5d0] sm:$0xff]  ;;  %v14291_v42 = vcombine.high %v6675_v31, %v6679_v37  ;;  %v14290_v55 = vcombine.low %v6675_v31, %v6679_v37 }
 0x608   : > { %10276 = vmatpush1.bf16.msra.mxu1 %v14250_v39  ;;  %10061 = vmatmul.mubr.bf16.gmra.mrb[24].mxu0 %v17441_v18  ;;  %v6686_v39 = vld [vmem:[#allocation16 + $0x5f0] sm:$0xff] }
 0x609   : > { %10277 = vmatprep.subr.bf16.mxu1 %v14259_v52  ;;  %10074 = vmatpush1.bf16.msra.mxu0 %v14256_v53  ;;  %v6683_v52 = vld [vmem:[#allocation16 + $0x5d8] sm:$0xff]  ;;  %v14297_v57 = vcombine.high %v6682_v51, %v6686_v39  ;;  %v14296_v1 = vcombine.low %v6682_v51, %v6686_v39 }
 0x60a   : > { %10101 = vmatprep.mubr.bf16.mxu0 %v17445_v24  ;;  %10075 = vmatprep.subr.bf16.mxu0 %v14265_v27  ;;  %v6687_v53 = vld [vmem:[#allocation16 + $0x5f8] sm:$0xff]  ;;  %v6690_v27 = vld [vmem:[#allocation16 + $0x610] sm:$0xff] }
 0x60b   : > { %10265 = vmatmul.mubr.bf16.gmra.mrb[28].mxu1 %v17441_v18  ;;  %v14283_v18 = vcombine.high %v6667_v58, %v6671_v25  ;;  %v14299_v2 = vcombine.high %v6683_v52, %v6687_v53  ;;  %v14298_v7 = vcombine.low %v6683_v52, %v6687_v53 }
 0x60c   : > { %10278 = vmatpush1.bf16.msra.mxu1 %v14258_v0  ;;  %10305 = vmatprep.mubr.bf16.mxu1 %v17445_v24  ;;  %v14289_v24 = vcombine.high %v6674_v9, %v6678_v63  ;;  %v6694_v0 = vld [vmem:[#allocation16 + $0x630] sm:$0xff] }
 0x60d   : > { %10279 = vmatprep.subr.bf16.mxu1 %v14267_v6  ;;  %10076 = vmatpush1.bf16.msra.mxu0 %v14264_v8  ;;  %v6691_v6 = vld [vmem:[#allocation16 + $0x618] sm:$0xff]  ;;  %v14305_v4 = vcombine.high %v6690_v27, %v6694_v0  ;;  %v14304_v19 = vcombine.low %v6690_v27, %v6694_v0 }
 0x60e   : > { %10077 = vmatprep.subr.bf16.mxu0 %v14273_v15  ;;  %v6695_v8 = vld [vmem:[#allocation16 + $0x638] sm:$0xff]  ;;  %v6698_v15 = vld [vmem:[#allocation16 + $0x650] sm:$0xff] }
 0x60f   : > { %v14307_v23 = vcombine.high %v6691_v6, %v6695_v8  ;;  %v14306_v25 = vcombine.low %v6691_v6, %v6695_v8 }
 0x610   : > { %10280 = vmatpush1.bf16.msra.mxu1 %v14266_v36  ;;  %v6702_v36 = vld [vmem:[#allocation16 + $0x670] sm:$0xff] }
 0x611   : > { %10281 = vmatprep.subr.bf16.mxu1 %v14275_v22  ;;  %10078 = vmatpush1.bf16.msra.mxu0 %v14272_v41  ;;  %v6699_v22 = vld [vmem:[#allocation16 + $0x658] sm:$0xff]  ;;  %v14313_v58 = vcombine.high %v6698_v15, %v6702_v36  ;;  %v14312_v63 = vcombine.low %v6698_v15, %v6702_v36 }
 0x612   : > { %10079 = vmatprep.subr.bf16.mxu0 %v14281_v26  ;;  %v6703_v41 = vld [vmem:[#allocation16 + $0x678] sm:$0xff]  ;;  %v6706_v26 = vld [vmem:[#allocation16 + $0x690] sm:$0xff] }
 0x613   : > { %v14315_v9 = vcombine.high %v6699_v22, %v6703_v41  ;;  %v14314_v37 = vcombine.low %v6699_v22, %v6703_v41 }
 0x614   : > { %10282 = vmatpush1.bf16.msra.mxu1 %v14274_v28  ;;  %v6710_v28 = vld [vmem:[#allocation16 + $0x6b0] sm:$0xff] }
 0x615   : > { %10283 = vmatprep.subr.bf16.mxu1 %v14283_v18  ;;  %10080 = vmatpush1.bf16.msra.mxu0 %v14280_v30  ;;  %v6707_v18 = vld [vmem:[#allocation16 + $0x698] sm:$0xff]  ;;  %v14321_v31 = vcombine.high %v6706_v26, %v6710_v28  ;;  %v14320_v39 = vcombine.low %v6706_v26, %v6710_v28 }
 0x616   : > { %10081 = vmatprep.subr.bf16.mxu0 %v14289_v24  ;;  %v6711_v30 = vld [vmem:[#allocation16 + $0x6b8] sm:$0xff]  ;;  %v6714_v24 = vld [vmem:[#allocation16 + $0x6d0] sm:$0xff] }
 0x617   : > { %v14323_v51 = vcombine.high %v6707_v18, %v6711_v30  ;;  %v14322_v53 = vcombine.low %v6707_v18, %v6711_v30 }
 0x618   : > { %10284 = vmatpush1.bf16.msra.mxu1 %v14282_v50  ;;  %v6718_v50 = vld [vmem:[#allocation16 + $0x6f0] sm:$0xff] }
 0x619   : > { %10285 = vmatprep.subr.bf16.mxu1 %v14291_v42  ;;  %10082 = vmatpush1.bf16.msra.mxu0 %v14288_v44  ;;  %v6715_v42 = vld [vmem:[#allocation16 + $0x6d8] sm:$0xff]  ;;  %v14329_v52 = vcombine.high %v6714_v24, %v6718_v50  ;;  %v14328_v0 = vcombine.low %v6714_v24, %v6718_v50 }
 0x61a   : > { %10083 = vmatprep.subr.bf16.mxu0 %v14297_v57  ;;  %v6719_v44 = vld [vmem:[#allocation16 + $0x6f8] sm:$0xff]  ;;  %v6722_v57 = vld [vmem:[#allocation16 + $0x710] sm:$0xff] }
 0x61b   : > { %v14331_v27 = vcombine.high %v6715_v42, %v6719_v44  ;;  %v14330_v8 = vcombine.low %v6715_v42, %v6719_v44 }
 0x61c   : > { %10286 = vmatpush1.bf16.msra.mxu1 %v14290_v55  ;;  %v6726_v55 = vld [vmem:[#allocation16 + $0x730] sm:$0xff] }
 0x61d   : > { %10287 = vmatprep.subr.bf16.mxu1 %v14299_v2  ;;  %10084 = vmatpush1.bf16.msra.mxu0 %v14296_v1  ;;  %v6723_v2 = vld [vmem:[#allocation16 + $0x718] sm:$0xff]  ;;  %v14337_v6 = vcombine.high %v6722_v57, %v6726_v55  ;;  %v14336_v36 = vcombine.low %v6722_v57, %v6726_v55 }
 0x61e   : > { %10085 = vmatprep.subr.bf16.mxu0 %v14305_v4  ;;  %v6727_v1 = vld [vmem:[#allocation16 + $0x738] sm:$0xff]  ;;  %v6730_v4 = vld [vmem:[#allocation16 + $0x750] sm:$0xff] }
 0x61f   : > { %v14339_v15 = vcombine.high %v6723_v2, %v6727_v1  ;;  %v14338_v41 = vcombine.low %v6723_v2, %v6727_v1 }
 0x620   : > { %10288 = vmatpush1.bf16.msra.mxu1 %v14298_v7  ;;  %v6734_v7 = vld [vmem:[#allocation16 + $0x770] sm:$0xff] }
 0x621   : > { %10289 = vmatprep.subr.bf16.mxu1 %v14307_v23  ;;  %10086 = vmatpush1.bf16.msra.mxu0 %v14304_v19  ;;  %v6731_v23 = vld [vmem:[#allocation16 + $0x758] sm:$0xff]  ;;  %v14345_v22 = vcombine.high %v6730_v4, %v6734_v7  ;;  %v14344_v28 = vcombine.low %v6730_v4, %v6734_v7 }
 0x622   : > { %10087 = vmatprep.subr.bf16.mxu0 %v14313_v58  ;;  %v6735_v19 = vld [vmem:[#allocation16 + $0x778] sm:$0xff]  ;;  %v6738_v58 = vld [vmem:[#allocation16 + $0x790] sm:$0xff] }
 0x623   : > { %v14347_v26 = vcombine.high %v6731_v23, %v6735_v19  ;;  %v14346_v30 = vcombine.low %v6731_v23, %v6735_v19 }
 0x624   : > { %10290 = vmatpush1.bf16.msra.mxu1 %v14306_v25  ;;  %v6742_v25 = vld [vmem:[#allocation16 + $0x7b0] sm:$0xff] }
 0x625   : > { %10291 = vmatprep.subr.bf16.mxu1 %v14315_v9  ;;  %10088 = vmatpush1.bf16.msra.mxu0 %v14312_v63  ;;  %v6739_v9 = vld [vmem:[#allocation16 + $0x798] sm:$0xff]  ;;  %v14353_v18 = vcombine.high %v6738_v58, %v6742_v25  ;;  %v14352_v50 = vcombine.low %v6738_v58, %v6742_v25 }
 0x626   : > { %10089 = vmatprep.subr.bf16.mxu0 %v14321_v31  ;;  %v6743_v63 = vld [vmem:[#allocation16 + $0x7b8] sm:$0xff]  ;;  %v6746_v31 = vld [vmem:[#allocation16 + $0x7d0] sm:$0xff] }
 0x627   : > { %v14355_v24 = vcombine.high %v6739_v9, %v6743_v63  ;;  %v14354_v44 = vcombine.low %v6739_v9, %v6743_v63 }
 0x628   : > { %10292 = vmatpush1.bf16.msra.mxu1 %v14314_v37  ;;  %v6750_v37 = vld [vmem:[#allocation16 + $0x7f0] sm:$0xff] }
 0x629   : > { %10293 = vmatprep.subr.bf16.mxu1 %v14323_v51  ;;  %10090 = vmatpush1.bf16.msra.mxu0 %v14320_v39  ;;  %v6747_v51 = vld [vmem:[#allocation16 + $0x7d8] sm:$0xff]  ;;  %v14361_v42 = vcombine.high %v6746_v31, %v6750_v37  ;;  %v14360_v55 = vcombine.low %v6746_v31, %v6750_v37 }
 0x62a   : > { %10091 = vmatprep.subr.bf16.mxu0 %v14329_v52  ;;  %v6751_v39 = vld [vmem:[#allocation16 + $0x7f8] sm:$0xff]  ;;  %v6754_v52 = vld [vmem:[#allocation16 + $0x810] sm:$0xff] }
 0x62b   : > { %v14363_v57 = vcombine.high %v6747_v51, %v6751_v39  ;;  %v14362_v1 = vcombine.low %v6747_v51, %v6751_v39 }
 0x62c   : > { %10294 = vmatpush1.bf16.msra.mxu1 %v14322_v53  ;;  %v6758_v53 = vld [vmem:[#allocation16 + $0x830] sm:$0xff] }
 0x62d   : > { %10295 = vmatprep.subr.bf16.mxu1 %v14331_v27  ;;  %10092 = vmatpush1.bf16.msra.mxu0 %v14328_v0  ;;  %v6755_v27 = vld [vmem:[#allocation16 + $0x818] sm:$0xff]  ;;  %v14369_v2 = vcombine.high %v6754_v52, %v6758_v53  ;;  %v14368_v7 = vcombine.low %v6754_v52, %v6758_v53 }
 0x62e   : > { %10093 = vmatprep.subr.bf16.mxu0 %v14337_v6  ;;  %v6759_v0 = vld [vmem:[#allocation16 + $0x838] sm:$0xff]  ;;  %v6762_v6 = vld [vmem:[#allocation16 + $0x850] sm:$0xff] }
 0x62f   : > { %v14371_v4 = vcombine.high %v6755_v27, %v6759_v0  ;;  %v14370_v19 = vcombine.low %v6755_v27, %v6759_v0  ;;  %v6787_v53 = vld [vmem:[#allocation16 + $0x918] sm:$0xff]  ;;  %v6794_v27 = vld [vmem:[#allocation16 + $0x950] sm:$0xff] }
 0x630   : > { %10296 = vmatpush1.bf16.msra.mxu1 %v14330_v8  ;;  %v6766_v8 = vld [vmem:[#allocation16 + $0x870] sm:$0xff] }
 0x631   : > { %10297 = vmatprep.subr.bf16.mxu1 %v14339_v15  ;;  %10094 = vmatpush1.bf16.msra.mxu0 %v14336_v36  ;;  %v6763_v15 = vld [vmem:[#allocation16 + $0x858] sm:$0xff]  ;;  %v14377_v23 = vcombine.high %v6762_v6, %v6766_v8  ;;  %v14376_v25 = vcombine.low %v6762_v6, %v6766_v8  ;;  %v6798_v0 = vld [vmem:[#allocation16 + $0x970] sm:$0xff] }
 0x632   : > { %10095 = vmatprep.subr.bf16.mxu0 %v14345_v22  ;;  %v6767_v36 = vld [vmem:[#allocation16 + $0x878] sm:$0xff]  ;;  %v6770_v22 = vld [vmem:[#allocation16 + $0x890] sm:$0xff] }
 0x633   : > { %v14379_v58 = vcombine.high %v6763_v15, %v6767_v36  ;;  %v14378_v63 = vcombine.low %v6763_v15, %v6767_v36  ;;  %v6795_v6 = vld [vmem:[#allocation16 + $0x958] sm:$0xff]  ;;  %v6802_v15 = vld [vmem:[#allocation16 + $0x990] sm:$0xff] }
 0x634   : > { %10298 = vmatpush1.bf16.msra.mxu1 %v14338_v41  ;;  %v6774_v41 = vld [vmem:[#allocation16 + $0x8b0] sm:$0xff]  ;;  %v6799_v8 = vld [vmem:[#allocation16 + $0x978] sm:$0xff] }
 0x635   : > { %10299 = vmatprep.subr.bf16.mxu1 %v14347_v26  ;;  %10096 = vmatpush1.bf16.msra.mxu0 %v14344_v28  ;;  %v6771_v26 = vld [vmem:[#allocation16 + $0x898] sm:$0xff]  ;;  %v14385_v9 = vcombine.high %v6770_v22, %v6774_v41  ;;  %v14384_v37 = vcombine.low %v6770_v22, %v6774_v41  ;;  %v6806_v36 = vld [vmem:[#allocation16 + $0x9b0] sm:$0xff]  ;;  %v14410_v41 = vcombine.low %v6795_v6, %v6799_v8 }
 0x636   : > { %10097 = vmatprep.subr.bf16.mxu0 %v14353_v18  ;;  %v6775_v28 = vld [vmem:[#allocation16 + $0x8b8] sm:$0xff]  ;;  %v6778_v18 = vld [vmem:[#allocation16 + $0x8d0] sm:$0xff] }
 0x637   : > { %v14387_v31 = vcombine.high %v6771_v26, %v6775_v28  ;;  %v14386_v39 = vcombine.low %v6771_v26, %v6775_v28  ;;  %v6807_v22 = vld [vmem:[#allocation16 + $0x9b8] sm:$0xff]  ;;  %v14416_v28 = vcombine.low %v6802_v15, %v6806_v36 }
 0x638   : > { %10300 = vmatpush1.bf16.msra.mxu1 %v14346_v30  ;;  %v6782_v30 = vld [vmem:[#allocation16 + $0x8f0] sm:$0xff] }
 0x639   : > { %10301 = vmatprep.subr.bf16.mxu1 %v14355_v24  ;;  %10098 = vmatpush1.bf16.msra.mxu0 %v14352_v50  ;;  %v6779_v24 = vld [vmem:[#allocation16 + $0x8d8] sm:$0xff]  ;;  %v14393_v51 = vcombine.high %v6778_v18, %v6782_v30  ;;  %v14392_v52 = vcombine.low %v6778_v18, %v6782_v30 }
 0x63a   : > { %10099 = vmatprep.subr.bf16.mxu0 %v14361_v42  ;;  %v6783_v50 = vld [vmem:[#allocation16 + $0x8f8] sm:$0xff]  ;;  %v6786_v42 = vld [vmem:[#allocation16 + $0x910] sm:$0xff] }
 0x63c   : > { %10302 = vmatpush1.bf16.msra.mxu1 %v14354_v44  ;;  %v14395_v44 = vcombine.high %v6779_v24, %v6783_v50 }
 0x63d   : > { %10303 = vmatprep.subr.bf16.mxu1 %v14363_v57  ;;  %10100 = vmatpush1.bf16.msra.mxu0 %v14360_v55  ;;  %v14394_v55 = vcombine.low %v6779_v24, %v6783_v50 }
 0x63e   : > { %10120 = vmatprep.subr.bf16.mxu0 %v14369_v2 }
 0x640   : > { %10304 = vmatpush1.bf16.msra.mxu1 %v14362_v1  ;;  %10102 = vmatmul.mubr.bf16.vlgmr.msra.gmra.mrb[20].mxu0 %v17452_v5 }
 0x641   : > { %10324 = vmatprep.subr.bf16.mxu1 %v14371_v4  ;;  %10121 = vmatpush1.bf16.msra.mxu0 %v14368_v7  ;;  %v14409_v4 = vcombine.high %v6794_v27, %v6798_v0 }
 0x642   : > { %10111 = vmatprep.mubr.bf16.mxu0 %v17454_v3  ;;  %10122 = vmatprep.subr.bf16.mxu0 %v14377_v23  ;;  %v14408_v23 = vcombine.low %v6794_v27, %v6798_v0 }
 0x643   : > { %10306 = vmatmul.mubr.bf16.vlgmr.msra.gmra.mrb[24].mxu1 %v17452_v5  ;;  %v6790_v5 = vld [vmem:[#allocation16 + $0x930] sm:$0xff] }
 0x644   : > { %10325 = vmatpush1.bf16.msra.mxu1 %v14370_v19  ;;  %10315 = vmatprep.mubr.bf16.mxu1 %v17454_v3  ;;  %v6791_v3 = vld [vmem:[#allocation16 + $0x938] sm:$0xff]  ;;  %v14401_v57 = vcombine.high %v6786_v42, %v6790_v5  ;;  %v14400_v1 = vcombine.low %v6786_v42, %v6790_v5 }
 0x645   : > { %10326 = vmatprep.subr.bf16.mxu1 %v14379_v58  ;;  %10123 = vmatpush1.bf16.msra.mxu0 %v14376_v25  ;;  %v14403_v2 = vcombine.high %v6787_v53, %v6791_v3  ;;  %v14402_v7 = vcombine.low %v6787_v53, %v6791_v3  ;;  %v6803_v19 = vld [vmem:[#allocation16 + $0x998] sm:$0xff]  ;;  %v6810_v58 = vld [vmem:[#allocation16 + $0x9d0] sm:$0xff] }
 0x646   : > { %10124 = vmatprep.subr.bf16.mxu0 %v14385_v9  ;;  %v6814_v25 = vld [vmem:[#allocation16 + $0x9f0] sm:$0xff]  ;;  %v14419_v26 = vcombine.high %v6803_v19, %v6807_v22  ;;  %v6811_v9 = vld [vmem:[#allocation16 + $0x9d8] sm:$0xff]  ;;  %v14418_v30 = vcombine.low %v6803_v19, %v6807_v22 }
 0x647   : > { %v14425_v18 = vcombine.high %v6810_v58, %v6814_v25  ;;  %v14424_v50 = vcombine.low %v6810_v58, %v6814_v25 }
 0x648   : > { %10327 = vmatpush1.bf16.msra.mxu1 %v14378_v63  ;;  %10112 = vmatmul.mubr.bf16.gmra.mrb[24].mxu0 %v17466_v21  ;;  %v6815_v63 = vld [vmem:[#allocation16 + $0x9f8] sm:$0xff] }
 0x649   : > { %10328 = vmatprep.subr.bf16.mxu1 %v14387_v31  ;;  %10125 = vmatpush1.bf16.msra.mxu0 %v14384_v37  ;;  %v6818_v31 = vld [vmem:[#allocation16 + $0xa10] sm:$0xff]  ;;  %v14427_v24 = vcombine.high %v6811_v9, %v6815_v63  ;;  %v14426_v5 = vcombine.low %v6811_v9, %v6815_v63 }
 0x64a   : > { %10152 = vmatprep.mubr.bf16.mxu0 %v17470_v43  ;;  %10126 = vmatprep.subr.bf16.mxu0 %v14393_v51  ;;  %v6822_v37 = vld [vmem:[#allocation16 + $0xa30] sm:$0xff]  ;;  %v6819_v51 = vld [vmem:[#allocation16 + $0xa18] sm:$0xff] }
 0x64b   : > { %10316 = vmatmul.mubr.bf16.gmra.mrb[28].mxu1 %v17466_v21  ;;  %v14411_v21 = vcombine.high %v6795_v6, %v6799_v8  ;;  %v14433_v42 = vcombine.high %v6818_v31, %v6822_v37  ;;  %v14432_v3 = vcombine.low %v6818_v31, %v6822_v37 }
 0x64c   : > { %10329 = vmatpush1.bf16.msra.mxu1 %v14386_v39  ;;  %10356 = vmatprep.mubr.bf16.mxu1 %v17470_v43  ;;  %v14417_v43 = vcombine.high %v6802_v15, %v6806_v36  ;;  %v6823_v39 = vld [vmem:[#allocation16 + $0xa38] sm:$0xff] }
 0x64d   : > { %10330 = vmatprep.subr.bf16.mxu1 %v14395_v44  ;;  %10127 = vmatpush1.bf16.msra.mxu0 %v14392_v52  ;;  %v6826_v44 = vld [vmem:[#allocation16 + $0xa50] sm:$0xff]  ;;  %v14435_v53 = vcombine.high %v6819_v51, %v6823_v39  ;;  %v14434_v0 = vcombine.low %v6819_v51, %v6823_v39 }
 0x64e   : > { %10128 = vmatprep.subr.bf16.mxu0 %v14401_v57  ;;  %v6830_v52 = vld [vmem:[#allocation16 + $0xa70] sm:$0xff]  ;;  %v6827_v57 = vld [vmem:[#allocation16 + $0xa58] sm:$0xff] }
 0x64f   : > { %v14441_v27 = vcombine.high %v6826_v44, %v6830_v52  ;;  %v14440_v8 = vcombine.low %v6826_v44, %v6830_v52 }
 0x650   : > { %10331 = vmatpush1.bf16.msra.mxu1 %v14394_v55  ;;  %v6831_v55 = vld [vmem:[#allocation16 + $0xa78] sm:$0xff] }
 0x651   : > { %10332 = vmatprep.subr.bf16.mxu1 %v14403_v2  ;;  %10129 = vmatpush1.bf16.msra.mxu0 %v14400_v1  ;;  %v6834_v2 = vld [vmem:[#allocation16 + $0xa90] sm:$0xff]  ;;  %v14443_v6 = vcombine.high %v6827_v57, %v6831_v55  ;;  %v14442_v36 = vcombine.low %v6827_v57, %v6831_v55 }
 0x652   : > { %10130 = vmatprep.subr.bf16.mxu0 %v14409_v4  ;;  %v6838_v1 = vld [vmem:[#allocation16 + $0xab0] sm:$0xff]  ;;  %v6835_v4 = vld [vmem:[#allocation16 + $0xa98] sm:$0xff] }
 0x653   : > { %v14449_v15 = vcombine.high %v6834_v2, %v6838_v1  ;;  %v14448_v22 = vcombine.low %v6834_v2, %v6838_v1 }
 0x654   : > { %10333 = vmatpush1.bf16.msra.mxu1 %v14402_v7  ;;  %v6839_v7 = vld [vmem:[#allocation16 + $0xab8] sm:$0xff] }
 0x655   : > { %10334 = vmatprep.subr.bf16.mxu1 %v14411_v21  ;;  %10131 = vmatpush1.bf16.msra.mxu0 %v14408_v23  ;;  %v6842_v21 = vld [vmem:[#allocation16 + $0xad0] sm:$0xff]  ;;  %v14451_v19 = vcombine.high %v6835_v4, %v6839_v7  ;;  %v14450_v25 = vcombine.low %v6835_v4, %v6839_v7 }
 0x656   : > { %10132 = vmatprep.subr.bf16.mxu0 %v14417_v43  ;;  %v6846_v23 = vld [vmem:[#allocation16 + $0xaf0] sm:$0xff]  ;;  %v6843_v43 = vld [vmem:[#allocation16 + $0xad8] sm:$0xff] }
 0x657   : > { %v14457_v58 = vcombine.high %v6842_v21, %v6846_v23  ;;  %v14456_v63 = vcombine.low %v6842_v21, %v6846_v23 }
 0x658   : > { %10335 = vmatpush1.bf16.msra.mxu1 %v14410_v41  ;;  %v6847_v41 = vld [vmem:[#allocation16 + $0xaf8] sm:$0xff] }
 0x659   : > { %10336 = vmatprep.subr.bf16.mxu1 %v14419_v26  ;;  %10133 = vmatpush1.bf16.msra.mxu0 %v14416_v28  ;;  %v6850_v26 = vld [vmem:[#allocation16 + $0xb10] sm:$0xff]  ;;  %v14459_v9 = vcombine.high %v6843_v43, %v6847_v41  ;;  %v14458_v37 = vcombine.low %v6843_v43, %v6847_v41 }
 0x65a   : > { %10134 = vmatprep.subr.bf16.mxu0 %v14425_v18  ;;  %v6854_v28 = vld [vmem:[#allocation16 + $0xb30] sm:$0xff]  ;;  %v6851_v18 = vld [vmem:[#allocation16 + $0xb18] sm:$0xff] }
 0x65b   : > { %v14465_v31 = vcombine.high %v6850_v26, %v6854_v28  ;;  %v14464_v39 = vcombine.low %v6850_v26, %v6854_v28 }
 0x65c   : > { %10337 = vmatpush1.bf16.msra.mxu1 %v14418_v30  ;;  %v6855_v30 = vld [vmem:[#allocation16 + $0xb38] sm:$0xff] }
 0x65d   : > { %10338 = vmatprep.subr.bf16.mxu1 %v14427_v24  ;;  %10135 = vmatpush1.bf16.msra.mxu0 %v14424_v50  ;;  %v6858_v24 = vld [vmem:[#allocation16 + $0xb50] sm:$0xff]  ;;  %v14467_v51 = vcombine.high %v6851_v18, %v6855_v30  ;;  %v14466_v52 = vcombine.low %v6851_v18, %v6855_v30 }
 0x65e   : > { %10136 = vmatprep.subr.bf16.mxu0 %v14433_v42  ;;  %v6862_v50 = vld [vmem:[#allocation16 + $0xb70] sm:$0xff]  ;;  %v6859_v42 = vld [vmem:[#allocation16 + $0xb58] sm:$0xff] }
 0x65f   : > { %v14473_v44 = vcombine.high %v6858_v24, %v6862_v50  ;;  %v14472_v55 = vcombine.low %v6858_v24, %v6862_v50 }
 0x660   : > { %10339 = vmatpush1.bf16.msra.mxu1 %v14426_v5  ;;  %v6863_v5 = vld [vmem:[#allocation16 + $0xb78] sm:$0xff] }
 0x661   : > { %10340 = vmatprep.subr.bf16.mxu1 %v14435_v53  ;;  %10137 = vmatpush1.bf16.msra.mxu0 %v14432_v3  ;;  %v6866_v53 = vld [vmem:[#allocation16 + $0xb90] sm:$0xff]  ;;  %v14475_v57 = vcombine.high %v6859_v42, %v6863_v5  ;;  %v14474_v1 = vcombine.low %v6859_v42, %v6863_v5 }
 0x662   : > { %10138 = vmatprep.subr.bf16.mxu0 %v14441_v27  ;;  %v6870_v3 = vld [vmem:[#allocation16 + $0xbb0] sm:$0xff]  ;;  %v6867_v27 = vld [vmem:[#allocation16 + $0xb98] sm:$0xff] }
 0x663   : > { %v14481_v2 = vcombine.high %v6866_v53, %v6870_v3  ;;  %v14480_v7 = vcombine.low %v6866_v53, %v6870_v3 }
 0x664   : > { %10341 = vmatpush1.bf16.msra.mxu1 %v14434_v0  ;;  %v6871_v0 = vld [vmem:[#allocation16 + $0xbb8] sm:$0xff] }
 0x665   : > { %10342 = vmatprep.subr.bf16.mxu1 %v14443_v6  ;;  %10139 = vmatpush1.bf16.msra.mxu0 %v14440_v8  ;;  %v6874_v6 = vld [vmem:[#allocation16 + $0xbd0] sm:$0xff]  ;;  %v14483_v4 = vcombine.high %v6867_v27, %v6871_v0  ;;  %v14482_v23 = vcombine.low %v6867_v27, %v6871_v0 }
 0x666   : > { %10140 = vmatprep.subr.bf16.mxu0 %v14449_v15  ;;  %v6878_v8 = vld [vmem:[#allocation16 + $0xbf0] sm:$0xff]  ;;  %v6875_v15 = vld [vmem:[#allocation16 + $0xbd8] sm:$0xff] }
 0x667   : > { %v14489_v21 = vcombine.high %v6874_v6, %v6878_v8  ;;  %v14488_v41 = vcombine.low %v6874_v6, %v6878_v8 }
 0x668   : > { %10343 = vmatpush1.bf16.msra.mxu1 %v14442_v36  ;;  %v6879_v36 = vld [vmem:[#allocation16 + $0xbf8] sm:$0xff] }
 0x669   : > { %10344 = vmatprep.subr.bf16.mxu1 %v14451_v19  ;;  %10141 = vmatpush1.bf16.msra.mxu0 %v14448_v22  ;;  %v6882_v19 = vld [vmem:[#allocation16 + $0xc10] sm:$0xff]  ;;  %v14491_v43 = vcombine.high %v6875_v15, %v6879_v36  ;;  %v14490_v28 = vcombine.low %v6875_v15, %v6879_v36  ;;  %v6915_v36 = vld [vmem:[#allocation16 + $0xd18] sm:$0xff] }
 0x66a   : > { %10142 = vmatprep.subr.bf16.mxu0 %v14457_v58  ;;  %v6886_v22 = vld [vmem:[#allocation16 + $0xc30] sm:$0xff]  ;;  %v6883_v58 = vld [vmem:[#allocation16 + $0xc18] sm:$0xff] }
 0x66b   : > { %v14497_v26 = vcombine.high %v6882_v19, %v6886_v22  ;;  %v14496_v30 = vcombine.low %v6882_v19, %v6886_v22  ;;  %v6922_v19 = vld [vmem:[#allocation16 + $0xd50] sm:$0xff] }
 0x66c   : > { %10345 = vmatpush1.bf16.msra.mxu1 %v14450_v25  ;;  %v6887_v25 = vld [vmem:[#allocation16 + $0xc38] sm:$0xff]  ;;  %v6926_v22 = vld [vmem:[#allocation16 + $0xd70] sm:$0xff] }
 0x66d   : > { %10346 = vmatprep.subr.bf16.mxu1 %v14459_v9  ;;  %10143 = vmatpush1.bf16.msra.mxu0 %v14456_v63  ;;  %v6890_v9 = vld [vmem:[#allocation16 + $0xc50] sm:$0xff]  ;;  %v14499_v18 = vcombine.high %v6883_v58, %v6887_v25  ;;  %v14498_v50 = vcombine.low %v6883_v58, %v6887_v25  ;;  %v17614_v25 = vld [vmem:[#allocation17] sm:$0xff] }
 0x66e   : > { %10144 = vmatprep.subr.bf16.mxu0 %v14465_v31  ;;  %v6894_v63 = vld [vmem:[#allocation16 + $0xc70] sm:$0xff]  ;;  %v6891_v31 = vld [vmem:[#allocation16 + $0xc58] sm:$0xff] }
 0x66f   : > { %v14505_v24 = vcombine.high %v6890_v9, %v6894_v63  ;;  %v14504_v5 = vcombine.low %v6890_v9, %v6894_v63  ;;  %v17617_v9 = vsub.s32 2, %v17544_v62  ;;  %v17620_v63 = vsub.s32 3, %v17544_v62 }
 0x670   : > { %10347 = vmatpush1.bf16.msra.mxu1 %v14458_v37  ;;  %v6895_v37 = vld [vmem:[#allocation16 + $0xc78] sm:$0xff] }
 0x671   : > { %10348 = vmatprep.subr.bf16.mxu1 %v14467_v51  ;;  %10145 = vmatpush1.bf16.msra.mxu0 %v14464_v39  ;;  %v6898_v51 = vld [vmem:[#allocation16 + $0xc90] sm:$0xff]  ;;  %v14507_v42 = vcombine.high %v6891_v31, %v6895_v37  ;;  %v14506_v3 = vcombine.low %v6891_v31, %v6895_v37  ;;  %v17626_v37 = vrot.slane %v17614_v25, %v17549_v20 }
 0x672   : > { %10146 = vmatprep.subr.bf16.mxu0 %v14473_v44  ;;  %v6902_v39 = vld [vmem:[#allocation16 + $0xcb0] sm:$0xff]  ;;  %v6899_v44 = vld [vmem:[#allocation16 + $0xc98] sm:$0xff] }
 0x673   : > { %v14513_v53 = vcombine.high %v6898_v51, %v6902_v39  ;;  %v14512_v0 = vcombine.low %v6898_v51, %v6902_v39  ;;  %v17632_v51 = vrot.slane %v17614_v25, %v17552_v45  ;;  %v14536_v39 = vcombine.low %v6922_v19, %v6926_v22 }
 0x674   : > { %10349 = vmatpush1.bf16.msra.mxu1 %v14466_v52  ;;  %v6903_v52 = vld [vmem:[#allocation16 + $0xcb8] sm:$0xff] }
 0x675   : > { %10350 = vmatprep.subr.bf16.mxu1 %v14475_v57  ;;  %10147 = vmatpush1.bf16.msra.mxu0 %v14472_v55  ;;  %v6906_v57 = vld [vmem:[#allocation16 + $0xcd0] sm:$0xff]  ;;  %v14515_v27 = vcombine.high %v6899_v44, %v6903_v52  ;;  %v14514_v8 = vcombine.low %v6899_v44, %v6903_v52  ;;  %v17638_v52 = vrot.slane %v17614_v25, %v17617_v9 }
 0x676   : > { %10148 = vmatprep.subr.bf16.mxu0 %v14481_v2  ;;  %v6910_v55 = vld [vmem:[#allocation16 + $0xcf0] sm:$0xff]  ;;  %v6907_v2 = vld [vmem:[#allocation16 + $0xcd8] sm:$0xff] }
 0x677   : > { %v14521_v6 = vcombine.high %v6906_v57, %v6910_v55  ;;  %v14520_v15 = vcombine.low %v6906_v57, %v6910_v55  ;;  %v17644_v55 = vrot.slane %v17614_v25, %v17620_v63 }
 0x678   : > { %10351 = vmatpush1.bf16.msra.mxu1 %v14474_v1  ;;  %v6911_v1 = vld [vmem:[#allocation16 + $0xcf8] sm:$0xff] }
 0x679   : > { %10352 = vmatprep.subr.bf16.mxu1 %v14483_v4  ;;  %10149 = vmatpush1.bf16.msra.mxu0 %v14480_v7  ;;  %v6914_v4 = vld [vmem:[#allocation16 + $0xd10] sm:$0xff]  ;;  %v14523_v7 = vcombine.high %v6907_v2, %v6911_v1 }
 0x67a   : > { %10150 = vmatprep.subr.bf16.mxu0 %v14489_v21 }
 0x67c   : > { %10353 = vmatpush1.bf16.msra.mxu1 %v14482_v23  ;;  %v14522_v23 = vcombine.low %v6907_v2, %v6911_v1  ;;  %v6942_v2 = vld [vmem:[#allocation16 + $0xdf0] sm:$0xff] }
 0x67d   : > { %10354 = vmatprep.subr.bf16.mxu1 %v14491_v43  ;;  %10151 = vmatpush1.bf16.msra.mxu0 %v14488_v41  ;;  %v17612_v43 = vld [vmem:[#allocation11] sm:$0xff] }
 0x67e   : > { %10171 = vmatprep.subr.bf16.mxu0 %v14497_v26  ;;  %v6923_v26 = vld [vmem:[#allocation16 + $0xd58] sm:$0xff]  ;;  %v2191_v31 = vrot.slane %v17612_v43, %v17549_v20  ;;  %v2199_v44 = vrot.slane %v17612_v43, %v17617_v9 }
 0x680   : > { %10355 = vmatpush1.bf16.msra.mxu1 %v14490_v28  ;;  %10153 = vmatmul.mubr.bf16.vlgmr.msra.gmra.mrb[20].mxu0 %v17477_v11  ;;  %v6927_v28 = vld [vmem:[#allocation16 + $0xd78] sm:$0xff]  ;;  %v17647_v1 = vadd.f32 %v17406_v32, %v2191_v31  ;;  %v17659_v32 = vadd.f32 %v17499_v56, %v2199_v44 }
 0x681   : > { %10375 = vmatprep.subr.bf16.mxu1 %v14499_v18  ;;  %10172 = vmatpush1.bf16.msra.mxu0 %v14496_v30  ;;  %v6930_v18 = vld [vmem:[#allocation16 + $0xd90] sm:$0xff]  ;;  %v6947_v44 = vld [vmem:[#allocation16 + $0xe18] sm:$0xff] }
 0x682   : > { %10162 = vmatprep.mubr.bf16.mxu0 %v17479_v17  ;;  %10173 = vmatprep.subr.bf16.mxu0 %v14505_v24  ;;  %v6934_v30 = vld [vmem:[#allocation16 + $0xdb0] sm:$0xff]  ;;  %v14539_v24 = vcombine.high %v6923_v26, %v6927_v28 }
 0x683   : > { %10357 = vmatmul.mubr.bf16.vlgmr.msra.gmra.mrb[24].mxu1 %v17477_v11  ;;  %v6918_v11 = vld [vmem:[#allocation16 + $0xd30] sm:$0xff] }
 0x684   : > { %10376 = vmatpush1.bf16.msra.mxu1 %v14498_v50  ;;  %10366 = vmatprep.mubr.bf16.mxu1 %v17479_v17  ;;  %v6919_v17 = vld [vmem:[#allocation16 + $0xd38] sm:$0xff]  ;;  %v14529_v21 = vcombine.high %v6914_v4, %v6918_v11  ;;  %v14528_v58 = vcombine.low %v6914_v4, %v6918_v11  ;;  %v2195_v50 = vrot.slane %v17612_v43, %v17552_v45 }
 0x685   : > { %10377 = vmatprep.subr.bf16.mxu1 %v14507_v42  ;;  %10174 = vmatpush1.bf16.msra.mxu0 %v14504_v5  ;;  %v14531_v41 = vcombine.high %v6915_v36, %v6919_v17  ;;  %v6931_v42 = vld [vmem:[#allocation16 + $0xd98] sm:$0xff] }
 0x686   : > { %10175 = vmatprep.subr.bf16.mxu0 %v14513_v53  ;;  %v6935_v5 = vld [vmem:[#allocation16 + $0xdb8] sm:$0xff]  ;;  %v14545_v53 = vcombine.high %v6930_v18, %v6934_v30  ;;  %v17653_v11 = vadd.f32 %v17408_v35, %v2195_v50 }
 0x687   : > { %v14547_v4 = vcombine.high %v6931_v42, %v6935_v5  ;;  %v14546_v56 = vcombine.low %v6931_v42, %v6935_v5 }
 0x688   : > { %10378 = vmatpush1.bf16.msra.mxu1 %v14506_v3  ;;  %10163 = vmatmul.mubr.bf16.gmra.mrb[24].mxu0 %v17491_v29  ;;  %v2203_v3 = vrot.slane %v17612_v43, %v17620_v63 }
 0x689   : > { %10379 = vmatprep.subr.bf16.mxu1 %v14515_v27  ;;  %10176 = vmatpush1.bf16.msra.mxu0 %v14512_v0  ;;  %v14538_v27 = vcombine.low %v6923_v26, %v6927_v28  ;;  %v6938_v0 = vld [vmem:[#allocation16 + $0xdd0] sm:$0xff] }
 0x68a   : > { %10203 = vmatprep.mubr.bf16.mxu0 %v17495_v34  ;;  %10177 = vmatprep.subr.bf16.mxu0 %v14521_v6  ;;  %v17667_v26 = vadd.f32 %v17501_v60, %v2203_v3  ;;  %v6971_v60 = vld [vmem:[#allocation16 + $0xed8] sm:$0xff] }
 0x68b   : > { %10367 = vmatmul.mubr.bf16.gmra.mrb[28].mxu1 %v17491_v29  ;;  %v14537_v29 = vcombine.high %v6922_v19, %v6926_v22 }
 0x68c   : > { %10380 = vmatpush1.bf16.msra.mxu1 %v14514_v8  ;;  %10407 = vmatprep.mubr.bf16.mxu1 %v17495_v34  ;;  %v14530_v34 = vcombine.low %v6915_v36, %v6919_v17  ;;  %v14544_v17 = vcombine.low %v6930_v18, %v6934_v30  ;;  %v6950_v18 = vld [vmem:[#allocation16 + $0xe30] sm:$0xff] }
 0x68d   : > { %10381 = vmatprep.subr.bf16.mxu1 %v14523_v7  ;;  %10178 = vmatpush1.bf16.msra.mxu0 %v14520_v15 }
 0x68e   : > { %10179 = vmatprep.subr.bf16.mxu0 %v14529_v21  ;;  %v6939_v21 = vld [vmem:[#allocation16 + $0xdd8] sm:$0xff] }
 0x690   : > { %10382 = vmatpush1.bf16.msra.mxu1 %v14522_v23  ;;  %v6943_v23 = vld [vmem:[#allocation16 + $0xdf8] sm:$0xff] }
 0x691   : > { %10383 = vmatprep.subr.bf16.mxu1 %v14531_v41  ;;  %10180 = vmatpush1.bf16.msra.mxu0 %v14528_v58  ;;  %v14553_v58 = vcombine.high %v6938_v0, %v6942_v2  ;;  %v14554_v5 = vcombine.low %v6939_v21, %v6943_v23 }
 0x692   : > { %10181 = vmatprep.subr.bf16.mxu0 %v14537_v29 }
 0x693   : > { %v9797_v57 = vpop.f32.mrb[12].mxu0 }
 0x694   : > { %10384 = vmatpush1.bf16.msra.mxu1 %v14530_v34  ;;  %v17650_v6 = vadd.f32 %v9797_v57, %v17626_v37  ;;  %v9799_v8 = vpop.f32.mrb[13].mxu0  ;;  %v6946_v34 = vld [vmem:[#allocation16 + $0xe10] sm:$0xff] }
 0x695   : > { %10385 = vmatprep.subr.bf16.mxu1 %v14539_v24  ;;  %v17656_v15 = vadd.f32 %v9799_v8, %v17632_v51  ;;  %v9801_v36 = vpop.f32.mrb[14].mxu0  ;;  %10182 = vmatpush1.bf16.msra.mxu0 %v14536_v39  ;;  %v14555_v24 = vcombine.high %v6939_v21, %v6943_v23  ;;  %v14552_v39 = vcombine.low %v6938_v0, %v6942_v2  ;;  %v6954_v57 = vld [vmem:[#allocation16 + $0xe50] sm:$0xff] }
 0x696   : > { %v10001_v7 = vpop.f32.mrb[16].mxu1  ;;  %v14974_v19 = vpack.c.bf16 %v17650_v6, %v17647_v1  ;;  %v9803_v41 = vpop.f32.mrb[15].mxu0  ;;  %10183 = vmatprep.subr.bf16.mxu0 %v14545_v53  ;;  %v6951_v53 = vld [vmem:[#allocation16 + $0xe38] sm:$0xff]  ;;  %v14561_v3 = vcombine.high %v6946_v34, %v6950_v18  ;;  %v17679_v8 = vadd.f32 %v9801_v36, %v17626_v37  ;;  %v14560_v23 = vcombine.low %v6946_v34, %v6950_v18  ;;  %v6962_v18 = vld [vmem:[#allocation16 + $0xe90] sm:$0xff] }
 0x697   : > { %v17664_v22 = vadd.f32 %v10001_v7, %v17638_v52  ;;  %v10003_v35 = vpop.f32.mrb[17].mxu1  ;;  %v14972_v28 = vpack.c.bf16 %v17656_v15, %v17653_v11  ;;  %v17688_v2 = vadd.f32 %v9803_v41, %v17632_v51  ;;  %v6955_v36 = vld [vmem:[#allocation16 + $0xe58] sm:$0xff]  ;;  %v14562_v34 = vcombine.low %v6947_v44, %v6951_v53 }
 0x698   : > { %v17672_v29 = vadd.f32 %v10003_v35, %v17644_v55  ;;  %10386 = vmatpush1.bf16.msra.mxu1 %v14538_v27  ;;  %v10005_v30 = vpop.f32.mrb[18].mxu1  ;;  %v6958_v27 = vld [vmem:[#allocation16 + $0xe70] sm:$0xff]  ;;  %v14563_v35 = vcombine.high %v6947_v44, %v6951_v53  ;;  %v7029_v1 = vrot.slane %v17614_v25, %v2206_v61 }
 0x699   : > { %10387 = vmatprep.subr.bf16.mxu1 %v14547_v4  ;;  %v10007_v50 = vpop.f32.mrb[19].mxu1  ;;  %10184 = vmatpush1.bf16.msra.mxu0 %v14544_v17  ;;  %v17685_v0 = vadd.f32 %v10005_v30, %v17638_v52 }
 0x69a   : > { %10185 = vmatprep.subr.bf16.mxu0 %v14553_v58  ;;  %v6959_v58 = vld [vmem:[#allocation16 + $0xe78] sm:$0xff] }
 0x69b   : > { %v9807_v42 = vpop.f32.mrb[16].mxu0  ;;  %v14571_v31 = vcombine.high %v6955_v36, %v6959_v58  ;;  %v14570_v53 = vcombine.low %v6955_v36, %v6959_v58  ;;  %v6983_v36 = vld [vmem:[#allocation16 + $0xf38] sm:$0xff] }
 0x69c   : > { %10388 = vmatpush1.bf16.msra.mxu1 %v14546_v56  ;;  %v17682_v4 = vadd.f32 %v9807_v42, %v17626_v37  ;;  %v9809_v7 = vpop.f32.mrb[17].mxu0  ;;  %v17694_v37 = vadd.f32 %v10007_v50, %v17644_v55  ;;  %v14569_v42 = vcombine.high %v6954_v57, %v6958_v27 }
 0x69d   : > { %10389 = vmatprep.subr.bf16.mxu1 %v14555_v24  ;;  %v17691_v17 = vadd.f32 %v9809_v7, %v17632_v51  ;;  %v9811_v21 = vpop.f32.mrb[18].mxu0  ;;  %10186 = vmatpush1.bf16.msra.mxu0 %v14552_v39  ;;  %v6966_v7 = vld [vmem:[#allocation16 + $0xeb0] sm:$0xff] }
 0x69e   : > { %v10011_v56 = vpop.f32.mrb[20].mxu1  ;;  %v14978_v24 = vpack.c.bf16 %v17682_v4, %v17679_v8  ;;  %v9812_v30 = vpop.f32.mrb[19].mxu0  ;;  %10187 = vmatprep.subr.bf16.mxu0 %v14561_v3  ;;  %v14577_v44 = vcombine.high %v6962_v18, %v6966_v7  ;;  %v6975_v3 = vld [vmem:[#allocation16 + $0xef8] sm:$0xff] }
 0x69f   : > { %v17699_v41 = vadd.f32 %v10011_v56, %v17638_v52  ;;  %v10013_v51 = vpop.f32.mrb[21].mxu1  ;;  %v14976_v39 = vpack.c.bf16 %v17691_v17, %v17688_v2  ;;  %v14568_v52 = vcombine.low %v6954_v57, %v6958_v27  ;;  %v6963_v56 = vld [vmem:[#allocation16 + $0xe98] sm:$0xff]  ;;  %v6978_v27 = vld [vmem:[#allocation16 + $0xf10] sm:$0xff] }
 0x6a0   : > { %10390 = vmatpush1.bf16.msra.mxu1 %v14554_v5  ;;  %v17704_v50 = vadd.f32 %v10013_v51, %v17644_v55  ;;  %v10015_v21 = vpop.f32.mrb[22].mxu1  ;;  %v6970_v55 = vld [vmem:[#allocation16 + $0xed0] sm:$0xff]  ;;  %v14578_v57 = vcombine.low %v6963_v56, %v6967_v46  ;;  %v14587_v5 = vcombine.high %v6971_v60, %v6975_v3 }
 0x6a1   : > { %10391 = vmatprep.subr.bf16.mxu1 %v14563_v35  ;;  %v10016_v30 = vpop.f32.mrb[23].mxu1  ;;  %10188 = vmatpush1.bf16.msra.mxu0 %v14560_v23  ;;  %v6974_v51 = vld [vmem:[#allocation16 + $0xef0] sm:$0xff]  ;;  %v14579_v35 = vcombine.high %v6963_v56, %v6967_v46  ;;  %v14576_v21 = vcombine.low %v6962_v18, %v6966_v7  ;;  %v6991_v46 = vld [vmem:[#allocation16 + $0xf78] sm:$0xff] }
 0x6a2   : > { %10189 = vmatprep.subr.bf16.mxu0 %v14569_v42  ;;  %v14585_v23 = vcombine.high %v6970_v55, %v6974_v51  ;;  %v6982_v30 = vld [vmem:[#allocation16 + $0xf30] sm:$0xff]  ;;  %v14584_v42 = vcombine.low %v6970_v55, %v6974_v51  ;;  %v17994_v59 = vpack.c.bf16 %v17704_v50, %v17694_v37 }
 0x6a3   : > { %v14593_v58 = vcombine.high %v6978_v27, %v6982_v30  ;;  %v6990_v18 = vld [vmem:[#allocation16 + $0xf70] sm:$0xff] }
 0x6a4   : > { %10392 = vmatpush1.bf16.msra.mxu1 %v14562_v34  ;;  %v6979_v34 = vld [vmem:[#allocation16 + $0xf18] sm:$0xff]  ;;  %v6998_v55 = vld [vmem:[#allocation16 + $0xfb0] sm:$0xff] }
 0x6a5   : > { %10393 = vmatprep.subr.bf16.mxu1 %v14571_v31  ;;  %10190 = vmatpush1.bf16.msra.mxu0 %v14568_v52  ;;  %v14586_v31 = vcombine.low %v6971_v60, %v6975_v3  ;;  %v6986_v52 = vld [vmem:[#allocation16 + $0xf50] sm:$0xff]  ;;  %v14595_v7 = vcombine.high %v6979_v34, %v6983_v36  ;;  %v6999_v60 = vld [vmem:[#allocation16 + $0xfb8] sm:$0xff] }
 0x6a6   : > { %10191 = vmatprep.subr.bf16.mxu0 %v14577_v44  ;;  %v14592_v44 = vcombine.low %v6978_v27, %v6982_v30  ;;  %v14601_v56 = vcombine.high %v6986_v52, %v6990_v18  ;;  %v7006_v27 = vld [vmem:[#allocation16 + $0xff0] sm:$0xff] }
 0x6a8   : > { %10394 = vmatpush1.bf16.msra.mxu1 %v14570_v53  ;;  %v6987_v53 = vld [vmem:[#allocation16 + $0xf58] sm:$0xff] }
 0x6a9   : > { %10395 = vmatprep.subr.bf16.mxu1 %v14579_v35  ;;  %10192 = vmatpush1.bf16.msra.mxu0 %v14576_v21  ;;  %v14594_v35 = vcombine.low %v6979_v34, %v6983_v36  ;;  %v6994_v21 = vld [vmem:[#allocation16 + $0xf90] sm:$0xff]  ;;  %v14603_v51 = vcombine.high %v6987_v53, %v6991_v46  ;;  %v7007_v34 = vld [vmem:[#allocation16 + $0xff8] sm:$0xff] }
 0x6aa   : > { %10193 = vmatprep.subr.bf16.mxu0 %v14585_v23  ;;  %v14600_v23 = vcombine.low %v6986_v52, %v6990_v18  ;;  %v14609_v3 = vcombine.high %v6994_v21, %v6998_v55 }
 0x6ac   : > { %10396 = vmatpush1.bf16.msra.mxu1 %v14578_v57  ;;  %v6995_v57 = vld [vmem:[#allocation16 + $0xf98] sm:$0xff] }
 0x6ad   : > { %10397 = vmatprep.subr.bf16.mxu1 %v14587_v5  ;;  %10194 = vmatpush1.bf16.msra.mxu0 %v14584_v42  ;;  %v14602_v5 = vcombine.low %v6987_v53, %v6991_v46  ;;  %v7002_v42 = vld [vmem:[#allocation16 + $0xfd0] sm:$0xff]  ;;  %v14611_v30 = vcombine.high %v6995_v57, %v6999_v60 }
 0x6ae   : > { %10195 = vmatprep.subr.bf16.mxu0 %v14593_v58  ;;  %v14608_v58 = vcombine.low %v6994_v21, %v6998_v55  ;;  %v14617_v36 = vcombine.high %v7002_v42, %v7006_v27  ;;  %v14616_v18 = vcombine.low %v7002_v42, %v7006_v27 }
 0x6b0   : > { %10398 = vmatpush1.bf16.msra.mxu1 %v14586_v31  ;;  %v7003_v31 = vld [vmem:[#allocation16 + $0xfd8] sm:$0xff] }
 0x6b1   : > { %10399 = vmatprep.subr.bf16.mxu1 %v14595_v7  ;;  %10196 = vmatpush1.bf16.msra.mxu0 %v14592_v44  ;;  %v14610_v7 = vcombine.low %v6995_v57, %v6999_v60  ;;  %v14619_v52 = vcombine.high %v7003_v31, %v7007_v34  ;;  %v14618_v44 = vcombine.low %v7003_v31, %v7007_v34 }
 0x6b2   : > { %10197 = vmatprep.subr.bf16.mxu0 %v14601_v56 }
 0x6b4   : > { %10400 = vmatpush1.bf16.msra.mxu1 %v14594_v35 }
 0x6b5   : > { %10401 = vmatprep.subr.bf16.mxu1 %v14603_v51  ;;  %10198 = vmatpush1.bf16.msra.mxu0 %v14600_v23 }
 0x6b6   : > { %10199 = vmatprep.subr.bf16.mxu0 %v14609_v3 }
 0x6b8   : > { %10402 = vmatpush1.bf16.msra.mxu1 %v14602_v5 }
 0x6b9   : > { %10403 = vmatprep.subr.bf16.mxu1 %v14611_v30  ;;  %10200 = vmatpush1.bf16.msra.mxu0 %v14608_v58 }
 0x6ba   : > { %10201 = vmatprep.subr.bf16.mxu0 %v14617_v36 }
 0x6bc   : > { %10404 = vmatpush1.bf16.msra.mxu1 %v14610_v7 }
 0x6bd   : > { %10405 = vmatprep.subr.bf16.mxu1 %v14619_v52  ;;  %10202 = vmatpush1.bf16.msra.mxu0 %v14616_v18 }
 0x6be   : > { %14964 = vmatprep.subr.bf16.mxu0 %v17570_v16 }
 0x6c0   : > { %10406 = vmatpush1.bf16.msra.mxu1 %v14618_v44  ;;  %10204 = vmatmul.mubr.bf16.vlgmr.msra.gmra.mrb[20].mxu0 %v17510_v49 }
 0x6c1   : > { %14973 = vmatprep.subr.bf16.mxu1 %v14972_v28  ;;  %10213 = vmatprep.mubr.bf16.mxu0 %v17512_v54 }
 0x6c3   : > { %10408 = vmatmul.mubr.bf16.vlgmr.msra.gmra.mrb[24].mxu1 %v17510_v49  ;;  %v17991_v49 = vpack.c.bf16 %v17672_v29, %v17667_v26 }
 0x6c4   : > { %14975 = vmatpush1.bf16.msra.mxu1 %v14974_v19  ;;  %10417 = vmatprep.mubr.bf16.mxu1 %v17512_v54  ;;  %v17992_v54 = vpack.c.bf16 %v17574_v47, %v17572_v33  ;;  %v2218_v33 = vsub.s32 7, %v17544_v62  ;;  %v2207_v47 = vrot.slane %v17612_v43, %v2206_v61 }
 0x6c5   : > { %14977 = vmatprep.subr.bf16.mxu1 %v14976_v39 }
 0x6c6   : > { %14965 = vmatpush3.bf16.xpose.msra.mxu0 %v17570_v16  ;;  %v17993_v16 = vpack.c.bf16 %v17664_v22, %v17659_v32  ;;  %v2219_v19 = vrot.slane %v17612_v43, %v2218_v33  ;;  %v7041_v26 = vrot.slane %v17614_v25, %v2218_v33  ;;  %v17763_v28 = vadd.f32 %v17503_v12, %v2207_v47 }
 0x6c7   : > { %14966 = vmatprep.subr.bf16.mxu0 %v17578_v13 }
 0x6c8   : > { %14979 = vmatpush1.bf16.msra.mxu1 %v14978_v24  ;;  %10214 = vmatmul.mubr.bf16.gmra.mrb[24].mxu0 %v17518_v38  ;;  %v15013_v12 = vadd.f32 %v17560_v48, %v2219_v19 }
 0x6c9   : > { %14968 = vmatprep.mubr.bf16.mxu0 %v10426_v14  ;;  %v2210_v14 = vsub.s32 5, %v17544_v62 }
 0x6cb   : > { %10418 = vmatmul.mubr.bf16.gmra.mrb[28].mxu1 %v17518_v38  ;;  %v17995_v38 = vpack.c.bf16 %v17699_v41, %v17685_v0  ;;  %v2211_v6 = vrot.slane %v17612_v43, %v2210_v14  ;;  %v7033_v11 = vrot.slane %v17614_v25, %v2210_v14 }
 0x6cd   : > { %v15011_v8 = vadd.f32 %v17505_v10, %v2211_v6 }
 0x6ce   : > { %14967 = vmatpush3.bf16.xpose.msra.mxu0 %v17578_v13  ;;  %v2214_v13 = vsub.s32 6, %v17544_v62 }
 0x6cf   : > { %14981 = vmatprep.subr.bf16.mxu0 %v17991_v49 }
 0x6d0   : > { %v2215_v15 = vrot.slane %v17612_v43, %v2214_v13  ;;  %v7037_v32 = vrot.slane %v17614_v25, %v2214_v13 }
 0x6d2   : > { %v17769_v17 = vadd.f32 %v17557_v40, %v2215_v15 }
 0x6d5   : > { %14969 = vmatmul.mubr.bf16.vlgmr.msra.gmra.mrb[28].mxu0 %v17992_v54 }
 0x6d6   : > { %14983 = vmatpush1.bf16.msra.mxu0 %v17993_v16 }
 0x6d7   : > { %14985 = vmatprep.subr.bf16.mxu0 %v17994_v59 }
 0x6da   : > { %14987 = vmatpush1.bf16.msra.mxu0 %v17995_v38 }
 0x793   : > { %v10205_v22 = vpop.f32.mrb[20].mxu0 }
 0x794   : > { %v17765_v62 = vadd.f32 %v10205_v22, %v7029_v1  ;;  %v10207_v29 = vpop.f32.mrb[21].mxu0 }
 0x795   : > { %v15033_v0 = vadd.f32 %v10207_v29, %v7033_v11  ;;  %v10209_v2 = vpop.f32.mrb[22].mxu0 }
 0x796   : > { %v10409_v4 = vpop.f32.mrb[24].mxu1  ;;  %v14990_v43 = vpack.c.bf16 %v17765_v62, %v17763_v28  ;;  %v10211_v24 = vpop.f32.mrb[23].mxu0  ;;  %v17780_v46 = vadd.f32 %v10209_v2, %v7029_v1  ;;  %v15836_v28 = vld [vmem:[#allocation19] ss:$16 sps:$4 sm:$0xff]   ;;  %v15839_v62 = vld [vmem:[#allocation19 + $0x8] ss:$16 sps:$4 sm:$0xff]  }
 0x797   : > { %v17773_v37 = vadd.f32 %v10409_v4, %v7037_v32  ;;  %v10411_v25 = vpop.f32.mrb[25].mxu1  ;;  %v14988_v41 = vpack.c.bf16 %v15033_v0, %v15011_v8  ;;  %v17776_v50 = vadd.f32 %v10211_v24, %v7033_v11 }
 0x798   : > { %v15039_v39 = vadd.f32 %v10411_v25, %v7041_v26  ;;  %v10413_v31 = vpop.f32.mrb[26].mxu1 }
 0x799   : > { %v14998_v10 = vpack.c.bf16 %v17773_v37, %v17769_v17  ;;  %14989 = vmatprep.subr.bf16.mxu1 %v14988_v41  ;;  %v17794_v34 = vadd.f32 %v10413_v31, %v7037_v32  ;;  %v10415_v36 = vpop.f32.mrb[27].mxu1  ;;  %v15844_v17 = vld [vmem:[#allocation19 + $0x24] ss:$16 sps:$4 sm:$0xff]   ;;  %v15842_v37 = vld [vmem:[#allocation19 + $0x20] ss:$16 sps:$4 sm:$0xff]  }
 0x79a   : > { %v14996_v53 = vpack.c.bf16 %v15039_v39, %v15013_v12  ;;  %v17796_v7 = vadd.f32 %v10415_v36, %v7041_v26  ;;  %v16786_v12 = vmov 0.0  }
 0x79b   : > { %v10215_v40 = vpop.f32.mrb[24].mxu0  ;;  %10606 = vmatprep.mubr.f32.mxu1 %v16786_v12  ;;  %10677 = vmatprep.mubr.f32.mxu0 %v16786_v12 }
 0x79c   : > { %14997 = vmatprep.subr.bf16.mxu0 %v14996_v53  ;;  %v17782_v56 = vadd.f32 %v10215_v40, %v7029_v1  ;;  %v10217_v35 = vpop.f32.mrb[25].mxu0 }
 0x79d   : > { %v17784_v21 = vadd.f32 %v10217_v35, %v7033_v11  ;;  %v10219_v55 = vpop.f32.mrb[26].mxu0 }
 0x79e   : > { %v14994_v48 = vpack.c.bf16 %v17782_v56, %v17780_v46  ;;  %v10220_v51 = vpop.f32.mrb[27].mxu0  ;;  %v10419_v52 = vpop.f32.mrb[28].mxu1  ;;  %v15853_v46 = vld [vmem:[#allocation19 + $0x4c] ss:$16 sps:$4 sm:$0xff]   ;;  %v15848_v56 = vld [vmem:[#allocation19 + $0x40] ss:$16 sps:$4 sm:$0xff]  }
 0x79f   : > { %v14992_v23 = vpack.c.bf16 %v17784_v21, %v17776_v50  ;;  %v17798_v18 = vadd.f32 %v10419_v52, %v7037_v32  ;;  %v10421_v44 = vpop.f32.mrb[29].mxu1  ;;  %v15845_v50 = vld [vmem:[#allocation19 + $0x28] ss:$16 sps:$4 sm:$0xff]  }
 0x7a0   : > { %v17800_v49 = vadd.f32 %v10421_v44, %v7041_v26  ;;  %v10423_v54 = vpop.f32.mrb[30].mxu1  ;;  %v15851_v21 = vld [vmem:[#allocation19 + $0x48] ss:$16 sps:$4 sm:$0xff]  }
 0x7a1   : > { %v15002_v16 = vpack.c.bf16 %v17798_v18, %v17794_v34  ;;  %v10424_v59 = vpop.f32.mrb[31].mxu1  ;;  %v15854_v34 = vld [vmem:[#allocation19 + $0x60] ss:$16 sps:$4 sm:$0xff]   ;;  %v15862_v18 = vld [vmem:[#allocation19 + $0x84] ss:$16 sps:$4 sm:$0xff]  }
 0x7a2   : > { %v15000_v38 = vpack.c.bf16 %v17800_v49, %v17796_v7  ;;  %v15857_v7 = vld [vmem:[#allocation19 + $0x68] ss:$16 sps:$4 sm:$0xff]   ;;  %v15865_v49 = vld [vmem:[#allocation19 + $0x8c] ss:$16 sps:$4 sm:$0xff]  }
 0x7a8   : > { %v14970_v57 = vpop.f32.mrb[28].mxu0 }
 0x7a9   : > { %v10464_v60 = vpop.f32.mrb[29].mxu0  ;;  %v10486_v3 = vsel %vm10479_vm0, %v14970_v57, -inf }
 0x7aa   : > { %10487 = vmax.xlane.f32.xlu1 %v10486_v3  ;;  %v14971_v5 = vpop.f32.mrb[30].mxu0  ;;  %v10480_v42 = vsel %vm10479_vm0, %v10464_v60, -inf }
 0x7ab   : > { %10481 = vmax.xlane.f32.xlu0 %v10480_v42  ;;  %v10467_v27 = vpop.f32.mrb[31].mxu0  ;;  %v10489_v30 = vsel %vm10479_vm0, %v14971_v5, -inf }
 0x7ac   : > { %v10483_v58 = vsel %vm10479_vm0, %v10467_v27, -inf }
 0x7ae   : > { %10490 = vmax.xlane.f32.xlu1 %v10489_v30 }
 0x7af   : > { %10484 = vmax.xlane.f32.xlu0 %v10483_v58 }
 0x837   : > { %v10488_v61 = vpop.xlane.xlu1 %10487 }
 0x838   : > { %v10494_v14 = vsub.f32 %v14970_v57, %v10488_v61  ;;  %v10482_v13 = vpop.xlane.xlu0 %10481 }
 0x839   : > { %v10492_v33 = vsub.f32 %v10464_v60, %v10482_v13 }
 0x83a   : > { %v10500_v47 = vmul.f32 1.442695, %v10494_v14 }
 0x83b   : > { %v10496_v1 = vmul.f32 1.442695, %v10492_v33  ;;  %v10491_v6 = vpop.xlane.xlu1 %10490 }
 0x83c   : > { %v10495_v11 = vsub.f32 %v14971_v5, %v10491_v6  ;;  %v10485_v15 = vpop.xlane.xlu0 %10484  ;;  %v15841_v6 = vld [vmem:[#allocation19 + $0xc] ss:$16 sps:$4 sm:$0xff]  }
 0x83d   : > { %16252 = vpow2.f32 %v10496_v1  ;;  %v10493_v32 = vsub.f32 %v10467_v27, %v10485_v15  ;;  %v15838_v1 = vld [vmem:[#allocation19 + $0x4] ss:$16 sps:$4 sm:$0xff]   ;;  %v15871_v15 = vld [vmem:[#allocation19 + $0xac] ss:$16 sps:$4 sm:$0xff]  }
 0x83e   : > { %16254 = vpow2.f32 %v10500_v47  ;;  %v10502_v19 = vmul.f32 1.442695, %v10495_v11  ;;  %v15868_v11 = vld [vmem:[#allocation19 + $0xa4] ss:$16 sps:$4 sm:$0xff]  }
 0x83f   : > { %v10498_v22 = vmul.f32 1.442695, %v10493_v32  ;;  %v15866_v32 = vld [vmem:[#allocation19 + $0xa0] ss:$16 sps:$4 sm:$0xff]  }
 0x841   : > { %16256 = vpow2.f32 %v10498_v22  ;;  %v15874_v22 = vld [vmem:[#allocation19 + $0xc4] ss:$16 sps:$4 sm:$0xff]  }
 0x842   : > { %16258 = vpow2.f32 %v10502_v19  ;;  %v15869_v19 = vld [vmem:[#allocation19 + $0xa8] ss:$16 sps:$4 sm:$0xff]  }
 0x847   : > { %v16253_v26 = vpop.eup %16252 }
 0x848   : > { %v10504_v29 = vsel %vm10479_vm0, %v16253_v26, 0.0  ;;  %v16255_v8 = vpop.eup %16254 }
 0x849   : > { %10505 = vadd.xlane.f32.xlu0 %v10504_v29  ;;  %v10510_v0 = vsel %vm10479_vm0, %v16255_v8, 0.0  ;;  %v15872_v29 = vld [vmem:[#allocation19 + $0xc0] ss:$16 sps:$4 sm:$0xff]  }
 0x84b   : > { %v16257_v4 = vpop.eup %16256 }
 0x84c   : > { %v10507_v2 = vsel %vm10479_vm0, %v16257_v4, 0.0  ;;  %v16259_v25 = vpop.eup %16258 }
 0x84d   : > { %10511 = vadd.xlane.f32.xlu0 %v10510_v0  ;;  %10508 = vadd.xlane.f32.xlu1 %v10507_v2  ;;  %v10513_v24 = vsel %vm10479_vm0, %v16259_v25, 0.0  ;;  %v15883_v0 = vld [vmem:[#allocation19 + $0xec] ss:$16 sps:$4 sm:$0xff]   ;;  %v15878_v2 = vld [vmem:[#allocation19 + $0xe0] ss:$16 sps:$4 sm:$0xff]  }
 0x851   : > { %10514 = vadd.xlane.f32.xlu1 %v10513_v24  ;;  %v15886_v24 = vld [vmem:[#allocation19 + $0x104] ss:$16 sps:$4 sm:$0xff]  }
 0x8d6   : > { %v10506_v41 = vpop.xlane.xlu0 %10505 }
 0x8d7   : > { %16260 = vrcp.f32 %v10506_v41  ;;  %v15884_v41 = vld [vmem:[#allocation19 + $0x100] ss:$16 sps:$4 sm:$0xff]  }
 0x8da   : > { %v10509_v39 = vpop.xlane.xlu1 %10508  ;;  %v10512_v53 = vpop.xlane.xlu0 %10511 }
 0x8db   : > { %16262 = vrcp.f32 %v10509_v39  ;;  %v15887_v39 = vld [vmem:[#allocation19 + $0x108] ss:$16 sps:$4 sm:$0xff]  }
 0x8dc   : > { %16264 = vrcp.f32 %v10512_v53  ;;  %v15892_v53 = vld [vmem:[#allocation19 + $0x124] ss:$16 sps:$4 sm:$0xff]  }
 0x8de   : > { %v10515_v40 = vpop.xlane.xlu1 %10514 }
 0x8df   : > { %16266 = vrcp.f32 %v10515_v40  ;;  %v15895_v40 = vld [vmem:[#allocation19 + $0x12c] ss:$16 sps:$4 sm:$0xff]  }
 0x8e1   : > { %v16261_v35 = vpop.eup %16260 }
 0x8e2   : > { %v10520_v55 = vmul.f32 %v16261_v35, %v16253_v26  ;;  %v15877_v26 = vld [vmem:[#allocation19 + $0xcc] ss:$16 sps:$4 sm:$0xff]   ;;  %v15890_v35 = vld [vmem:[#allocation19 + $0x120] ss:$16 sps:$4 sm:$0xff]  }
 0x8e4   : > { %v10524_v5 = vsel %vm10479_vm0, %v10520_v55, 0.0  ;;  %v15893_v55 = vld [vmem:[#allocation19 + $0x128] ss:$16 sps:$4 sm:$0xff]  }
 0x8e5   : > { %v16263_v51 = vpop.eup %16262 }
 0x8e6   : > { %v16265_v57 = vpop.eup %16264  ;;  %v10521_v60 = vmul.f32 %v16263_v51, %v16257_v4  ;;  %v15880_v4 = vld [vmem:[#allocation19 + $0xe4] ss:$16 sps:$4 sm:$0xff]  }
 0x8e7   : > { %v10522_v3 = vmul.f32 %v16265_v57, %v16255_v8  ;;  %v15875_v8 = vld [vmem:[#allocation19 + $0xc8] ss:$16 sps:$4 sm:$0xff]   ;;  %v15898_v51 = vld [vmem:[#allocation19 + $0x144] ss:$16 sps:$4 sm:$0xff]   ;;  %v15901_v57 = vld [vmem:[#allocation19 + $0x14c] ss:$16 sps:$4 sm:$0xff]  }
 0x8e8   : > { %v10525_v42 = vsel %vm10479_vm0, %v10521_v60, 0.0  ;;  %v15896_v60 = vld [vmem:[#allocation19 + $0x140] ss:$16 sps:$4 sm:$0xff]  }
 0x8e9   : > { %v16267_v27 = vpop.eup %16266  ;;  %v10526_v30 = vadd.f32 %v10525_v42, %v10524_v5  ;;  %v10527_v58 = vsel %vm10479_vm0, %v10522_v3, 0.0  ;;  %v15899_v3 = vld [vmem:[#allocation19 + $0x148] ss:$16 sps:$4 sm:$0xff]   ;;  %v15904_v5 = vld [vmem:[#allocation19 + $0x164] ss:$16 sps:$4 sm:$0xff]  }
 0x8ea   : > { %v10523_v31 = vmul.f32 %v16267_v27, %v16259_v25  ;;  %v15881_v25 = vld [vmem:[#allocation19 + $0xe8] ss:$16 sps:$4 sm:$0xff]   ;;  %v15907_v42 = vld [vmem:[#allocation19 + $0x16c] ss:$16 sps:$4 sm:$0xff]   ;;  %v15902_v27 = vld [vmem:[#allocation19 + $0x160] ss:$16 sps:$4 sm:$0xff]  }
 0x8eb   : > { %v10528_v36 = vadd.f32 %v10527_v58, %v10526_v30  ;;  %v15905_v30 = vld [vmem:[#allocation19 + $0x168] ss:$16 sps:$4 sm:$0xff]   ;;  %v15910_v58 = vld [vmem:[#allocation19 + $0x184] ss:$16 sps:$4 sm:$0xff]  }
 0x8ec   : > { %v10529_v52 = vsel %vm10479_vm0, %v10523_v31, 0.0  ;;  %v15913_v31 = vld [vmem:[#allocation19 + $0x18c] ss:$16 sps:$4 sm:$0xff]  }
 0x8ed   : > { %v10530_v44 = vadd.f32 %v10529_v52, %v10528_v36  ;;  %v15908_v36 = vld [vmem:[#allocation19 + $0x180] ss:$16 sps:$4 sm:$0xff]   ;;  %v15911_v52 = vld [vmem:[#allocation19 + $0x188] ss:$16 sps:$4 sm:$0xff]  }
 0x8ef   : > { %v10531_v54 = vrot.slane %v10530_v44, 4 }
 0x8f1   : > { %v10532_v59 = vadd.f32 %v10531_v54, %v10530_v44  ;;  %v15916_v44 = vld [vmem:[#allocation19 + $0x1a4] ss:$16 sps:$4 sm:$0xff]   ;;  %v15919_v54 = vld [vmem:[#allocation19 + $0x1ac] ss:$16 sps:$4 sm:$0xff]  }
 0x8f3   : > { %v10533_v61 = vrot.slane %v10532_v59, 2 }
 0x8f5   : > { %v10534_v14 = vadd.f32 %v10533_v61, %v10532_v59  ;;  %v15914_v59 = vld [vmem:[#allocation19 + $0x1a0] ss:$16 sps:$4 sm:$0xff]   ;;  %v15917_v61 = vld [vmem:[#allocation19 + $0x1a8] ss:$16 sps:$4 sm:$0xff]  }
 0x8f7   : > { %v10535_v13 = vrot.slane %v10534_v14, 1 }
 0x8f9   : > { %v10536_v33 = vadd.f32 %v10535_v13, %v10534_v14  ;;  %v15922_v14 = vld [vmem:[#allocation19 + $0x1c4] ss:$16 sps:$4 sm:$0xff]   ;;  %v15925_v13 = vld [vmem:[#allocation19 + $0x1cc] ss:$16 sps:$4 sm:$0xff]  }
 0x8fb   : > { %v10538_v47 = vmul.f32 0.03125, %v10536_v33  ;;  %v15920_v33 = vld [vmem:[#allocation19 + $0x1c0] ss:$16 sps:$4 sm:$0xff]  }
 0x8fd   : > { %14620 = vmatmul.mubr.msk.f32.vlgmr.msra.gmra.mrb[32].mxu1 %vm10479_vm0, %v10538_v47  ;;  %14621 = vmatmul.mubr.msk.f32.vlgmr.msra.gmra.mrb[32].mxu0 %vm10479_vm0, %v10538_v47 }
 0x8fe   : > { %14991 = vmatpush1.bf16.msra.mxu1 %v14990_v43  ;;  %14999 = vmatpush1.bf16.msra.mxu0 %v14998_v10  ;;  %v15847_v43 = vld [vmem:[#allocation19 + $0x2c] ss:$16 sps:$4 sm:$0xff]   ;;  %v15850_v10 = vld [vmem:[#allocation19 + $0x44] ss:$16 sps:$4 sm:$0xff]  }
 0x8ff   : > { %14993 = vmatprep.subr.bf16.mxu1 %v14992_v23  ;;  %15001 = vmatprep.subr.bf16.mxu0 %v15000_v38  ;;  %v15859_v23 = vld [vmem:[#allocation19 + $0x6c] ss:$16 sps:$4 sm:$0xff]   ;;  %v15863_v38 = vld [vmem:[#allocation19 + $0x88] ss:$16 sps:$4 sm:$0xff]  }
 0x900   : > { %10748 = vmatprep.mubr.f32.mxu1 %v16786_v12  ;;  %10819 = vmatprep.mubr.f32.mxu0 %v16786_v12  ;;  %v15889_v12 = vld [vmem:[#allocation19 + $0x10c] ss:$16 sps:$4 sm:$0xff]  }
 0x902   : > { %14995 = vmatpush1.bf16.msra.mxu1 %v14994_v48  ;;  %15003 = vmatpush1.bf16.msra.mxu0 %v15002_v16  ;;  %v15856_v48 = vld [vmem:[#allocation19 + $0x64] ss:$16 sps:$4 sm:$0xff]   ;;  %v15860_v16 = vld [vmem:[#allocation19 + $0x80] ss:$16 sps:$4 sm:$0xff]  }
 0x903   : > { %12392 = vmatprep.subr.bf16.mxu1 %v15838_v1  ;;  %12556 = vmatprep.subr.bf16.mxu0 %v15841_v6  ;;  %v15928_v1 = vld [vmem:[#allocation19 + $0x1e4] ss:$16 sps:$4 sm:$0xff]   ;;  %v15931_v6 = vld [vmem:[#allocation19 + $0x1ec] ss:$16 sps:$4 sm:$0xff]  }
 0x905   : > { %14622 = vmatmul.mubr.msk.f32.vlgmr.msra.gmra.mrb[34].mxu1 %vm10479_vm0, %v10538_v47  ;;  %14623 = vmatmul.mubr.msk.f32.vlgmr.msra.gmra.mrb[34].mxu0 %vm10479_vm0, %v10538_v47  ;;  %v15923_v47 = vld [vmem:[#allocation19 + $0x1c8] ss:$16 sps:$4 sm:$0xff]  }
 0x906   : > { %12393 = vmatpush1.bf16.msra.mxu1 %v15836_v28  ;;  %12557 = vmatpush1.bf16.msra.mxu0 %v15839_v62  ;;  %v15926_v28 = vld [vmem:[#allocation19 + $0x1e0] ss:$16 sps:$4 sm:$0xff]   ;;  %v15929_v62 = vld [vmem:[#allocation19 + $0x1e8] ss:$16 sps:$4 sm:$0xff]  }
 0x907   : > { %12394 = vmatprep.subr.bf16.mxu1 %v15844_v17  ;;  %12558 = vmatprep.subr.bf16.mxu0 %v15847_v43  ;;  %v15934_v17 = vld [vmem:[#allocation19 + $0x204] ss:$16 sps:$4 sm:$0xff]   ;;  %v15937_v43 = vld [vmem:[#allocation19 + $0x20c] ss:$16 sps:$4 sm:$0xff]  }
 0x90a   : > { %12395 = vmatpush1.bf16.msra.mxu1 %v15842_v37  ;;  %12559 = vmatpush1.bf16.msra.mxu0 %v15845_v50 }
 0x90b   : > { %12396 = vmatprep.subr.bf16.mxu1 %v15850_v10  ;;  %12560 = vmatprep.subr.bf16.mxu0 %v15853_v46 }
 0x90e   : > { %12397 = vmatpush1.bf16.msra.mxu1 %v15848_v56  ;;  %12561 = vmatpush1.bf16.msra.mxu0 %v15851_v21  ;;  %v15932_v21 = vld [vmem:[#allocation19 + $0x200] ss:$16 sps:$4 sm:$0xff]  }
 0x90f   : > { %12398 = vmatprep.subr.bf16.mxu1 %v15856_v48  ;;  %12562 = vmatprep.subr.bf16.mxu0 %v15859_v23  ;;  %v15935_v48 = vld [vmem:[#allocation19 + $0x208] ss:$16 sps:$4 sm:$0xff]  }
 0x912   : > { %12399 = vmatpush1.bf16.msra.mxu1 %v15854_v34  ;;  %12563 = vmatpush1.bf16.msra.mxu0 %v15857_v7  ;;  %v15940_v34 = vld [vmem:[#allocation19 + $0x224] ss:$16 sps:$4 sm:$0xff]   ;;  %v15943_v7 = vld [vmem:[#allocation19 + $0x22c] ss:$16 sps:$4 sm:$0xff]  }
 0x913   : > { %12400 = vmatprep.subr.bf16.mxu1 %v15862_v18  ;;  %12564 = vmatprep.subr.bf16.mxu0 %v15865_v49  ;;  %v15938_v49 = vld [vmem:[#allocation19 + $0x220] ss:$16 sps:$4 sm:$0xff]  }
 0x916   : > { %12401 = vmatpush1.bf16.msra.mxu1 %v15860_v16  ;;  %12565 = vmatpush1.bf16.msra.mxu0 %v15863_v38  ;;  %v15941_v16 = vld [vmem:[#allocation19 + $0x228] ss:$16 sps:$4 sm:$0xff]   ;;  %v15946_v38 = vld [vmem:[#allocation19 + $0x244] ss:$16 sps:$4 sm:$0xff]  }
 0x917   : > { %12402 = vmatprep.subr.bf16.mxu1 %v15868_v11  ;;  %12566 = vmatprep.subr.bf16.mxu0 %v15871_v15  ;;  %v15949_v11 = vld [vmem:[#allocation19 + $0x24c] ss:$16 sps:$4 sm:$0xff]  }
 0x91a   : > { %12403 = vmatpush1.bf16.msra.mxu1 %v15866_v32  ;;  %12567 = vmatpush1.bf16.msra.mxu0 %v15869_v19 }
 0x91b   : > { %12404 = vmatprep.subr.bf16.mxu1 %v15874_v22  ;;  %12568 = vmatprep.subr.bf16.mxu0 %v15877_v26  ;;  %v15944_v26 = vld [vmem:[#allocation19 + $0x240] ss:$16 sps:$4 sm:$0xff]  }
 0x91e   : > { %12405 = vmatpush1.bf16.msra.mxu1 %v15872_v29  ;;  %12569 = vmatpush1.bf16.msra.mxu0 %v15875_v8  ;;  %v15947_v29 = vld [vmem:[#allocation19 + $0x248] ss:$16 sps:$4 sm:$0xff]   ;;  %v15952_v8 = vld [vmem:[#allocation19 + $0x264] ss:$16 sps:$4 sm:$0xff]  }
 0x91f   : > { %12406 = vmatprep.subr.bf16.mxu1 %v15880_v4  ;;  %12570 = vmatprep.subr.bf16.mxu0 %v15883_v0  ;;  %v15955_v4 = vld [vmem:[#allocation19 + $0x26c] ss:$16 sps:$4 sm:$0xff]   ;;  %v15950_v0 = vld [vmem:[#allocation19 + $0x260] ss:$16 sps:$4 sm:$0xff]  }
 0x922   : > { %12407 = vmatpush1.bf16.msra.mxu1 %v15878_v2  ;;  %12571 = vmatpush1.bf16.msra.mxu0 %v15881_v25  ;;  %v15953_v2 = vld [vmem:[#allocation19 + $0x268] ss:$16 sps:$4 sm:$0xff]   ;;  %v15958_v25 = vld [vmem:[#allocation19 + $0x284] ss:$16 sps:$4 sm:$0xff]  }
 0x923   : > { %12408 = vmatprep.subr.bf16.mxu1 %v15886_v24  ;;  %12572 = vmatprep.subr.bf16.mxu0 %v15889_v12  ;;  %v15961_v24 = vld [vmem:[#allocation19 + $0x28c] ss:$16 sps:$4 sm:$0xff]   ;;  %v15956_v12 = vld [vmem:[#allocation19 + $0x280] ss:$16 sps:$4 sm:$0xff]  }
 0x926   : > { %12409 = vmatpush1.bf16.msra.mxu1 %v15884_v41  ;;  %12573 = vmatpush1.bf16.msra.mxu0 %v15887_v39  ;;  %v15959_v41 = vld [vmem:[#allocation19 + $0x288] ss:$16 sps:$4 sm:$0xff]   ;;  %v15964_v39 = vld [vmem:[#allocation19 + $0x2a4] ss:$16 sps:$4 sm:$0xff]  }
 0x927   : > { %12410 = vmatprep.subr.bf16.mxu1 %v15892_v53  ;;  %12574 = vmatprep.subr.bf16.mxu0 %v15895_v40  ;;  %v15967_v53 = vld [vmem:[#allocation19 + $0x2ac] ss:$16 sps:$4 sm:$0xff]   ;;  %v15962_v40 = vld [vmem:[#allocation19 + $0x2a0] ss:$16 sps:$4 sm:$0xff]  }
 0x92a   : > { %12411 = vmatpush1.bf16.msra.mxu1 %v15890_v35  ;;  %12575 = vmatpush1.bf16.msra.mxu0 %v15893_v55  ;;  %v15965_v35 = vld [vmem:[#allocation19 + $0x2a8] ss:$16 sps:$4 sm:$0xff]   ;;  %v15970_v55 = vld [vmem:[#allocation19 + $0x2c4] ss:$16 sps:$4 sm:$0xff]  }
 0x92b   : > { %12412 = vmatprep.subr.bf16.mxu1 %v15898_v51  ;;  %12576 = vmatprep.subr.bf16.mxu0 %v15901_v57  ;;  %v15973_v51 = vld [vmem:[#allocation19 + $0x2cc] ss:$16 sps:$4 sm:$0xff]   ;;  %v15968_v57 = vld [vmem:[#allocation19 + $0x2c0] ss:$16 sps:$4 sm:$0xff]  }
 0x92e   : > { %12413 = vmatpush1.bf16.msra.mxu1 %v15896_v60  ;;  %12577 = vmatpush1.bf16.msra.mxu0 %v15899_v3  ;;  %v15971_v60 = vld [vmem:[#allocation19 + $0x2c8] ss:$16 sps:$4 sm:$0xff]   ;;  %v15976_v3 = vld [vmem:[#allocation19 + $0x2e4] ss:$16 sps:$4 sm:$0xff]  }
 0x92f   : > { %12414 = vmatprep.subr.bf16.mxu1 %v15904_v5  ;;  %12578 = vmatprep.subr.bf16.mxu0 %v15907_v42  ;;  %v15979_v5 = vld [vmem:[#allocation19 + $0x2ec] ss:$16 sps:$4 sm:$0xff]   ;;  %v15974_v42 = vld [vmem:[#allocation19 + $0x2e0] ss:$16 sps:$4 sm:$0xff]  }
 0x932   : > { %12415 = vmatpush1.bf16.msra.mxu1 %v15902_v27  ;;  %12579 = vmatpush1.bf16.msra.mxu0 %v15905_v30  ;;  %v15977_v27 = vld [vmem:[#allocation19 + $0x2e8] ss:$16 sps:$4 sm:$0xff]   ;;  %v15982_v30 = vld [vmem:[#allocation19 + $0x304] ss:$16 sps:$4 sm:$0xff]  }
 0x933   : > { %12416 = vmatprep.subr.bf16.mxu1 %v15910_v58  ;;  %12580 = vmatprep.subr.bf16.mxu0 %v15913_v31  ;;  %v15985_v58 = vld [vmem:[#allocation19 + $0x30c] ss:$16 sps:$4 sm:$0xff]   ;;  %v15980_v31 = vld [vmem:[#allocation19 + $0x300] ss:$16 sps:$4 sm:$0xff]  }
 0x936   : > { %12417 = vmatpush1.bf16.msra.mxu1 %v15908_v36  ;;  %12581 = vmatpush1.bf16.msra.mxu0 %v15911_v52  ;;  %v15983_v36 = vld [vmem:[#allocation19 + $0x308] ss:$16 sps:$4 sm:$0xff]   ;;  %v15988_v52 = vld [vmem:[#allocation19 + $0x324] ss:$16 sps:$4 sm:$0xff]  }
 0x937   : > { %12418 = vmatprep.subr.bf16.mxu1 %v15916_v44  ;;  %12582 = vmatprep.subr.bf16.mxu0 %v15919_v54  ;;  %v15991_v44 = vld [vmem:[#allocation19 + $0x32c] ss:$16 sps:$4 sm:$0xff]   ;;  %v15986_v54 = vld [vmem:[#allocation19 + $0x320] ss:$16 sps:$4 sm:$0xff]  }
 0x93a   : > { %12419 = vmatpush1.bf16.msra.mxu1 %v15914_v59  ;;  %12583 = vmatpush1.bf16.msra.mxu0 %v15917_v61  ;;  %v15989_v59 = vld [vmem:[#allocation19 + $0x328] ss:$16 sps:$4 sm:$0xff]   ;;  %v15994_v61 = vld [vmem:[#allocation19 + $0x344] ss:$16 sps:$4 sm:$0xff]  }
 0x93b   : > { %12420 = vmatprep.subr.bf16.mxu1 %v15922_v14  ;;  %12584 = vmatprep.subr.bf16.mxu0 %v15925_v13  ;;  %v15997_v14 = vld [vmem:[#allocation19 + $0x34c] ss:$16 sps:$4 sm:$0xff]   ;;  %v15992_v13 = vld [vmem:[#allocation19 + $0x340] ss:$16 sps:$4 sm:$0xff]  }
 0x93e   : > { %12421 = vmatpush1.bf16.msra.mxu1 %v15920_v33  ;;  %12585 = vmatpush1.bf16.msra.mxu0 %v15923_v47  ;;  %v15995_v33 = vld [vmem:[#allocation19 + $0x348] ss:$16 sps:$4 sm:$0xff]   ;;  %v16000_v47 = vld [vmem:[#allocation19 + $0x364] ss:$16 sps:$4 sm:$0xff]  }
 0x93f   : > { %12422 = vmatprep.subr.bf16.mxu1 %v15928_v1  ;;  %12586 = vmatprep.subr.bf16.mxu0 %v15931_v6  ;;  %v16003_v1 = vld [vmem:[#allocation19 + $0x36c] ss:$16 sps:$4 sm:$0xff]   ;;  %v15998_v6 = vld [vmem:[#allocation19 + $0x360] ss:$16 sps:$4 sm:$0xff]  }
 0x942   : > { %12423 = vmatpush1.bf16.msra.mxu1 %v15926_v28  ;;  %12587 = vmatpush1.bf16.msra.mxu0 %v15929_v62  ;;  %v16001_v28 = vld [vmem:[#allocation19 + $0x368] ss:$16 sps:$4 sm:$0xff]   ;;  %v16006_v62 = vld [vmem:[#allocation19 + $0x384] ss:$16 sps:$4 sm:$0xff]  }
 0x943   : > { %12433 = vmatprep.subr.bf16.mxu1 %v15934_v17  ;;  %12597 = vmatprep.subr.bf16.mxu0 %v15937_v43  ;;  %v16009_v17 = vld [vmem:[#allocation19 + $0x38c] ss:$16 sps:$4 sm:$0xff]   ;;  %v16004_v43 = vld [vmem:[#allocation19 + $0x380] ss:$16 sps:$4 sm:$0xff]  }
 0x9d0   : > { %v10608_v37 = vpop.f32.mrb[32].mxu1  ;;  %v17836_v50 = vpop.f32.mrb[32].mxu0 }
 0x9d1   : > { %v10610_v10 = vpop.f32.mrb[33].mxu1  ;;  %v10681_v46 = vpop.f32.mrb[33].mxu0  ;;  %v10826_v23 = vpack.c.bf16 %v10608_v37, %v10608_v37  ;;  %v16007_v37 = vld [vmem:[#allocation19 + $0x388] ss:$16 sps:$4 sm:$0xff]  }
 0x9d2   : > { %v10827_v56 = vpack.c.bf16 %v10610_v10, %v10610_v10  ;;  %v10829_v18 = vpack.c.bf16 %v10681_v46, %v10681_v46  ;;  %v16012_v10 = vld [vmem:[#allocation19 + $0x3a4] ss:$16 sps:$4 sm:$0xff]   ;;  %v16015_v46 = vld [vmem:[#allocation19 + $0x3ac] ss:$16 sps:$4 sm:$0xff]  }
 0x9d4   : > { %12424 = vmatprep.mubr.bf16.mxu1 %v10827_v56  ;;  %12588 = vmatprep.mubr.bf16.mxu0 %v10827_v56  ;;  %v16010_v56 = vld [vmem:[#allocation19 + $0x3a0] ss:$16 sps:$4 sm:$0xff]  }
 0x9d5   : > { %12425 = vmatmul.mubr.bf16.vlgmr.msra.gmra.mrb[36].mxu1 %v10826_v23  ;;  %12589 = vmatmul.mubr.bf16.vlgmr.msra.gmra.mrb[36].mxu0 %v10826_v23  ;;  %v16021_v23 = vld [vmem:[#allocation19 + $0x3cc] ss:$16 sps:$4 sm:$0xff]  }
 0x9d6   : > { %12434 = vmatpush1.bf16.msra.mxu1 %v15932_v21  ;;  %12598 = vmatpush1.bf16.msra.mxu0 %v15935_v48  ;;  %v16013_v21 = vld [vmem:[#allocation19 + $0x3a8] ss:$16 sps:$4 sm:$0xff]   ;;  %v16018_v48 = vld [vmem:[#allocation19 + $0x3c4] ss:$16 sps:$4 sm:$0xff]  }
 0x9d7   : > { %12465 = vmatprep.mubr.bf16.mxu1 %v10829_v18  ;;  %12629 = vmatprep.mubr.bf16.mxu0 %v10829_v18  ;;  %v16024_v18 = vld [vmem:[#allocation19 + $0x3e4] ss:$16 sps:$4 sm:$0xff]  }
 0x9d8   : > { %v17838_v15 = vpop.f32.mrb[34].mxu1  ;;  %v17840_v32 = vpop.f32.mrb[34].mxu0  ;;  %12435 = vmatprep.subr.bf16.mxu1 %v15940_v34  ;;  %12599 = vmatprep.subr.bf16.mxu0 %v15943_v7  ;;  %v16016_v34 = vld [vmem:[#allocation19 + $0x3c0] ss:$16 sps:$4 sm:$0xff]   ;;  %v16019_v7 = vld [vmem:[#allocation19 + $0x3c8] ss:$16 sps:$4 sm:$0xff]  }
 0x9d9   : > { %v17842_v19 = vpop.f32.mrb[35].mxu1  ;;  %v17844_v22 = vpop.f32.mrb[35].mxu0 }
 0x9da   : > { %12436 = vmatpush1.bf16.msra.mxu1 %v15938_v49  ;;  %12600 = vmatpush1.bf16.msra.mxu0 %v15941_v16  ;;  %v16027_v49 = vld [vmem:[#allocation19 + $0x3ec] ss:$16 sps:$4 sm:$0xff]   ;;  %v16022_v16 = vld [vmem:[#allocation19 + $0x3e0] ss:$16 sps:$4 sm:$0xff]  }
 0x9db   : > { %12437 = vmatprep.subr.bf16.mxu1 %v15946_v38  ;;  %12601 = vmatprep.subr.bf16.mxu0 %v15949_v11  ;;  %v16025_v38 = vld [vmem:[#allocation19 + $0x3e8] ss:$16 sps:$4 sm:$0xff]   ;;  %v16030_v11 = vld [vmem:[#allocation19 + $0x404] ss:$16 sps:$4 sm:$0xff]  }
 0x9de   : > { %12438 = vmatpush1.bf16.msra.mxu1 %v15944_v26  ;;  %12602 = vmatpush1.bf16.msra.mxu0 %v15947_v29  ;;  %v16033_v26 = vld [vmem:[#allocation19 + $0x40c] ss:$16 sps:$4 sm:$0xff]   ;;  %v16028_v29 = vld [vmem:[#allocation19 + $0x400] ss:$16 sps:$4 sm:$0xff]  }
 0x9df   : > { %12439 = vmatprep.subr.bf16.mxu1 %v15952_v8  ;;  %12603 = vmatprep.subr.bf16.mxu0 %v15955_v4  ;;  %v10828_v8 = vpack.c.bf16 %v17836_v50, %v17836_v50  ;;  %v16031_v4 = vld [vmem:[#allocation19 + $0x408] ss:$16 sps:$4 sm:$0xff]   ;;  %v16045_v50 = vld [vmem:[#allocation19 + $0x44c] ss:$16 sps:$4 sm:$0xff]  }
 0x9e2   : > { %12440 = vmatpush1.bf16.msra.mxu1 %v15950_v0  ;;  %12604 = vmatpush1.bf16.msra.mxu0 %v15953_v2  ;;  %v10831_v0 = vpack.c.bf16 %v17842_v19, %v17842_v19  ;;  %v16036_v2 = vld [vmem:[#allocation19 + $0x424] ss:$16 sps:$4 sm:$0xff]  }
 0x9e3   : > { %12441 = vmatprep.subr.bf16.mxu1 %v15958_v25  ;;  %12605 = vmatprep.subr.bf16.mxu0 %v15961_v24  ;;  %v16039_v25 = vld [vmem:[#allocation19 + $0x42c] ss:$16 sps:$4 sm:$0xff]   ;;  %v16034_v24 = vld [vmem:[#allocation19 + $0x420] ss:$16 sps:$4 sm:$0xff]   ;;  %v16048_v19 = vld [vmem:[#allocation19 + $0x464] ss:$16 sps:$4 sm:$0xff]  }
 0x9e6   : > { %12442 = vmatpush1.bf16.msra.mxu1 %v15956_v12  ;;  %12606 = vmatpush1.bf16.msra.mxu0 %v15959_v41  ;;  %v16037_v12 = vld [vmem:[#allocation19 + $0x428] ss:$16 sps:$4 sm:$0xff]   ;;  %v16042_v41 = vld [vmem:[#allocation19 + $0x444] ss:$16 sps:$4 sm:$0xff]  }
 0x9e7   : > { %12443 = vmatprep.subr.bf16.mxu1 %v15964_v39  ;;  %12607 = vmatprep.subr.bf16.mxu0 %v15967_v53  ;;  %v16040_v39 = vld [vmem:[#allocation19 + $0x440] ss:$16 sps:$4 sm:$0xff]   ;;  %v16043_v53 = vld [vmem:[#allocation19 + $0x448] ss:$16 sps:$4 sm:$0xff]  }
 0x9ea   : > { %12444 = vmatpush1.bf16.msra.mxu1 %v15962_v40  ;;  %12608 = vmatpush1.bf16.msra.mxu0 %v15965_v35  ;;  %v16051_v40 = vld [vmem:[#allocation19 + $0x46c] ss:$16 sps:$4 sm:$0xff]   ;;  %v16046_v35 = vld [vmem:[#allocation19 + $0x460] ss:$16 sps:$4 sm:$0xff]  }
 0x9eb   : > { %12445 = vmatprep.subr.bf16.mxu1 %v15970_v55  ;;  %12609 = vmatprep.subr.bf16.mxu0 %v15973_v51  ;;  %v16049_v55 = vld [vmem:[#allocation19 + $0x468] ss:$16 sps:$4 sm:$0xff]   ;;  %v16054_v51 = vld [vmem:[#allocation19 + $0x484] ss:$16 sps:$4 sm:$0xff]  }
 0x9ee   : > { %12446 = vmatpush1.bf16.msra.mxu1 %v15968_v57  ;;  %12610 = vmatpush1.bf16.msra.mxu0 %v15971_v60  ;;  %v16057_v57 = vld [vmem:[#allocation19 + $0x48c] ss:$16 sps:$4 sm:$0xff]   ;;  %v16052_v60 = vld [vmem:[#allocation19 + $0x480] ss:$16 sps:$4 sm:$0xff]  }
 0x9ef   : > { %12447 = vmatprep.subr.bf16.mxu1 %v15976_v3  ;;  %12611 = vmatprep.subr.bf16.mxu0 %v15979_v5  ;;  %v16055_v3 = vld [vmem:[#allocation19 + $0x488] ss:$16 sps:$4 sm:$0xff]   ;;  %v16060_v5 = vld [vmem:[#allocation19 + $0x4a4] ss:$16 sps:$4 sm:$0xff]  }
 0x9f2   : > { %12448 = vmatpush1.bf16.msra.mxu1 %v15974_v42  ;;  %12612 = vmatpush1.bf16.msra.mxu0 %v15977_v27  ;;  %v16063_v42 = vld [vmem:[#allocation19 + $0x4ac] ss:$16 sps:$4 sm:$0xff]   ;;  %v16058_v27 = vld [vmem:[#allocation19 + $0x4a0] ss:$16 sps:$4 sm:$0xff]  }
 0x9f3   : > { %12449 = vmatprep.subr.bf16.mxu1 %v15982_v30  ;;  %12613 = vmatprep.subr.bf16.mxu0 %v15985_v58  ;;  %v16061_v30 = vld [vmem:[#allocation19 + $0x4a8] ss:$16 sps:$4 sm:$0xff]   ;;  %v16066_v58 = vld [vmem:[#allocation19 + $0x4c4] ss:$16 sps:$4 sm:$0xff]  }
 0x9f6   : > { %12450 = vmatpush1.bf16.msra.mxu1 %v15980_v31  ;;  %12614 = vmatpush1.bf16.msra.mxu0 %v15983_v36  ;;  %v16069_v31 = vld [vmem:[#allocation19 + $0x4cc] ss:$16 sps:$4 sm:$0xff]   ;;  %v16064_v36 = vld [vmem:[#allocation19 + $0x4c0] ss:$16 sps:$4 sm:$0xff]  }
 0x9f7   : > { %12451 = vmatprep.subr.bf16.mxu1 %v15988_v52  ;;  %12615 = vmatprep.subr.bf16.mxu0 %v15991_v44  ;;  %v16067_v52 = vld [vmem:[#allocation19 + $0x4c8] ss:$16 sps:$4 sm:$0xff]   ;;  %v16072_v44 = vld [vmem:[#allocation19 + $0x4e4] ss:$16 sps:$4 sm:$0xff]  }
 0x9fa   : > { %12452 = vmatpush1.bf16.msra.mxu1 %v15986_v54  ;;  %12616 = vmatpush1.bf16.msra.mxu0 %v15989_v59  ;;  %v16075_v54 = vld [vmem:[#allocation19 + $0x4ec] ss:$16 sps:$4 sm:$0xff]   ;;  %v16070_v59 = vld [vmem:[#allocation19 + $0x4e0] ss:$16 sps:$4 sm:$0xff]  }
 0x9fb   : > { %12453 = vmatprep.subr.bf16.mxu1 %v15994_v61  ;;  %12617 = vmatprep.subr.bf16.mxu0 %v15997_v14  ;;  %v16073_v61 = vld [vmem:[#allocation19 + $0x4e8] ss:$16 sps:$4 sm:$0xff]   ;;  %v16078_v14 = vld [vmem:[#allocation19 + $0x504] ss:$16 sps:$4 sm:$0xff]  }
 0x9fe   : > { %12454 = vmatpush1.bf16.msra.mxu1 %v15992_v13  ;;  %12618 = vmatpush1.bf16.msra.mxu0 %v15995_v33  ;;  %v16081_v13 = vld [vmem:[#allocation19 + $0x50c] ss:$16 sps:$4 sm:$0xff]   ;;  %v16076_v33 = vld [vmem:[#allocation19 + $0x500] ss:$16 sps:$4 sm:$0xff]  }
 0x9ff   : > { %12455 = vmatprep.subr.bf16.mxu1 %v16000_v47  ;;  %12619 = vmatprep.subr.bf16.mxu0 %v16003_v1  ;;  %v16079_v47 = vld [vmem:[#allocation19 + $0x508] ss:$16 sps:$4 sm:$0xff]   ;;  %v16084_v1 = vld [vmem:[#allocation19 + $0x524] ss:$16 sps:$4 sm:$0xff]  }
 0xa02   : > { %12456 = vmatpush1.bf16.msra.mxu1 %v15998_v6  ;;  %12620 = vmatpush1.bf16.msra.mxu0 %v16001_v28  ;;  %v16087_v6 = vld [vmem:[#allocation19 + $0x52c] ss:$16 sps:$4 sm:$0xff]   ;;  %v16082_v28 = vld [vmem:[#allocation19 + $0x520] ss:$16 sps:$4 sm:$0xff]  }
 0xa03   : > { %12457 = vmatprep.subr.bf16.mxu1 %v16006_v62  ;;  %12621 = vmatprep.subr.bf16.mxu0 %v16009_v17  ;;  %v16085_v62 = vld [vmem:[#allocation19 + $0x528] ss:$16 sps:$4 sm:$0xff]   ;;  %v16090_v17 = vld [vmem:[#allocation19 + $0x544] ss:$16 sps:$4 sm:$0xff]  }
 0xa06   : > { %12458 = vmatpush1.bf16.msra.mxu1 %v16004_v43  ;;  %12622 = vmatpush1.bf16.msra.mxu0 %v16007_v37  ;;  %v16093_v43 = vld [vmem:[#allocation19 + $0x54c] ss:$16 sps:$4 sm:$0xff]   ;;  %v16088_v37 = vld [vmem:[#allocation19 + $0x540] ss:$16 sps:$4 sm:$0xff]  }
 0xa07   : > { %12459 = vmatprep.subr.bf16.mxu1 %v16012_v10  ;;  %12623 = vmatprep.subr.bf16.mxu0 %v16015_v46  ;;  %v16091_v10 = vld [vmem:[#allocation19 + $0x548] ss:$16 sps:$4 sm:$0xff]   ;;  %v16096_v46 = vld [vmem:[#allocation19 + $0x564] ss:$16 sps:$4 sm:$0xff]  }
 0xa0a   : > { %12460 = vmatpush1.bf16.msra.mxu1 %v16010_v56  ;;  %12624 = vmatpush1.bf16.msra.mxu0 %v16013_v21  ;;  %v16099_v56 = vld [vmem:[#allocation19 + $0x56c] ss:$16 sps:$4 sm:$0xff]   ;;  %v16094_v21 = vld [vmem:[#allocation19 + $0x560] ss:$16 sps:$4 sm:$0xff]  }
 0xa0b   : > { %12461 = vmatprep.subr.bf16.mxu1 %v16018_v48  ;;  %12625 = vmatprep.subr.bf16.mxu0 %v16021_v23  ;;  %v16097_v48 = vld [vmem:[#allocation19 + $0x568] ss:$16 sps:$4 sm:$0xff]   ;;  %v16102_v23 = vld [vmem:[#allocation19 + $0x584] ss:$16 sps:$4 sm:$0xff]  }
 0xa0e   : > { %12462 = vmatpush1.bf16.msra.mxu1 %v16016_v34  ;;  %12626 = vmatpush1.bf16.msra.mxu0 %v16019_v7  ;;  %v16105_v34 = vld [vmem:[#allocation19 + $0x58c] ss:$16 sps:$4 sm:$0xff]   ;;  %v16100_v7 = vld [vmem:[#allocation19 + $0x580] ss:$16 sps:$4 sm:$0xff]  }
 0xa0f   : > { %12463 = vmatprep.subr.bf16.mxu1 %v16024_v18  ;;  %12627 = vmatprep.subr.bf16.mxu0 %v16027_v49  ;;  %v16103_v18 = vld [vmem:[#allocation19 + $0x588] ss:$16 sps:$4 sm:$0xff]   ;;  %v16108_v49 = vld [vmem:[#allocation19 + $0x5a4] ss:$16 sps:$4 sm:$0xff]  }
 0xa12   : > { %12464 = vmatpush1.bf16.msra.mxu1 %v16022_v16  ;;  %12628 = vmatpush1.bf16.msra.mxu0 %v16025_v38  ;;  %v16111_v16 = vld [vmem:[#allocation19 + $0x5ac] ss:$16 sps:$4 sm:$0xff]   ;;  %v16106_v38 = vld [vmem:[#allocation19 + $0x5a0] ss:$16 sps:$4 sm:$0xff]  }
 0xa13   : > { %12474 = vmatprep.subr.bf16.mxu1 %v16030_v11  ;;  %12638 = vmatprep.subr.bf16.mxu0 %v16033_v26  ;;  %v16109_v11 = vld [vmem:[#allocation19 + $0x5a8] ss:$16 sps:$4 sm:$0xff]   ;;  %v16114_v26 = vld [vmem:[#allocation19 + $0x5c4] ss:$16 sps:$4 sm:$0xff]  }
 0xa15   : > { %12466 = vmatmul.mubr.bf16.vlgmr.msra.gmra.mrb[36].mxu1 %v10828_v8  ;;  %12630 = vmatmul.mubr.bf16.vlgmr.msra.gmra.mrb[36].mxu0 %v10828_v8  ;;  %v16112_v8 = vld [vmem:[#allocation19 + $0x5c0] ss:$16 sps:$4 sm:$0xff]  }
 0xa16   : > { %12475 = vmatpush1.bf16.msra.mxu1 %v16028_v29  ;;  %12506 = vmatprep.mubr.bf16.mxu1 %v10831_v0  ;;  %v16117_v29 = vld [vmem:[#allocation19 + $0x5cc] ss:$16 sps:$4 sm:$0xff]  }
 0xa17   : > { %12639 = vmatpush1.bf16.msra.mxu0 %v16031_v4  ;;  %12670 = vmatprep.mubr.bf16.mxu0 %v10831_v0  ;;  %v16115_v4 = vld [vmem:[#allocation19 + $0x5c8] ss:$16 sps:$4 sm:$0xff]   ;;  %v16120_v0 = vld [vmem:[#allocation19 + $0x5e4] ss:$16 sps:$4 sm:$0xff]  }
 0xa18   : > { %12476 = vmatprep.subr.bf16.mxu1 %v16036_v2  ;;  %12640 = vmatprep.subr.bf16.mxu0 %v16039_v25  ;;  %v16123_v2 = vld [vmem:[#allocation19 + $0x5ec] ss:$16 sps:$4 sm:$0xff]   ;;  %v16118_v25 = vld [vmem:[#allocation19 + $0x5e0] ss:$16 sps:$4 sm:$0xff]  }
 0xa1a   : > { %12477 = vmatpush1.bf16.msra.mxu1 %v16034_v24  ;;  %v16121_v24 = vld [vmem:[#allocation19 + $0x5e8] ss:$16 sps:$4 sm:$0xff]  }
 0xa1b   : > { %12641 = vmatpush1.bf16.msra.mxu0 %v16037_v12  ;;  %12478 = vmatprep.subr.bf16.mxu1 %v16042_v41  ;;  %v16126_v12 = vld [vmem:[#allocation19 + $0x604] ss:$16 sps:$4 sm:$0xff]   ;;  %v16129_v41 = vld [vmem:[#allocation19 + $0x60c] ss:$16 sps:$4 sm:$0xff]  }
 0xa1c   : > { %12642 = vmatprep.subr.bf16.mxu0 %v16045_v50  ;;  %v16124_v50 = vld [vmem:[#allocation19 + $0x600] ss:$16 sps:$4 sm:$0xff]  }
 0xa1e   : > { %12479 = vmatpush1.bf16.msra.mxu1 %v16040_v39  ;;  %v10830_v39 = vpack.c.bf16 %v17838_v15, %v17838_v15  ;;  %v16141_v15 = vld [vmem:[#allocation19 + $0x64c] ss:$16 sps:$4 sm:$0xff]  }
 0xa1f   : > { %12643 = vmatpush1.bf16.msra.mxu0 %v16043_v53  ;;  %12480 = vmatprep.subr.bf16.mxu1 %v16048_v19  ;;  %v16127_v53 = vld [vmem:[#allocation19 + $0x608] ss:$16 sps:$4 sm:$0xff]   ;;  %v16132_v19 = vld [vmem:[#allocation19 + $0x624] ss:$16 sps:$4 sm:$0xff]  }
 0xa20   : > { %12644 = vmatprep.subr.bf16.mxu0 %v16051_v40  ;;  %v10833_v40 = vpack.c.bf16 %v17844_v22, %v17844_v22  ;;  %v16147_v22 = vld [vmem:[#allocation19 + $0x66c] ss:$16 sps:$4 sm:$0xff]  }
 0xa22   : > { %12481 = vmatpush1.bf16.msra.mxu1 %v16046_v35  ;;  %v16135_v35 = vld [vmem:[#allocation19 + $0x62c] ss:$16 sps:$4 sm:$0xff]  }
 0xa23   : > { %12645 = vmatpush1.bf16.msra.mxu0 %v16049_v55  ;;  %12482 = vmatprep.subr.bf16.mxu1 %v16054_v51  ;;  %v16130_v55 = vld [vmem:[#allocation19 + $0x620] ss:$16 sps:$4 sm:$0xff]   ;;  %v16133_v51 = vld [vmem:[#allocation19 + $0x628] ss:$16 sps:$4 sm:$0xff]  }
 0xa24   : > { %12646 = vmatprep.subr.bf16.mxu0 %v16057_v57  ;;  %v16138_v57 = vld [vmem:[#allocation19 + $0x644] ss:$16 sps:$4 sm:$0xff]  }
 0xa26   : > { %12483 = vmatpush1.bf16.msra.mxu1 %v16052_v60  ;;  %v16136_v60 = vld [vmem:[#allocation19 + $0x640] ss:$16 sps:$4 sm:$0xff]  }
 0xa27   : > { %12647 = vmatpush1.bf16.msra.mxu0 %v16055_v3  ;;  %12484 = vmatprep.subr.bf16.mxu1 %v16060_v5  ;;  %v16139_v3 = vld [vmem:[#allocation19 + $0x648] ss:$16 sps:$4 sm:$0xff]   ;;  %v16144_v5 = vld [vmem:[#allocation19 + $0x664] ss:$16 sps:$4 sm:$0xff]  }
 0xa28   : > { %12648 = vmatprep.subr.bf16.mxu0 %v16063_v42  ;;  %v16142_v42 = vld [vmem:[#allocation19 + $0x660] ss:$16 sps:$4 sm:$0xff]  }
 0xa2a   : > { %12485 = vmatpush1.bf16.msra.mxu1 %v16058_v27  ;;  %v16145_v27 = vld [vmem:[#allocation19 + $0x668] ss:$16 sps:$4 sm:$0xff]  }
 0xa2b   : > { %12649 = vmatpush1.bf16.msra.mxu0 %v16061_v30  ;;  %12486 = vmatprep.subr.bf16.mxu1 %v16066_v58  ;;  %v16150_v30 = vld [vmem:[#allocation19 + $0x684] ss:$16 sps:$4 sm:$0xff]   ;;  %v16153_v58 = vld [vmem:[#allocation19 + $0x68c] ss:$16 sps:$4 sm:$0xff]  }
 0xa2c   : > { %12650 = vmatprep.subr.bf16.mxu0 %v16069_v31  ;;  %v16148_v31 = vld [vmem:[#allocation19 + $0x680] ss:$16 sps:$4 sm:$0xff]  }
 0xa2e   : > { %12487 = vmatpush1.bf16.msra.mxu1 %v16064_v36  ;;  %v16151_v36 = vld [vmem:[#allocation19 + $0x688] ss:$16 sps:$4 sm:$0xff]  }
 0xa2f   : > { %12651 = vmatpush1.bf16.msra.mxu0 %v16067_v52  ;;  %12488 = vmatprep.subr.bf16.mxu1 %v16072_v44  ;;  %v16156_v52 = vld [vmem:[#allocation19 + $0x6a4] ss:$16 sps:$4 sm:$0xff]   ;;  %v16159_v44 = vld [vmem:[#allocation19 + $0x6ac] ss:$16 sps:$4 sm:$0xff]  }
 0xa30   : > { %12652 = vmatprep.subr.bf16.mxu0 %v16075_v54  ;;  %v16154_v54 = vld [vmem:[#allocation19 + $0x6a0] ss:$16 sps:$4 sm:$0xff]  }
 0xa32   : > { %12489 = vmatpush1.bf16.msra.mxu1 %v16070_v59  ;;  %v16157_v59 = vld [vmem:[#allocation19 + $0x6a8] ss:$16 sps:$4 sm:$0xff]  }
 0xa33   : > { %12653 = vmatpush1.bf16.msra.mxu0 %v16073_v61  ;;  %12490 = vmatprep.subr.bf16.mxu1 %v16078_v14  ;;  %v16162_v61 = vld [vmem:[#allocation19 + $0x6c4] ss:$16 sps:$4 sm:$0xff]   ;;  %v16165_v14 = vld [vmem:[#allocation19 + $0x6cc] ss:$16 sps:$4 sm:$0xff]  }
 0xa34   : > { %12654 = vmatprep.subr.bf16.mxu0 %v16081_v13  ;;  %v16160_v13 = vld [vmem:[#allocation19 + $0x6c0] ss:$16 sps:$4 sm:$0xff]  }
 0xa36   : > { %12491 = vmatpush1.bf16.msra.mxu1 %v16076_v33  ;;  %v16163_v33 = vld [vmem:[#allocation19 + $0x6c8] ss:$16 sps:$4 sm:$0xff]  }
 0xa37   : > { %12655 = vmatpush1.bf16.msra.mxu0 %v16079_v47  ;;  %12492 = vmatprep.subr.bf16.mxu1 %v16084_v1  ;;  %v16168_v47 = vld [vmem:[#allocation19 + $0x6e4] ss:$16 sps:$4 sm:$0xff]   ;;  %v16171_v1 = vld [vmem:[#allocation19 + $0x6ec] ss:$16 sps:$4 sm:$0xff]  }
 0xa38   : > { %12656 = vmatprep.subr.bf16.mxu0 %v16087_v6  ;;  %v16166_v6 = vld [vmem:[#allocation19 + $0x6e0] ss:$16 sps:$4 sm:$0xff]  }
 0xa3a   : > { %12493 = vmatpush1.bf16.msra.mxu1 %v16082_v28  ;;  %v16169_v28 = vld [vmem:[#allocation19 + $0x6e8] ss:$16 sps:$4 sm:$0xff]  }
 0xa3b   : > { %12657 = vmatpush1.bf16.msra.mxu0 %v16085_v62  ;;  %12494 = vmatprep.subr.bf16.mxu1 %v16090_v17  ;;  %v16174_v62 = vld [vmem:[#allocation19 + $0x704] ss:$16 sps:$4 sm:$0xff]   ;;  %v16177_v17 = vld [vmem:[#allocation19 + $0x70c] ss:$16 sps:$4 sm:$0xff]  }
 0xa3c   : > { %12658 = vmatprep.subr.bf16.mxu0 %v16093_v43  ;;  %v16172_v43 = vld [vmem:[#allocation19 + $0x700] ss:$16 sps:$4 sm:$0xff]  }
 0xa3e   : > { %12495 = vmatpush1.bf16.msra.mxu1 %v16088_v37  ;;  %v16175_v37 = vld [vmem:[#allocation19 + $0x708] ss:$16 sps:$4 sm:$0xff]  }
 0xa3f   : > { %12659 = vmatpush1.bf16.msra.mxu0 %v16091_v10  ;;  %12496 = vmatprep.subr.bf16.mxu1 %v16096_v46  ;;  %v16180_v10 = vld [vmem:[#allocation19 + $0x724] ss:$16 sps:$4 sm:$0xff]   ;;  %v16183_v46 = vld [vmem:[#allocation19 + $0x72c] ss:$16 sps:$4 sm:$0xff]  }
 0xa40   : > { %12660 = vmatprep.subr.bf16.mxu0 %v16099_v56  ;;  %v16178_v56 = vld [vmem:[#allocation19 + $0x720] ss:$16 sps:$4 sm:$0xff]  }
 0xa42   : > { %12497 = vmatpush1.bf16.msra.mxu1 %v16094_v21  ;;  %v16181_v21 = vld [vmem:[#allocation19 + $0x728] ss:$16 sps:$4 sm:$0xff]  }
 0xa43   : > { %12661 = vmatpush1.bf16.msra.mxu0 %v16097_v48  ;;  %12498 = vmatprep.subr.bf16.mxu1 %v16102_v23  ;;  %v16186_v48 = vld [vmem:[#allocation19 + $0x744] ss:$16 sps:$4 sm:$0xff]   ;;  %v16189_v23 = vld [vmem:[#allocation19 + $0x74c] ss:$16 sps:$4 sm:$0xff]  }
 0xa44   : > { %12662 = vmatprep.subr.bf16.mxu0 %v16105_v34  ;;  %v16184_v34 = vld [vmem:[#allocation19 + $0x740] ss:$16 sps:$4 sm:$0xff]  }
 0xa46   : > { %12499 = vmatpush1.bf16.msra.mxu1 %v16100_v7  ;;  %v16187_v7 = vld [vmem:[#allocation19 + $0x748] ss:$16 sps:$4 sm:$0xff]  }
 0xa47   : > { %12663 = vmatpush1.bf16.msra.mxu0 %v16103_v18  ;;  %12500 = vmatprep.subr.bf16.mxu1 %v16108_v49  ;;  %v16192_v18 = vld [vmem:[#allocation19 + $0x764] ss:$16 sps:$4 sm:$0xff]   ;;  %v16195_v49 = vld [vmem:[#allocation19 + $0x76c] ss:$16 sps:$4 sm:$0xff]  }
 0xa48   : > { %12664 = vmatprep.subr.bf16.mxu0 %v16111_v16  ;;  %v16190_v16 = vld [vmem:[#allocation19 + $0x760] ss:$16 sps:$4 sm:$0xff]  }
 0xa4a   : > { %12501 = vmatpush1.bf16.msra.mxu1 %v16106_v38  ;;  %v16193_v38 = vld [vmem:[#allocation19 + $0x768] ss:$16 sps:$4 sm:$0xff]  }
 0xa4b   : > { %12665 = vmatpush1.bf16.msra.mxu0 %v16109_v11  ;;  %12502 = vmatprep.subr.bf16.mxu1 %v16114_v26  ;;  %v16198_v11 = vld [vmem:[#allocation19 + $0x784] ss:$16 sps:$4 sm:$0xff]   ;;  %v16201_v26 = vld [vmem:[#allocation19 + $0x78c] ss:$16 sps:$4 sm:$0xff]  }
 0xa4c   : > { %12666 = vmatprep.subr.bf16.mxu0 %v16117_v29  ;;  %v16196_v29 = vld [vmem:[#allocation19 + $0x780] ss:$16 sps:$4 sm:$0xff]  }
 0xa4e   : > { %12503 = vmatpush1.bf16.msra.mxu1 %v16112_v8  ;;  %v16199_v8 = vld [vmem:[#allocation19 + $0x788] ss:$16 sps:$4 sm:$0xff]  }
 0xa4f   : > { %12667 = vmatpush1.bf16.msra.mxu0 %v16115_v4  ;;  %12504 = vmatprep.subr.bf16.mxu1 %v16120_v0  ;;  %v16204_v4 = vld [vmem:[#allocation19 + $0x7a4] ss:$16 sps:$4 sm:$0xff]   ;;  %v16207_v0 = vld [vmem:[#allocation19 + $0x7ac] ss:$16 sps:$4 sm:$0xff]  }
 0xa50   : > { %12668 = vmatprep.subr.bf16.mxu0 %v16123_v2  ;;  %v16202_v2 = vld [vmem:[#allocation19 + $0x7a0] ss:$16 sps:$4 sm:$0xff]  }
 0xa52   : > { %12505 = vmatpush1.bf16.msra.mxu1 %v16118_v25  ;;  %v16205_v25 = vld [vmem:[#allocation19 + $0x7a8] ss:$16 sps:$4 sm:$0xff]  }
 0xa53   : > { %12669 = vmatpush1.bf16.msra.mxu0 %v16121_v24  ;;  %12515 = vmatprep.subr.bf16.mxu1 %v16126_v12  ;;  %v16210_v24 = vld [vmem:[#allocation19 + $0x7c4] ss:$16 sps:$4 sm:$0xff]   ;;  %v16213_v12 = vld [vmem:[#allocation19 + $0x7cc] ss:$16 sps:$4 sm:$0xff]  }
 0xa54   : > { %12679 = vmatprep.subr.bf16.mxu0 %v16129_v41  ;;  %v16208_v41 = vld [vmem:[#allocation19 + $0x7c0] ss:$16 sps:$4 sm:$0xff]  }
 0xa55   : > { %12507 = vmatmul.mubr.bf16.vlgmr.msra.gmra.mrb[36].mxu1 %v10830_v39 }
 0xa56   : > { %12671 = vmatmul.mubr.bf16.vlgmr.msra.gmra.mrb[36].mxu0 %v10830_v39  ;;  %12516 = vmatpush1.bf16.msra.mxu1 %v16124_v50  ;;  %v16211_v50 = vld [vmem:[#allocation19 + $0x7c8] ss:$16 sps:$4 sm:$0xff]   ;;  %v16216_v39 = vld [vmem:[#allocation19 + $0x7e4] ss:$16 sps:$4 sm:$0xff]  }
 0xa57   : > { %12547 = vmatprep.mubr.bf16.mxu1 %v10833_v40  ;;  %12680 = vmatpush1.bf16.msra.mxu0 %v16127_v53  ;;  %v16219_v53 = vld [vmem:[#allocation19 + $0x7ec] ss:$16 sps:$4 sm:$0xff]  }
 0xa58   : > { %12711 = vmatprep.mubr.bf16.mxu0 %v10833_v40  ;;  %12517 = vmatprep.subr.bf16.mxu1 %v16132_v19  ;;  %v16214_v19 = vld [vmem:[#allocation19 + $0x7e0] ss:$16 sps:$4 sm:$0xff]   ;;  %v16217_v40 = vld [vmem:[#allocation19 + $0x7e8] ss:$16 sps:$4 sm:$0xff]  }
 0xa59   : > { %12681 = vmatprep.subr.bf16.mxu0 %v16135_v35  ;;  %v16220_v35 = vld [vmem:[#allocation22 + $0x40] sm:$0xff]  }
 0xa5a   : > { %12518 = vmatpush1.bf16.msra.mxu1 %v16130_v55  ;;  %v16221_v55 = vld [vmem:[#allocation22 + $0xc0] sm:$0xff]  }
 0xa5b   : > { %12682 = vmatpush1.bf16.msra.mxu0 %v16133_v51  ;;  %12519 = vmatprep.subr.bf16.mxu1 %v16138_v57  ;;  %v16222_v51 = vld [vmem:[#allocation22] sm:$0xff]   ;;  %v10832_v57 = vpack.c.bf16 %v17840_v32, %v17840_v32  ;;  %v16231_v32 = vld [vmem:[#allocation22 + $0x90] sm:$0xff]  }
 0xa5c   : > { %12683 = vmatprep.subr.bf16.mxu0 %v16141_v15  ;;  %v16223_v15 = vld [vmem:[#allocation22 + $0x80] sm:$0xff]  }
 0xa5e   : > { %12520 = vmatpush1.bf16.msra.mxu1 %v16136_v60  ;;  %v16224_v60 = vld [vmem:[#allocation22 + $0x48] sm:$0xff]  }
 0xa5f   : > { %12684 = vmatpush1.bf16.msra.mxu0 %v16139_v3  ;;  %12521 = vmatprep.subr.bf16.mxu1 %v16144_v5  ;;  %v16225_v3 = vld [vmem:[#allocation22 + $0xc8] sm:$0xff]  }
 0xa60   : > { %12685 = vmatprep.subr.bf16.mxu0 %v16147_v22  ;;  %v16226_v5 = vld [vmem:[#allocation22 + $0x8] sm:$0xff]  }
 0xa61   : > { %v16227_v22 = vld [vmem:[#allocation22 + $0x88] sm:$0xff]  }
 0xa62   : > { %12522 = vmatpush1.bf16.msra.mxu1 %v16142_v42  ;;  %v16228_v42 = vld [vmem:[#allocation22 + $0x50] sm:$0xff]  }
 0xa63   : > { %12686 = vmatpush1.bf16.msra.mxu0 %v16145_v27  ;;  %12523 = vmatprep.subr.bf16.mxu1 %v16150_v30  ;;  %v16229_v27 = vld [vmem:[#allocation22 + $0xd0] sm:$0xff]  }
 0xa64   : > { %12687 = vmatprep.subr.bf16.mxu0 %v16153_v58  ;;  %v16230_v30 = vld [vmem:[#allocation22 + $0x10] sm:$0xff]   ;;  %v16232_v58 = vld [vmem:[#allocation22 + $0x58] sm:$0xff]  }
 0xa66   : > { %12524 = vmatpush1.bf16.msra.mxu1 %v16148_v31  ;;  %v16233_v31 = vld [vmem:[#allocation22 + $0xd8] sm:$0xff]  }
 0xa67   : > { %12688 = vmatpush1.bf16.msra.mxu0 %v16151_v36  ;;  %12525 = vmatprep.subr.bf16.mxu1 %v16156_v52  ;;  %v16234_v36 = vld [vmem:[#allocation22 + $0x18] sm:$0xff]  }
 0xa68   : > { %12689 = vmatprep.subr.bf16.mxu0 %v16159_v44  ;;  %v16235_v52 = vld [vmem:[#allocation22 + $0x98] sm:$0xff]   ;;  %v16236_v44 = vld [vmem:[#allocation22 + $0x60] sm:$0xff]  }
 0xa6a   : > { %12526 = vmatpush1.bf16.msra.mxu1 %v16154_v54  ;;  %v16237_v54 = vld [vmem:[#allocation22 + $0xe0] sm:$0xff]  }
 0xa6b   : > { %12690 = vmatpush1.bf16.msra.mxu0 %v16157_v59  ;;  %12527 = vmatprep.subr.bf16.mxu1 %v16162_v61  ;;  %v16238_v59 = vld [vmem:[#allocation22 + $0x20] sm:$0xff]  }
 0xa6c   : > { %12691 = vmatprep.subr.bf16.mxu0 %v16165_v14  ;;  %v16239_v61 = vld [vmem:[#allocation22 + $0xa0] sm:$0xff]   ;;  %v16240_v14 = vld [vmem:[#allocation22 + $0x68] sm:$0xff]  }
 0xa6e   : > { %12528 = vmatpush1.bf16.msra.mxu1 %v16160_v13  ;;  %v16241_v13 = vld [vmem:[#allocation22 + $0xe8] sm:$0xff]  }
 0xa6f   : > { %12692 = vmatpush1.bf16.msra.mxu0 %v16163_v33  ;;  %12529 = vmatprep.subr.bf16.mxu1 %v16168_v47  ;;  %v16242_v33 = vld [vmem:[#allocation22 + $0x28] sm:$0xff]  }
 0xa70   : > { %12693 = vmatprep.subr.bf16.mxu0 %v16171_v1  ;;  %v16243_v47 = vld [vmem:[#allocation22 + $0xa8] sm:$0xff]   ;;  %v16244_v1 = vld [vmem:[#allocation22 + $0x70] sm:$0xff]  }
 0xa72   : > { %12530 = vmatpush1.bf16.msra.mxu1 %v16166_v6  ;;  %v16245_v6 = vld [vmem:[#allocation22 + $0xf0] sm:$0xff]  }
 0xa73   : > { %12694 = vmatpush1.bf16.msra.mxu0 %v16169_v28  ;;  %12531 = vmatprep.subr.bf16.mxu1 %v16174_v62  ;;  %v16246_v28 = vld [vmem:[#allocation22 + $0x30] sm:$0xff]  }
 0xa74   : > { %12695 = vmatprep.subr.bf16.mxu0 %v16177_v17  ;;  %v16247_v62 = vld [vmem:[#allocation22 + $0xb0] sm:$0xff]   ;;  %v16248_v17 = vld [vmem:[#allocation22 + $0x78] sm:$0xff]  }
 0xa76   : > { %12532 = vmatpush1.bf16.msra.mxu1 %v16172_v43  ;;  %v16249_v43 = vld [vmem:[#allocation22 + $0xf8] sm:$0xff]  }
 0xa77   : > { %12696 = vmatpush1.bf16.msra.mxu0 %v16175_v37  ;;  %12533 = vmatprep.subr.bf16.mxu1 %v16180_v10  ;;  %v16250_v37 = vld [vmem:[#allocation22 + $0x38] sm:$0xff]  }
 0xa78   : > { %12697 = vmatprep.subr.bf16.mxu0 %v16183_v46  ;;  %v16251_v10 = vld [vmem:[#allocation22 + $0xb8] sm:$0xff]  }
 0xa79   : > { %v11090_v46 = vld [vmem:[#allocation20] sm:$0xf] }
 0xa7a   : > { %12534 = vmatpush1.bf16.msra.mxu1 %v16178_v56  ;;  %v12375_v56 = vrot.slane %v11090_v46, %v17549_v20 }
 0xa7b   : > { %12698 = vmatpush1.bf16.msra.mxu0 %v16181_v21  ;;  %12535 = vmatprep.subr.bf16.mxu1 %v16186_v48  ;;  %v12383_v21 = vrot.slane %v11090_v46, %v17617_v9  ;;  %v12379_v48 = vrot.slane %v11090_v46, %v17552_v45 }
 0xa7c   : > { %12699 = vmatprep.subr.bf16.mxu0 %v16189_v23  ;;  %v12387_v23 = vrot.slane %v11090_v46, %v17620_v63 }
 0xa7e   : > { %12536 = vmatpush1.bf16.msra.mxu1 %v16184_v34 }
 0xa7f   : > { %12700 = vmatpush1.bf16.msra.mxu0 %v16187_v7  ;;  %12537 = vmatprep.subr.bf16.mxu1 %v16192_v18 }
 0xa80   : > { %12701 = vmatprep.subr.bf16.mxu0 %v16195_v49 }
 0xa82   : > { %12538 = vmatpush1.bf16.msra.mxu1 %v16190_v16 }
 0xa83   : > { %12702 = vmatpush1.bf16.msra.mxu0 %v16193_v38  ;;  %12539 = vmatprep.subr.bf16.mxu1 %v16198_v11 }
 0xa84   : > { %12703 = vmatprep.subr.bf16.mxu0 %v16201_v26 }
 0xa86   : > { %12540 = vmatpush1.bf16.msra.mxu1 %v16196_v29 }
 0xa87   : > { %12704 = vmatpush1.bf16.msra.mxu0 %v16199_v8  ;;  %12541 = vmatprep.subr.bf16.mxu1 %v16204_v4 }
 0xa88   : > { %12705 = vmatprep.subr.bf16.mxu0 %v16207_v0 }
 0xa8a   : > { %12542 = vmatpush1.bf16.msra.mxu1 %v16202_v2 }
 0xa8b   : > { %12706 = vmatpush1.bf16.msra.mxu0 %v16205_v25  ;;  %12543 = vmatprep.subr.bf16.mxu1 %v16210_v24 }
 0xa8c   : > { %12707 = vmatprep.subr.bf16.mxu0 %v16213_v12 }
 0xa8e   : > { %12544 = vmatpush1.bf16.msra.mxu1 %v16208_v41 }
 0xa8f   : > { %12708 = vmatpush1.bf16.msra.mxu0 %v16211_v50  ;;  %12545 = vmatprep.subr.bf16.mxu1 %v16216_v39  ;;  %v12792_v39 = vld [vmem:[#allocation23] sm:$0x1] }
 0xa90   : > { %12709 = vmatprep.subr.bf16.mxu0 %v16219_v53 }
 0xa92   : > { %12546 = vmatpush1.bf16.msra.mxu1 %v16214_v19 }
 0xa93   : > { %12710 = vmatpush1.bf16.msra.mxu0 %v16217_v40  ;;  %14920 = vmatprep.subr.bf16.mxu1 %v16220_v35 }
 0xa94   : > { %14942 = vmatprep.subr.bf16.mxu0 %v16221_v55 }
 0xa95   : > { %12548 = vmatmul.mubr.bf16.vlgmr.msra.gmra.mrb[36].mxu1 %v10832_v57 }
 0xa96   : > { %12712 = vmatmul.mubr.bf16.vlgmr.msra.gmra.mrb[36].mxu0 %v10832_v57  ;;  %14921 = vmatpush3.bf16.msra.mxu1 %v16222_v51 }
 0xa97   : > { %14943 = vmatpush3.bf16.msra.mxu0 %v16223_v15  ;;  %14922 = vmatprep.subr.bf16.mxu1 %v16224_v60 }
 0xa98   : > { %14944 = vmatprep.subr.bf16.mxu0 %v16225_v3 }
 0xa9a   : > { %14923 = vmatpush3.bf16.msra.mxu1 %v16226_v5 }
 0xa9b   : > { %14945 = vmatpush3.bf16.msra.mxu0 %v16227_v22  ;;  %14924 = vmatprep.subr.bf16.mxu1 %v16228_v42 }
 0xa9c   : > { %14946 = vmatprep.subr.bf16.mxu0 %v16229_v27 }
 0xa9e   : > { %14925 = vmatpush3.bf16.msra.mxu1 %v16230_v30 }
 0xa9f   : > { %14947 = vmatpush3.bf16.msra.mxu0 %v16231_v32  ;;  %14926 = vmatprep.subr.bf16.mxu1 %v16232_v58 }
 0xaa0   : > { %14948 = vmatprep.subr.bf16.mxu0 %v16233_v31 }
 0xaa2   : > { %14927 = vmatpush3.bf16.msra.mxu1 %v16234_v36 }
 0xaa3   : > { %14949 = vmatpush3.bf16.msra.mxu0 %v16235_v52  ;;  %14928 = vmatprep.subr.bf16.mxu1 %v16236_v44 }
 0xaa4   : > { %14950 = vmatprep.subr.bf16.mxu0 %v16237_v54 }
 0xaa6   : > { %14929 = vmatpush3.bf16.msra.mxu1 %v16238_v59 }
 0xaa7   : > { %14951 = vmatpush3.bf16.msra.mxu0 %v16239_v61  ;;  %14930 = vmatprep.subr.bf16.mxu1 %v16240_v14 }
 0xaa8   : > { %14952 = vmatprep.subr.bf16.mxu0 %v16241_v13 }
 0xaaa   : > { %14931 = vmatpush3.bf16.msra.mxu1 %v16242_v33 }
 0xaab   : > { %14953 = vmatpush3.bf16.msra.mxu0 %v16243_v47  ;;  %14932 = vmatprep.subr.bf16.mxu1 %v16244_v1 }
 0xaac   : > { %14954 = vmatprep.subr.bf16.mxu0 %v16245_v6 }
 0xaae   : > { %14933 = vmatpush3.bf16.msra.mxu1 %v16246_v28 }
 0xaaf   : > { %14955 = vmatpush3.bf16.msra.mxu0 %v16247_v62  ;;  %14934 = vmatprep.subr.bf16.mxu1 %v16248_v17 }
 0xab0   : > { %14956 = vmatprep.subr.bf16.mxu0 %v16249_v43 }
 0xab2   : > { %14935 = vmatpush3.bf16.msra.mxu1 %v16250_v37 }
 0xab3   : > { %14957 = vmatpush3.bf16.msra.mxu0 %v16251_v10 }
 0xb68   : > { %v12549_v34 = vpop.f32.mrb[36].mxu1 }
 0xb69   : > { %v15044_v7 = vadd.f32 %v12549_v34, %v12375_v56  ;;  %v12713_v18 = vpop.f32.mrb[36].mxu0  ;;  %v12551_v49 = vpop.f32.mrb[37].mxu1 }
 0xb6a   : > { %v15046_v16 = vadd.f32 %v12713_v18, %v12383_v21  ;;  %v15045_v38 = vadd.f32 %v12551_v49, %v12379_v48  ;;  %v12715_v11 = vpop.f32.mrb[37].mxu0  ;;  %v12553_v26 = vpop.f32.mrb[38].mxu1 }
 0xb6b   : > { %v12720_v29 = vmax.f32 %v15044_v7, 0.0  ;;  %v15047_v8 = vadd.f32 %v12715_v11, %v12387_v23  ;;  %v12717_v4 = vpop.f32.mrb[38].mxu0  ;;  %v12554_v0 = vpop.f32.mrb[39].mxu1 }
 0xb6c   : > { %v12722_v2 = vmax.f32 %v15046_v16, 0.0  ;;  %v12721_v20 = vmax.f32 %v15045_v38, 0.0  ;;  %v12718_v25 = vpop.f32.mrb[39].mxu0 }
 0xb6d   : > { %v12723_v9 = vmax.f32 %v15047_v8, 0.0  ;;  %v12724_v45 = vpack.c.bf16 %v12720_v29, %v12720_v29 }
 0xb6e   : > { %v12725_v24 = vpack.c.bf16 %v12721_v20, %v12721_v20  ;;  %v12726_v63 = vpack.c.bf16 %v12722_v2, %v12722_v2 }
 0xb6f   : > { %v12727_v12 = vpack.c.bf16 %v12723_v9, %v12723_v9 }
 0xb70   : > { %13017 = vmatprep.mubr.bf16.mxu1 %v12725_v24 }
 0xb71   : > { %13057 = vmatprep.mubr.bf16.mxu0 %v12727_v12  ;;  %13018 = vmatmul.mubr.bf16.vlgmr.msra.gmra.mrb[40].mxu1 %v12724_v45 }
 0xb72   : > { %13058 = vmatmul.mubr.bf16.vlgmr.msra.gmra.mrb[40].mxu0 %v12726_v63 }
 0xc44   : > { %v14936_v41 = vpop.f32.mrb[40].mxu1 }
 0xc45   : > { %v14958_v50 = vpop.f32.mrb[40].mxu0  ;;  %v14937_v53 = vpop.f32.mrb[41].mxu1 }
 0xc46   : > { %v14938_v19 = vadd.f32 %v14937_v53, %v14936_v41  ;;  %v14959_v40 = vpop.f32.mrb[41].mxu0  ;;  %v14939_v35 = vpop.f32.mrb[42].mxu1 }
 0xc47   : > { %v14960_v55 = vadd.f32 %v14959_v40, %v14958_v50  ;;  %v14961_v51 = vpop.f32.mrb[42].mxu0  ;;  %v14940_v57 = vpop.f32.mrb[43].mxu1 }
 0xc48   : > { %v13020_v15 = vadd.f32 %v14938_v19, %v12792_v39  ;;  %v14962_v60 = vpop.f32.mrb[43].mxu0 }
 0xc4a   : > { %v13060_v3 = vadd.f32 %v14960_v55, %v13020_v15 }
 0xc4c   : > { %v13065_v5 = vmax.f32 %v13060_v3, 0.0 }
 0xc4e   : > { %13066 = vst [vmem:[%s684_s29] sm:$0x1] %v13065_v5 }
 0xc4f   : > { %16677 = shalt.err (!%p16674_p2)
}
 0xc50   : > { %s16678_s18 = scalar_lea.hbm %s17865_s1, 16  ;;  %s16682_s5 = scalar_lea.hbm %s17996_s27, 32 }
 0xc51   : > { %p16679_p4 = scmp.ne.s32.totalorder %s17865_s1, %s16678_s18  ;;  %p16683_p7 = scmp.lt.u32.totalorder %s17865_s1, %s17996_s27 }
 0xc52   : > { %p16684_p9 = scmp.lt.u32.totalorder %s16682_s5, %s16678_s18  ;;  %p16686_p11 = scmp.lt.u32.totalorder %s16678_s18, %s17865_s1 }
 0xc53   : > { %p16680_p10 = pnand %p16679_p4, %p17997_p0 }
 0xc54   : > { %p16685_p8 = por %p16684_p9, %p16683_p7 }
 0xc55   : > { %p16681_p5 = pneg %p16680_p10 }
 0xc56   : > { %p16687_p12 = por %p16686_p11, %p16685_p8 }
 0xc58   : > { %p16688_p13 = pnand %p16687_p12, %p16681_p5 }
 0xc5a   : > { %16691 = shalt.err (!%p16688_p13)
}
 0xc5b   : > { %15307 = dma.vmem_to_hbm [thread:$0]  (%p17997_p0), %s17867_s22, 16, %s17865_s1, %s13068_s20  }
 0xc5c PF: > { %s17998_s3 = sld [smem:[#allocation36_spill]]  ;;  %p17999_p1 = scmp.ne.s32.totalorder %s17967_s2, 0 }
 0xc5d   : > { %p18000_p3 = scmp.ge.s32.totalorder %s16762_s16, 2 }
 0xc5f   : > { %p15354_p6 = pnand %p18000_p3, %p17999_p1 }
 0xc62   : > { %s13092_s7 = sand.u32 1, %s17998_s3  }
 0xc63   : > { %s13093_s26 = scalar_lea.sflag [#allocation4], %s13092_s7 }
 0xc64   : > { %16745 = dma.done.wait (!%p15354_p6), %s13093_s26, 16  }
 0xc65   : > { %16747 = vsyncadd (!%p15354_p6), %s13093_s26, 4294967280  ;;  %p36_p2 = scmp.ge.s32.totalorder %s17159_s23, 4   ;;  %s18001_s29 = smov %s16754_s30 }
 0xc66   : > { %s18002_s30 = smov %s16758_s15  ;;  %s18003_s15 = smov %s17170_s14 }
 0xc67   : > { %s18004_s16 = smov %s17159_s23  ;;  %38 = sbr.rel (!%p36_p2) target bundleno = 23 (0x17), region = 182 }
 0xc6e   :  { %13097 = vsyncpa [#allocation3], 1 }
 0xc6f   :  { %13099 = vsyncpa [#allocation3 + $0x1], 1 }
 0xc70   :  { %13100 = vsyncpa [#allocation6], 1 }
 0xc71   :  { %13102 = vsyncpa [#allocation6 + $0x1], 1 }
 0xc72   :  { %13103 = vsyncpa [#allocation9], 1 }
 0xc73   :  { %13104 = vsyncpa [#allocation12], 1 }
 0xc74   :  { %13105 = vsyncpa [#allocation15], 1 }
 0xc75   :  { %13106 = vsyncpa [#allocation18], 1 }
 0xc76   :  { %13107 = vsyncpa [#allocation21], 1 }
 0xc77   :  { %13108 = vsyncpa [#allocation24], 1 }
 0xc78   :  { %13109 = vsyncpa [#allocation4], 1 }
 0xc79   :  { %13111 = vsyncpa [#allocation4 + $0x1], 1 }

</bundles_post_ra>
